<compile_context>
chip_gen: v6e
topology: v6e:2x2x1
jax: 0.10.0
libtpu: 0.0.40
codegen_flags: <defaults>
</compile_context>

<pallas_src>
import numpy as np
import jax
import jax.numpy as jnp
from jax.experimental import pallas as pl
from jax.experimental.pallas import tpu as pltpu

# Keep the pure-JAX reference matmuls at full f32 accuracy so the comparison
# against the (f32-accurate) in-kernel MXU matmuls is meaningful on real TPUs.
jax.config.update("jax_default_matmul_precision", "highest")

# ---------------- config ----------------
B = 16             # batch
N = 16             # constant.ADJ_SIZE
EMB_DIM = 32
POS_DIM = 8
NER_DIM = 8
IN_DIM = EMB_DIM + POS_DIM + NER_DIM     # 48
HID = 32           # hidden_dim == mem_dim
NUM_LAYERS = 2
VOCAB = 50
N_POS = 10
N_NER = 6
NEG_INF = 1e12     # constant.INFINITY_NUMBER


def _tensorcores_per_chip() -> int:
    """Best-effort detection: v7x exposes 2 TensorCores/chip, earlier chips 1."""
    try:
        kind = jax.devices()[0].device_kind.lower()
    except Exception:
        return 1
    if "v7" in kind or "tpu7" in kind or "7x" in kind:
        return 2
    return 1


# v7x: split the tiny batch across its two TensorCores (grid=(2,), "parallel").
# v5e / v6e (single TC): one grid step with the whole batch, so the fixed
# per-step pipeline overhead is paid once and every matmul sees 256 sublanes.
BB = 8 if _tensorcores_per_chip() == 2 else 16   # sequences per grid step
ROWS = BB * N                                    # GCN rows per grid step (128/256)
AUX_LANES = 4 * HID                              # 128: [0:96] pool masks, [96:128] 1/denom

# packed weight-slab row offsets (all multiples of 8 -> cheap ref slices)
W0_OFF = 0
W1_OFF = IN_DIM                   # 48
WM_OFF = IN_DIM + HID             # 80
W_ROWS = IN_DIM + HID + 3 * HID   # 176

# TODO(synk): opt['rnn'] LSTM branch, dep_dim>0 adjacency re-weighting and
# train-mode dropout have no clean Pallas equivalent here; this implements the
# eval-mode, rnn=False, dep_dim=0 path exactly.


def gcn_relation_kernel(adj_ref, x_ref, aux_ref, w_ref, b_ref, out_ref):
    adj = adj_ref[...]                        # (ROWS, ROWS) block-diagonal adjacency
    h = x_ref[...]                            # (ROWS, IN_DIM) flattened embeddings
    mask_add = aux_ref[:, 0:3 * HID]          # (ROWS, 96) additive pool masks (0 / -1e12)
    inv_denom = aux_ref[:, 3 * HID:4 * HID]   # (ROWS, HID) 1/(deg+1), lane-replicated

    w0 = w_ref[W0_OFF:W0_OFF + IN_DIM, :]     # (IN_DIM, HID)
    w1 = w_ref[W1_OFF:W1_OFF + HID, :]        # (HID, HID)
    wm = w_ref[WM_OFF:WM_OFF + 3 * HID, :]    # (3*HID, HID)
    b0 = b_ref[0:1, :]
    b1 = b_ref[1:2, :]
    bm = b_ref[2:3, :]

    # GCN layers. Block-diagonal adj makes "adj.bmm(h)" one wide MXU matmul.
    # Self-loop folded: Ax@W + b + h@W + b == (Ax + h) @ W + 2b.
    for W, bvec in ((w0, b0), (w1, b1)):
        ax = jnp.dot(adj, h, preferred_element_type=jnp.float32)          # (ROWS, d)
        z = jnp.dot(ax + h, W, preferred_element_type=jnp.float32) + 2.0 * bvec
        h = jnp.maximum(z * inv_denom, 0.0)                               # (ROWS, HID)

    # Fused masked max-pool (sentence / subj / obj) in one add + one sublane
    # reduce.  Masked positions get h - 1e12, which rounds to exactly -1e12 in
    # f32 (|h| << ulp(1e12)), i.e. identical to masked_fill in the reference.
    h3 = jnp.concatenate([h, h, h], axis=-1)                              # (ROWS, 96)
    pooled = jnp.max((h3 + mask_add).reshape(BB, N, 3 * HID), axis=1)     # (BB, 96)

    # out_mlp: one (BB, 96) @ (96, 32) dot (concat already lane-contiguous).
    z = jnp.dot(pooled, wm, preferred_element_type=jnp.float32) + bm
    # Two offset sub-stores (no lane concat / relayout before the store).
    out_ref[:, 0:HID] = jnp.maximum(z, 0.0)        # out_mlp output
    out_ref[:, HID:2 * HID] = pooled[:, 0:HID]     # h_out (sentence pool)


def gcn_relation_forward(adj, x, subj_pos, obj_pos, w_all, b_all):
    G = B // BB

    # --- wrapper-side prep (tiny, all plain XLA glue) ---
    row = jnp.sum(adj, axis=2)                    # (B, N) = adj.sum(2)
    col = jnp.sum(adj, axis=1)                    # (B, N) = adj.sum(1)
    inv_denom = 1.0 / (row + 1.0)                 # (B, N)

    sent_m = ((row + col) == 0.0).astype(jnp.float32)   # isolated-node mask
    subj_m = (subj_pos != 0).astype(jnp.float32)         # subj_pos.eq(0).eq(0)
    obj_m = (obj_pos != 0).astype(jnp.float32)
    mask3 = jnp.stack([sent_m, subj_m, obj_m], axis=-1)               # (B, N, 3)
    mask_add = jnp.repeat(mask3, HID, axis=-1) * (-NEG_INF)           # (B, N, 96)
    invd_rep = jnp.broadcast_to(inv_denom[..., None], (B, N, HID))    # (B, N, 32)
    aux = jnp.concatenate([mask_add, invd_rep], axis=-1)              # (B, N, 128)
    aux_flat = aux.reshape(B * N, AUX_LANES)

    # Block-diagonal adjacency: rows [g*ROWS:(g+1)*ROWS] hold the BBxBB block
    # diagonal for group g -> one (ROWS, ROWS) @ (ROWS, d) matmul per layer.
    eye = jnp.eye(BB, dtype=adj.dtype)
    adj_bd = jnp.einsum('gbij,bc->gbicj', adj.reshape(G, BB, N, N), eye)
    adj_bd = adj_bd.reshape(B * N, BB * N)

    x_flat = x.reshape(B * N, IN_DIM)

    res = pl.pallas_call(
        gcn_relation_kernel,
        out_shape=jax.ShapeDtypeStruct((B, 2 * HID), jnp.float32),
        grid_spec=pltpu.PrefetchScalarGridSpec(
            num_scalar_prefetch=0,
            grid=(G,),
            in_specs=[
                pl.BlockSpec((ROWS, BB * N), lambda g: (g, 0)),       # adj_bd
                pl.BlockSpec((ROWS, IN_DIM), lambda g: (g, 0)),       # x_flat
                pl.BlockSpec((ROWS, AUX_LANES), lambda g: (g, 0)),    # aux
                pl.BlockSpec((W_ROWS, HID), lambda g: (0, 0)),        # weight slab
                pl.BlockSpec((3, HID), lambda g: (0, 0)),             # bias slab
            ],
            out_specs=pl.BlockSpec((BB, 2 * HID), lambda g: (g, 0)),
        ),
        compiler_params=pltpu.CompilerParams(
            dimension_semantics=("parallel",)),
    )(adj_bd, x_flat, aux_flat, w_all, b_all)
    return res[:, :HID], res[:, HID:]


def reference(adj, x, subj_pos, obj_pos, params):
    """Pure-JAX reference mirroring the PyTorch forward (eval mode)."""
    w0, b0, w1, b1, wm, bm = params
    row = adj.sum(2)
    col = adj.sum(1)
    denom = row[..., None] + 1.0
    mask = ((row + col) == 0.0)[..., None]
    h = x
    for W, bvec in ((w0, b0), (w1, b1)):
        Ax = jnp.einsum('bij,bjd->bid', adj, h)
        AxW = Ax @ W + bvec
        AxW = AxW + (h @ W + bvec)       # self-loop
        AxW = AxW / denom
        h = jnp.maximum(AxW, 0.0)

    def mp(m):
        return jnp.max(jnp.where(m, -NEG_INF, h), axis=1)

    h_out = mp(mask)
    s_out = mp((subj_pos != 0)[..., None])
    o_out = mp((obj_pos != 0)[..., None])
    feat = jnp.concatenate([h_out, s_out, o_out], axis=1)
    out = jnp.maximum(feat @ wm + bm, 0.0)
    return out, h_out


if __name__ == "__main__":
    key = jax.random.PRNGKey(0)
    k = jax.random.split(key, 12)

    # ---- padded sequences ----
    lengths = jnp.asarray(8 + (np.arange(B) * 3) % 9, dtype=jnp.int32)    # 8..14
    valid = jnp.arange(N)[None, :] < lengths[:, None]                     # (B, N)

    words = jnp.where(valid, jax.random.randint(k[0], (B, N), 1, VOCAB), 0)
    pos_ids = jnp.where(valid, jax.random.randint(k[1], (B, N), 1, N_POS), 0)
    ner_ids = jnp.where(valid, jax.random.randint(k[2], (B, N), 1, N_NER), 0)

    # ---- embedding tables (word padding row zeroed, as nn.Embedding(padding_idx)) ----
    word_tab = jax.random.uniform(k[3], (VOCAB, EMB_DIM), minval=-1.0, maxval=1.0)
    word_tab = word_tab.at[0].set(0.0)
    pos_tab = jax.random.normal(k[4], (N_POS, POS_DIM))
    ner_tab = jax.random.normal(k[5], (N_NER, NER_DIM))

    # embedding lookup + concat (glue, like torch.cat(embs, dim=2))
    x = jnp.concatenate([word_tab[words], pos_tab[pos_ids], ner_tab[ner_ids]],
                        axis=-1).astype(jnp.float32)                       # (B, N, IN_DIM)

    # ---- adjacency: symmetric, clipped to {0,1}, zero on padding ----
    raw = (jax.random.uniform(k[6], (B, N, N)) < 0.25).astype(jnp.float32)
    adj = jnp.clip(raw + jnp.transpose(raw, (0, 2, 1)), 0.0, 1.0)
    vf = valid.astype(jnp.float32)
    adj = adj * vf[:, :, None] * vf[:, None, :]

    # ---- subj/obj relative positions (0 exactly at the entity token) ----
    subj_idx = jnp.asarray(np.arange(B) % 8, dtype=jnp.int32)
    obj_idx = jnp.asarray((np.arange(B) * 2 + 5) % 8, dtype=jnp.int32)
    ar = jnp.arange(N, dtype=jnp.int32)[None, :]
    subj_pos = ar - subj_idx[:, None]          # (B, N)
    obj_pos = ar - obj_idx[:, None]

    # ---- linear layer parameters (deterministic, PyTorch-style bounds) ----
    def linear(kk, fin, fout):
        bound = 1.0 / np.sqrt(fin)
        kw, kb = jax.random.split(kk)
        W = jax.random.uniform(kw, (fin, fout), minval=-bound, maxval=bound,
                               dtype=jnp.float32)
        bvec = jax.random.uniform(kb, (1, fout), minval=-bound, maxval=bound,
                                  dtype=jnp.float32)
        return W, bvec

    w0, b0 = linear(k[7], IN_DIM, HID)
    w1, b1 = linear(k[8], HID, HID)
    wm, bm = linear(k[9], 3 * HID, HID)

    # pack params into one weight slab + one bias slab for the kernel
    w_all = jnp.concatenate([w0, w1, wm], axis=0)   # (176, HID)
    b_all = jnp.concatenate([b0, b1, bm], axis=0)   # (3, HID)

    out, h_out = gcn_relation_forward(adj, x, subj_pos, obj_pos, w_all, b_all)
    out = jax.block_until_ready(out)
    h_out = jax.block_until_ready(h_out)

    ref_out, ref_h = reference(adj, x, subj_pos, obj_pos, (w0, b0, w1, b1, wm, bm))
    assert np.allclose(np.asarray(out), np.asarray(ref_out), rtol=1e-3, atol=1e-3), \
        float(np.max(np.abs(np.asarray(out) - np.asarray(ref_out))))
    assert np.allclose(np.asarray(h_out), np.asarray(ref_h), rtol=1e-3, atol=1e-3), \
        float(np.max(np.abs(np.asarray(h_out) - np.asarray(ref_h))))
    print("KERNEL_OK")
</pallas_src>

<mosaic_0001>
module attributes {stable_mosaic.version = 11 : i64} {
  func.func @gcn_relation_kernel(%arg0: i32, %arg1: memref<256x256xf32, #tpu.memory_space<vmem>>, %arg2: memref<256x48xf32, #tpu.memory_space<vmem>>, %arg3: memref<256x128xf32, #tpu.memory_space<vmem>>, %arg4: memref<176x32xf32, #tpu.memory_space<vmem>>, %arg5: memref<3x32xf32, #tpu.memory_space<vmem>>, %arg6: memref<16x64xf32, #tpu.memory_space<vmem>>) attributes {dimension_semantics = [#tpu.dimension_semantics<parallel>], iteration_bounds = array<i64: 1>, scalar_prefetch = 0 : i64, scratch_operands = 0 : i64, tpu.core_type = #tpu.core_type<tc>, window_params = [{transform_indices = @transform_0, window_bounds = array<i64: 256, 256>}, {transform_indices = @transform_1, window_bounds = array<i64: 256, 48>}, {transform_indices = @transform_2, window_bounds = array<i64: 256, 128>}, {pipeline_mode = #tpu.pipeline_mode<synchronous>, transform_indices = @transform_3, window_bounds = array<i64: 176, 32>}, {pipeline_mode = #tpu.pipeline_mode<synchronous>, transform_indices = @transform_4, window_bounds = array<i64: 3, 32>}, {transform_indices = @transform_5, window_bounds = array<i64: 16, 64>}]} {
    %c0 = arith.constant 0 : index
    %c0_0 = arith.constant 0 : index
    %0 = vector.load %arg1[%c0, %c0_0] : memref<256x256xf32, #tpu.memory_space<vmem>>, vector<256x256xf32>
    %c0_1 = arith.constant 0 : index
    %c0_2 = arith.constant 0 : index
    %1 = vector.load %arg2[%c0_1, %c0_2] : memref<256x48xf32, #tpu.memory_space<vmem>>, vector<256x48xf32>
    %c0_3 = arith.constant 0 : index
    %c0_4 = arith.constant 0 : index
    %2 = vector.load %arg3[%c0_3, %c0_4] : memref<256x128xf32, #tpu.memory_space<vmem>>, vector<256x96xf32>
    %c0_5 = arith.constant 0 : index
    %c96 = arith.constant 96 : index
    %3 = vector.load %arg3[%c0_5, %c96] : memref<256x128xf32, #tpu.memory_space<vmem>>, vector<256x32xf32>
    %c0_6 = arith.constant 0 : index
    %c0_7 = arith.constant 0 : index
    %4 = vector.load %arg4[%c0_6, %c0_7] : memref<176x32xf32, #tpu.memory_space<vmem>>, vector<48x32xf32>
    %c48 = arith.constant 48 : index
    %c0_8 = arith.constant 0 : index
    %5 = vector.load %arg4[%c48, %c0_8] : memref<176x32xf32, #tpu.memory_space<vmem>>, vector<32x32xf32>
    %c80 = arith.constant 80 : index
    %c0_9 = arith.constant 0 : index
    %6 = vector.load %arg4[%c80, %c0_9] : memref<176x32xf32, #tpu.memory_space<vmem>>, vector<96x32xf32>
    %c0_10 = arith.constant 0 : index
    %c0_11 = arith.constant 0 : index
    %7 = vector.load %arg5[%c0_10, %c0_11] : memref<3x32xf32, #tpu.memory_space<vmem>>, vector<1x32xf32>
    %c1 = arith.constant 1 : index
    %c0_12 = arith.constant 0 : index
    %8 = vector.load %arg5[%c1, %c0_12] : memref<3x32xf32, #tpu.memory_space<vmem>>, vector<1x32xf32>
    %c2 = arith.constant 2 : index
    %c0_13 = arith.constant 0 : index
    %9 = vector.load %arg5[%c2, %c0_13] : memref<3x32xf32, #tpu.memory_space<vmem>>, vector<1x32xf32>
    %cst = arith.constant dense<0.000000e+00> : vector<256x48xf32>
    %10 = tpu.matmul %0, %1, %cst {dimension_numbers = #tpu.dot_dimension_numbers<[1], [0], [0], [1], [0, 0, 1, 1], [], []>, precision = #tpu.contract_precision<fp32>} : vector<256x256xf32>, vector<256x48xf32>, vector<256x48xf32> -> vector<256x48xf32>
    %11 = arith.addf %10, %1 : vector<256x48xf32>
    %cst_14 = arith.constant dense<0.000000e+00> : vector<256x32xf32>
    %12 = tpu.matmul %11, %4, %cst_14 {dimension_numbers = #tpu.dot_dimension_numbers<[1], [0], [0], [1], [0, 0, 1, 1], [], []>, precision = #tpu.contract_precision<fp32>} : vector<256x48xf32>, vector<48x32xf32>, vector<256x32xf32> -> vector<256x32xf32>
    %cst_15 = arith.constant 2.000000e+00 : f32
    %13 = vector.broadcast %cst_15 : f32 to vector<1x32xf32>
    %14 = arith.mulf %13, %7 : vector<1x32xf32>
    %15 = vector.broadcast %14 : vector<1x32xf32> to vector<256x32xf32>
    %16 = arith.addf %12, %15 : vector<256x32xf32>
    %17 = arith.mulf %16, %3 : vector<256x32xf32>
    %cst_16 = arith.constant 0.000000e+00 : f32
    %18 = vector.broadcast %cst_16 : f32 to vector<256x32xf32>
    %19 = arith.maximumf %17, %18 : vector<256x32xf32>
    %cst_17 = arith.constant dense<0.000000e+00> : vector<256x32xf32>
    %20 = tpu.matmul %0, %19, %cst_17 {dimension_numbers = #tpu.dot_dimension_numbers<[1], [0], [0], [1], [0, 0, 1, 1], [], []>, precision = #tpu.contract_precision<fp32>} : vector<256x256xf32>, vector<256x32xf32>, vector<256x32xf32> -> vector<256x32xf32>
    %21 = arith.addf %20, %19 : vector<256x32xf32>
    %cst_18 = arith.constant dense<0.000000e+00> : vector<256x32xf32>
    %22 = tpu.matmul %21, %5, %cst_18 {dimension_numbers = #tpu.dot_dimension_numbers<[1], [0], [0], [1], [0, 0, 1, 1], [], []>, precision = #tpu.contract_precision<fp32>} : vector<256x32xf32>, vector<32x32xf32>, vector<256x32xf32> -> vector<256x32xf32>
    %cst_19 = arith.constant 2.000000e+00 : f32
    %23 = vector.broadcast %cst_19 : f32 to vector<1x32xf32>
    %24 = arith.mulf %23, %8 : vector<1x32xf32>
    %25 = vector.broadcast %24 : vector<1x32xf32> to vector<256x32xf32>
    %26 = arith.addf %22, %25 : vector<256x32xf32>
    %27 = arith.mulf %26, %3 : vector<256x32xf32>
    %cst_20 = arith.constant 0.000000e+00 : f32
    %28 = vector.broadcast %cst_20 : f32 to vector<256x32xf32>
    %29 = arith.maximumf %27, %28 : vector<256x32xf32>
    %30 = tpu.concatenate %29, %29, %29 in 1 : vector<256x32xf32>, vector<256x32xf32>, vector<256x32xf32> -> vector<256x96xf32>
    %31 = arith.addf %30, %2 : vector<256x96xf32>
    %32 = vector.shape_cast %31 : vector<256x96xf32> to vector<16x16x96xf32>
    %cst_21 = arith.constant dense<0xFF800000> : vector<16x96xf32>
    %33 = vector.multi_reduction <maximumf>, %32, %cst_21 [1] : vector<16x16x96xf32> to vector<16x96xf32>
    %cst_22 = arith.constant dense<0.000000e+00> : vector<16x32xf32>
    %34 = tpu.matmul %33, %6, %cst_22 {dimension_numbers = #tpu.dot_dimension_numbers<[1], [0], [0], [1], [0, 0, 1, 1], [], []>, precision = #tpu.contract_precision<fp32>} : vector<16x96xf32>, vector<96x32xf32>, vector<16x32xf32> -> vector<16x32xf32>
    %35 = vector.broadcast %9 : vector<1x32xf32> to vector<16x32xf32>
    %36 = arith.addf %34, %35 : vector<16x32xf32>
    %cst_23 = arith.constant 0.000000e+00 : f32
    %37 = vector.broadcast %cst_23 : f32 to vector<16x32xf32>
    %38 = arith.maximumf %36, %37 : vector<16x32xf32>
    %c0_24 = arith.constant 0 : index
    %c0_25 = arith.constant 0 : index
    %39 = vector.load %arg6[%c0_24, %c0_25] : memref<16x64xf32, #tpu.memory_space<vmem>>, vector<16x32xf32>
    tpu.vector_store %arg6[%c0_24, %c0_25], %38 {strides = array<i32>} : memref<16x64xf32, #tpu.memory_space<vmem>>, vector<16x32xf32>,
    %40 = vector.extract_strided_slice %33 {offsets = [0, 0], sizes = [16, 32], strides = [1, 1]} : vector<16x96xf32> to vector<16x32xf32>
    %c0_26 = arith.constant 0 : index
    %c32 = arith.constant 32 : index
    %41 = vector.load %arg6[%c0_26, %c32] : memref<16x64xf32, #tpu.memory_space<vmem>>, vector<16x32xf32>
    tpu.vector_store %arg6[%c0_26, %c32], %40 {strides = array<i32>} : memref<16x64xf32, #tpu.memory_space<vmem>>, vector<16x32xf32>,
    return
  }
  func.func @transform_0(%arg0: i32) -> (i32, i32) {
    %c0_i32 = arith.constant 0 : i32
    %c0_i32_0 = arith.constant 0 : i32
    return %arg0, %c0_i32 : i32, i32
  }
  func.func @transform_1(%arg0: i32) -> (i32, i32) {
    %c0_i32 = arith.constant 0 : i32
    %c0_i32_0 = arith.constant 0 : i32
    return %arg0, %c0_i32 : i32, i32
  }
  func.func @transform_2(%arg0: i32) -> (i32, i32) {
    %c0_i32 = arith.constant 0 : i32
    %c0_i32_0 = arith.constant 0 : i32
    return %arg0, %c0_i32 : i32, i32
  }
  func.func @transform_3(%arg0: i32) -> (i32, i32) {
    %c0_i32 = arith.constant 0 : i32
    %c0_i32_0 = arith.constant 0 : i32
    %c0_i32_1 = arith.constant 0 : i32
    return %c0_i32, %c0_i32_0 : i32, i32
  }
  func.func @transform_4(%arg0: i32) -> (i32, i32) {
    %c0_i32 = arith.constant 0 : i32
    %c0_i32_0 = arith.constant 0 : i32
    %c0_i32_1 = arith.constant 0 : i32
    return %c0_i32, %c0_i32_0 : i32, i32
  }
  func.func @transform_5(%arg0: i32) -> (i32, i32) {
    %c0_i32 = arith.constant 0 : i32
    %c0_i32_0 = arith.constant 0 : i32
    return %arg0, %c0_i32 : i32, i32
  }
}

</mosaic_0001>

<bundles_post_ra>
// kernel: tpu_custom_call.1
= control target key start
LH: loop header
LB: loop body
LE: loop exit
PB: predicated region body
PF: predicated region fallthrough
CT: control target
= control target key end

     0   :  { %10 = vsyncpa [#allocation3], 0  ;;  %s18872_s0 = inlined_call_operand.vmem [shape: f32[256,256], index: 0, kind: input, shape index: {}]   ;;  %s18873_s1 = inlined_call_operand.vmem [shape: f32[256,48], index: 1, kind: input, shape index: {}]   ;;  %s18874_s2 = inlined_call_operand.hbm [shape: f32[256,128], index: 2, kind: input, shape index: {}]   ;;  %s18875_s3 = inlined_call_operand.vmem [shape: f32[176,32], index: 3, kind: input, shape index: {}]   ;;  %s18876_s4 = inlined_call_operand.vmem [shape: f32[3,32], index: 4, kind: input, shape index: {}]   ;;  %s18877_s5 = inlined_call_operand.hbm [shape: f32[16,64], index: 5, kind: output, shape index: {}]  }
   0x1   :  { %11 = vsyncpa [#allocation4], 0  ;;  %s12181_s18 = smov [#allocation2]  }
   0x2   :  { %s21_s19 = sshll.u32 %s12181_s18, 4  ;;  %s22_s19 = int_to_ptr.vmem [resolvable:$true] %s21_s19 }
   0x3   :  { %s12145_s20 = scalar_lea.vmem %s22_s19, 4096  ;;  %p12150_p1 = scmp.lt.s32.totalorder %s22_s19, %s22_s19 }
   0x4   :  { %p12146_p0 = scmp.ne.s32.totalorder %s22_s19, %s12145_s20  ;;  %p12151_p2 = scmp.lt.s32.totalorder %s12145_s20, %s12145_s20 }
   0x6   :  { %p12152_p3 = por %p12151_p2, %p12150_p1 }
   0x8   :  { %p12153_p4 = pnand %p12152_p3, %p12146_p0 }
   0xa   :  { %12156 = shalt.err (!%p12153_p4)
}
   0xb   :  { %s12182_s21 = smov 128   ;;  %s12183_s22 = smov 8  }
   0xc   :  { %27 = dma.hbm_to_vmem [thread:$0]  %s18874_s2, 4096, %s22_s19, [#allocation3], %s12182_s21, %s12182_s21, %s12183_s22  }
   0xd   :  { %12177 = dma.done.wait [#allocation3], 4096  }
   0xe   :  { %12178 = vsyncadd [#allocation3], 4294963200  ;;  %v18908_v0 = vmov 0.0   ;;  %v114_v1 = vld [vmem:[%s18873_s1 + $0x78] sm:$0xff]  ;;  %v113_v2 = vld [vmem:[%s18873_s1 + $0x70] sm:$0xff]  ;;  %vm2791_vm0 = vcmask 392192  }
   0xf   :  { %188 = vmatprep.subr.mxu0 %v18908_v0  ;;  %765 = vmatprep.subr.mxu1 %v18908_v0  ;;  %v112_v3 = vld [vmem:[%s18873_s1 + $0x68] sm:$0xff]  ;;  %v12235_v4 = vand.u32 4294901760, %v114_v1  ;;  %v12237_v5 = vand.u32 4294901760, %v113_v2  ;;  %v111_v7 = vld [vmem:[%s18873_s1 + $0x60] sm:$0xff]  ;;  %v110_v8 = vld [vmem:[%s18873_s1 + $0x58] sm:$0xff]  ;;  %vm7527_vm1 = vcmask 261120  }
  0x10   :  { %v12239_v6 = vand.u32 4294901760, %v112_v3  ;;  %v109_v9 = vld [vmem:[%s18873_s1 + $0x50] sm:$0xff]  ;;  %v12250_v10 = vand.u32 4294901760, %v111_v7  ;;  %v12252_v11 = vand.u32 4294901760, %v110_v8  ;;  %v108_v13 = vld [vmem:[%s18873_s1 + $0x48] sm:$0xff]  ;;  %v107_v14 = vld [vmem:[%s18873_s1 + $0x40] sm:$0xff] }
  0x11   :  { %v12254_v12 = vand.u32 4294901760, %v109_v9  ;;  %190 = vmatpush1.msra.mxu0 %v12235_v4  ;;  %v12264_v15 = vsub.f32 %v114_v1, %v12235_v4  ;;  %v12267_v16 = vsub.f32 %v113_v2, %v12237_v5  ;;  %v12269_v17 = vand.u32 4294901760, %v108_v13  ;;  %v106_v19 = vld [vmem:[%s18873_s1 + $0x38] sm:$0xff]  ;;  %v105_v26 = vld [vmem:[%s18873_s1 + $0x30] sm:$0xff]  ;;  %v104_v36 = vld [vmem:[%s18873_s1 + $0x28] sm:$0xff]  ;;  %s12186_s11 = smov 64  }
  0x12   :  { %v12272_v18 = vsub.f32 %v112_v3, %v12239_v6  ;;  %191 = vmatprep.subr.mxu0 %v18908_v0  ;;  %v12279_v20 = vsub.f32 %v111_v7, %v12250_v10  ;;  %v12282_v21 = vsub.f32 %v110_v8, %v12252_v11  ;;  %v12288_v25 = vand.u32 4294901760, %v107_v14  ;;  %v103_v41 = vld [vmem:[%s18873_s1 + $0x20] sm:$0xff]  ;;  %v102_v49 = vld [vmem:[%s18873_s1 + $0x18] sm:$0xff]  ;;  %v101_v53 = vld [vmem:[%s18873_s1 + $0x10] sm:$0xff] }
  0x13   :  { %193 = vmatpush1.msra.mxu0 %v12237_v5  ;;  %v18896_v22 = vand.u32 4294901760, %v12264_v15  ;;  %v18894_v23 = vand.u32 4294901760, %v12267_v16  ;;  %v12295_v28 = vand.u32 4294901760, %v106_v19  ;;  %v12299_v30 = vsub.f32 %v109_v9, %v12254_v12  ;;  %v100_v59 = vld [vmem:[%s18873_s1 + $0x8] sm:$0xff]  ;;  %v99_v2 = vld [vmem:[%s18873_s1] sm:$0xff] }
  0x14   :  { %v18892_v24 = vand.u32 4294901760, %v12272_v18  ;;  %194 = vmatprep.subr.mxu0 %v18908_v0  ;;  %v18891_v27 = vand.u32 4294901760, %v12279_v20  ;;  %v18889_v29 = vand.u32 4294901760, %v12282_v21  ;;  %v12312_v34 = vsub.f32 %v108_v13, %v12269_v17 }
  0x15   :  { %196 = vmatpush1.msra.mxu0 %v12239_v6  ;;  %v769_v31 = vsub.f32 %v12264_v15, %v18896_v22  ;;  %v776_v32 = vsub.f32 %v12267_v16, %v18894_v23  ;;  %v12315_v35 = vand.u32 4294901760, %v105_v26  ;;  %v18888_v40 = vand.u32 4294901760, %v12299_v30  ;;  %v119_v22 = vld [vmem:[%s18873_s1 + $0xa0] sm:$0xff] }
  0x16   :  { %v783_v33 = vsub.f32 %v12272_v18, %v18892_v24  ;;  %197 = vmatprep.subr.mxu0 %v18908_v0  ;;  %v790_v39 = vsub.f32 %v12279_v20, %v18891_v27  ;;  %v797_v42 = vsub.f32 %v12282_v21, %v18889_v29  ;;  %v12333_v43 = vsub.f32 %v107_v14, %v12288_v25  ;;  %v130_v14 = vld [vmem:[%s18873_s1 + $0xf8] sm:$0xff] }
  0x17   :  { %199 = vmatpush1.msra.mxu0 %v12250_v10  ;;  %v770_v37 = vand.u32 4294901760, %v769_v31  ;;  %v777_v38 = vand.u32 4294901760, %v776_v32  ;;  %v12336_v45 = vand.u32 4294901760, %v104_v36  ;;  %v18886_v46 = vand.u32 4294901760, %v12312_v34 }
  0x18   :  { %200 = vmatprep.subr.mxu0 %v18908_v0  ;;  %v784_v44 = vand.u32 4294901760, %v783_v33  ;;  %v12340_v47 = vsub.f32 %v106_v19, %v12295_v28  ;;  %v12344_v48 = vand.u32 4294901760, %v103_v41  ;;  %v791_v50 = vand.u32 4294901760, %v790_v39 }
  0x19   :  { %202 = vmatpush1.msra.mxu0 %v12252_v11  ;;  %771 = vmatpush1.msra.mxu1 %v770_v37  ;;  %v804_v51 = vsub.f32 %v12299_v30, %v18888_v40  ;;  %v18885_v52 = vand.u32 4294901760, %v12333_v43  ;;  %v12358_v54 = vsub.f32 %v105_v26, %v12315_v35  ;;  %v798_v55 = vand.u32 4294901760, %v797_v42 }
  0x1a   :  { %203 = vmatprep.subr.mxu0 %v18908_v0  ;;  %772 = vmatprep.subr.mxu1 %v18908_v0  ;;  %19801 = vst [vmem:[#allocation8_spill] sm:$0xff] %v12344_v48  ;;  %v811_v56 = vsub.f32 %v12312_v34, %v18886_v46  ;;  %v12366_v57 = vand.u32 4294901760, %v102_v49  ;;  %v18883_v58 = vand.u32 4294901760, %v12340_v47  ;;  %v12373_v60 = vsub.f32 %v104_v36, %v12336_v45  ;;  %v129_v36 = vld [vmem:[%s18873_s1 + $0xf0] sm:$0xff] }
  0x1b   :  { %205 = vmatpush1.msra.mxu0 %v12254_v12  ;;  %778 = vmatpush1.msra.mxu1 %v777_v38  ;;  %v12377_v61 = vand.u32 4294901760, %v101_v53  ;;  %v805_v62 = vand.u32 4294901760, %v804_v51  ;;  %v818_v63 = vsub.f32 %v12333_v43, %v18885_v52  ;;  %v18882_v1 = vand.u32 4294901760, %v12358_v54 }
  0x1c   :  { %206 = vmatprep.subr.mxu0 %v18908_v0  ;;  %779 = vmatprep.subr.mxu1 %v18908_v0  ;;  %19802 = vst [vmem:[#allocation9_spill] sm:$0xff] %v12366_v57  ;;  %v12388_v3 = vsub.f32 %v103_v41, %v12344_v48  ;;  %v12392_v7 = vand.u32 4294901760, %v100_v59  ;;  %v812_v8 = vand.u32 4294901760, %v811_v56  ;;  %v825_v9 = vsub.f32 %v12340_v47, %v18883_v58  ;;  %v127_v56 = vld [vmem:[%s18873_s1 + $0xe0] sm:$0xff] }
  0x1d   :  { %208 = vmatpush1.msra.mxu0 %v12269_v17  ;;  %785 = vmatpush1.msra.mxu1 %v784_v44  ;;  %19803 = vst [vmem:[#allocation10_spill] sm:$0xff] %v12377_v61  ;;  %v18880_v13 = vand.u32 4294901760, %v12373_v60  ;;  %v12403_v19 = vsub.f32 %v102_v49, %v12366_v57  ;;  %v12407_v26 = vand.u32 4294901760, %v99_v2  ;;  %v819_v31 = vand.u32 4294901760, %v818_v63  ;;  %v128_v44 = vld [vmem:[%s18873_s1 + $0xe8] sm:$0xff] }
  0x1e   :  { %209 = vmatprep.subr.mxu0 %v18908_v0  ;;  %786 = vmatprep.subr.mxu1 %v18908_v0  ;;  %19804 = vst [vmem:[#allocation11_spill] sm:$0xff] %v12388_v3  ;;  %19805 = vst [vmem:[#allocation12_spill] sm:$0xff] %v12392_v7  ;;  %v832_v32 = vsub.f32 %v12358_v54, %v18882_v1  ;;  %v18879_v33 = vand.u32 4294901760, %v12388_v3  ;;  %v12418_v37 = vsub.f32 %v101_v53, %v12377_v61  ;;  %vm9762_vm2 = vcmask 523264  }
  0x1f   :  { %211 = vmatpush1.msra.mxu0 %v12288_v25  ;;  %792 = vmatpush1.msra.mxu1 %v791_v50  ;;  %19806 = vst [vmem:[#allocation13_spill] sm:$0xff] %v12403_v19  ;;  %19807 = vst [vmem:[#allocation14_spill] sm:$0xff] %v12407_v26  ;;  %v12422_v38 = vand.u32 4294901760, %v130_v14  ;;  %v826_v39 = vand.u32 4294901760, %v825_v9  ;;  %v839_v41 = vsub.f32 %v12373_v60, %v18880_v13  ;;  %v18878_v42 = vand.u32 4294901760, %v12403_v19 }
  0x20   :  { %212 = vmatprep.subr.mxu0 %v18908_v0  ;;  %793 = vmatprep.subr.mxu1 %v18908_v0  ;;  %19808 = vst [vmem:[#allocation15_spill] sm:$0xff] %v12418_v37  ;;  %v12433_v49 = vsub.f32 %v100_v59, %v12392_v7  ;;  %v12437_v50 = vand.u32 4294901760, %v129_v36  ;;  %v833_v51 = vand.u32 4294901760, %v832_v32  ;;  %v846_v53 = vsub.f32 %v12388_v3, %v18879_v33 }
  0x21   :  { %214 = vmatpush1.msra.mxu0 %v12295_v28  ;;  %799 = vmatpush1.msra.mxu1 %v798_v55  ;;  %19809 = vst [vmem:[#allocation16_spill] sm:$0xff] %v12422_v38  ;;  %v18881_v55 = vand.u32 4294901760, %v12418_v37  ;;  %v12448_v59 = vsub.f32 %v99_v2, %v12407_v26  ;;  %v840_v63 = vand.u32 4294901760, %v839_v41  ;;  %v126_v2 = vld [vmem:[%s18873_s1 + $0xd8] sm:$0xff]  ;;  %v12467_v32 = vand.u32 4294901760, %v127_v56 }
  0x22   :  { %215 = vmatprep.subr.mxu0 %v18908_v0  ;;  %800 = vmatprep.subr.mxu1 %v18908_v0  ;;  %19810 = vst [vmem:[#allocation17_spill] sm:$0xff] %v12433_v49  ;;  %19811 = vst [vmem:[#allocation18_spill] sm:$0xff] %v12437_v50  ;;  %v18884_v9 = vand.u32 4294901760, %v12433_v49  ;;  %v12478_v33 = vsub.f32 %v129_v36, %v12437_v50  ;;  %v12482_v13 = vand.u32 4294901760, %v126_v2  ;;  %v124_v36 = vld [vmem:[%s18873_s1 + $0xc8] sm:$0xff]  ;;  %vm9827_vm3 = vcmask 785408  }
  0x23   :  { %217 = vmatpush1.msra.mxu0 %v12315_v35  ;;  %806 = vmatpush1.msra.mxu1 %v805_v62  ;;  %19812 = vst [vmem:[#allocation19_spill] sm:$0xff] %v12448_v59  ;;  %v12452_v62 = vand.u32 4294901760, %v128_v44  ;;  %19815 = vst [vmem:[#allocation22_spill] sm:$0xff] %v12467_v32  ;;  %v860_v41 = vsub.f32 %v12418_v37, %v18881_v55  ;;  %v12508_v52 = vsub.f32 %v127_v56, %v12467_v32  ;;  %v122_v56 = vld [vmem:[%s18873_s1 + $0xb8] sm:$0xff]  ;;  %vm9992_vm4 = vcmask 1041409  }
  0x24   :  { %218 = vmatprep.subr.mxu0 %v18908_v0  ;;  %807 = vmatprep.subr.mxu1 %v18908_v0  ;;  %19816 = vst [vmem:[#allocation23_spill] sm:$0xff] %v12478_v33  ;;  %19817 = vst [vmem:[#allocation24_spill] sm:$0xff] %v12482_v13  ;;  %v12512_v46 = vand.u32 4294901760, %v124_v36  ;;  %v12523_v40 = vsub.f32 %v126_v2, %v12482_v13  ;;  %v121_v2 = vld [vmem:[%s18873_s1 + $0xb0] sm:$0xff]  ;;  %v12542_v24 = vand.u32 4294901760, %v122_v56  ;;  %vm9994_vm5 = vcmask 1042434  }
  0x25   :  { %220 = vmatpush1.msra.mxu0 %v12336_v45  ;;  %813 = vmatpush1.msra.mxu1 %v812_v8  ;;  %19813 = vst [vmem:[#allocation20_spill] sm:$0xff] %v12452_v62  ;;  %v853_v8 = vsub.f32 %v12403_v19, %v18878_v42  ;;  %v18887_v42 = vand.u32 4294901760, %v12448_v59  ;;  %v12493_v1 = vsub.f32 %v128_v44, %v12452_v62  ;;  %v123_v44 = vld [vmem:[%s18873_s1 + $0xc0] sm:$0xff]  ;;  %19820 = vst [vmem:[#allocation27_spill] sm:$0xff] %v12508_v52  ;;  %vm9996_vm6 = vcmask 1043459  }
  0x26   :  { %221 = vmatprep.subr.mxu0 %v18908_v0  ;;  %814 = vmatprep.subr.mxu1 %v18908_v0  ;;  %19821 = vst [vmem:[#allocation28_spill] sm:$0xff] %v12512_v46  ;;  %19822 = vst [vmem:[#allocation29_spill] sm:$0xff] %v12523_v40  ;;  %v12527_v29 = vand.u32 4294901760, %v123_v44  ;;  %v12550_v23 = vsub.f32 %v124_v36, %v12512_v46  ;;  %v19830_v36 = vand.u32 4294901760, %v12523_v40  ;;  %vm9998_vm7 = vcmask 1044484  }
  0x27   :  { %223 = vmatpush1.msra.mxu0 %v12344_v48  ;;  %820 = vmatpush1.msra.mxu1 %v819_v31  ;;  %v12463_v31 = vsub.f32 %v130_v14, %v12422_v38  ;;  %v125_v14 = vld [vmem:[%s18873_s1 + $0xd0] sm:$0xff]  ;;  %19818 = vst [vmem:[#allocation25_spill] sm:$0xff] %v12493_v1  ;;  %19825 = vst [vmem:[#allocation32_spill] sm:$0xff] %v12542_v24  ;;  %vm10000_vm8 = vcmask 1045509   ;;  %vm10002_vm9 = vcmask 1046534   ;;  %vm10004_vm10 = vcmask 1047559  }
  0x28   :  { %224 = vmatprep.subr.mxu0 %v18908_v0  ;;  %821 = vmatprep.subr.mxu1 %v18908_v0  ;;  %v12497_v58 = vand.u32 4294901760, %v125_v14  ;;  %19823 = vst [vmem:[#allocation30_spill] sm:$0xff] %v12527_v29  ;;  %19826 = vst [vmem:[#allocation33_spill] sm:$0xff] %v12550_v23  ;;  %vm10659_vm11 = vcmask 523520  }
  0x29   :  { %226 = vmatpush1.msra.mxu0 %v12366_v57  ;;  %827 = vmatpush1.msra.mxu1 %v826_v39  ;;  %19814 = vst [vmem:[#allocation21_spill] sm:$0xff] %v12463_v31  ;;  %v847_v39 = vand.u32 4294901760, %v846_v53  ;;  %v867_v53 = vsub.f32 %v12433_v49, %v18884_v9  ;;  %v18890_v55 = vand.u32 4294901760, %v12463_v31  ;;  %v18893_v9 = vand.u32 4294901760, %v12478_v33 }
  0x2a   :  { %227 = vmatprep.subr.mxu0 %v18908_v0  ;;  %828 = vmatprep.subr.mxu1 %v18908_v0  ;;  %19819 = vst [vmem:[#allocation26_spill] sm:$0xff] %v12497_v58  ;;  %v12538_v27 = vsub.f32 %v125_v14, %v12497_v58  ;;  %v12554_v14 = vand.u32 4294901760, %v121_v2 }
  0x2b   :  { %229 = vmatpush1.msra.mxu0 %v12377_v61  ;;  %834 = vmatpush1.msra.mxu1 %v833_v51  ;;  %v854_v51 = vand.u32 4294901760, %v853_v8  ;;  %v874_v8 = vsub.f32 %v12448_v59, %v18887_v42  ;;  %v18895_v42 = vand.u32 4294901760, %v12493_v1 }
  0x2c   :  { %230 = vmatprep.subr.mxu0 %v18908_v0  ;;  %835 = vmatprep.subr.mxu1 %v18908_v0  ;;  %19824 = vst [vmem:[#allocation31_spill] sm:$0xff] %v12538_v27  ;;  %19827 = vst [vmem:[#allocation34_spill] sm:$0xff] %v12554_v14 }
  0x2d   :  { %232 = vmatpush1.msra.mxu0 %v12392_v7  ;;  %841 = vmatpush1.msra.mxu1 %v840_v63  ;;  %v861_v63 = vand.u32 4294901760, %v860_v41  ;;  %v881_v41 = vsub.f32 %v12463_v31, %v18890_v55  ;;  %v18897_v55 = vand.u32 4294901760, %v12508_v52 }
  0x2e   :  { %233 = vmatprep.subr.mxu0 %v18908_v0  ;;  %842 = vmatprep.subr.mxu1 %v18908_v0 }
  0x2f   :  { %235 = vmatpush1.msra.mxu0 %v12407_v26  ;;  %848 = vmatpush1.msra.mxu1 %v847_v39  ;;  %v868_v39 = vand.u32 4294901760, %v867_v53  ;;  %v888_v53 = vsub.f32 %v12478_v33, %v18893_v9  ;;  %v12568_v9 = vsub.f32 %v123_v44, %v12527_v29  ;;  %v909_v44 = vsub.f32 %v12523_v40, %v19830_v36 }
  0x30   :  { %236 = vmatprep.subr.mxu0 %v18908_v0  ;;  %849 = vmatprep.subr.mxu1 %v18908_v0  ;;  %v19838_v40 = vand.u32 4294901760, %v12550_v23 }
  0x31   :  { %238 = vmatpush2.msra.mxu0 %v12422_v38  ;;  %855 = vmatpush1.msra.mxu1 %v854_v51  ;;  %v875_v51 = vand.u32 4294901760, %v874_v8  ;;  %v895_v8 = vsub.f32 %v12493_v1, %v18895_v42  ;;  %v902_v42 = vsub.f32 %v12508_v52, %v18897_v55  ;;  %19828 = vst [vmem:[#allocation35_spill] sm:$0xff] %v12568_v9  ;;  %v19834_v52 = vand.u32 4294901760, %v12538_v27  ;;  %v37_v38 = vld [vmem:[%s18872_s0 + $0x10] sm:$0xff] }
  0x32   :  { %239 = vmatprep.subr.mxu0 %v18908_v0  ;;  %856 = vmatprep.subr.mxu1 %v18908_v0  ;;  %v19836_v1 = vmov 0.0  }
  0x33   :  { %241 = vmatpush2.msra.mxu0 %v12437_v50  ;;  %862 = vmatpush1.msra.mxu1 %v861_v63  ;;  %v882_v63 = vand.u32 4294901760, %v881_v41  ;;  %v889_v41 = vand.u32 4294901760, %v888_v53  ;;  %v36_v53 = vld [vmem:[%s18872_s0 + $0x8] sm:$0xff]  ;;  %v896_v55 = vand.u32 4294901760, %v895_v8  ;;  %v38_v8 = vld [vmem:[%s18872_s0 + $0x18] sm:$0xff]  ;;  %v903_v36 = vand.u32 4294901760, %v902_v42 }
  0x34   :  { %242 = vmatprep.subr.mxu0 %v18908_v0  ;;  %863 = vmatprep.subr.mxu1 %v18908_v0  ;;  %v117_v42 = vld [vmem:[%s18873_s1 + $0x90] sm:$0xff]  ;;  %v116_v50 = vld [vmem:[%s18873_s1 + $0x88] sm:$0xff]  ;;  %v12626_v33 = vand.u32 4294901760, %v38_v8 }
  0x35   :  { %244 = vmatpush2.msra.mxu0 %v12452_v62  ;;  %869 = vmatpush1.msra.mxu1 %v868_v39  ;;  %v120_v39 = vld [vmem:[%s18873_s1 + $0xa8] sm:$0xff]  ;;  %v12590_v62 = vand.u32 4294901760, %v119_v22  ;;  %v12646_v26 = vand.u32 4294901760, %v117_v42 }
  0x36   :  { %245 = vmatprep.subr.mxu0 %v18908_v0  ;;  %870 = vmatprep.subr.mxu1 %v18908_v0  ;;  %19840 = vst [vmem:[#allocation43_spill] sm:$0xff] %v12626_v33  ;;  %v12672_v49 = vsub.f32 %v38_v8, %v12626_v33 }
  0x37   :  { %247 = vmatpush2.msra.mxu0 %v12467_v32  ;;  %876 = vmatpush1.msra.mxu1 %v875_v51  ;;  %v12573_v51 = vsub.f32 %v122_v56, %v12542_v24  ;;  %v12582_v32 = vand.u32 4294901760, %v120_v39  ;;  %v35_v56 = vld [vmem:[%s18872_s0] sm:$0xff]  ;;  %19832 = vst [vmem:[#allocation38_spill] sm:$0xff] %v12590_v62  ;;  %19844 = vst [vmem:[#allocation46_spill] sm:$0xff] %v12646_v26 }
  0x38   :  { %248 = vmatprep.subr.mxu0 %v18908_v0  ;;  %877 = vmatprep.subr.mxu1 %v18908_v0  ;;  %19850 = vst [vmem:[#allocation51_spill] sm:$0xff] %v12672_v49 }
  0x39   :  { %19829 = vst [vmem:[#allocation36_spill] sm:$0xff] %v12573_v51  ;;  %250 = vmatpush2.msra.mxu0 %v12482_v13  ;;  %883 = vmatpush2.msra.mxu1 %v882_v63  ;;  %19831 = vst [vmem:[#allocation37_spill] sm:$0xff] %v12582_v32  ;;  %v12593_v63 = vsub.f32 %v121_v2, %v12554_v14  ;;  %v916_v13 = vsub.f32 %v12538_v27, %v19834_v52  ;;  %v12606_v2 = vand.u32 4294901760, %v36_v53 }
  0x3a   :  { %251 = vmatprep.subr.mxu0 %v18908_v0  ;;  %884 = vmatprep.subr.mxu1 %v18908_v0  ;;  %v118_v0 = vld [vmem:[%s18873_s1 + $0x98] sm:$0xff]  ;;  %v910_v52 = vand.u32 4294901760, %v909_v44  ;;  %v923_v27 = vsub.f32 %v12550_v23, %v19838_v40  ;;  %v12637_v44 = vsub.f32 %v119_v22, %v12590_v62  ;;  %v19843_v23 = vand.u32 4294901760, %v12568_v9  ;;  %v115_v40 = vld [vmem:[%s18873_s1 + $0x80] sm:$0xff] }
  0x3b   :  { %19833 = vst [vmem:[#allocation39_spill] sm:$0xff] %v12593_v63  ;;  %253 = vmatpush2.msra.mxu0 %v12497_v58  ;;  %890 = vmatpush2.msra.mxu1 %v889_v41  ;;  %19835 = vst [vmem:[#allocation40_spill] sm:$0xff] %v12606_v2  ;;  %v12614_v41 = vand.u32 4294901760, %v35_v56  ;;  %v12624_v58 = vsub.f32 %v120_v39, %v12582_v32  ;;  %v40_v39 = vld [vmem:[%s18872_s0 + $0x28] sm:$0xff]  ;;  %v12652_v22 = vsub.f32 %v36_v53, %v12606_v2  ;;  %v39_v53 = vld [vmem:[%s18872_s0 + $0x20] sm:$0xff] }
  0x3c   :  { %254 = vmatprep.subr.mxu0 %v19836_v1  ;;  %891 = vmatprep.subr.mxu1 %v19836_v1  ;;  %19842 = vst [vmem:[#allocation45_spill] sm:$0xff] %v12637_v44  ;;  %v930_v31 = vsub.f32 %v12568_v9, %v19843_v23  ;;  %v12664_v9 = vand.u32 4294901760, %v37_v38  ;;  %v924_v59 = vand.u32 4294901760, %v923_v27  ;;  %v12681_v61 = vand.u32 4294901760, %v115_v40 }
  0x3d   :  { %19837 = vst [vmem:[#allocation41_spill] sm:$0xff] %v12614_v41  ;;  %256 = vmatpush2.msra.mxu0 %v12512_v46  ;;  %897 = vmatpush2.msra.mxu1 %v896_v55  ;;  %19839 = vst [vmem:[#allocation42_spill] sm:$0xff] %v12624_v58  ;;  %v12633_v55 = vand.u32 4294901760, %v118_v0  ;;  %v917_v46 = vand.u32 4294901760, %v916_v13  ;;  %v12662_v23 = vsub.f32 %v35_v56, %v12614_v41  ;;  %v19852_v56 = vand.u32 4294901760, %v12593_v63 }
  0x3e   :  { %257 = vmatprep.subr.mxu0 %v19836_v1  ;;  %898 = vmatprep.subr.mxu1 %v19836_v1  ;;  %19845 = vst [vmem:[#allocation47_spill] sm:$0xff] %v12652_v22  ;;  %19849 = vst [vmem:[#allocation50_spill] sm:$0xff] %v12664_v9  ;;  %v931_v8 = vand.u32 4294901760, %v930_v31  ;;  %v12689_v7 = vand.u32 4294901760, %v12652_v22  ;;  %v12694_v37 = vand.u32 4294901760, %v39_v53  ;;  %v12705_v31 = vsub.f32 %v37_v38, %v12664_v9  ;;  %v41_v38 = vld [vmem:[%s18872_s0 + $0x30] sm:$0xff] }
  0x3f   :  { %19841 = vst [vmem:[#allocation44_spill] sm:$0xff] %v12633_v55  ;;  %259 = vmatpush2.msra.mxu0 %v12527_v29  ;;  %904 = vmatpush2.msra.mxu1 %v903_v36  ;;  %v19846_v36 = vand.u32 4294901760, %v12573_v51  ;;  %v12659_v29 = vand.u32 4294901760, %v116_v50  ;;  %19848 = vst [vmem:[#allocation49_spill] sm:$0xff] %v12662_v23  ;;  %v12685_v27 = vsub.f32 %v118_v0, %v12633_v55  ;;  %v12751_v57 = vand.u32 4294901760, %v41_v38 }
  0x40   :  { %260 = vmatprep.subr.mxu0 %v19836_v1  ;;  %905 = vmatprep.subr.mxu1 %v19836_v1  ;;  %19853 = vst [vmem:[#allocation53_spill] sm:$0xff] %v12681_v61  ;;  %19854 = vst [vmem:[#allocation54_spill] sm:$0xff] %v12689_v7  ;;  %v12736_v19 = vsub.f32 %v115_v40, %v12681_v61 }
  0x41   :  { %v937_v13 = vsub.f32 %v12573_v51, %v19846_v36  ;;  %19847 = vst [vmem:[#allocation48_spill] sm:$0xff] %v12659_v29  ;;  %262 = vmatpush2.msra.mxu0 %v12542_v24  ;;  %911 = vmatpush2.msra.mxu1 %v910_v52  ;;  %v12674_v36 = vand.u32 4294901760, %v40_v39  ;;  %v944_v51 = vsub.f32 %v12593_v63, %v19852_v56  ;;  %19856 = vst [vmem:[#allocation56_spill] sm:$0xff] %v12694_v37  ;;  %v42_v56 = vld [vmem:[%s18872_s0 + $0x38] sm:$0xff] }
  0x42   :  { %263 = vmatprep.subr.mxu0 %v19836_v1  ;;  %912 = vmatprep.subr.mxu1 %v19836_v1  ;;  %v12692_v24 = vsub.f32 %v117_v42, %v12646_v26  ;;  %19858 = vst [vmem:[#allocation58_spill] sm:$0xff] %v12705_v31  ;;  %v19859_v42 = vand.u32 4294901760, %v12624_v58  ;;  %v12715_v63 = vsub.f32 %v116_v50, %v12659_v29  ;;  %v12729_v50 = vand.u32 4294901760, %v42_v56 }
  0x43   :  { %19851 = vst [vmem:[#allocation52_spill] sm:$0xff] %v12674_v36  ;;  %265 = vmatpush2.msra.mxu0 %v12554_v14  ;;  %918 = vmatpush2.msra.mxu1 %v917_v46  ;;  %v938_v0 = vand.u32 4294901760, %v937_v13  ;;  %v12702_v46 = vand.u32 4294901760, %v12662_v23  ;;  %v12712_v14 = vand.u32 4294901760, %v12672_v49  ;;  %v12718_v13 = vsub.f32 %v40_v39, %v12674_v36  ;;  %19866 = vst [vmem:[#allocation64_spill] sm:$0xff] %v12751_v57 }
  0x44   :  { %19855 = vst [vmem:[#allocation55_spill] sm:$0xff] %v12692_v24  ;;  %266 = vmatprep.subr.mxu0 %v19836_v1  ;;  %919 = vmatprep.subr.mxu1 %v19836_v1  ;;  %v951_v52 = vsub.f32 %v12624_v58, %v19859_v42  ;;  %v19862_v42 = vand.u32 4294901760, %v12637_v44  ;;  %19863 = vst [vmem:[#allocation61_spill] sm:$0xff] %v12729_v50  ;;  %v287_v39 = vsub.f32 %v12652_v22, %v12689_v7 }
  0x45   :  { %19857 = vst [vmem:[#allocation57_spill] sm:$0xff] %v12702_v46  ;;  %268 = vmatpush2.msra.mxu0 %v12582_v32  ;;  %925 = vmatpush2.msra.mxu1 %v924_v59  ;;  %19860 = vst [vmem:[#allocation59_spill] sm:$0xff] %v12712_v14  ;;  %v945_v59 = vand.u32 4294901760, %v944_v51  ;;  %v12739_v51 = vsub.f32 %v39_v53, %v12694_v37  ;;  %v12749_v58 = vand.u32 4294901760, %v12705_v31  ;;  %v12758_v22 = vand.u32 4294901760, %v12718_v13 }
  0x46   :  { %19861 = vst [vmem:[#allocation60_spill] sm:$0xff] %v12718_v13  ;;  %269 = vmatprep.subr.mxu0 %v19836_v1  ;;  %926 = vmatprep.subr.mxu1 %v19836_v1  ;;  %v958_v32 = vsub.f32 %v12637_v44, %v19862_v42  ;;  %v44_v42 = vld [vmem:[%s18872_s0 + $0x48] sm:$0xff]  ;;  %v952_v40 = vand.u32 4294901760, %v951_v52  ;;  %v302_v53 = vsub.f32 %v12672_v49, %v12712_v14  ;;  %v12774_v49 = vand.u32 4294901760, %v287_v39 }
  0x47   :  { %271 = vmatpush2.msra.mxu0 %v12590_v62  ;;  %932 = vmatpush2.msra.mxu1 %v931_v8  ;;  %19864 = vst [vmem:[#allocation62_spill] sm:$0xff] %v12739_v51  ;;  %v293_v8 = vsub.f32 %v12662_v23, %v12702_v46  ;;  %19865 = vst [vmem:[#allocation63_spill] sm:$0xff] %v12749_v58  ;;  %v43_v46 = vld [vmem:[%s18872_s0 + $0x40] sm:$0xff]  ;;  %v12769_v14 = vsub.f32 %v42_v56, %v12729_v50  ;;  %v12771_v7 = vand.u32 4294901760, %v44_v42  ;;  %v46_v56 = vld [vmem:[%s18872_s0 + $0x58] sm:$0xff] }
  0x48   :  { %272 = vmatprep.subr.mxu0 %v19836_v1  ;;  %933 = vmatprep.subr.mxu1 %v19836_v1  ;;  %19867 = vst [vmem:[#allocation65_spill] sm:$0xff] %v12758_v22  ;;  %v959_v23 = vand.u32 4294901760, %v958_v32  ;;  %19871 = vst [vmem:[#allocation68_spill] sm:$0xff] %v12774_v49  ;;  %v12781_v44 = vand.u32 4294901760, %v12739_v51  ;;  %v308_v39 = vsub.f32 %v12705_v31, %v12749_v58  ;;  %v12798_v32 = vand.u32 4294901760, %v302_v53  ;;  %v45_v58 = vld [vmem:[%s18872_s0 + $0x50] sm:$0xff] }
  0x49   :  { %274 = vmatpush2.msra.mxu0 %v12633_v55  ;;  %939 = vmatpush2.msra.mxu1 %v938_v0  ;;  %v19868_v0 = vand.u32 4294901760, %v12685_v27  ;;  %19869 = vst [vmem:[#allocation66_spill] sm:$0xff] %v12769_v14  ;;  %19870 = vst [vmem:[#allocation67_spill] sm:$0xff] %v12771_v7  ;;  %v19872_v55 = vand.u32 4294901760, %v12692_v24  ;;  %v12814_v53 = vsub.f32 %v44_v42, %v12771_v7  ;;  %v12816_v31 = vand.u32 4294901760, %v46_v56 }
  0x4a   :  { %275 = vmatprep.subr.mxu0 %v19836_v1  ;;  %940 = vmatprep.subr.mxu1 %v19836_v1  ;;  %19873 = vst [vmem:[#allocation69_spill] sm:$0xff] %v12781_v44  ;;  %19877 = vst [vmem:[#allocation73_spill] sm:$0xff] %v12798_v32  ;;  %v12829_v42 = vand.u32 4294901760, %v308_v39 }
  0x4b   :  { %v965_v52 = vsub.f32 %v12685_v27, %v19868_v0  ;;  %277 = vmatpush2.msra.mxu0 %v12646_v26  ;;  %946 = vmatpush2.msra.mxu1 %v945_v59  ;;  %v972_v62 = vsub.f32 %v12692_v24, %v19872_v55  ;;  %v12788_v59 = vand.u32 4294901760, %v293_v8  ;;  %v12793_v55 = vsub.f32 %v41_v38, %v12751_v57 }
  0x4c   :  { %278 = vmatprep.subr.mxu0 %v19836_v1  ;;  %947 = vmatprep.subr.mxu1 %v19836_v1  ;;  %v12795_v0 = vand.u32 4294901760, %v43_v46  ;;  %v19878_v26 = vand.u32 4294901760, %v12715_v63  ;;  %v317_v8 = vsub.f32 %v12718_v13, %v12758_v22  ;;  %19880 = vst [vmem:[#allocation75_spill] sm:$0xff] %v12814_v53  ;;  %19881 = vst [vmem:[#allocation76_spill] sm:$0xff] %v12816_v31  ;;  %v19882_v22 = vand.u32 4294901760, %v12736_v19 }
  0x4d   :  { %19874 = vst [vmem:[#allocation70_spill] sm:$0xff] %v12788_v59  ;;  %19875 = vst [vmem:[#allocation71_spill] sm:$0xff] %v12793_v55  ;;  %280 = vmatpush2.msra.mxu0 %v12659_v29  ;;  %953 = vmatpush2.msra.mxu1 %v952_v40  ;;  %v966_v38 = vand.u32 4294901760, %v965_v52  ;;  %v12811_v40 = vand.u32 4294901760, %v12769_v14  ;;  %v323_v52 = vsub.f32 %v12739_v51, %v12781_v44  ;;  %v48_v29 = vld [vmem:[%s18872_s0 + $0x68] sm:$0xff]  ;;  %v12850_v39 = vand.u32 4294901760, %v12814_v53 }
  0x4e   :  { %19876 = vst [vmem:[#allocation72_spill] sm:$0xff] %v12795_v0  ;;  %v979_v24 = vsub.f32 %v12715_v63, %v19878_v26  ;;  %281 = vmatprep.subr.mxu0 %v19836_v1  ;;  %954 = vmatprep.subr.mxu1 %v19836_v1  ;;  %v973_v26 = vand.u32 4294901760, %v972_v62  ;;  %v986_v13 = vsub.f32 %v12736_v19, %v19882_v22  ;;  %19883 = vst [vmem:[#allocation77_spill] sm:$0xff] %v12829_v42 }
  0x4f   :  { %19879 = vst [vmem:[#allocation74_spill] sm:$0xff] %v12811_v40  ;;  %283 = vmatpush2.msra.mxu0 %v12681_v61  ;;  %289 = vmatprep.mubr.f32.mxu0 %v12774_v49  ;;  %v12832_v61 = vand.u32 4294901760, %v12793_v55  ;;  %v12835_v62 = vsub.f32 %v43_v46, %v12795_v0  ;;  %v12837_v49 = vand.u32 4294901760, %v45_v58  ;;  %v12841_v44 = vand.u32 4294901760, %v317_v8  ;;  %19888 = vst [vmem:[#allocation82_spill] sm:$0xff] %v12850_v39 }
  0x50   :  { %960 = vmatpush2.msra.mxu1 %v959_v23  ;;  %295 = vmatmul.mubr.f32.vlgmr.msra.gmra.mxu0 %v12788_v59  ;;  %v980_v22 = vand.u32 4294901760, %v979_v24  ;;  %v47_v23 = vld [vmem:[%s18872_s0 + $0x60] sm:$0xff]  ;;  %v332_v46 = vsub.f32 %v12769_v14, %v12811_v40  ;;  %v12853_v59 = vsub.f32 %v46_v56, %v12816_v31  ;;  %v50_v24 = vld [vmem:[%s18872_s0 + $0x78] sm:$0xff]  ;;  %v987_v8 = vand.u32 4294901760, %v986_v13  ;;  %v49_v13 = vld [vmem:[%s18872_s0 + $0x70] sm:$0xff] }
  0x51   :  { %19884 = vst [vmem:[#allocation78_spill] sm:$0xff] %v12832_v61  ;;  %19885 = vst [vmem:[#allocation79_spill] sm:$0xff] %v12835_v62  ;;  %961 = vmatprep.subr.mxu1 %v19836_v1  ;;  %304 = vmatprep.mubr.f32.mxu0 %v12798_v32  ;;  %v12855_v32 = vand.u32 4294901760, %v48_v29  ;;  %v338_v56 = vsub.f32 %v12793_v55, %v12832_v61  ;;  %v12868_v40 = vand.u32 4294901760, %v12835_v62  ;;  %v12873_v51 = vand.u32 4294901760, %v47_v23 }
  0x52   :  { %19886 = vst [vmem:[#allocation80_spill] sm:$0xff] %v12837_v49  ;;  %19887 = vst [vmem:[#allocation81_spill] sm:$0xff] %v12841_v44  ;;  %967 = vmatpush2.msra.mxu1 %v966_v38  ;;  %1214 = vmatprep.subr.mxu0 %v19836_v1  ;;  %v12862_v38 = vand.u32 4294901760, %v323_v52  ;;  %v12871_v14 = vsub.f32 %v45_v58, %v12837_v49  ;;  %v12883_v52 = vand.u32 4294901760, %v332_v46 }
  0x53   :  { %19889 = vst [vmem:[#allocation83_spill] sm:$0xff] %v12853_v59  ;;  %19890 = vst [vmem:[#allocation84_spill] sm:$0xff] %v12855_v32  ;;  %968 = vmatprep.subr.mxu1 %v19836_v1  ;;  %990 = vmatprep.mubr.f32.mxu1 %v12606_v2  ;;  %v347_v58 = vsub.f32 %v12814_v53, %v12850_v39  ;;  %v12891_v2 = vsub.f32 %v48_v29, %v12855_v32  ;;  %v12901_v46 = vand.u32 4294901760, %v338_v56 }
  0x54   :  { %19891 = vst [vmem:[#allocation85_spill] sm:$0xff] %v12862_v38  ;;  %974 = vmatpush2.msra.mxu1 %v973_v26  ;;  %310 = vmatmul.mubr.f32.gmra.mxu0 %v12829_v42  ;;  %19892 = vst [vmem:[#allocation86_spill] sm:$0xff] %v12868_v40  ;;  %v12880_v26 = vand.u32 4294901760, %v50_v24  ;;  %v12888_v42 = vand.u32 4294901760, %v12853_v59  ;;  %v353_v39 = vsub.f32 %v12835_v62, %v12868_v40  ;;  %v12906_v29 = vand.u32 4294901760, %v12871_v14 }
  0x55   :  { %19893 = vst [vmem:[#allocation87_spill] sm:$0xff] %v12871_v14  ;;  %19894 = vst [vmem:[#allocation88_spill] sm:$0xff] %v12873_v51  ;;  %975 = vmatprep.subr.mxu1 %v19836_v1  ;;  %319 = vmatprep.mubr.f32.mxu0 %v12841_v44  ;;  %v12895_v44 = vand.u32 4294901760, %v49_v13  ;;  %v12909_v61 = vsub.f32 %v47_v23, %v12873_v51  ;;  %v12921_v56 = vand.u32 4294901760, %v347_v58  ;;  %v54_v58 = vld [vmem:[%s18872_s0 + $0x98] sm:$0xff] }
  0x56   :  { %19895 = vst [vmem:[#allocation89_spill] sm:$0xff] %v12880_v26  ;;  %981 = vmatpush2.msra.mxu1 %v980_v22  ;;  %1217 = vmatpush1.msra.mxu0 %v12264_v15  ;;  %19896 = vst [vmem:[#allocation90_spill] sm:$0xff] %v12883_v52  ;;  %v52_v22 = vld [vmem:[%s18872_s0 + $0x88] sm:$0xff]  ;;  %v12914_v53 = vsub.f32 %v50_v24, %v12880_v26  ;;  %v362_v23 = vsub.f32 %v12853_v59, %v12888_v42 }
  0x57   :  { %19897 = vst [vmem:[#allocation91_spill] sm:$0xff] %v12888_v42  ;;  %19898 = vst [vmem:[#allocation92_spill] sm:$0xff] %v12891_v2  ;;  %982 = vmatprep.subr.mxu1 %v19836_v1  ;;  %1218 = vmatprep.subr.mxu0 %v19836_v1  ;;  %v12933_v24 = vsub.f32 %v49_v13, %v12895_v44  ;;  %v368_v42 = vsub.f32 %v12871_v14, %v12906_v29  ;;  %v12966_v14 = vand.u32 4294901760, %v54_v58 }
  0x58   :  { %19899 = vst [vmem:[#allocation93_spill] sm:$0xff] %v12895_v44  ;;  %988 = vmatpush2.msra.mxu1 %v987_v8  ;;  %325 = vmatmul.mubr.f32.gmra.mxu0 %v12862_v38  ;;  %19900 = vst [vmem:[#allocation94_spill] sm:$0xff] %v12901_v46  ;;  %v51_v8 = vld [vmem:[%s18872_s0 + $0x80] sm:$0xff]  ;;  %v12926_v38 = vand.u32 4294901760, %v12891_v2  ;;  %v12952_v13 = vand.u32 4294901760, %v12914_v53 }
  0x59   :  { %19901 = vst [vmem:[#allocation95_spill] sm:$0xff] %v12906_v29  ;;  %19902 = vst [vmem:[#allocation96_spill] sm:$0xff] %v12909_v61  ;;  %992 = vmatmul.mubr.f32.vlgmr.msra.gmra.mxu1 %v12614_v41  ;;  %1631 = vmatprep.subr.mxu1 %v19836_v1  ;;  %v12928_v41 = vand.u32 4294901760, %v52_v22  ;;  %v12947_v40 = vand.u32 4294901760, %v51_v8  ;;  %v12971_v59 = vand.u32 4294901760, %v12933_v24 }
  0x5a   :  { %19903 = vst [vmem:[#allocation97_spill] sm:$0xff] %v12914_v53  ;;  %1633 = vmatpush1.msra.mxu1 %v12235_v4  ;;  %334 = vmatprep.mubr.f32.mxu0 %v12883_v52  ;;  %19904 = vst [vmem:[#allocation98_spill] sm:$0xff] %v12921_v56  ;;  %v12940_v52 = vand.u32 4294901760, %v353_v39  ;;  %v53_v39 = vld [vmem:[%s18872_s0 + $0x90] sm:$0xff]  ;;  %v377_v29 = vsub.f32 %v12891_v2, %v12926_v38  ;;  %v392_v2 = vsub.f32 %v12914_v53, %v12952_v13 }
  0x5b   :  { %19905 = vst [vmem:[#allocation99_spill] sm:$0xff] %v12926_v38  ;;  %19906 = vst [vmem:[#allocation100_spill] sm:$0xff] %v12928_v41  ;;  %997 = vmatprep.mubr.f32.mxu1 %v12626_v33  ;;  %1221 = vmatpush1.msra.mxu0 %v12267_v16  ;;  %v12945_v33 = vand.u32 4294901760, %v12909_v61  ;;  %v12985_v38 = vand.u32 4294901760, %v53_v39 }
  0x5c   :  { %19907 = vst [vmem:[#allocation101_spill] sm:$0xff] %v12933_v24  ;;  %340 = vmatmul.mubr.f32.gmra.mxu0 %v12901_v46  ;;  %1634 = vmatprep.subr.mxu1 %v19836_v1  ;;  %19908 = vst [vmem:[#allocation102_spill] sm:$0xff] %v12940_v52  ;;  %v12959_v46 = vand.u32 4294901760, %v362_v23  ;;  %v56_v23 = vld [vmem:[%s18872_s0 + $0xa8] sm:$0xff] }
  0x5d   :  { %19909 = vst [vmem:[#allocation103_spill] sm:$0xff] %v12945_v33  ;;  %19910 = vst [vmem:[#allocation104_spill] sm:$0xff] %v12947_v40  ;;  %999 = vmatmul.mubr.f32.gmra.mxu1 %v12664_v9  ;;  %1222 = vmatprep.subr.mxu0 %v19836_v1  ;;  %v12964_v9 = vsub.f32 %v52_v22, %v12928_v41  ;;  %v383_v22 = vsub.f32 %v12909_v61, %v12945_v33  ;;  %v13004_v33 = vand.u32 4294901760, %v56_v23 }
  0x5e   :  { %19911 = vst [vmem:[#allocation105_spill] sm:$0xff] %v12952_v13  ;;  %1636 = vmatpush1.msra.mxu1 %v12237_v5  ;;  %349 = vmatprep.mubr.f32.mxu0 %v12921_v56  ;;  %19912 = vst [vmem:[#allocation106_spill] sm:$0xff] %v12959_v46  ;;  %v12978_v56 = vand.u32 4294901760, %v368_v42  ;;  %v55_v42 = vld [vmem:[%s18872_s0 + $0xa0] sm:$0xff]  ;;  %v398_v13 = vsub.f32 %v12933_v24, %v12971_v59 }
  0x5f   :  { %19913 = vst [vmem:[#allocation107_spill] sm:$0xff] %v12964_v9  ;;  %19914 = vst [vmem:[#allocation108_spill] sm:$0xff] %v12966_v14  ;;  %1004 = vmatprep.mubr.f32.mxu1 %v12674_v36  ;;  %1225 = vmatpush1.msra.mxu0 %v12272_v18  ;;  %v12983_v36 = vsub.f32 %v51_v8, %v12947_v40  ;;  %v12999_v8 = vand.u32 4294901760, %v12964_v9  ;;  %v13023_v53 = vand.u32 4294901760, %v55_v42 }
  0x60   :  { %19915 = vst [vmem:[#allocation109_spill] sm:$0xff] %v12971_v59  ;;  %355 = vmatmul.mubr.f32.gmra.mxu0 %v12940_v52  ;;  %1637 = vmatprep.subr.mxu1 %v19836_v1  ;;  %19916 = vst [vmem:[#allocation110_spill] sm:$0xff] %v12978_v56  ;;  %v12996_v52 = vand.u32 4294901760, %v377_v29  ;;  %v58_v29 = vld [vmem:[%s18872_s0 + $0xb8] sm:$0xff]  ;;  %v13027_v59 = vand.u32 4294901760, %v392_v2  ;;  %v60_v2 = vld [vmem:[%s18872_s0 + $0xc8] sm:$0xff] }
  0x61   :  { %19917 = vst [vmem:[#allocation111_spill] sm:$0xff] %v12983_v36  ;;  %19918 = vst [vmem:[#allocation112_spill] sm:$0xff] %v12985_v38  ;;  %1006 = vmatmul.mubr.f32.gmra.mxu1 %v12694_v37  ;;  %1226 = vmatprep.subr.mxu0 %v19836_v1  ;;  %v13002_v37 = vsub.f32 %v54_v58, %v12966_v14  ;;  %v13018_v58 = vand.u32 4294901760, %v12983_v36  ;;  %v13042_v24 = vand.u32 4294901760, %v58_v29 }
  0x62   :  { %1639 = vmatpush1.msra.mxu1 %v12239_v6  ;;  %364 = vmatprep.mubr.f32.mxu0 %v12959_v46  ;;  %19919 = vst [vmem:[#allocation113_spill] sm:$0xff] %v12996_v52  ;;  %19920 = vst [vmem:[#allocation114_spill] sm:$0xff] %v12999_v8  ;;  %v13015_v46 = vand.u32 4294901760, %v383_v22 }
  0x63   :  { %19921 = vst [vmem:[#allocation115_spill] sm:$0xff] %v13002_v37  ;;  %19922 = vst [vmem:[#allocation116_spill] sm:$0xff] %v13004_v33  ;;  %1011 = vmatprep.mubr.f32.mxu1 %v12729_v50  ;;  %1229 = vmatpush1.msra.mxu0 %v12279_v20  ;;  %v13021_v50 = vsub.f32 %v53_v39, %v12985_v38  ;;  %v407_v39 = vsub.f32 %v12964_v9, %v12999_v8  ;;  %v13037_v22 = vand.u32 4294901760, %v13002_v37 }
  0x64   :  { %370 = vmatmul.mubr.f32.gmra.mxu0 %v12978_v56  ;;  %1640 = vmatprep.subr.mxu1 %v19836_v1  ;;  %19923 = vst [vmem:[#allocation117_spill] sm:$0xff] %v13015_v46  ;;  %19924 = vst [vmem:[#allocation118_spill] sm:$0xff] %v13018_v58  ;;  %v57_v56 = vld [vmem:[%s18872_s0 + $0xb0] sm:$0xff]  ;;  %v13059_v9 = vsub.f32 %v55_v42, %v13023_v53 }
  0x65   :  { %19925 = vst [vmem:[#allocation119_spill] sm:$0xff] %v13021_v50  ;;  %19926 = vst [vmem:[#allocation120_spill] sm:$0xff] %v13023_v53  ;;  %1013 = vmatmul.mubr.f32.gmra.mxu1 %v12751_v57  ;;  %1230 = vmatprep.subr.mxu0 %v19836_v1  ;;  %v13040_v57 = vsub.f32 %v56_v23, %v13004_v33  ;;  %v413_v23 = vsub.f32 %v12983_v36, %v13018_v58  ;;  %v13056_v8 = vand.u32 4294901760, %v13021_v50 }
  0x66   :  { %19927 = vst [vmem:[#allocation121_spill] sm:$0xff] %v13027_v59  ;;  %1642 = vmatpush1.msra.mxu1 %v12250_v10  ;;  %379 = vmatprep.mubr.f32.mxu0 %v12996_v52  ;;  %19928 = vst [vmem:[#allocation122_spill] sm:$0xff] %v13037_v22  ;;  %v13049_v52 = vand.u32 4294901760, %v398_v13  ;;  %v13061_v61 = vand.u32 4294901760, %v57_v56  ;;  %v59_v13 = vld [vmem:[%s18872_s0 + $0xc0] sm:$0xff]  ;;  %v422_v42 = vsub.f32 %v13002_v37, %v13037_v22  ;;  %v13096_v22 = vand.u32 4294901760, %v13059_v9 }
  0x67   :  { %19929 = vst [vmem:[#allocation123_spill] sm:$0xff] %v13040_v57  ;;  %19930 = vst [vmem:[#allocation124_spill] sm:$0xff] %v13042_v24  ;;  %1018 = vmatprep.mubr.f32.mxu1 %v12771_v7  ;;  %1233 = vmatpush1.msra.mxu0 %v12282_v21  ;;  %v13072_v7 = vand.u32 4294901760, %v407_v39  ;;  %v13077_v58 = vand.u32 4294901760, %v13040_v57  ;;  %v13080_v36 = vsub.f32 %v58_v29, %v13042_v24  ;;  %v62_v39 = vld [vmem:[%s18872_s0 + $0xd8] sm:$0xff] }
  0x68   :  { %19931 = vst [vmem:[#allocation125_spill] sm:$0xff] %v13049_v52  ;;  %385 = vmatmul.mubr.f32.gmra.mxu0 %v13015_v46  ;;  %1643 = vmatprep.subr.mxu1 %v19836_v1  ;;  %19932 = vst [vmem:[#allocation126_spill] sm:$0xff] %v13056_v8  ;;  %v13068_v46 = vand.u32 4294901760, %v60_v2  ;;  %v428_v29 = vsub.f32 %v13021_v50, %v13056_v8  ;;  %v13118_v8 = vand.u32 4294901760, %v62_v39 }
  0x69   :  { %19933 = vst [vmem:[#allocation127_spill] sm:$0xff] %v13059_v9  ;;  %19934 = vst [vmem:[#allocation128_spill] sm:$0xff] %v13061_v61  ;;  %1020 = vmatmul.mubr.f32.gmra.mxu1 %v12795_v0  ;;  %1234 = vmatprep.subr.mxu0 %v19836_v1  ;;  %v13084_v0 = vand.u32 4294901760, %v59_v13 }
  0x6a   :  { %19935 = vst [vmem:[#allocation129_spill] sm:$0xff] %v13068_v46  ;;  %1645 = vmatpush1.msra.mxu1 %v12252_v11  ;;  %394 = vmatprep.mubr.f32.mxu0 %v13027_v59  ;;  %19936 = vst [vmem:[#allocation130_spill] sm:$0xff] %v13072_v7  ;;  %v13091_v59 = vand.u32 4294901760, %v413_v23  ;;  %v13104_v37 = vsub.f32 %v60_v2, %v13068_v46  ;;  %v61_v23 = vld [vmem:[%s18872_s0 + $0xd0] sm:$0xff] }
  0x6b   :  { %19937 = vst [vmem:[#allocation131_spill] sm:$0xff] %v13077_v58  ;;  %19938 = vst [vmem:[#allocation132_spill] sm:$0xff] %v13080_v36  ;;  %1025 = vmatprep.mubr.f32.mxu1 %v12816_v31  ;;  %1237 = vmatpush1.msra.mxu0 %v12299_v30  ;;  %v13099_v31 = vsub.f32 %v57_v56, %v13061_v61  ;;  %v437_v56 = vsub.f32 %v13040_v57, %v13077_v58  ;;  %v13137_v57 = vand.u32 4294901760, %v61_v23 }
  0x6c   :  { %19939 = vst [vmem:[#allocation133_spill] sm:$0xff] %v13084_v0  ;;  %400 = vmatmul.mubr.f32.gmra.mxu0 %v13049_v52  ;;  %1646 = vmatprep.subr.mxu1 %v19836_v1  ;;  %19940 = vst [vmem:[#allocation134_spill] sm:$0xff] %v13091_v59  ;;  %v13111_v52 = vand.u32 4294901760, %v422_v42  ;;  %v13123_v2 = vsub.f32 %v59_v13, %v13084_v0  ;;  %v64_v42 = vld [vmem:[%s18872_s0 + $0xe8] sm:$0xff]  ;;  %v443_v58 = vsub.f32 %v13059_v9, %v13096_v22 }
  0x6d   :  { %19941 = vst [vmem:[#allocation135_spill] sm:$0xff] %v13096_v22  ;;  %19942 = vst [vmem:[#allocation136_spill] sm:$0xff] %v13099_v31  ;;  %1027 = vmatmul.mubr.f32.gmra.mxu1 %v12837_v49  ;;  %1238 = vmatprep.subr.mxu0 %v19836_v1  ;;  %v13116_v49 = vand.u32 4294901760, %v13080_v36  ;;  %v13142_v13 = vand.u32 4294901760, %v13104_v37  ;;  %v13156_v9 = vand.u32 4294901760, %v64_v42 }
  0x6e   :  { %19943 = vst [vmem:[#allocation137_spill] sm:$0xff] %v13104_v37  ;;  %1648 = vmatpush1.msra.mxu1 %v12254_v12  ;;  %409 = vmatprep.mubr.f32.mxu0 %v13072_v7  ;;  %19944 = vst [vmem:[#allocation138_spill] sm:$0xff] %v13111_v52  ;;  %v13130_v7 = vand.u32 4294901760, %v428_v29  ;;  %v63_v29 = vld [vmem:[%s18872_s0 + $0xe0] sm:$0xff]  ;;  %v13161_v50 = vand.u32 4294901760, %v13123_v2 }
  0x6f   :  { %19945 = vst [vmem:[#allocation139_spill] sm:$0xff] %v13116_v49  ;;  %19946 = vst [vmem:[#allocation140_spill] sm:$0xff] %v13118_v8  ;;  %1032 = vmatprep.mubr.f32.mxu1 %v12855_v32  ;;  %1241 = vmatpush1.msra.mxu0 %v12312_v34  ;;  %v13135_v32 = vand.u32 4294901760, %v13099_v31  ;;  %v452_v22 = vsub.f32 %v13080_v36, %v13116_v49  ;;  %v13175_v49 = vand.u32 4294901760, %v63_v29 }
  0x70   :  { %19947 = vst [vmem:[#allocation141_spill] sm:$0xff] %v13123_v2  ;;  %415 = vmatmul.mubr.f32.gmra.mxu0 %v13091_v59  ;;  %1649 = vmatprep.subr.mxu1 %v19836_v1  ;;  %19948 = vst [vmem:[#allocation142_spill] sm:$0xff] %v13130_v7  ;;  %v13149_v59 = vand.u32 4294901760, %v437_v56  ;;  %v66_v56 = vld [vmem:[%s18872_s0 + $0xf8] sm:$0xff]  ;;  %v467_v36 = vsub.f32 %v13104_v37, %v13142_v13 }
  0x71   :  { %19949 = vst [vmem:[#allocation143_spill] sm:$0xff] %v13135_v32  ;;  %19950 = vst [vmem:[#allocation144_spill] sm:$0xff] %v13137_v57  ;;  %1034 = vmatmul.mubr.f32.gmra.mxu1 %v12873_v51  ;;  %1242 = vmatprep.subr.mxu0 %v19836_v1  ;;  %v13154_v51 = vsub.f32 %v62_v39, %v13118_v8  ;;  %v458_v39 = vsub.f32 %v13099_v31, %v13135_v32  ;;  %v13194_v32 = vand.u32 4294901760, %v66_v56 }
  0x72   :  { %19951 = vst [vmem:[#allocation145_spill] sm:$0xff] %v13142_v13  ;;  %1651 = vmatpush1.msra.mxu1 %v12269_v17  ;;  %424 = vmatprep.mubr.f32.mxu0 %v13111_v52  ;;  %19952 = vst [vmem:[#allocation146_spill] sm:$0xff] %v13149_v59  ;;  %v13168_v52 = vand.u32 4294901760, %v443_v58  ;;  %v65_v58 = vld [vmem:[%s18872_s0 + $0xf0] sm:$0xff]  ;;  %v473_v13 = vsub.f32 %v13123_v2, %v13161_v50 }
  0x73   :  { %19953 = vst [vmem:[#allocation147_spill] sm:$0xff] %v13154_v51  ;;  %19954 = vst [vmem:[#allocation148_spill] sm:$0xff] %v13156_v9  ;;  %1039 = vmatprep.mubr.f32.mxu1 %v12880_v26  ;;  %1245 = vmatpush1.msra.mxu0 %v12333_v43  ;;  %v13173_v26 = vsub.f32 %v61_v23, %v13137_v57  ;;  %v13189_v23 = vand.u32 4294901760, %v13154_v51  ;;  %v13213_v37 = vand.u32 4294901760, %v65_v58 }
  0x74   :  { %19955 = vst [vmem:[#allocation149_spill] sm:$0xff] %v13161_v50  ;;  %430 = vmatmul.mubr.f32.gmra.mxu0 %v13130_v7  ;;  %1652 = vmatprep.subr.mxu1 %v19836_v1  ;;  %19956 = vst [vmem:[#allocation150_spill] sm:$0xff] %v13168_v52  ;;  %v13186_v7 = vand.u32 4294901760, %v452_v22  ;;  %v68_v22 = vld [vmem:[%s18872_s0 + $0x108] sm:$0xff]  ;;  %v13217_v50 = vand.u32 4294901760, %v467_v36  ;;  %v70_v36 = vld [vmem:[%s18872_s0 + $0x118] sm:$0xff] }
  0x75   :  { %19957 = vst [vmem:[#allocation151_spill] sm:$0xff] %v13173_v26  ;;  %19958 = vst [vmem:[#allocation152_spill] sm:$0xff] %v13175_v49  ;;  %1041 = vmatmul.mubr.f32.gmra.mxu1 %v12895_v44  ;;  %1246 = vmatprep.subr.mxu0 %v19836_v1  ;;  %v13192_v44 = vsub.f32 %v64_v42, %v13156_v9  ;;  %v13208_v42 = vand.u32 4294901760, %v13173_v26  ;;  %v13232_v2 = vand.u32 4294901760, %v68_v22 }
  0x76   :  { %1654 = vmatpush1.msra.mxu1 %v12288_v25  ;;  %439 = vmatprep.mubr.f32.mxu0 %v13149_v59  ;;  %19959 = vst [vmem:[#allocation153_spill] sm:$0xff] %v13186_v7  ;;  %19960 = vst [vmem:[#allocation154_spill] sm:$0xff] %v13189_v23  ;;  %v13205_v59 = vand.u32 4294901760, %v458_v39 }
  0x77   :  { %19961 = vst [vmem:[#allocation155_spill] sm:$0xff] %v13192_v44  ;;  %19962 = vst [vmem:[#allocation156_spill] sm:$0xff] %v13194_v32  ;;  %1046 = vmatprep.mubr.f32.mxu1 %v12928_v41  ;;  %1249 = vmatpush1.msra.mxu0 %v12340_v47  ;;  %v13211_v41 = vsub.f32 %v63_v29, %v13175_v49  ;;  %v482_v29 = vsub.f32 %v13154_v51, %v13189_v23  ;;  %v13227_v39 = vand.u32 4294901760, %v13192_v44 }
  0x78   :  { %445 = vmatmul.mubr.f32.gmra.mxu0 %v13168_v52  ;;  %1655 = vmatprep.subr.mxu1 %v19836_v1  ;;  %19963 = vst [vmem:[#allocation157_spill] sm:$0xff] %v13205_v59  ;;  %19964 = vst [vmem:[#allocation158_spill] sm:$0xff] %v13208_v42  ;;  %v67_v52 = vld [vmem:[%s18872_s0 + $0x100] sm:$0xff]  ;;  %v13249_v51 = vsub.f32 %v65_v58, %v13213_v37 }
  0x79   :  { %19965 = vst [vmem:[#allocation159_spill] sm:$0xff] %v13211_v41  ;;  %19966 = vst [vmem:[#allocation160_spill] sm:$0xff] %v13213_v37  ;;  %1048 = vmatmul.mubr.f32.gmra.mxu1 %v12947_v40  ;;  %1250 = vmatprep.subr.mxu0 %v19836_v1  ;;  %v13230_v40 = vsub.f32 %v66_v56, %v13194_v32  ;;  %v488_v56 = vsub.f32 %v13173_v26, %v13208_v42  ;;  %v13246_v23 = vand.u32 4294901760, %v13211_v41 }
  0x7a   :  { %19967 = vst [vmem:[#allocation161_spill] sm:$0xff] %v13217_v50  ;;  %1657 = vmatpush1.msra.mxu1 %v12295_v28  ;;  %454 = vmatprep.mubr.f32.mxu0 %v13186_v7  ;;  %19968 = vst [vmem:[#allocation162_spill] sm:$0xff] %v13227_v39  ;;  %v13239_v7 = vand.u32 4294901760, %v473_v13  ;;  %v13251_v31 = vand.u32 4294901760, %v67_v52  ;;  %v69_v13 = vld [vmem:[%s18872_s0 + $0x110] sm:$0xff]  ;;  %v497_v58 = vsub.f32 %v13192_v44, %v13227_v39  ;;  %v13286_v39 = vand.u32 4294901760, %v13249_v51 }
  0x7b   :  { %19969 = vst [vmem:[#allocation163_spill] sm:$0xff] %v13230_v40  ;;  %19970 = vst [vmem:[#allocation164_spill] sm:$0xff] %v13232_v2  ;;  %1053 = vmatprep.mubr.f32.mxu1 %v12966_v14  ;;  %1253 = vmatpush1.msra.mxu0 %v12358_v54  ;;  %v13262_v14 = vand.u32 4294901760, %v482_v29  ;;  %v13267_v42 = vand.u32 4294901760, %v13230_v40  ;;  %v13270_v26 = vsub.f32 %v68_v22, %v13232_v2  ;;  %v72_v29 = vld [vmem:[%s18872_s0 + $0x128] sm:$0xff] }
  0x7c   :  { %19971 = vst [vmem:[#allocation165_spill] sm:$0xff] %v13239_v7  ;;  %460 = vmatmul.mubr.f32.gmra.mxu0 %v13205_v59  ;;  %1658 = vmatprep.subr.mxu1 %v19836_v1  ;;  %19972 = vst [vmem:[#allocation166_spill] sm:$0xff] %v13246_v23  ;;  %v13258_v59 = vand.u32 4294901760, %v70_v36  ;;  %v503_v22 = vsub.f32 %v13211_v41, %v13246_v23  ;;  %v13308_v23 = vand.u32 4294901760, %v72_v29  ;;  %v19995_v41 = vld [vmem:[#allocation13_spill] sm:$0xff] }
  0x7d   :  { %19973 = vst [vmem:[#allocation167_spill] sm:$0xff] %v13249_v51  ;;  %19974 = vst [vmem:[#allocation168_spill] sm:$0xff] %v13251_v31  ;;  %1055 = vmatmul.mubr.f32.gmra.mxu1 %v12985_v38  ;;  %1254 = vmatprep.subr.mxu0 %v19836_v1  ;;  %v13274_v38 = vand.u32 4294901760, %v69_v13 }
  0x7e   :  { %19975 = vst [vmem:[#allocation169_spill] sm:$0xff] %v13258_v59  ;;  %1660 = vmatpush1.msra.mxu1 %v12315_v35  ;;  %469 = vmatprep.mubr.f32.mxu0 %v13217_v50  ;;  %19976 = vst [vmem:[#allocation170_spill] sm:$0xff] %v13262_v14  ;;  %v13281_v50 = vand.u32 4294901760, %v488_v56  ;;  %v13294_v44 = vsub.f32 %v70_v36, %v13258_v59  ;;  %v71_v56 = vld [vmem:[%s18872_s0 + $0x120] sm:$0xff] }
  0x7f   :  { %19977 = vst [vmem:[#allocation171_spill] sm:$0xff] %v13267_v42  ;;  %19978 = vst [vmem:[#allocation172_spill] sm:$0xff] %v13270_v26  ;;  %1060 = vmatprep.mubr.f32.mxu1 %v13004_v33  ;;  %1257 = vmatpush1.msra.mxu0 %v12373_v60  ;;  %v13289_v33 = vsub.f32 %v67_v52, %v13251_v31  ;;  %v512_v52 = vsub.f32 %v13230_v40, %v13267_v42  ;;  %v13327_v40 = vand.u32 4294901760, %v71_v56 }
  0x80   :  { %19979 = vst [vmem:[#allocation173_spill] sm:$0xff] %v13274_v38  ;;  %475 = vmatmul.mubr.f32.gmra.mxu0 %v13239_v7  ;;  %1661 = vmatprep.subr.mxu1 %v19836_v1  ;;  %19980 = vst [vmem:[#allocation174_spill] sm:$0xff] %v13281_v50  ;;  %v13301_v7 = vand.u32 4294901760, %v497_v58  ;;  %v13313_v36 = vsub.f32 %v69_v13, %v13274_v38  ;;  %v74_v58 = vld [vmem:[%s18872_s0 + $0x138] sm:$0xff]  ;;  %v518_v42 = vsub.f32 %v13249_v51, %v13286_v39 }
  0x81   :  { %19981 = vst [vmem:[#allocation175_spill] sm:$0xff] %v13286_v39  ;;  %19982 = vst [vmem:[#allocation176_spill] sm:$0xff] %v13289_v33  ;;  %1062 = vmatmul.mubr.f32.gmra.mxu1 %v13023_v53  ;;  %1258 = vmatprep.subr.mxu0 %v19836_v1  ;;  %v13306_v53 = vand.u32 4294901760, %v13270_v26  ;;  %v13332_v13 = vand.u32 4294901760, %v13294_v44  ;;  %v13346_v51 = vand.u32 4294901760, %v74_v58 }
  0x82   :  { %19983 = vst [vmem:[#allocation177_spill] sm:$0xff] %v13294_v44  ;;  %1663 = vmatpush1.msra.mxu1 %v12336_v45  ;;  %484 = vmatprep.mubr.f32.mxu0 %v13262_v14  ;;  %19984 = vst [vmem:[#allocation178_spill] sm:$0xff] %v13301_v7  ;;  %v13320_v14 = vand.u32 4294901760, %v503_v22  ;;  %v73_v22 = vld [vmem:[%s18872_s0 + $0x130] sm:$0xff] }
  0x83   :  { %19985 = vst [vmem:[#allocation179_spill] sm:$0xff] %v13306_v53  ;;  %19986 = vst [vmem:[#allocation180_spill] sm:$0xff] %v13308_v23  ;;  %1067 = vmatprep.mubr.f32.mxu1 %v13042_v24  ;;  %1261 = vmatpush1.msra.mxu0 %v12388_v3  ;;  %v13325_v24 = vand.u32 4294901760, %v13289_v33  ;;  %v527_v39 = vsub.f32 %v13270_v26, %v13306_v53  ;;  %v13351_v3 = vand.u32 4294901760, %v13313_v36  ;;  %v13365_v53 = vand.u32 4294901760, %v73_v22 }
  0x84   :  { %19987 = vst [vmem:[#allocation181_spill] sm:$0xff] %v13313_v36  ;;  %490 = vmatmul.mubr.f32.gmra.mxu0 %v13281_v50  ;;  %1664 = vmatprep.subr.mxu1 %v19836_v1  ;;  %19988 = vst [vmem:[#allocation182_spill] sm:$0xff] %v13320_v14  ;;  %v13339_v50 = vand.u32 4294901760, %v512_v52  ;;  %v76_v52 = vld [vmem:[%s18872_s0 + $0x148] sm:$0xff]  ;;  %v542_v26 = vsub.f32 %v13294_v44, %v13332_v13 }
  0x85   :  { %19989 = vst [vmem:[#allocation183_spill] sm:$0xff] %v13325_v24  ;;  %19990 = vst [vmem:[#allocation184_spill] sm:$0xff] %v13327_v40  ;;  %1069 = vmatmul.mubr.f32.gmra.mxu1 %v13061_v61  ;;  %1262 = vmatprep.subr.mxu0 %v19836_v1  ;;  %v13344_v61 = vsub.f32 %v72_v29, %v13308_v23  ;;  %v533_v29 = vsub.f32 %v13289_v33, %v13325_v24  ;;  %v13376_v24 = vand.u32 4294901760, %v527_v39  ;;  %v78_v39 = vld [vmem:[%s18872_s0 + $0x158] sm:$0xff] }
  0x86   :  { %19991 = vst [vmem:[#allocation185_spill] sm:$0xff] %v13332_v13  ;;  %1666 = vmatpush1.msra.mxu1 %v12344_v48  ;;  %499 = vmatprep.mubr.f32.mxu0 %v13301_v7  ;;  %19992 = vst [vmem:[#allocation186_spill] sm:$0xff] %v13339_v50  ;;  %v13358_v7 = vand.u32 4294901760, %v518_v42  ;;  %v75_v42 = vld [vmem:[%s18872_s0 + $0x140] sm:$0xff]  ;;  %v13384_v33 = vand.u32 4294901760, %v76_v52  ;;  %v20005_v13 = vld [vmem:[#allocation15_spill] sm:$0xff]  ;;  %v548_v44 = vsub.f32 %v13313_v36, %v13351_v3 }
  0x87   :  { %19993 = vst [vmem:[#allocation187_spill] sm:$0xff] %v13344_v61  ;;  %19994 = vst [vmem:[#allocation188_spill] sm:$0xff] %v13346_v51  ;;  %1074 = vmatprep.mubr.f32.mxu1 %v13068_v46  ;;  %1265 = vmatpush1.msra.mxu0 %v19995_v41  ;;  %v13363_v46 = vsub.f32 %v71_v56, %v13327_v40  ;;  %v13379_v56 = vand.u32 4294901760, %v13344_v61 }
  0x88   :  { %19996 = vst [vmem:[#allocation189_spill] sm:$0xff] %v13351_v3  ;;  %505 = vmatmul.mubr.f32.gmra.mxu0 %v13320_v14  ;;  %1667 = vmatprep.subr.mxu1 %v19836_v1  ;;  %19997 = vst [vmem:[#allocation190_spill] sm:$0xff] %v13358_v7  ;;  %v20000_v14 = vld [vmem:[#allocation9_spill] sm:$0xff]  ;;  %v13407_v3 = vand.u32 4294901760, %v542_v26  ;;  %v80_v26 = vld [vmem:[%s18872_s0 + $0x168] sm:$0xff] }
  0x89   :  { %19998 = vst [vmem:[#allocation191_spill] sm:$0xff] %v13363_v46  ;;  %19999 = vst [vmem:[#allocation192_spill] sm:$0xff] %v13365_v53  ;;  %1076 = vmatmul.mubr.f32.gmra.mxu1 %v13084_v0  ;;  %1266 = vmatprep.subr.mxu0 %v19836_v1  ;;  %v13382_v0 = vsub.f32 %v74_v58, %v13346_v51  ;;  %v13398_v58 = vand.u32 4294901760, %v13363_v46 }
  0x8a   :  { %1669 = vmatpush1.msra.mxu1 %v20000_v14  ;;  %514 = vmatprep.mubr.f32.mxu0 %v13339_v50  ;;  %20001 = vst [vmem:[#allocation193_spill] sm:$0xff] %v13376_v24  ;;  %20002 = vst [vmem:[#allocation194_spill] sm:$0xff] %v13379_v56  ;;  %v13395_v50 = vand.u32 4294901760, %v533_v29  ;;  %v20011_v29 = vld [vmem:[#allocation10_spill] sm:$0xff]  ;;  %v13422_v14 = vand.u32 4294901760, %v78_v39 }
  0x8b   :  { %20003 = vst [vmem:[#allocation195_spill] sm:$0xff] %v13382_v0  ;;  %20004 = vst [vmem:[#allocation196_spill] sm:$0xff] %v13384_v33  ;;  %1081 = vmatprep.mubr.f32.mxu1 %v13118_v8  ;;  %1269 = vmatpush1.msra.mxu0 %v20005_v13  ;;  %v13401_v8 = vsub.f32 %v73_v22, %v13365_v53  ;;  %v13403_v13 = vand.u32 4294901760, %v75_v42  ;;  %v557_v22 = vsub.f32 %v13344_v61, %v13379_v56 }
  0x8c   :  { %520 = vmatmul.mubr.f32.gmra.mxu0 %v13358_v7  ;;  %1670 = vmatprep.subr.mxu1 %v19836_v1  ;;  %20006 = vst [vmem:[#allocation197_spill] sm:$0xff] %v13395_v50  ;;  %20007 = vst [vmem:[#allocation198_spill] sm:$0xff] %v13398_v58  ;;  %v77_v7 = vld [vmem:[%s18872_s0 + $0x150] sm:$0xff]  ;;  %v13417_v36 = vand.u32 4294901760, %v13382_v0 }
  0x8d   :  { %20008 = vst [vmem:[#allocation199_spill] sm:$0xff] %v13401_v8  ;;  %20009 = vst [vmem:[#allocation200_spill] sm:$0xff] %v13403_v13  ;;  %1083 = vmatmul.mubr.f32.gmra.mxu1 %v13137_v57  ;;  %1270 = vmatprep.subr.mxu0 %v19836_v1  ;;  %v13420_v57 = vsub.f32 %v76_v52, %v13384_v33  ;;  %v563_v52 = vsub.f32 %v13363_v46, %v13398_v58  ;;  %v13436_v56 = vand.u32 4294901760, %v13401_v8 }
  0x8e   :  { %20010 = vst [vmem:[#allocation201_spill] sm:$0xff] %v13407_v3  ;;  %1672 = vmatpush1.msra.mxu1 %v20011_v29  ;;  %529 = vmatprep.mubr.f32.mxu0 %v13376_v24  ;;  %20012 = vst [vmem:[#allocation202_spill] sm:$0xff] %v13417_v36  ;;  %v20015_v29 = vld [vmem:[#allocation17_spill] sm:$0xff]  ;;  %v13429_v24 = vand.u32 4294901760, %v548_v44  ;;  %v13439_v61 = vsub.f32 %v75_v42, %v13403_v13  ;;  %v13441_v41 = vand.u32 4294901760, %v77_v7  ;;  %v79_v44 = vld [vmem:[%s18872_s0 + $0x160] sm:$0xff] }
  0x8f   :  { %20013 = vst [vmem:[#allocation203_spill] sm:$0xff] %v13420_v57  ;;  %20014 = vst [vmem:[#allocation204_spill] sm:$0xff] %v13422_v14  ;;  %1088 = vmatprep.mubr.f32.mxu1 %v13156_v9  ;;  %1273 = vmatpush1.msra.mxu0 %v20015_v29  ;;  %v20021_v9 = vld [vmem:[#allocation12_spill] sm:$0xff]  ;;  %v13452_v58 = vand.u32 4294901760, %v557_v22  ;;  %v572_v42 = vsub.f32 %v13382_v0, %v13417_v36  ;;  %v13457_v46 = vand.u32 4294901760, %v13420_v57  ;;  %v13464_v48 = vand.u32 4294901760, %v79_v44 }
  0x90   :  { %20016 = vst [vmem:[#allocation205_spill] sm:$0xff] %v13429_v24  ;;  %535 = vmatmul.mubr.f32.gmra.mxu0 %v13395_v50  ;;  %1673 = vmatprep.subr.mxu1 %v19836_v1  ;;  %20017 = vst [vmem:[#allocation206_spill] sm:$0xff] %v13436_v56  ;;  %v13448_v50 = vand.u32 4294901760, %v80_v26  ;;  %v13460_v29 = vsub.f32 %v78_v39, %v13422_v14  ;;  %v82_v22 = vld [vmem:[%s18872_s0 + $0x178] sm:$0xff]  ;;  %v578_v39 = vsub.f32 %v13401_v8, %v13436_v56 }
  0x91   :  { %20018 = vst [vmem:[#allocation207_spill] sm:$0xff] %v13439_v61  ;;  %20019 = vst [vmem:[#allocation208_spill] sm:$0xff] %v13441_v41  ;;  %1090 = vmatmul.mubr.f32.gmra.mxu1 %v13175_v49  ;;  %1274 = vmatprep.subr.mxu0 %v19836_v1  ;;  %v20025_v49 = vld [vmem:[#allocation19_spill] sm:$0xff]  ;;  %v13476_v36 = vand.u32 4294901760, %v13439_v61  ;;  %v13491_v56 = vand.u32 4294901760, %v572_v42  ;;  %v13498_v8 = vand.u32 4294901760, %v82_v22 }
  0x92   :  { %20020 = vst [vmem:[#allocation209_spill] sm:$0xff] %v13448_v50  ;;  %1675 = vmatpush1.msra.mxu1 %v20021_v9  ;;  %544 = vmatprep.mubr.f32.mxu0 %v13407_v3  ;;  %20022 = vst [vmem:[#allocation210_spill] sm:$0xff] %v13452_v58  ;;  %v13471_v3 = vand.u32 4294901760, %v563_v52  ;;  %v13484_v0 = vsub.f32 %v80_v26, %v13448_v50  ;;  %v81_v52 = vld [vmem:[%s18872_s0 + $0x170] sm:$0xff]  ;;  %v20035_v26 = vld [vmem:[#allocation21_spill] sm:$0xff] }
  0x93   :  { %20023 = vst [vmem:[#allocation211_spill] sm:$0xff] %v13457_v46  ;;  %20024 = vst [vmem:[#allocation212_spill] sm:$0xff] %v13460_v29  ;;  %1095 = vmatprep.mubr.f32.mxu1 %v13194_v32  ;;  %1277 = vmatpush1.msra.mxu0 %v20025_v49  ;;  %v13479_v32 = vsub.f32 %v77_v7, %v13441_v41  ;;  %v587_v7 = vsub.f32 %v13420_v57, %v13457_v46  ;;  %v84_v42 = vld [vmem:[%s18872_s0 + $0x188] sm:$0xff]  ;;  %v13517_v57 = vand.u32 4294901760, %v81_v52 }
  0x94   :  { %20026 = vst [vmem:[#allocation213_spill] sm:$0xff] %v13464_v48  ;;  %550 = vmatmul.mubr.f32.gmra.mxu0 %v13429_v24  ;;  %1676 = vmatprep.subr.mxu1 %v19836_v1  ;;  %20027 = vst [vmem:[#allocation214_spill] sm:$0xff] %v13471_v3  ;;  %v20031_v24 = vld [vmem:[#allocation14_spill] sm:$0xff]  ;;  %v13503_v49 = vsub.f32 %v79_v44, %v13464_v48  ;;  %v593_v46 = vsub.f32 %v13439_v61, %v13476_v36  ;;  %v13522_v44 = vand.u32 4294901760, %v13484_v0 }
  0x95   :  { %20028 = vst [vmem:[#allocation215_spill] sm:$0xff] %v13476_v36  ;;  %20029 = vst [vmem:[#allocation216_spill] sm:$0xff] %v13479_v32  ;;  %1097 = vmatmul.mubr.f32.gmra.mxu1 %v13213_v37  ;;  %1278 = vmatprep.subr.mxu0 %v19836_v1  ;;  %v13496_v37 = vand.u32 4294901760, %v13460_v29  ;;  %v13529_v36 = vand.u32 4294901760, %v587_v7  ;;  %v86_v7 = vld [vmem:[%s18872_s0 + $0x198] sm:$0xff] }
  0x96   :  { %20030 = vst [vmem:[#allocation217_spill] sm:$0xff] %v13484_v0  ;;  %1678 = vmatpush1.msra.mxu1 %v20031_v24  ;;  %559 = vmatprep.mubr.f32.mxu0 %v13452_v58  ;;  %20032 = vst [vmem:[#allocation218_spill] sm:$0xff] %v13491_v56  ;;  %v13510_v58 = vand.u32 4294901760, %v578_v39  ;;  %v83_v39 = vld [vmem:[%s18872_s0 + $0x180] sm:$0xff]  ;;  %v20045_v24 = vld [vmem:[#allocation23_spill] sm:$0xff]  ;;  %v13541_v9 = vand.u32 4294901760, %v13503_v49 }
  0x97   :  { %20033 = vst [vmem:[#allocation219_spill] sm:$0xff] %v13496_v37  ;;  %20034 = vst [vmem:[#allocation220_spill] sm:$0xff] %v13498_v8  ;;  %1102 = vmatprep.mubr.f32.mxu1 %v13232_v2  ;;  %1281 = vmatpush2.msra.mxu0 %v20035_v26  ;;  %v13515_v2 = vand.u32 4294901760, %v13479_v32  ;;  %v602_v61 = vsub.f32 %v13460_v29, %v13496_v37  ;;  %v13536_v26 = vand.u32 4294901760, %v84_v42  ;;  %v13555_v37 = vand.u32 4294901760, %v83_v39 }
  0x98   :  { %20036 = vst [vmem:[#allocation221_spill] sm:$0xff] %v13503_v49  ;;  %565 = vmatmul.mubr.f32.gmra.mxu0 %v13471_v3  ;;  %1679 = vmatprep.subr.mxu1 %v19836_v1  ;;  %20037 = vst [vmem:[#allocation222_spill] sm:$0xff] %v13510_v58  ;;  %v20041_v3 = vld [vmem:[#allocation16_spill] sm:$0xff]  ;;  %v617_v29 = vsub.f32 %v13484_v0, %v13522_v44  ;;  %v623_v0 = vsub.f32 %v13503_v49, %v13541_v9 }
  0x99   :  { %20038 = vst [vmem:[#allocation223_spill] sm:$0xff] %v13515_v2  ;;  %20039 = vst [vmem:[#allocation224_spill] sm:$0xff] %v13517_v57  ;;  %1104 = vmatmul.mubr.f32.gmra.mxu1 %v13251_v31  ;;  %1282 = vmatprep.subr.mxu0 %v19836_v1  ;;  %v13534_v31 = vsub.f32 %v82_v22, %v13498_v8  ;;  %v608_v22 = vsub.f32 %v13479_v32, %v13515_v2  ;;  %v13566_v2 = vand.u32 4294901760, %v602_v61  ;;  %v88_v61 = vld [vmem:[%s18872_s0 + $0x1a8] sm:$0xff] }
  0x9a   :  { %20040 = vst [vmem:[#allocation225_spill] sm:$0xff] %v13522_v44  ;;  %1681 = vmatpush2.msra.mxu1 %v20041_v3  ;;  %574 = vmatprep.mubr.f32.mxu0 %v13491_v56  ;;  %20042 = vst [vmem:[#allocation226_spill] sm:$0xff] %v13529_v36  ;;  %v13548_v56 = vand.u32 4294901760, %v593_v46  ;;  %v85_v46 = vld [vmem:[%s18872_s0 + $0x190] sm:$0xff]  ;;  %v13574_v32 = vand.u32 4294901760, %v86_v7  ;;  %v20055_v44 = vld [vmem:[#allocation25_spill] sm:$0xff] }
  0x9b   :  { %20043 = vst [vmem:[#allocation227_spill] sm:$0xff] %v13534_v31  ;;  %20044 = vst [vmem:[#allocation228_spill] sm:$0xff] %v13536_v26  ;;  %1109 = vmatprep.mubr.f32.mxu1 %v13258_v59  ;;  %1285 = vmatpush2.msra.mxu0 %v20045_v24  ;;  %v13553_v59 = vsub.f32 %v81_v52, %v13517_v57  ;;  %v13569_v52 = vand.u32 4294901760, %v13534_v31 }
  0x9c   :  { %20046 = vst [vmem:[#allocation229_spill] sm:$0xff] %v13541_v9  ;;  %580 = vmatmul.mubr.f32.gmra.mxu0 %v13510_v58  ;;  %1682 = vmatprep.subr.mxu1 %v19836_v1  ;;  %20047 = vst [vmem:[#allocation230_spill] sm:$0xff] %v13548_v56  ;;  %v20050_v58 = vld [vmem:[#allocation18_spill] sm:$0xff]  ;;  %v13597_v9 = vand.u32 4294901760, %v617_v29  ;;  %v90_v29 = vld [vmem:[%s18872_s0 + $0x1b8] sm:$0xff] }
  0x9d   :  { %20048 = vst [vmem:[#allocation231_spill] sm:$0xff] %v13553_v59  ;;  %20049 = vst [vmem:[#allocation232_spill] sm:$0xff] %v13555_v37  ;;  %1111 = vmatmul.mubr.f32.gmra.mxu1 %v13274_v38  ;;  %1286 = vmatprep.subr.mxu0 %v19836_v1  ;;  %v13572_v38 = vsub.f32 %v84_v42, %v13536_v26  ;;  %v13588_v42 = vand.u32 4294901760, %v13553_v59 }
  0x9e   :  { %1684 = vmatpush2.msra.mxu1 %v20050_v58  ;;  %589 = vmatprep.mubr.f32.mxu0 %v13529_v36  ;;  %20051 = vst [vmem:[#allocation233_spill] sm:$0xff] %v13566_v2  ;;  %20052 = vst [vmem:[#allocation234_spill] sm:$0xff] %v13569_v52  ;;  %v13585_v36 = vand.u32 4294901760, %v608_v22  ;;  %v20061_v22 = vld [vmem:[#allocation20_spill] sm:$0xff]  ;;  %v13612_v58 = vand.u32 4294901760, %v88_v61 }
  0x9f   :  { %20053 = vst [vmem:[#allocation235_spill] sm:$0xff] %v13572_v38  ;;  %20054 = vst [vmem:[#allocation236_spill] sm:$0xff] %v13574_v32  ;;  %1116 = vmatprep.mubr.f32.mxu1 %v13308_v23  ;;  %1289 = vmatpush2.msra.mxu0 %v20055_v44  ;;  %v13591_v23 = vsub.f32 %v83_v39, %v13555_v37  ;;  %v13593_v44 = vand.u32 4294901760, %v85_v46  ;;  %v632_v39 = vsub.f32 %v13534_v31, %v13569_v52 }
  0xa0   :  { %595 = vmatmul.mubr.f32.gmra.mxu0 %v13548_v56  ;;  %1685 = vmatprep.subr.mxu1 %v19836_v1  ;;  %20056 = vst [vmem:[#allocation237_spill] sm:$0xff] %v13585_v36  ;;  %20057 = vst [vmem:[#allocation238_spill] sm:$0xff] %v13588_v42  ;;  %v87_v56 = vld [vmem:[%s18872_s0 + $0x1a0] sm:$0xff]  ;;  %v13607_v49 = vand.u32 4294901760, %v13572_v38 }
  0xa1   :  { %20058 = vst [vmem:[#allocation239_spill] sm:$0xff] %v13591_v23  ;;  %20059 = vst [vmem:[#allocation240_spill] sm:$0xff] %v13593_v44  ;;  %1118 = vmatmul.mubr.f32.gmra.mxu1 %v13327_v40  ;;  %1290 = vmatprep.subr.mxu0 %v19836_v1  ;;  %v13610_v40 = vsub.f32 %v86_v7, %v13574_v32  ;;  %v638_v7 = vsub.f32 %v13553_v59, %v13588_v42  ;;  %v13626_v52 = vand.u32 4294901760, %v13591_v23 }
  0xa2   :  { %20060 = vst [vmem:[#allocation241_spill] sm:$0xff] %v13597_v9  ;;  %1687 = vmatpush2.msra.mxu1 %v20061_v22  ;;  %604 = vmatprep.mubr.f32.mxu0 %v13566_v2  ;;  %20062 = vst [vmem:[#allocation242_spill] sm:$0xff] %v13607_v49  ;;  %v20065_v22 = vld [vmem:[#allocation27_spill] sm:$0xff]  ;;  %v13619_v2 = vand.u32 4294901760, %v623_v0  ;;  %v13629_v31 = vsub.f32 %v85_v46, %v13593_v44  ;;  %v13631_v24 = vand.u32 4294901760, %v87_v56  ;;  %v89_v0 = vld [vmem:[%s18872_s0 + $0x1b0] sm:$0xff] }
  0xa3   :  { %20063 = vst [vmem:[#allocation243_spill] sm:$0xff] %v13610_v40  ;;  %20064 = vst [vmem:[#allocation244_spill] sm:$0xff] %v13612_v58  ;;  %1123 = vmatprep.mubr.f32.mxu1 %v13346_v51  ;;  %1293 = vmatpush2.msra.mxu0 %v20065_v22  ;;  %v20071_v51 = vld [vmem:[#allocation22_spill] sm:$0xff]  ;;  %v13642_v42 = vand.u32 4294901760, %v632_v39  ;;  %v647_v46 = vsub.f32 %v13572_v38, %v13607_v49  ;;  %v13647_v59 = vand.u32 4294901760, %v13610_v40  ;;  %v13654_v3 = vand.u32 4294901760, %v89_v0 }
  0xa4   :  { %20066 = vst [vmem:[#allocation245_spill] sm:$0xff] %v13619_v2  ;;  %610 = vmatmul.mubr.f32.gmra.mxu0 %v13585_v36  ;;  %1688 = vmatprep.subr.mxu1 %v19836_v1  ;;  %20067 = vst [vmem:[#allocation246_spill] sm:$0xff] %v13626_v52  ;;  %v13638_v36 = vand.u32 4294901760, %v90_v29  ;;  %v13650_v22 = vsub.f32 %v88_v61, %v13612_v58  ;;  %v92_v39 = vld [vmem:[%s18872_s0 + $0x1c8] sm:$0xff]  ;;  %v653_v61 = vsub.f32 %v13591_v23, %v13626_v52 }
  0xa5   :  { %20068 = vst [vmem:[#allocation247_spill] sm:$0xff] %v13629_v31  ;;  %20069 = vst [vmem:[#allocation248_spill] sm:$0xff] %v13631_v24  ;;  %1125 = vmatmul.mubr.f32.gmra.mxu1 %v13365_v53  ;;  %1294 = vmatprep.subr.mxu0 %v19836_v1  ;;  %v20075_v53 = vld [vmem:[#allocation29_spill] sm:$0xff]  ;;  %v13666_v49 = vand.u32 4294901760, %v13629_v31  ;;  %v13681_v52 = vand.u32 4294901760, %v647_v46  ;;  %v13688_v23 = vand.u32 4294901760, %v92_v39 }
  0xa6   :  { %20070 = vst [vmem:[#allocation249_spill] sm:$0xff] %v13638_v36  ;;  %1690 = vmatpush2.msra.mxu1 %v20071_v51  ;;  %619 = vmatprep.mubr.f32.mxu0 %v13597_v9  ;;  %20072 = vst [vmem:[#allocation250_spill] sm:$0xff] %v13642_v42  ;;  %v13661_v9 = vand.u32 4294901760, %v638_v7  ;;  %v13674_v38 = vsub.f32 %v90_v29, %v13638_v36  ;;  %v91_v7 = vld [vmem:[%s18872_s0 + $0x1c0] sm:$0xff]  ;;  %v20085_v29 = vld [vmem:[#allocation31_spill] sm:$0xff] }
  0xa7   :  { %20073 = vst [vmem:[#allocation251_spill] sm:$0xff] %v13647_v59  ;;  %20074 = vst [vmem:[#allocation252_spill] sm:$0xff] %v13650_v22  ;;  %1130 = vmatprep.mubr.f32.mxu1 %v13384_v33  ;;  %1297 = vmatpush2.msra.mxu0 %v20075_v53  ;;  %v13669_v33 = vsub.f32 %v87_v56, %v13631_v24  ;;  %v662_v56 = vsub.f32 %v13610_v40, %v13647_v59  ;;  %v94_v46 = vld [vmem:[%s18872_s0 + $0x1d8] sm:$0xff]  ;;  %v13707_v40 = vand.u32 4294901760, %v91_v7 }
  0xa8   :  { %20076 = vst [vmem:[#allocation253_spill] sm:$0xff] %v13654_v3  ;;  %625 = vmatmul.mubr.f32.gmra.mxu0 %v13619_v2  ;;  %1691 = vmatprep.subr.mxu1 %v19836_v1  ;;  %20077 = vst [vmem:[#allocation254_spill] sm:$0xff] %v13661_v9  ;;  %v20081_v2 = vld [vmem:[#allocation24_spill] sm:$0xff]  ;;  %v13693_v53 = vsub.f32 %v89_v0, %v13654_v3  ;;  %v668_v59 = vsub.f32 %v13629_v31, %v13666_v49  ;;  %v13712_v0 = vand.u32 4294901760, %v13674_v38 }
  0xa9   :  { %20078 = vst [vmem:[#allocation255_spill] sm:$0xff] %v13666_v49  ;;  %20079 = vst [vmem:[#allocation256_spill] sm:$0xff] %v13669_v33  ;;  %1132 = vmatmul.mubr.f32.gmra.mxu1 %v13403_v13  ;;  %1298 = vmatprep.subr.mxu0 %v19836_v1  ;;  %v13686_v13 = vand.u32 4294901760, %v13650_v22  ;;  %v13719_v49 = vand.u32 4294901760, %v662_v56  ;;  %v96_v56 = vld [vmem:[%s18872_s0 + $0x1e8] sm:$0xff] }
  0xaa   :  { %20080 = vst [vmem:[#allocation257_spill] sm:$0xff] %v13674_v38  ;;  %1693 = vmatpush2.msra.mxu1 %v20081_v2  ;;  %634 = vmatprep.mubr.f32.mxu0 %v13642_v42  ;;  %20082 = vst [vmem:[#allocation258_spill] sm:$0xff] %v13681_v52  ;;  %v13700_v42 = vand.u32 4294901760, %v653_v61  ;;  %v93_v61 = vld [vmem:[%s18872_s0 + $0x1d0] sm:$0xff]  ;;  %v20095_v2 = vld [vmem:[#allocation33_spill] sm:$0xff]  ;;  %v13731_v51 = vand.u32 4294901760, %v13693_v53 }
  0xab   :  { %20083 = vst [vmem:[#allocation259_spill] sm:$0xff] %v13686_v13  ;;  %20084 = vst [vmem:[#allocation260_spill] sm:$0xff] %v13688_v23  ;;  %1137 = vmatprep.mubr.f32.mxu1 %v13422_v14  ;;  %1301 = vmatpush2.msra.mxu0 %v20085_v29  ;;  %v13705_v14 = vand.u32 4294901760, %v13669_v33  ;;  %v677_v31 = vsub.f32 %v13650_v22, %v13686_v13  ;;  %v13726_v29 = vand.u32 4294901760, %v94_v46  ;;  %v13745_v13 = vand.u32 4294901760, %v93_v61 }
  0xac   :  { %20086 = vst [vmem:[#allocation261_spill] sm:$0xff] %v13693_v53  ;;  %640 = vmatmul.mubr.f32.gmra.mxu0 %v13661_v9  ;;  %1694 = vmatprep.subr.mxu1 %v19836_v1  ;;  %20087 = vst [vmem:[#allocation262_spill] sm:$0xff] %v13700_v42  ;;  %v20091_v9 = vld [vmem:[#allocation26_spill] sm:$0xff]  ;;  %v692_v22 = vsub.f32 %v13674_v38, %v13712_v0  ;;  %v698_v38 = vsub.f32 %v13693_v53, %v13731_v51 }
  0xad   :  { %20088 = vst [vmem:[#allocation263_spill] sm:$0xff] %v13705_v14  ;;  %20089 = vst [vmem:[#allocation264_spill] sm:$0xff] %v13707_v40  ;;  %1139 = vmatmul.mubr.f32.gmra.mxu1 %v13441_v41  ;;  %1302 = vmatprep.subr.mxu0 %v19836_v1  ;;  %v13724_v41 = vsub.f32 %v92_v39, %v13688_v23  ;;  %v683_v39 = vsub.f32 %v13669_v33, %v13705_v14  ;;  %v13756_v14 = vand.u32 4294901760, %v677_v31  ;;  %v98_v31 = vld [vmem:[%s18872_s0 + $0x1f8] sm:$0xff] }
  0xae   :  { %20090 = vst [vmem:[#allocation265_spill] sm:$0xff] %v13712_v0  ;;  %1696 = vmatpush2.msra.mxu1 %v20091_v9  ;;  %649 = vmatprep.mubr.f32.mxu0 %v13681_v52  ;;  %20092 = vst [vmem:[#allocation26_spill] sm:$0xff] %v13719_v49  ;;  %v13738_v52 = vand.u32 4294901760, %v668_v59  ;;  %v95_v59 = vld [vmem:[%s18872_s0 + $0x1e0] sm:$0xff]  ;;  %v13764_v33 = vand.u32 4294901760, %v96_v56  ;;  %v20105_v0 = vld [vmem:[#allocation35_spill] sm:$0xff] }
  0xaf   :  { %20093 = vst [vmem:[#allocation266_spill] sm:$0xff] %v13724_v41  ;;  %20094 = vst [vmem:[#allocation267_spill] sm:$0xff] %v13726_v29  ;;  %1144 = vmatprep.mubr.f32.mxu1 %v13448_v50  ;;  %1305 = vmatpush2.msra.mxu0 %v20095_v2  ;;  %v13743_v50 = vsub.f32 %v91_v7, %v13707_v40  ;;  %v13759_v7 = vand.u32 4294901760, %v13724_v41  ;;  %v13806_v2 = vand.u32 4294901760, %v698_v38  ;;  %v20120_v38 = vld [vmem:[#allocation32_spill] sm:$0xff] }
  0xb0   :  { %20096 = vst [vmem:[#allocation268_spill] sm:$0xff] %v13731_v51  ;;  %655 = vmatmul.mubr.f32.gmra.mxu0 %v13700_v42  ;;  %1697 = vmatprep.subr.mxu1 %v19836_v1  ;;  %20097 = vst [vmem:[#allocation269_spill] sm:$0xff] %v13738_v52  ;;  %v20100_v42 = vld [vmem:[#allocation28_spill] sm:$0xff]  ;;  %v13787_v51 = vand.u32 4294901760, %v692_v22 }
  0xb1   :  { %20098 = vst [vmem:[#allocation270_spill] sm:$0xff] %v13743_v50  ;;  %20099 = vst [vmem:[#allocation271_spill] sm:$0xff] %v13745_v13  ;;  %1146 = vmatmul.mubr.f32.gmra.mxu1 %v13464_v48  ;;  %1306 = vmatprep.subr.mxu0 %v19836_v1  ;;  %v13762_v48 = vsub.f32 %v94_v46, %v13726_v29  ;;  %v13778_v46 = vand.u32 4294901760, %v13743_v50  ;;  %v20115_v22 = vld [vmem:[#allocation36_spill] sm:$0xff] }
  0xb2   :  { %1699 = vmatpush2.msra.mxu1 %v20100_v42  ;;  %664 = vmatprep.mubr.f32.mxu0 %v13719_v49  ;;  %20101 = vst [vmem:[#allocation272_spill] sm:$0xff] %v13756_v14  ;;  %20102 = vst [vmem:[#allocation273_spill] sm:$0xff] %v13759_v7  ;;  %v13775_v49 = vand.u32 4294901760, %v683_v39  ;;  %v20111_v39 = vld [vmem:[#allocation30_spill] sm:$0xff]  ;;  %v13802_v42 = vand.u32 4294901760, %v98_v31 }
  0xb3   :  { %20103 = vst [vmem:[#allocation274_spill] sm:$0xff] %v13762_v48  ;;  %20104 = vst [vmem:[#allocation275_spill] sm:$0xff] %v13764_v33  ;;  %1151 = vmatprep.mubr.f32.mxu1 %v13498_v8  ;;  %1309 = vmatpush2.msra.mxu0 %v20105_v0  ;;  %v13781_v8 = vsub.f32 %v93_v61, %v13745_v13  ;;  %v13783_v0 = vand.u32 4294901760, %v95_v59  ;;  %v707_v61 = vsub.f32 %v13724_v41, %v13759_v7 }
  0xb4   :  { %670 = vmatmul.mubr.f32.gmra.mxu0 %v13738_v52  ;;  %1700 = vmatprep.subr.mxu1 %v19836_v1  ;;  %20106 = vst [vmem:[#allocation276_spill] sm:$0xff] %v13775_v49  ;;  %20107 = vst [vmem:[#allocation277_spill] sm:$0xff] %v13778_v46  ;;  %v97_v52 = vld [vmem:[%s18872_s0 + $0x1f0] sm:$0xff]  ;;  %v13797_v53 = vand.u32 4294901760, %v13762_v48  ;;  %s12185_s0 = smov 32  }
  0xb5   :  { %20108 = vst [vmem:[#allocation278_spill] sm:$0xff] %v13781_v8  ;;  %20109 = vst [vmem:[#allocation279_spill] sm:$0xff] %v13783_v0  ;;  %1153 = vmatmul.mubr.f32.gmra.mxu1 %v13517_v57  ;;  %1310 = vmatprep.subr.mxu0 %v19836_v1  ;;  %v13800_v57 = vsub.f32 %v96_v56, %v13764_v33  ;;  %v13813_v7 = vand.u32 4294901760, %v13781_v8  ;;  %v13816_v56 = vsub.f32 %v95_v59, %v13783_v0 }
  0xb6   :  { %20110 = vst [vmem:[#allocation280_spill] sm:$0xff] %v13787_v51  ;;  %1702 = vmatpush2.msra.mxu1 %v20111_v39  ;;  %679 = vmatprep.mubr.f32.mxu0 %v13756_v14  ;;  %20112 = vst [vmem:[#allocation30_spill] sm:$0xff] %v13797_v53  ;;  %v713_v14 = vsub.f32 %v13743_v50, %v13778_v46  ;;  %v13818_v41 = vand.u32 4294901760, %v97_v52  ;;  %v13832_v59 = vsub.f32 %v98_v31, %v13802_v42  ;;  %v20128_v31 = vld [vmem:[#allocation34_spill] sm:$0xff] }
  0xb7   :  { %20113 = vst [vmem:[#allocation281_spill] sm:$0xff] %v13800_v57  ;;  %20114 = vst [vmem:[#allocation282_spill] sm:$0xff] %v13802_v42  ;;  %1158 = vmatprep.mubr.f32.mxu1 %v13536_v26  ;;  %1313 = vmatpush2.msra.mxu0 %v20115_v22  ;;  %v722_v26 = vsub.f32 %v13762_v48, %v13797_v53  ;;  %v13829_v46 = vand.u32 4294901760, %v13800_v57  ;;  %v13843_v53 = vand.u32 4294901760, %v13816_v56 }
  0xb8   :  { %20116 = vst [vmem:[#allocation36_spill] sm:$0xff] %v13806_v2  ;;  %685 = vmatmul.mubr.f32.gmra.mxu0 %v13775_v49  ;;  %1703 = vmatprep.subr.mxu1 %v19836_v1  ;;  %20117 = vst [vmem:[#allocation283_spill] sm:$0xff] %v13813_v7  ;;  %v13824_v49 = vand.u32 4294901760, %v707_v61  ;;  %v728_v61 = vsub.f32 %v13781_v8, %v13813_v7  ;;  %v13846_v48 = vsub.f32 %v97_v52, %v13818_v41  ;;  %v20131_v52 = vld [vmem:[#allocation42_spill] sm:$0xff] }
  0xb9   :  { %20118 = vst [vmem:[#allocation284_spill] sm:$0xff] %v13816_v56  ;;  %20119 = vst [vmem:[#allocation285_spill] sm:$0xff] %v13818_v41  ;;  %1160 = vmatmul.mubr.f32.gmra.mxu1 %v13555_v37  ;;  %1314 = vmatprep.subr.mxu0 %v19836_v1  ;;  %v20124_v37 = vld [vmem:[#allocation39_spill] sm:$0xff] }
  0xba   :  { %1705 = vmatpush2.msra.mxu1 %v20120_v38  ;;  %694 = vmatprep.mubr.f32.mxu0 %v13787_v51  ;;  %20121 = vst [vmem:[#allocation32_spill] sm:$0xff] %v13824_v49  ;;  %20122 = vst [vmem:[#allocation286_spill] sm:$0xff] %v13829_v46  ;;  %v13838_v51 = vand.u32 4294901760, %v713_v14  ;;  %v737_v14 = vsub.f32 %v13800_v57, %v13829_v46  ;;  %v20134_v46 = vld [vmem:[#allocation37_spill] sm:$0xff] }
  0xbb   :  { %20123 = vst [vmem:[#allocation287_spill] sm:$0xff] %v13832_v59  ;;  %1165 = vmatprep.mubr.f32.mxu1 %v13574_v32  ;;  %1317 = vmatpush2.msra.mxu0 %v20124_v37  ;;  %20126 = vst [vmem:[#allocation288_spill] sm:$0xff] %v13843_v53  ;;  %v13857_v32 = vand.u32 4294901760, %v13832_v59 }
  0xbc   :  { %700 = vmatmul.mubr.f32.gmra.mxu0 %v13806_v2  ;;  %1706 = vmatprep.subr.mxu1 %v19836_v1  ;;  %20125 = vst [vmem:[#allocation39_spill] sm:$0xff] %v13838_v51  ;;  %20127 = vst [vmem:[#allocation289_spill] sm:$0xff] %v13846_v48  ;;  %v13852_v2 = vand.u32 4294901760, %v722_v26  ;;  %v743_v26 = vsub.f32 %v13816_v56, %v13843_v53 }
  0xbd   :  { %1167 = vmatmul.mubr.f32.gmra.mxu1 %v13593_v44  ;;  %1318 = vmatprep.subr.mxu0 %v19836_v1  ;;  %20130 = vst [vmem:[#allocation290_spill] sm:$0xff] %v13857_v32  ;;  %v13863_v44 = vand.u32 4294901760, %v728_v61  ;;  %v752_v61 = vsub.f32 %v13832_v59, %v13857_v32 }
  0xbe   :  { %1708 = vmatpush2.msra.mxu1 %v20128_v31  ;;  %709 = vmatprep.mubr.f32.mxu0 %v13824_v49  ;;  %20129 = vst [vmem:[#allocation34_spill] sm:$0xff] %v13852_v2  ;;  %v13868_v49 = vand.u32 4294901760, %v13846_v48 }
  0xbf   :  { %1172 = vmatprep.mubr.f32.mxu1 %v13612_v58  ;;  %1321 = vmatpush2.msra.mxu0 %v20131_v52  ;;  %20132 = vst [vmem:[#allocation42_spill] sm:$0xff] %v13863_v44  ;;  %v13874_v58 = vand.u32 4294901760, %v737_v14  ;;  %v20138_v14 = vld [vmem:[#allocation38_spill] sm:$0xff] }
  0xc0   :  { %715 = vmatmul.mubr.f32.gmra.mxu0 %v13838_v51  ;;  %1709 = vmatprep.subr.mxu1 %v19836_v1  ;;  %20133 = vst [vmem:[#allocation291_spill] sm:$0xff] %v13868_v49  ;;  %v20136_v51 = vld [vmem:[#allocation45_spill] sm:$0xff]  ;;  %v758_v53 = vsub.f32 %v13846_v48, %v13868_v49 }
  0xc1   :  { %1174 = vmatmul.mubr.f32.gmra.mxu1 %v13631_v24  ;;  %1322 = vmatprep.subr.mxu0 %v19836_v1  ;;  %20135 = vst [vmem:[#allocation37_spill] sm:$0xff] %v13874_v58  ;;  %v13882_v24 = vand.u32 4294901760, %v743_v26 }
  0xc2   :  { %1711 = vmatpush2.msra.mxu1 %v20134_v46  ;;  %724 = vmatprep.mubr.f32.mxu0 %v13852_v2  ;;  %v13890_v2 = vand.u32 4294901760, %v752_v61  ;;  %v13896_v26 = vand.u32 4294901760, %v758_v53  ;;  %v20142_v61 = vld [vmem:[#allocation55_spill] sm:$0xff]  ;;  %v20143_v53 = vld [vmem:[#allocation46_spill] sm:$0xff] }
  0xc3   :  { %1179 = vmatprep.mubr.f32.mxu1 %v13638_v36  ;;  %1325 = vmatpush2.msra.mxu0 %v20136_v51  ;;  %20137 = vst [vmem:[#allocation45_spill] sm:$0xff] %v13882_v24 }
  0xc4   :  { %730 = vmatmul.mubr.f32.gmra.mxu0 %v13863_v44  ;;  %1712 = vmatprep.subr.mxu1 %v19836_v1  ;;  %20139 = vst [vmem:[#allocation38_spill] sm:$0xff] %v13890_v2  ;;  %20140 = vst [vmem:[#allocation292_spill] sm:$0xff] %v13896_v26  ;;  %v20141_v44 = vld [vmem:[#allocation44_spill] sm:$0xff] }
  0xc5   :  { %1181 = vmatmul.mubr.f32.gmra.mxu1 %v13654_v3  ;;  %1326 = vmatprep.subr.mxu0 %v19836_v1 }
  0xc6   :  { %1714 = vmatpush2.msra.mxu1 %v20138_v14  ;;  %739 = vmatprep.mubr.f32.mxu0 %v13874_v58  ;;  %v20147_v58 = vld [vmem:[#allocation51_spill] sm:$0xff] }
  0xc7   :  { %1186 = vmatprep.mubr.f32.mxu1 %v13688_v23  ;;  %1329 = vmatpush2.msra.mxu0 %v12685_v27 }
  0xc8   :  { %745 = vmatmul.mubr.f32.gmra.mxu0 %v13882_v24  ;;  %1715 = vmatprep.subr.mxu1 %v19836_v1  ;;  %v20146_v24 = vld [vmem:[#allocation48_spill] sm:$0xff] }
  0xc9   :  { %1188 = vmatmul.mubr.f32.gmra.mxu1 %v13707_v40  ;;  %1330 = vmatprep.subr.mxu0 %v19836_v1 }
  0xca   :  { %1717 = vmatpush2.msra.mxu1 %v20141_v44  ;;  %754 = vmatprep.mubr.f32.mxu0 %v13890_v2  ;;  %v20144_v2 = vld [vmem:[#allocation47_spill] sm:$0xff] }
  0xcb   :  { %1193 = vmatprep.mubr.f32.mxu1 %v13726_v29  ;;  %1333 = vmatpush2.msra.mxu0 %v20142_v61 }
  0xcc   :  { %760 = vmatmul.mubr.f32.gmra.mxu0 %v13896_v26  ;;  %1334 = vmatprep.subr.mxu0 %v19836_v1  ;;  %v20145_v26 = vld [vmem:[#allocation49_spill] sm:$0xff] }
  0xcd   :  { %1195 = vmatmul.mubr.f32.gmra.mxu1 %v13745_v13  ;;  %1718 = vmatprep.subr.mxu1 %v19836_v1  ;;  %v20154_v13 = vld [vmem:[#allocation57_spill] sm:$0xff] }
  0xce   :  { %1337 = vmatpush2.msra.mxu0 %v12715_v63  ;;  %1720 = vmatpush2.msra.mxu1 %v20143_v53 }
  0xcf   :  { %1338 = vmatprep.subr.mxu0 %v19836_v1  ;;  %1200 = vmatprep.mubr.f32.mxu1 %v13764_v33  ;;  %v20148_v33 = vld [vmem:[#allocation58_spill] sm:$0xff] }
  0xd0   :  { %1341 = vmatpush2.msra.mxu0 %v12736_v19  ;;  %1344 = vmatprep.mubr.f32.mxu0 %v20144_v2  ;;  %v20149_v2 = vld [vmem:[#allocation53_spill] sm:$0xff] }
  0xd1   :  { %1202 = vmatmul.mubr.f32.gmra.mxu1 %v13783_v0  ;;  %1347 = vmatmul.mubr.f32.vlgmr.msra.gmra.mxu0 %v20145_v26  ;;  %v20150_v0 = vld [vmem:[#allocation60_spill] sm:$0xff]  ;;  %v20151_v26 = vld [vmem:[#allocation54_spill] sm:$0xff] }
  0xd2   :  { %1721 = vmatprep.subr.mxu1 %v19836_v1  ;;  %1207 = vmatprep.mubr.f32.mxu1 %v13802_v42  ;;  %v20152_v42 = vand.u32 4294901760, %v12264_v15  ;;  %v20158_v15 = vld [vmem:[#allocation63_spill] sm:$0xff] }
  0xd3   :  { %1723 = vmatpush2.msra.mxu1 %v20146_v24  ;;  %1353 = vmatprep.mubr.f32.mxu0 %v20147_v58  ;;  %v20153_v58 = vld [vmem:[#allocation62_spill] sm:$0xff] }
  0xd4   :  { %1724 = vmatprep.subr.mxu1 %v19836_v1  ;;  %2080 = vmatprep.subr.mxu0 %v19836_v1 }
  0xd5   :  { %1209 = vmatmul.mubr.f32.gmra.mxu1 %v13818_v41  ;;  %1356 = vmatmul.mubr.f32.gmra.mxu0 %v20148_v33  ;;  %v20155_v33 = vld [vmem:[#allocation66_spill] sm:$0xff]  ;;  %v20156_v41 = vld [vmem:[#allocation59_spill] sm:$0xff] }
  0xd6   :  { %1726 = vmatpush2.msra.mxu1 %v20149_v2  ;;  %1362 = vmatprep.mubr.f32.mxu0 %v20150_v0  ;;  %v20157_v0 = vand.u32 4294901760, %v12267_v16  ;;  %v20162_v16 = vld [vmem:[#allocation69_spill] sm:$0xff] }
  0xd7   :  { %1730 = vmatprep.mubr.f32.mxu1 %v20151_v26  ;;  %2084 = vmatpush1.msra.mxu0 %v20152_v42  ;;  %v20159_v42 = vld [vmem:[#allocation75_spill] sm:$0xff] }
  0xd8   :  { %2465 = vmatprep.subr.mxu1 %v19836_v1  ;;  %2085 = vmatprep.subr.mxu0 %v19836_v1 }
  0xd9   :  { %1365 = vmatmul.mubr.f32.gmra.mxu0 %v20153_v58  ;;  %1734 = vmatmul.mubr.f32.vlgmr.msra.gmra.mxu1 %v20154_v13  ;;  %v20339_v58 = vld [vmem:[#allocation112_spill] sm:$0xff] }
  0xda   :  { %2467 = vmatpush1.msra.mxu1 %v12235_v4  ;;  %1371 = vmatprep.mubr.f32.mxu0 %v20155_v33  ;;  %v20160_v4 = vld [vmem:[#allocation65_spill] sm:$0xff]  ;;  %v20161_v33 = vand.u32 4294901760, %v12272_v18  ;;  %v20166_v18 = vld [vmem:[#allocation87_spill] sm:$0xff] }
  0xdb   :  { %1741 = vmatprep.mubr.f32.mxu1 %v20156_v41  ;;  %2089 = vmatpush1.msra.mxu0 %v20157_v0  ;;  %v20163_v0 = vld [vmem:[#allocation83_spill] sm:$0xff]  ;;  %v20337_v41 = vld [vmem:[#allocation104_spill] sm:$0xff] }
  0xdc   :  { %2468 = vmatprep.subr.mxu1 %v19836_v1  ;;  %2090 = vmatprep.subr.mxu0 %v19836_v1 }
  0xdd   :  { %1374 = vmatmul.mubr.f32.gmra.mxu0 %v12793_v55  ;;  %1745 = vmatmul.mubr.f32.gmra.mxu1 %v20158_v15 }
  0xde   :  { %2470 = vmatpush1.msra.mxu1 %v12237_v5  ;;  %1380 = vmatprep.mubr.f32.mxu0 %v20159_v42  ;;  %v20164_v5 = vld [vmem:[#allocation74_spill] sm:$0xff]  ;;  %v20165_v42 = vand.u32 4294901760, %v12279_v20  ;;  %v20171_v20 = vld [vmem:[#allocation96_spill] sm:$0xff] }
  0xdf   :  { %1752 = vmatprep.mubr.f32.mxu1 %v20160_v4  ;;  %2094 = vmatpush1.msra.mxu0 %v20161_v33  ;;  %v20167_v33 = vld [vmem:[#allocation78_spill] sm:$0xff] }
  0xe0   :  { %2471 = vmatprep.subr.mxu1 %v19836_v1  ;;  %2095 = vmatprep.subr.mxu0 %v19836_v1 }
  0xe1   :  { %1383 = vmatmul.mubr.f32.gmra.mxu0 %v12835_v62  ;;  %1756 = vmatmul.mubr.f32.gmra.mxu1 %v20162_v16  ;;  %v20168_v16 = vld [vmem:[#allocation92_spill] sm:$0xff] }
  0xe2   :  { %2473 = vmatpush1.msra.mxu1 %v12239_v6  ;;  %1389 = vmatprep.mubr.f32.mxu0 %v20163_v0  ;;  %v20169_v6 = vld [vmem:[#allocation82_spill] sm:$0xff]  ;;  %v20170_v0 = vand.u32 4294901760, %v12282_v21  ;;  %v20176_v21 = vld [vmem:[#allocation101_spill] sm:$0xff] }
  0xe3   :  { %1763 = vmatprep.mubr.f32.mxu1 %v20164_v5  ;;  %2099 = vmatpush1.msra.mxu0 %v20165_v42  ;;  %v20172_v42 = vld [vmem:[#allocation86_spill] sm:$0xff] }
  0xe4   :  { %2474 = vmatprep.subr.mxu1 %v19836_v1  ;;  %2100 = vmatprep.subr.mxu0 %v19836_v1 }
  0xe5   :  { %1392 = vmatmul.mubr.f32.gmra.mxu0 %v20166_v18  ;;  %1767 = vmatmul.mubr.f32.gmra.mxu1 %v20167_v33  ;;  %v20173_v33 = vld [vmem:[#allocation97_spill] sm:$0xff] }
  0xe6   :  { %2476 = vmatpush1.msra.mxu1 %v12250_v10  ;;  %1398 = vmatprep.mubr.f32.mxu0 %v20168_v16  ;;  %v20174_v10 = vld [vmem:[#allocation91_spill] sm:$0xff]  ;;  %v20175_v16 = vand.u32 4294901760, %v12299_v30 }
  0xe7   :  { %1774 = vmatprep.mubr.f32.mxu1 %v20169_v6  ;;  %2104 = vmatpush1.msra.mxu0 %v20170_v0  ;;  %v20177_v0 = vld [vmem:[#allocation95_spill] sm:$0xff] }
  0xe8   :  { %2477 = vmatprep.subr.mxu1 %v19836_v1  ;;  %2105 = vmatprep.subr.mxu0 %v19836_v1  ;;  %v20181_v30 = vld [vmem:[#allocation111_spill] sm:$0xff] }
  0xe9   :  { %1401 = vmatmul.mubr.f32.gmra.mxu0 %v20171_v20  ;;  %1778 = vmatmul.mubr.f32.gmra.mxu1 %v20172_v42  ;;  %v20178_v42 = vld [vmem:[#allocation107_spill] sm:$0xff] }
  0xea   :  { %2479 = vmatpush1.msra.mxu1 %v12252_v11  ;;  %1407 = vmatprep.mubr.f32.mxu0 %v20173_v33  ;;  %v20179_v11 = vld [vmem:[#allocation99_spill] sm:$0xff]  ;;  %v20180_v33 = vand.u32 4294901760, %v12312_v34 }
  0xeb   :  { %1785 = vmatprep.mubr.f32.mxu1 %v20174_v10  ;;  %2109 = vmatpush1.msra.mxu0 %v20175_v16  ;;  %v20182_v16 = vld [vmem:[#allocation103_spill] sm:$0xff] }
  0xec   :  { %2480 = vmatprep.subr.mxu1 %v19836_v1  ;;  %2110 = vmatprep.subr.mxu0 %v19836_v1  ;;  %v20186_v34 = vld [vmem:[#allocation119_spill] sm:$0xff] }
  0xed   :  { %1410 = vmatmul.mubr.f32.gmra.mxu0 %v20176_v21  ;;  %1789 = vmatmul.mubr.f32.gmra.mxu1 %v20177_v0  ;;  %v20183_v0 = vld [vmem:[#allocation115_spill] sm:$0xff] }
  0xee   :  { %2482 = vmatpush1.msra.mxu1 %v12254_v12  ;;  %1416 = vmatprep.mubr.f32.mxu0 %v20178_v42  ;;  %v20184_v12 = vld [vmem:[#allocation105_spill] sm:$0xff]  ;;  %v20185_v42 = vand.u32 4294901760, %v12333_v43  ;;  %v20191_v43 = vld [vmem:[#allocation127_spill] sm:$0xff] }
  0xef   :  { %1796 = vmatprep.mubr.f32.mxu1 %v20179_v11  ;;  %2114 = vmatpush1.msra.mxu0 %v20180_v33  ;;  %v20187_v33 = vld [vmem:[#allocation109_spill] sm:$0xff] }
  0xf0   :  { %2483 = vmatprep.subr.mxu1 %v19836_v1  ;;  %2115 = vmatprep.subr.mxu0 %v19836_v1 }
  0xf1   :  { %1419 = vmatmul.mubr.f32.gmra.mxu0 %v20181_v30  ;;  %1800 = vmatmul.mubr.f32.gmra.mxu1 %v20182_v16  ;;  %v20188_v16 = vld [vmem:[#allocation123_spill] sm:$0xff] }
  0xf2   :  { %2485 = vmatpush1.msra.mxu1 %v12269_v17  ;;  %1425 = vmatprep.mubr.f32.mxu0 %v20183_v0  ;;  %v20189_v17 = vld [vmem:[#allocation114_spill] sm:$0xff]  ;;  %v20190_v0 = vand.u32 4294901760, %v12340_v47  ;;  %v20196_v47 = vld [vmem:[#allocation136_spill] sm:$0xff] }
  0xf3   :  { %1807 = vmatprep.mubr.f32.mxu1 %v20184_v12  ;;  %2119 = vmatpush1.msra.mxu0 %v20185_v42  ;;  %v20192_v42 = vld [vmem:[#allocation118_spill] sm:$0xff]  ;;  %v20247_v12 = vld [vmem:[#allocation23_spill] sm:$0xff] }
  0xf4   :  { %2486 = vmatprep.subr.mxu1 %v19836_v1  ;;  %2120 = vmatprep.subr.mxu0 %v19836_v1  ;;  %v20248_v30 = vand.u32 4294901760, %v20247_v12  ;;  %v20252_v12 = vld [vmem:[#allocation203_spill] sm:$0xff] }
  0xf5   :  { %1428 = vmatmul.mubr.f32.gmra.mxu0 %v20186_v34  ;;  %1811 = vmatmul.mubr.f32.gmra.mxu1 %v20187_v33  ;;  %v20193_v33 = vld [vmem:[#allocation132_spill] sm:$0xff]  ;;  %v20243_v34 = vld [vmem:[#allocation183_spill] sm:$0xff] }
  0xf6   :  { %2488 = vmatpush1.msra.mxu1 %v12288_v25  ;;  %1434 = vmatprep.mubr.f32.mxu0 %v20188_v16  ;;  %v20194_v25 = vld [vmem:[#allocation122_spill] sm:$0xff]  ;;  %v20195_v16 = vand.u32 4294901760, %v12358_v54  ;;  %v20201_v54 = vld [vmem:[#allocation141_spill] sm:$0xff] }
  0xf7   :  { %1818 = vmatprep.mubr.f32.mxu1 %v20189_v17  ;;  %2124 = vmatpush1.msra.mxu0 %v20190_v0  ;;  %v20197_v0 = vld [vmem:[#allocation126_spill] sm:$0xff] }
  0xf8   :  { %2489 = vmatprep.subr.mxu1 %v19836_v1  ;;  %2125 = vmatprep.subr.mxu0 %v19836_v1 }
  0xf9   :  { %1437 = vmatmul.mubr.f32.gmra.mxu0 %v20191_v43  ;;  %1822 = vmatmul.mubr.f32.gmra.mxu1 %v20192_v42  ;;  %v20198_v42 = vld [vmem:[#allocation137_spill] sm:$0xff] }
  0xfa   :  { %2491 = vmatpush1.msra.mxu1 %v12295_v28  ;;  %1443 = vmatprep.mubr.f32.mxu0 %v20193_v33  ;;  %v20199_v28 = vld [vmem:[#allocation131_spill] sm:$0xff]  ;;  %v20200_v33 = vand.u32 4294901760, %v12373_v60 }
  0xfb   :  { %1829 = vmatprep.mubr.f32.mxu1 %v20194_v25  ;;  %2129 = vmatpush1.msra.mxu0 %v20195_v16  ;;  %v20202_v16 = vld [vmem:[#allocation135_spill] sm:$0xff] }
  0xfc   :  { %2492 = vmatprep.subr.mxu1 %v19836_v1  ;;  %2130 = vmatprep.subr.mxu0 %v19836_v1  ;;  %v20207_v60 = vld [vmem:[#allocation151_spill] sm:$0xff] }
  0xfd   :  { %1446 = vmatmul.mubr.f32.gmra.mxu0 %v20196_v47  ;;  %1833 = vmatmul.mubr.f32.gmra.mxu1 %v20197_v0  ;;  %v20203_v0 = vld [vmem:[#allocation147_spill] sm:$0xff] }
  0xfe   :  { %2494 = vmatpush1.msra.mxu1 %v12315_v35  ;;  %1452 = vmatprep.mubr.f32.mxu0 %v20198_v42  ;;  %v20204_v35 = vld [vmem:[#allocation139_spill] sm:$0xff] }
  0xff   :  { %1840 = vmatprep.mubr.f32.mxu1 %v20199_v28  ;;  %2134 = vmatpush1.msra.mxu0 %v20200_v33  ;;  %v20205_v42 = vld [vmem:[#allocation11_spill] sm:$0xff] }
 0x100   :  { %2495 = vmatprep.subr.mxu1 %v19836_v1  ;;  %2135 = vmatprep.subr.mxu0 %v19836_v1  ;;  %v20206_v47 = vand.u32 4294901760, %v20205_v42  ;;  %v20208_v33 = vld [vmem:[#allocation143_spill] sm:$0xff] }
 0x101   :  { %1455 = vmatmul.mubr.f32.gmra.mxu0 %v20201_v54  ;;  %1844 = vmatmul.mubr.f32.gmra.mxu1 %v20202_v16  ;;  %v20209_v54 = vld [vmem:[#allocation8_spill] sm:$0xff]  ;;  %v20210_v16 = vld [vmem:[#allocation155_spill] sm:$0xff] }
 0x102   :  { %2497 = vmatpush1.msra.mxu1 %v12336_v45  ;;  %1461 = vmatprep.mubr.f32.mxu0 %v20203_v0  ;;  %v20211_v45 = vld [vmem:[#allocation145_spill] sm:$0xff]  ;;  %v20214_v42 = vld [vmem:[#allocation159_spill] sm:$0xff] }
 0x103   :  { %1851 = vmatprep.mubr.f32.mxu1 %v20204_v35  ;;  %2139 = vmatpush1.msra.mxu0 %v20206_v47  ;;  %v20212_v0 = vld [vmem:[#allocation13_spill] sm:$0xff] }
 0x104   :  { %2498 = vmatprep.subr.mxu1 %v19836_v1  ;;  %2140 = vmatprep.subr.mxu0 %v19836_v1  ;;  %v20213_v28 = vand.u32 4294901760, %v20212_v0  ;;  %v20215_v47 = vld [vmem:[#allocation149_spill] sm:$0xff]  ;;  %v20221_v0 = vld [vmem:[#allocation167_spill] sm:$0xff] }
 0x105   :  { %1464 = vmatmul.mubr.f32.gmra.mxu0 %v20207_v60  ;;  %1855 = vmatmul.mubr.f32.gmra.mxu1 %v20208_v33  ;;  %v20216_v60 = vld [vmem:[#allocation9_spill] sm:$0xff]  ;;  %v20217_v33 = vld [vmem:[#allocation163_spill] sm:$0xff] }
 0x106   :  { %2500 = vmatpush1.msra.mxu1 %v20209_v54  ;;  %1470 = vmatprep.mubr.f32.mxu0 %v20210_v16  ;;  %v20218_v54 = vld [vmem:[#allocation154_spill] sm:$0xff]  ;;  %v20219_v16 = vld [vmem:[#allocation15_spill] sm:$0xff] }
 0x107   :  { %1862 = vmatprep.mubr.f32.mxu1 %v20211_v45  ;;  %2144 = vmatpush1.msra.mxu0 %v20213_v28  ;;  %v20220_v35 = vand.u32 4294901760, %v20219_v16  ;;  %v20222_v28 = vld [vmem:[#allocation158_spill] sm:$0xff]  ;;  %v20228_v16 = vld [vmem:[#allocation176_spill] sm:$0xff] }
 0x108   :  { %2501 = vmatprep.subr.mxu1 %v19836_v1  ;;  %2145 = vmatprep.subr.mxu0 %v19836_v1 }
 0x109   :  { %1473 = vmatmul.mubr.f32.gmra.mxu0 %v20214_v42  ;;  %1866 = vmatmul.mubr.f32.gmra.mxu1 %v20215_v47  ;;  %v20223_v42 = vld [vmem:[#allocation10_spill] sm:$0xff]  ;;  %v20224_v47 = vld [vmem:[#allocation172_spill] sm:$0xff] }
 0x10a   :  { %2503 = vmatpush1.msra.mxu1 %v20216_v60  ;;  %1479 = vmatprep.mubr.f32.mxu0 %v20217_v33  ;;  %v20225_v60 = vld [vmem:[#allocation162_spill] sm:$0xff]  ;;  %v20226_v33 = vld [vmem:[#allocation17_spill] sm:$0xff] }
 0x10b   :  { %1873 = vmatprep.mubr.f32.mxu1 %v20218_v54  ;;  %2149 = vmatpush1.msra.mxu0 %v20220_v35  ;;  %v20227_v45 = vand.u32 4294901760, %v20226_v33  ;;  %v20229_v35 = vld [vmem:[#allocation166_spill] sm:$0xff] }
 0x10c   :  { %2504 = vmatprep.subr.mxu1 %v19836_v1  ;;  %2150 = vmatprep.subr.mxu0 %v19836_v1 }
 0x10d   :  { %1482 = vmatmul.mubr.f32.gmra.mxu0 %v20221_v0  ;;  %1877 = vmatmul.mubr.f32.gmra.mxu1 %v20222_v28  ;;  %v20230_v0 = vld [vmem:[#allocation12_spill] sm:$0xff] }
 0x10e   :  { %2506 = vmatpush1.msra.mxu1 %v20223_v42  ;;  %1488 = vmatprep.mubr.f32.mxu0 %v20224_v47  ;;  %v20231_v42 = vld [vmem:[#allocation177_spill] sm:$0xff]  ;;  %v20232_v47 = vld [vmem:[#allocation171_spill] sm:$0xff] }
 0x10f   :  { %1884 = vmatprep.mubr.f32.mxu1 %v20225_v60  ;;  %2154 = vmatpush1.msra.mxu0 %v20227_v45  ;;  %v20233_v60 = vld [vmem:[#allocation19_spill] sm:$0xff]  ;;  %v20235_v45 = vld [vmem:[#allocation181_spill] sm:$0xff] }
 0x110   :  { %v296_v54 = vpop.f32.mrf.mxu0  ;;  %2507 = vmatprep.subr.mxu1 %v19836_v1  ;;  %2155 = vmatprep.subr.mxu0 %v19836_v1  ;;  %v20234_v25 = vand.u32 4294901760, %v20233_v60  ;;  %v20240_v60 = vld [vmem:[#allocation21_spill] sm:$0xff] }
 0x111   :  { %1491 = vmatmul.mubr.f32.gmra.mxu0 %v20228_v16  ;;  %1888 = vmatmul.mubr.f32.gmra.mxu1 %v20229_v35  ;;  %v20236_v16 = vld [vmem:[#allocation175_spill] sm:$0xff]  ;;  %v20241_v43 = vand.u32 4294901760, %v20240_v60 }
 0x112   :  { %2509 = vmatpush1.msra.mxu1 %v20230_v0  ;;  %v298_v28 = vpop.f32.mrf.mxu0  ;;  %1497 = vmatprep.mubr.f32.mxu0 %v20231_v42  ;;  %v12073_v0 = vld [vmem:[%s18873_s1] sm:$0xff]  ;;  %v20238_v35 = vld [vmem:[#allocation187_spill] sm:$0xff] }
 0x113   :  { %1895 = vmatprep.mubr.f32.mxu1 %v20232_v47  ;;  %2159 = vmatpush1.msra.mxu0 %v20234_v25  ;;  %v297_v28 = vadd.f32 %v12073_v0, %v296_v54  ;;  %v20237_v42 = vld [vmem:[#allocation14_spill] sm:$0xff]  ;;  %v20239_v25 = vld [vmem:[#allocation179_spill] sm:$0xff]  ;;  %v20244_v0 = vld [vmem:[#allocation16_spill] sm:$0xff] }
 0x114   :  { %v311_v33 = vpop.f32.mrf.mxu0  ;;  %2510 = vmatprep.subr.mxu1 %v19836_v1  ;;  %2160 = vmatprep.subr.mxu0 %v19836_v1  ;;  %v20245_v60 = vld [vmem:[#allocation195_spill] sm:$0xff] }
 0x115   :  { %1500 = vmatmul.mubr.f32.gmra.mxu0 %v20235_v45  ;;  %1899 = vmatmul.mubr.f32.gmra.mxu1 %v20236_v16  ;;  %v20242_v45 = vld [vmem:[#allocation191_spill] sm:$0xff] }
 0x116   :  { %2512 = vmatpush1.msra.mxu1 %v20237_v42  ;;  %v313_v47 = vpop.f32.mrf.mxu0  ;;  %1506 = vmatprep.mubr.f32.mxu0 %v20238_v35  ;;  %v20246_v35 = vld [vmem:[#allocation185_spill] sm:$0xff] }
 0x117   :  { %1906 = vmatprep.mubr.f32.mxu1 %v20239_v25  ;;  %2164 = vmatpush2.msra.mxu0 %v20241_v43  ;;  %v12074_v47 = vld [vmem:[%s18873_s1 + $0x8] sm:$0xff] }
 0x118   :  { %v326_v17 = vpop.f32.mrf.mxu0  ;;  %2513 = vmatprep.subr.mxu1 %v19836_v1  ;;  %2165 = vmatprep.subr.mxu0 %v19836_v1  ;;  %v312_v54 = vadd.f32 %v12074_v47, %v311_v33  ;;  %v20249_v33 = vld [vmem:[#allocation199_spill] sm:$0xff] }
 0x119   :  { %v993_v16 = vpop.f32.mrf.mxu1  ;;  %1509 = vmatmul.mubr.f32.gmra.mxu0 %v20242_v45  ;;  %1910 = vmatmul.mubr.f32.gmra.mxu1 %v20243_v34 }
 0x11a   :  { %v14083_v42 = vadd.f32 %v993_v16, %v297_v28  ;;  %2515 = vmatpush2.msra.mxu1 %v20244_v0  ;;  %v328_v43 = vpop.f32.mrf.mxu0  ;;  %1515 = vmatprep.mubr.f32.mxu0 %v20245_v60  ;;  %v20250_v16 = vld [vmem:[#allocation189_spill] sm:$0xff]  ;;  %v12075_v28 = vld [vmem:[%s18873_s1 + $0x10] sm:$0xff]  ;;  %v20251_v0 = vld [vmem:[#allocation18_spill] sm:$0xff] }
 0x11b   :  { %v995_v25 = vpop.f32.mrf.mxu1  ;;  %1917 = vmatprep.mubr.f32.mxu1 %v20246_v35  ;;  %2169 = vmatpush2.msra.mxu0 %v20248_v30  ;;  %v20253_v35 = vld [vmem:[#allocation194_spill] sm:$0xff]  ;;  %v20254_v60 = vld [vmem:[#allocation25_spill] sm:$0xff] }
 0x11c   :  { %v341_v45 = vpop.f32.mrf.mxu0  ;;  %2516 = vmatprep.subr.mxu1 %v19836_v1  ;;  %2170 = vmatprep.subr.mxu0 %v19836_v1  ;;  %v327_v25 = vadd.f32 %v12075_v28, %v326_v17  ;;  %v20255_v11 = vand.u32 4294901760, %v20254_v60  ;;  %v20256_v17 = vld [vmem:[#allocation207_spill] sm:$0xff]  ;;  %v20259_v60 = vld [vmem:[#allocation212_spill] sm:$0xff] }
 0x11d   :  { %v1000_v34 = vpop.f32.mrf.mxu1  ;;  %1518 = vmatmul.mubr.f32.gmra.mxu0 %v20249_v33  ;;  %1921 = vmatmul.mubr.f32.gmra.mxu1 %v20250_v16 }
 0x11e   :  { %v14097_v47 = vadd.f32 %v1000_v34, %v312_v54  ;;  %2518 = vmatpush2.msra.mxu1 %v20251_v0  ;;  %v343_v30 = vpop.f32.mrf.mxu0  ;;  %1524 = vmatprep.mubr.f32.mxu0 %v20252_v12  ;;  %v20257_v34 = vld [vmem:[#allocation198_spill] sm:$0xff]  ;;  %v12076_v54 = vld [vmem:[%s18873_s1 + $0x18] sm:$0xff]  ;;  %v20261_v12 = vld [vmem:[#allocation27_spill] sm:$0xff] }
 0x11f   :  { %v1002_v43 = vpop.f32.mrf.mxu1  ;;  %1928 = vmatprep.mubr.f32.mxu1 %v20253_v35  ;;  %2174 = vmatpush2.msra.mxu0 %v20255_v11  ;;  %v342_v28 = vadd.f32 %v12076_v54, %v341_v45  ;;  %v20258_v30 = vld [vmem:[#allocation20_spill] sm:$0xff]  ;;  %v20260_v35 = vld [vmem:[#allocation202_spill] sm:$0xff]  ;;  %v20262_v21 = vand.u32 4294901760, %v20261_v12  ;;  %v20266_v12 = vld [vmem:[#allocation217_spill] sm:$0xff] }
 0x120   :  { %v356_v33 = vpop.f32.mrf.mxu0  ;;  %2519 = vmatprep.subr.mxu1 %v19836_v1  ;;  %2175 = vmatprep.subr.mxu0 %v19836_v1  ;;  %v20263_v45 = vld [vmem:[#allocation216_spill] sm:$0xff] }
 0x121   :  { %v1007_v16 = vpop.f32.mrf.mxu1  ;;  %1527 = vmatmul.mubr.f32.gmra.mxu0 %v20256_v17  ;;  %1932 = vmatmul.mubr.f32.gmra.mxu1 %v20257_v34 }
 0x122   :  { %v14111_v0 = vadd.f32 %v1007_v16, %v327_v25  ;;  %2521 = vmatpush2.msra.mxu1 %v20258_v30  ;;  %v358_v11 = vpop.f32.mrf.mxu0  ;;  %1533 = vmatprep.mubr.f32.mxu0 %v20259_v60  ;;  %v20264_v16 = vld [vmem:[#allocation206_spill] sm:$0xff]  ;;  %v20268_v60 = vld [vmem:[#allocation29_spill] sm:$0xff] }
 0x123   :  { %v1009_v43 = vpop.f32.mrf.mxu1  ;;  %1939 = vmatprep.mubr.f32.mxu1 %v20260_v35  ;;  %2179 = vmatpush2.msra.mxu0 %v20262_v21  ;;  %v12077_v25 = vld [vmem:[%s18873_s1 + $0x20] sm:$0xff]  ;;  %v20267_v35 = vld [vmem:[#allocation211_spill] sm:$0xff]  ;;  %v20269_v10 = vand.u32 4294901760, %v20268_v60 }
 0x124   :  { %v371_v17 = vpop.f32.mrf.mxu0  ;;  %2522 = vmatprep.subr.mxu1 %v19836_v1  ;;  %2180 = vmatprep.subr.mxu0 %v19836_v1  ;;  %v357_v54 = vadd.f32 %v12077_v25, %v356_v33  ;;  %v20265_v11 = vld [vmem:[#allocation22_spill] sm:$0xff]  ;;  %v20270_v33 = vld [vmem:[#allocation221_spill] sm:$0xff]  ;;  %v20273_v60 = vld [vmem:[#allocation227_spill] sm:$0xff] }
 0x125   :  { %v1014_v34 = vpop.f32.mrf.mxu1  ;;  %1536 = vmatmul.mubr.f32.gmra.mxu0 %v20263_v45  ;;  %1943 = vmatmul.mubr.f32.gmra.mxu1 %v20264_v16 }
 0x126   :  { %v14125_v30 = vadd.f32 %v1014_v34, %v342_v28  ;;  %2524 = vmatpush2.msra.mxu1 %v20265_v11  ;;  %v373_v21 = vpop.f32.mrf.mxu0  ;;  %1542 = vmatprep.mubr.f32.mxu0 %v20266_v12  ;;  %v20271_v34 = vld [vmem:[#allocation215_spill] sm:$0xff] }
 0x127   :  { %v1016_v43 = vpop.f32.mrf.mxu1  ;;  %1950 = vmatprep.mubr.f32.mxu1 %v20267_v35  ;;  %2184 = vmatpush2.msra.mxu0 %v20269_v10  ;;  %v12078_v28 = vld [vmem:[%s18873_s1 + $0x28] sm:$0xff]  ;;  %v20272_v21 = vld [vmem:[#allocation24_spill] sm:$0xff] }
 0x128   :  { %v386_v45 = vpop.f32.mrf.mxu0  ;;  %2525 = vmatprep.subr.mxu1 %v19836_v1  ;;  %2185 = vmatprep.subr.mxu0 %v19836_v1  ;;  %v372_v25 = vadd.f32 %v12078_v28, %v371_v17  ;;  %v20274_v35 = vld [vmem:[#allocation219_spill] sm:$0xff] }
 0x129   :  { %v1021_v16 = vpop.f32.mrf.mxu1  ;;  %1545 = vmatmul.mubr.f32.gmra.mxu0 %v20270_v33  ;;  %1954 = vmatmul.mubr.f32.gmra.mxu1 %v20271_v34  ;;  %v20275_v12 = vld [vmem:[#allocation31_spill] sm:$0xff] }
 0x12a   :  { %v14139_v11 = vadd.f32 %v1021_v16, %v357_v54  ;;  %2527 = vmatpush2.msra.mxu1 %v20272_v21  ;;  %v388_v10 = vpop.f32.mrf.mxu0  ;;  %1551 = vmatprep.mubr.f32.mxu0 %v20273_v60  ;;  %v20276_v20 = vand.u32 4294901760, %v20275_v12  ;;  %v20277_v17 = vld [vmem:[#allocation231_spill] sm:$0xff]  ;;  %v12079_v54 = vld [vmem:[%s18873_s1 + $0x30] sm:$0xff] }
 0x12b   :  { %v1023_v43 = vpop.f32.mrf.mxu1  ;;  %1961 = vmatprep.mubr.f32.mxu1 %v20274_v35  ;;  %2528 = vmatprep.subr.mxu1 %v19836_v1  ;;  %v20278_v16 = vld [vmem:[#allocation223_spill] sm:$0xff]  ;;  %v387_v28 = vadd.f32 %v12079_v54, %v386_v45  ;;  %v20281_v35 = vld [vmem:[#allocation33_spill] sm:$0xff] }
 0x12c   :  { %2189 = vmatpush2.msra.mxu0 %v20276_v20  ;;  %v401_v33 = vpop.f32.mrf.mxu0  ;;  %2530 = vmatpush2.msra.mxu1 %v20091_v9  ;;  %v20279_v12 = vld [vmem:[#allocation235_spill] sm:$0xff]  ;;  %v20280_v43 = vld [vmem:[#allocation225_spill] sm:$0xff]  ;;  %v20282_v60 = vand.u32 4294901760, %v20281_v35 }
 0x12d   :  { %2190 = vmatprep.subr.mxu0 %v19836_v1  ;;  %v1028_v34 = vpop.f32.mrf.mxu1  ;;  %1554 = vmatmul.mubr.f32.gmra.mxu0 %v20277_v17  ;;  %v20283_v45 = vld [vmem:[#allocation239_spill] sm:$0xff]  ;;  %v12080_v9 = vld [vmem:[%s18873_s1 + $0x38] sm:$0xff] }
 0x12e   :  { %1965 = vmatmul.mubr.f32.gmra.mxu1 %v20278_v16  ;;  %v14153_v21 = vadd.f32 %v1028_v34, %v372_v25  ;;  %v403_v20 = vpop.f32.mrf.mxu0  ;;  %1560 = vmatprep.mubr.f32.mxu0 %v20279_v12  ;;  %v20284_v34 = vld [vmem:[#allocation229_spill] sm:$0xff]  ;;  %v402_v25 = vadd.f32 %v12080_v9, %v401_v33  ;;  %v20288_v12 = vld [vmem:[#allocation35_spill] sm:$0xff] }
 0x12f   :  { %v1030_v10 = vpop.f32.mrf.mxu1  ;;  %1972 = vmatprep.mubr.f32.mxu1 %v20280_v43  ;;  %2194 = vmatpush2.msra.mxu0 %v20282_v60  ;;  %v20285_v20 = vld [vmem:[#allocation28_spill] sm:$0xff]  ;;  %v20286_v60 = vld [vmem:[#allocation243_spill] sm:$0xff]  ;;  %v20287_v43 = vld [vmem:[#allocation234_spill] sm:$0xff]  ;;  %v20289_v6 = vand.u32 4294901760, %v20288_v12 }
 0x130   :  { %v416_v17 = vpop.f32.mrf.mxu0  ;;  %2531 = vmatprep.subr.mxu1 %v19836_v1  ;;  %2195 = vmatprep.subr.mxu0 %v19836_v1  ;;  %v20290_v33 = vld [vmem:[#allocation247_spill] sm:$0xff]  ;;  %v20292_v12 = vld [vmem:[#allocation252_spill] sm:$0xff] }
 0x131   :  { %v1035_v16 = vpop.f32.mrf.mxu1  ;;  %1563 = vmatmul.mubr.f32.gmra.mxu0 %v20283_v45  ;;  %2533 = vmatpush2.msra.mxu1 %v20285_v20 }
 0x132   :  { %1976 = vmatmul.mubr.f32.gmra.mxu1 %v20284_v34  ;;  %v14167_v54 = vadd.f32 %v1035_v16, %v387_v28  ;;  %v418_v35 = vpop.f32.mrf.mxu0  ;;  %1569 = vmatprep.mubr.f32.mxu0 %v20286_v60  ;;  %v20291_v16 = vld [vmem:[#allocation238_spill] sm:$0xff] }
 0x133   :  { %v1037_v10 = vpop.f32.mrf.mxu1  ;;  %1983 = vmatprep.mubr.f32.mxu1 %v20287_v43  ;;  %2199 = vmatpush2.msra.mxu0 %v20289_v6  ;;  %v12081_v28 = vld [vmem:[%s18873_s1 + $0x40] sm:$0xff]  ;;  %v20294_v43 = vand.u32 4294901760, %v20115_v22 }
 0x134   :  { %v431_v45 = vpop.f32.mrf.mxu0  ;;  %2534 = vmatprep.subr.mxu1 %v19836_v1  ;;  %2200 = vmatprep.subr.mxu0 %v19836_v1  ;;  %v417_v9 = vadd.f32 %v12081_v28, %v416_v17  ;;  %v20293_v10 = vld [vmem:[#allocation242_spill] sm:$0xff]  ;;  %v20295_v17 = vld [vmem:[#allocation256_spill] sm:$0xff] }
 0x135   :  { %v1042_v34 = vpop.f32.mrf.mxu1  ;;  %1572 = vmatmul.mubr.f32.gmra.mxu0 %v20290_v33  ;;  %2536 = vmatpush2.msra.mxu1 %v20111_v39  ;;  %v12082_v39 = vld [vmem:[%s18873_s1 + $0x48] sm:$0xff] }
 0x136   :  { %1987 = vmatmul.mubr.f32.gmra.mxu1 %v20291_v16  ;;  %v14181_v20 = vadd.f32 %v1042_v34, %v402_v25  ;;  %v433_v6 = vpop.f32.mrf.mxu0  ;;  %1578 = vmatprep.mubr.f32.mxu0 %v20292_v12  ;;  %v20296_v34 = vld [vmem:[#allocation246_spill] sm:$0xff]  ;;  %v432_v25 = vadd.f32 %v12082_v39, %v431_v45  ;;  %v20300_v45 = vld [vmem:[#allocation261_spill] sm:$0xff] }
 0x137   :  { %v1044_v35 = vpop.f32.mrf.mxu1  ;;  %1994 = vmatprep.mubr.f32.mxu1 %v20293_v10  ;;  %2204 = vmatpush2.msra.mxu0 %v20294_v43  ;;  %v20297_v43 = vld [vmem:[#allocation257_spill] sm:$0xff]  ;;  %v20299_v10 = vand.u32 4294901760, %v20124_v37 }
 0x138   :  { %v446_v33 = vpop.f32.mrf.mxu0  ;;  %2537 = vmatprep.subr.mxu1 %v19836_v1  ;;  %2205 = vmatprep.subr.mxu0 %v19836_v1  ;;  %v20298_v35 = vld [vmem:[#allocation251_spill] sm:$0xff] }
 0x139   :  { %v1049_v16 = vpop.f32.mrf.mxu1  ;;  %1581 = vmatmul.mubr.f32.gmra.mxu0 %v20295_v17  ;;  %2539 = vmatpush2.msra.mxu1 %v20120_v38  ;;  %v12083_v38 = vld [vmem:[%s18873_s1 + $0x50] sm:$0xff] }
 0x13a   :  { %1998 = vmatmul.mubr.f32.gmra.mxu1 %v20296_v34  ;;  %v14195_v28 = vadd.f32 %v1049_v16, %v417_v9  ;;  %v448_v22 = vpop.f32.mrf.mxu0  ;;  %1587 = vmatprep.mubr.f32.mxu0 %v20297_v43  ;;  %v20301_v16 = vld [vmem:[#allocation255_spill] sm:$0xff]  ;;  %v447_v9 = vadd.f32 %v12083_v38, %v446_v33  ;;  %v20332_v43 = vld [vmem:[#allocation88_spill] sm:$0xff] }
 0x13b   :  { %v1051_v6 = vpop.f32.mrf.mxu1  ;;  %2005 = vmatprep.mubr.f32.mxu1 %v20298_v35  ;;  %2209 = vmatpush2.msra.mxu0 %v20299_v10  ;;  %v20302_v10 = vld [vmem:[#allocation266_spill] sm:$0xff]  ;;  %v20304_v35 = vand.u32 4294901760, %v20131_v52  ;;  %v20305_v33 = vld [vmem:[#allocation263_spill] sm:$0xff] }
 0x13c   :  { %v461_v17 = vpop.f32.mrf.mxu0  ;;  %2540 = vmatprep.subr.mxu1 %v19836_v1  ;;  %2210 = vmatprep.subr.mxu0 %v19836_v1  ;;  %v20303_v6 = vld [vmem:[#allocation259_spill] sm:$0xff] }
 0x13d   :  { %v1056_v34 = vpop.f32.mrf.mxu1  ;;  %1590 = vmatmul.mubr.f32.gmra.mxu0 %v20300_v45  ;;  %2542 = vmatpush2.msra.mxu1 %v20128_v31  ;;  %v12084_v31 = vld [vmem:[%s18873_s1 + $0x58] sm:$0xff] }
 0x13e   :  { %2009 = vmatmul.mubr.f32.gmra.mxu1 %v20301_v16  ;;  %v14209_v39 = vadd.f32 %v1056_v34, %v432_v25  ;;  %v463_v37 = vpop.f32.mrf.mxu0  ;;  %1596 = vmatprep.mubr.f32.mxu0 %v20302_v10  ;;  %v462_v34 = vadd.f32 %v12084_v31, %v461_v17  ;;  %v20309_v17 = vld [vmem:[#allocation268_spill] sm:$0xff] }
 0x13f   :  { %v1058_v22 = vpop.f32.mrf.mxu1  ;;  %2016 = vmatprep.mubr.f32.mxu1 %v20303_v6  ;;  %2214 = vmatpush2.msra.mxu0 %v20304_v35  ;;  %v20306_v35 = vld [vmem:[#allocation274_spill] sm:$0xff]  ;;  %v20307_v37 = vld [vmem:[#allocation265_spill] sm:$0xff] }
 0x140   :  { %v476_v45 = vpop.f32.mrf.mxu0  ;;  %2543 = vmatprep.subr.mxu1 %v19836_v1  ;;  %2215 = vmatprep.subr.mxu0 %v19836_v1  ;;  %v20308_v22 = vand.u32 4294901760, %v20136_v51 }
 0x141   :  { %v1063_v16 = vpop.f32.mrf.mxu1  ;;  %1599 = vmatmul.mubr.f32.gmra.mxu0 %v13743_v50  ;;  %2545 = vmatpush2.msra.mxu1 %v20134_v46  ;;  %v12085_v46 = vld [vmem:[%s18873_s1 + $0x60] sm:$0xff] }
 0x142   :  { %2020 = vmatmul.mubr.f32.gmra.mxu1 %v20305_v33  ;;  %v14223_v25 = vadd.f32 %v1063_v16, %v447_v9  ;;  %v478_v52 = vpop.f32.mrf.mxu0  ;;  %1605 = vmatprep.mubr.f32.mxu0 %v20306_v35  ;;  %v477_v16 = vadd.f32 %v12085_v46, %v476_v45  ;;  %v20312_v45 = vld [vmem:[#allocation277_spill] sm:$0xff] }
 0x143   :  { %v1065_v38 = vpop.f32.mrf.mxu1  ;;  %2027 = vmatprep.mubr.f32.mxu1 %v20307_v37  ;;  %2219 = vmatpush2.msra.mxu0 %v20308_v22  ;;  %v20310_v52 = vld [vmem:[#allocation273_spill] sm:$0xff]  ;;  %v12093_v37 = vld [vmem:[%s18873_s1 + $0xa0] sm:$0xff] }
 0x144   :  { %v491_v50 = vpop.f32.mrf.mxu0  ;;  %2546 = vmatprep.subr.mxu1 %v19836_v1  ;;  %2220 = vmatprep.subr.mxu0 %v19836_v1  ;;  %v20311_v38 = vand.u32 4294901760, %v12685_v27 }
 0x145   :  { %v1070_v33 = vpop.f32.mrf.mxu1  ;;  %1608 = vmatmul.mubr.f32.gmra.mxu0 %v13781_v8  ;;  %2548 = vmatpush2.msra.mxu1 %v20138_v14  ;;  %v12086_v14 = vld [vmem:[%s18873_s1 + $0x68] sm:$0xff]  ;;  %v20330_v8 = vld [vmem:[#allocation80_spill] sm:$0xff] }
 0x146   :  { %2031 = vmatmul.mubr.f32.gmra.mxu1 %v20309_v17  ;;  %v14237_v9 = vadd.f32 %v1070_v33, %v462_v34  ;;  %v493_v51 = vpop.f32.mrf.mxu0  ;;  %1614 = vmatprep.mubr.f32.mxu0 %v13800_v57  ;;  %v492_v33 = vadd.f32 %v12086_v14, %v491_v50  ;;  %v12087_v50 = vld [vmem:[%s18873_s1 + $0x70] sm:$0xff] }
 0x147   :  { %v1072_v31 = vpop.f32.mrf.mxu1  ;;  %2038 = vmatprep.mubr.f32.mxu1 %v20310_v52  ;;  %2224 = vmatpush2.msra.mxu0 %v20311_v38  ;;  %v20313_v51 = vld [vmem:[#allocation30_spill] sm:$0xff]  ;;  %v12092_v52 = vld [vmem:[%s18873_s1 + $0x98] sm:$0xff] }
 0x148   :  { %v506_v22 = vpop.f32.mrf.mxu0  ;;  %2549 = vmatprep.subr.mxu1 %v19836_v1  ;;  %2225 = vmatprep.subr.mxu0 %v19836_v1  ;;  %v20314_v31 = vand.u32 4294901760, %v20142_v61  ;;  %v20315_v61 = vand.u32 4294901760, %v12715_v63  ;;  %v12088_v63 = vld [vmem:[%s18873_s1 + $0x78] sm:$0xff] }
 0x149   :  { %v1077_v17 = vpop.f32.mrf.mxu1  ;;  %1617 = vmatmul.mubr.f32.gmra.mxu0 %v13816_v56  ;;  %2551 = vmatpush2.msra.mxu1 %v20141_v44  ;;  %v507_v44 = vadd.f32 %v12087_v50, %v506_v22  ;;  %v20328_v56 = vld [vmem:[#allocation72_spill] sm:$0xff] }
 0x14a   :  { %2042 = vmatmul.mubr.f32.gmra.mxu1 %v20312_v45  ;;  %v14251_v34 = vadd.f32 %v1077_v17, %v477_v16  ;;  %v508_v27 = vpop.f32.mrf.mxu0  ;;  %1623 = vmatprep.mubr.f32.mxu0 %v13832_v59 }
 0x14b   :  { %v1079_v46 = vpop.f32.mrf.mxu1  ;;  %2049 = vmatprep.mubr.f32.mxu1 %v20313_v51  ;;  %2229 = vmatpush2.msra.mxu0 %v20314_v31  ;;  %v20316_v27 = vld [vmem:[#allocation286_spill] sm:$0xff]  ;;  %v20318_v31 = vld [vmem:[#allocation40_spill] sm:$0xff] }
 0x14c   :  { %v521_v38 = vpop.f32.mrf.mxu0  ;;  %2230 = vmatprep.subr.mxu0 %v19836_v1  ;;  %2552 = vmatprep.subr.mxu1 %v19836_v1  ;;  %v20317_v46 = vand.u32 4294901760, %v12736_v19  ;;  %v12091_v51 = vld [vmem:[%s18873_s1 + $0x90] sm:$0xff] }
 0x14d   :  { %v1084_v45 = vpop.f32.mrf.mxu1  ;;  %1626 = vmatmul.mubr.f32.gmra.mxu0 %v13846_v48  ;;  %2554 = vmatpush2.msra.mxu1 %v20143_v53  ;;  %v522_v53 = vadd.f32 %v12088_v63, %v521_v38  ;;  %v12089_v38 = vld [vmem:[%s18873_s1 + $0x80] sm:$0xff]  ;;  %v20323_v63 = vld [vmem:[#allocation52_spill] sm:$0xff] }
 0x14e   :  { %2053 = vmatmul.mubr.f32.gmra.mxu1 %v13813_v7  ;;  %v14265_v17 = vadd.f32 %v1084_v45, %v492_v33  ;;  %2234 = vmatpush2.msra.mxu0 %v20315_v61  ;;  %v523_v16 = vpop.f32.mrf.mxu0  ;;  %v20319_v45 = vld [vmem:[#allocation288_spill] sm:$0xff]  ;;  %v20320_v33 = vld [vmem:[#allocation41_spill] sm:$0xff] }
 0x14f   :  { %v1086_v14 = vpop.f32.mrf.mxu1  ;;  %2235 = vmatprep.subr.mxu0 %v19836_v1  ;;  %2060 = vmatprep.mubr.f32.mxu1 %v20316_v27  ;;  %v20321_v16 = vld [vmem:[#allocation43_spill] sm:$0xff]  ;;  %v20326_v48 = vld [vmem:[#allocation64_spill] sm:$0xff] }
 0x150   :  { %2239 = vmatpush2.msra.mxu0 %v20317_v46  ;;  %2241 = vmatprep.mubr.f32.mxu0 %v20318_v31  ;;  %v536_v7 = vpop.f32.mrf.mxu0 }
 0x151   :  { %v1091_v22 = vpop.f32.mrf.mxu1  ;;  %2243 = vmatmul.mubr.f32.vlgmr.msra.gmra.mxu0 %v20320_v33  ;;  %2555 = vmatprep.subr.mxu1 %v19836_v1 }
 0x152   :  { %2064 = vmatmul.mubr.f32.gmra.mxu1 %v20319_v45  ;;  %v14280_v50 = vadd.f32 %v1091_v22, %v507_v44  ;;  %v538_v61 = vpop.f32.mrf.mxu0  ;;  %2248 = vmatprep.mubr.f32.mxu0 %v20321_v16  ;;  %v20322_v45 = vld [vmem:[#allocation50_spill] sm:$0xff]  ;;  %v537_v44 = vadd.f32 %v12089_v38, %v536_v7  ;;  %v12090_v7 = vld [vmem:[%s18873_s1 + $0x88] sm:$0xff]  ;;  %v20325_v38 = vld [vmem:[#allocation61_spill] sm:$0xff] }
 0x153   :  { %2071 = vmatprep.mubr.f32.mxu1 %v13857_v32  ;;  %2557 = vmatpush2.msra.mxu1 %v20146_v24  ;;  %v1093_v19 = vpop.f32.mrf.mxu1 }
 0x154   :  { %v551_v14 = vpop.f32.mrf.mxu0  ;;  %2558 = vmatprep.subr.mxu1 %v19836_v1 }
 0x155   :  { %v1098_v46 = vpop.f32.mrf.mxu1  ;;  %2250 = vmatmul.mubr.f32.gmra.mxu0 %v20322_v45  ;;  %2560 = vmatpush2.msra.mxu1 %v20149_v2 }
 0x156   :  { %2075 = vmatmul.mubr.f32.gmra.mxu1 %v13868_v49  ;;  %v14292_v22 = vadd.f32 %v1098_v46, %v522_v53  ;;  %v553_v24 = vpop.f32.mrf.mxu0  ;;  %2255 = vmatprep.mubr.f32.mxu0 %v20323_v63  ;;  %v20324_v49 = vld [vmem:[#allocation56_spill] sm:$0xff]  ;;  %v552_v53 = vadd.f32 %v12090_v7, %v551_v14 }
 0x157   :  { %v1100_v61 = vpop.f32.mrf.mxu1  ;;  %2562 = vmatprep.mubr.f32.mxu1 %v20318_v31 }
 0x158   :  { %v566_v19 = vpop.f32.mrf.mxu0 }
 0x159   :  { %v1105_v32 = vpop.f32.mrf.mxu1  ;;  %2257 = vmatmul.mubr.f32.gmra.mxu0 %v20324_v49  ;;  %v567_v59 = vadd.f32 %v12091_v51, %v566_v19  ;;  %v20329_v19 = vld [vmem:[#allocation76_spill] sm:$0xff] }
 0x15a   :  { %2564 = vmatmul.mubr.f32.vlgmr.msra.gmra.mxu1 %v20320_v33  ;;  %v14302_v46 = vadd.f32 %v1105_v32, %v537_v44  ;;  %v568_v2 = vpop.f32.mrf.mxu0  ;;  %2262 = vmatprep.mubr.f32.mxu0 %v20325_v38  ;;  %v20327_v44 = vld [vmem:[#allocation67_spill] sm:$0xff] }
 0x15b   :  { %2569 = vmatprep.mubr.f32.mxu1 %v20321_v16  ;;  %v1107_v24 = vpop.f32.mrf.mxu1  ;;  %v20361_v16 = vld [vmem:[#allocation180_spill] sm:$0xff] }
 0x15c   :  { %v581_v61 = vpop.f32.mrf.mxu0 }
 0x15d   :  { %v1112_v27 = vpop.f32.mrf.mxu1  ;;  %2264 = vmatmul.mubr.f32.gmra.mxu0 %v20326_v48  ;;  %v582_v57 = vadd.f32 %v12092_v52, %v581_v61  ;;  %v20331_v61 = vld [vmem:[#allocation84_spill] sm:$0xff] }
 0x15e   :  { %2571 = vmatmul.mubr.f32.gmra.mxu1 %v20322_v45  ;;  %v14311_v14 = vadd.f32 %v1112_v27, %v552_v53  ;;  %v583_v32 = vpop.f32.mrf.mxu0  ;;  %2269 = vmatprep.mubr.f32.mxu0 %v20327_v44 }
 0x15f   :  { %2576 = vmatprep.mubr.f32.mxu1 %v20323_v63  ;;  %v1114_v7 = vpop.f32.mrf.mxu1 }
 0x160   :  { %v596_v2 = vpop.f32.mrf.mxu0 }
 0x161   :  { %v1119_v24 = vpop.f32.mrf.mxu1  ;;  %2271 = vmatmul.mubr.f32.gmra.mxu0 %v20328_v56  ;;  %v597_v35 = vadd.f32 %v12093_v37, %v596_v2 }
 0x162   :  { %2578 = vmatmul.mubr.f32.gmra.mxu1 %v20324_v49  ;;  %v14320_v51 = vadd.f32 %v1119_v24, %v567_v59  ;;  %v598_v27 = vpop.f32.mrf.mxu0  ;;  %2276 = vmatprep.mubr.f32.mxu0 %v20329_v19  ;;  %v12102_v49 = vld [vmem:[%s18873_s1 + $0xe8] sm:$0xff] }
 0x163   :  { %2583 = vmatprep.mubr.f32.mxu1 %v20325_v38  ;;  %v1121_v53 = vpop.f32.mrf.mxu1  ;;  %v168_v27 = vld [vmem:[%s18875_s3 + $0x28] sm:$0xff] }
 0x164   :  { %v611_v32 = vpop.f32.mrf.mxu0  ;;  %v14336_v6 = vand.u32 4294901760, %v168_v27 }
 0x165   :  { %v1126_v7 = vpop.f32.mrf.mxu1  ;;  %2278 = vmatmul.mubr.f32.gmra.mxu0 %v20330_v8 }
 0x166   :  { %2585 = vmatmul.mubr.f32.gmra.mxu1 %v20326_v48  ;;  %v14329_v52 = vadd.f32 %v1126_v7, %v582_v57  ;;  %v613_v59 = vpop.f32.mrf.mxu0  ;;  %2283 = vmatprep.mubr.f32.mxu0 %v20331_v61  ;;  %v12094_v57 = vld [vmem:[%s18873_s1 + $0xa8] sm:$0xff] }
 0x167   :  { %2590 = vmatprep.mubr.f32.mxu1 %v20327_v44  ;;  %v1128_v24 = vpop.f32.mrf.mxu1  ;;  %v612_v37 = vadd.f32 %v12094_v57, %v611_v32  ;;  %v20333_v59 = vld [vmem:[#allocation89_spill] sm:$0xff]  ;;  %11208 = vmatprep.subr.mxu0 %v14336_v6 }
 0x168   :  { %v626_v53 = vpop.f32.mrf.mxu0  ;;  %v14348_v24 = vsub.f32 %v168_v27, %v14336_v6  ;;  %11209 = vmatpush3.msra.mxu0 %v14336_v6 }
 0x169   :  { %v1133_v10 = vpop.f32.mrf.mxu1  ;;  %2285 = vmatmul.mubr.f32.gmra.mxu0 %v20332_v43 }
 0x16a   :  { %2592 = vmatmul.mubr.f32.gmra.mxu1 %v20328_v56  ;;  %v14343_v2 = vadd.f32 %v1133_v10, %v597_v35  ;;  %v628_v7 = vpop.f32.mrf.mxu0  ;;  %2290 = vmatprep.mubr.f32.mxu0 %v20333_v59  ;;  %v14353_v18 = vand.u32 4294901760, %v14348_v24  ;;  %v20335_v10 = vld [vmem:[#allocation93_spill] sm:$0xff]  ;;  %v12095_v35 = vld [vmem:[%s18873_s1 + $0xb0] sm:$0xff] }
 0x16b   :  { %2597 = vmatprep.mubr.f32.mxu1 %v20329_v19  ;;  %v1135_v12 = vpop.f32.mrf.mxu1  ;;  %v627_v27 = vadd.f32 %v12095_v35, %v626_v53  ;;  %v20336_v7 = vld [vmem:[#allocation100_spill] sm:$0xff]  ;;  %v12096_v53 = vld [vmem:[%s18873_s1 + $0xb8] sm:$0xff] }
 0x16c   :  { %v641_v60 = vpop.f32.mrf.mxu0  ;;  %20334 = vst [vmem:[#allocation44_spill] sm:$0xff] %v14353_v18  ;;  %v3303_v5 = vsub.f32 %v14348_v24, %v14353_v18  ;;  %v20349_v56 = vld [vmem:[#allocation144_spill] sm:$0xff] }
 0x16d   :  { %v1140_v32 = vpop.f32.mrf.mxu1  ;;  %2292 = vmatmul.mubr.f32.gmra.mxu0 %v20335_v10 }
 0x16e   :  { %2599 = vmatmul.mubr.f32.gmra.mxu1 %v20330_v8  ;;  %v14360_v57 = vadd.f32 %v1140_v32, %v612_v37  ;;  %v643_v12 = vpop.f32.mrf.mxu0  ;;  %2297 = vmatprep.mubr.f32.mxu0 %v20336_v7  ;;  %v3304_v15 = vand.u32 4294901760, %v3303_v5  ;;  %v642_v37 = vadd.f32 %v12096_v53, %v641_v60  ;;  %v12097_v60 = vld [vmem:[%s18873_s1 + $0xc0] sm:$0xff]  ;;  %v20345_v8 = vld [vmem:[#allocation133_spill] sm:$0xff] }
 0x16f   :  { %2604 = vmatprep.mubr.f32.mxu1 %v20331_v61  ;;  %v1142_v62 = vpop.f32.mrf.mxu1  ;;  %v20338_v12 = vld [vmem:[#allocation108_spill] sm:$0xff] }
 0x170   :  { %v656_v4 = vpop.f32.mrf.mxu0  ;;  %11268 = vmatprep.subr.mxu1 %v3304_v15 }
 0x171   :  { %v1147_v55 = vpop.f32.mrf.mxu1  ;;  %2299 = vmatmul.mubr.f32.gmra.mxu0 %v20337_v41  ;;  %11269 = vmatpush3.msra.mxu1 %v3304_v15 }
 0x172   :  { %2606 = vmatmul.mubr.f32.gmra.mxu1 %v20332_v43  ;;  %v14371_v32 = vadd.f32 %v1147_v55, %v627_v27  ;;  %v658_v35 = vpop.f32.mrf.mxu0  ;;  %2304 = vmatprep.mubr.f32.mxu0 %v20338_v12  ;;  %v657_v55 = vadd.f32 %v12097_v60, %v656_v4 }
 0x173   :  { %2611 = vmatprep.mubr.f32.mxu1 %v20333_v59  ;;  %v1149_v62 = vpop.f32.mrf.mxu1  ;;  %v20340_v35 = vld [vmem:[#allocation116_spill] sm:$0xff] }
 0x174   :  { %v671_v5 = vpop.f32.mrf.mxu0  ;;  %v20341_v59 = vld [vmem:[#allocation120_spill] sm:$0xff] }
 0x175   :  { %v1154_v13 = vpop.f32.mrf.mxu1  ;;  %2306 = vmatmul.mubr.f32.gmra.mxu0 %v20339_v58 }
 0x176   :  { %2613 = vmatmul.mubr.f32.gmra.mxu1 %v20335_v10  ;;  %v14380_v27 = vadd.f32 %v1154_v13, %v642_v37  ;;  %v673_v53 = vpop.f32.mrf.mxu0  ;;  %2311 = vmatprep.mubr.f32.mxu0 %v20340_v35  ;;  %v12098_v10 = vld [vmem:[%s18873_s1 + $0xc8] sm:$0xff]  ;;  %v20342_v37 = vld [vmem:[#allocation124_spill] sm:$0xff] }
 0x177   :  { %2618 = vmatprep.mubr.f32.mxu1 %v20336_v7  ;;  %v1156_v62 = vpop.f32.mrf.mxu1  ;;  %v672_v43 = vadd.f32 %v12098_v10, %v671_v5  ;;  %v20343_v7 = vld [vmem:[#allocation128_spill] sm:$0xff] }
 0x178   :  { %v686_v26 = vpop.f32.mrf.mxu0 }
 0x179   :  { %v1161_v15 = vpop.f32.mrf.mxu1  ;;  %2313 = vmatmul.mubr.f32.gmra.mxu0 %v20341_v59 }
 0x17a   :  { %2620 = vmatmul.mubr.f32.gmra.mxu1 %v20337_v41  ;;  %v14389_v4 = vadd.f32 %v1161_v15, %v657_v55  ;;  %v688_v13 = vpop.f32.mrf.mxu0  ;;  %2318 = vmatprep.mubr.f32.mxu0 %v20342_v37  ;;  %v12099_v41 = vld [vmem:[%s18873_s1 + $0xd0] sm:$0xff]  ;;  %v20344_v55 = vld [vmem:[#allocation129_spill] sm:$0xff]  ;;  %v167_v15 = vld [vmem:[%s18875_s3 + $0x20] sm:$0xff] }
 0x17b   :  { %2625 = vmatprep.mubr.f32.mxu1 %v20338_v12  ;;  %v1163_v60 = vpop.f32.mrf.mxu1  ;;  %v687_v61 = vadd.f32 %v12099_v41, %v686_v26  ;;  %v12100_v26 = vld [vmem:[%s18873_s1 + $0xd8] sm:$0xff] }
 0x17c   :  { %v701_v53 = vpop.f32.mrf.mxu0  ;;  %v14405_v60 = vand.u32 4294901760, %v167_v15 }
 0x17d   :  { %v1168_v62 = vpop.f32.mrf.mxu1  ;;  %2320 = vmatmul.mubr.f32.gmra.mxu0 %v20343_v7 }
 0x17e   :  { %2627 = vmatmul.mubr.f32.gmra.mxu1 %v20339_v58  ;;  %v14398_v10 = vadd.f32 %v1168_v62, %v672_v43  ;;  %v703_v5 = vpop.f32.mrf.mxu0  ;;  %2325 = vmatprep.mubr.f32.mxu0 %v20344_v55  ;;  %v14410_v41 = vsub.f32 %v167_v15, %v14405_v60  ;;  %v702_v43 = vadd.f32 %v12100_v26, %v701_v53 }
 0x17f   :  { %2632 = vmatprep.mubr.f32.mxu1 %v20340_v35  ;;  %v1170_v13 = vpop.f32.mrf.mxu1  ;;  %11210 = vmatprep.subr.mxu0 %v14405_v60 }
 0x180   :  { %v716_v58 = vpop.f32.mrf.mxu0  ;;  %20346 = vst [vmem:[#allocation55_spill] sm:$0xff] %v14410_v41  ;;  %v20347_v13 = vld [vmem:[#allocation140_spill] sm:$0xff]  ;;  %11211 = vmatpush3.msra.mxu0 %v14405_v60 }
 0x181   :  { %v1175_v12 = vpop.f32.mrf.mxu1  ;;  %2327 = vmatmul.mubr.f32.gmra.mxu0 %v20345_v8 }
 0x182   :  { %2634 = vmatmul.mubr.f32.gmra.mxu1 %v20341_v59  ;;  %v14415_v62 = vadd.f32 %v1175_v12, %v687_v61  ;;  %v718_v5 = vpop.f32.mrf.mxu0  ;;  %2332 = vmatprep.mubr.f32.mxu0 %v20347_v13  ;;  %v14421_v59 = vand.u32 4294901760, %v14410_v41  ;;  %v12101_v12 = vld [vmem:[%s18873_s1 + $0xe0] sm:$0xff] }
 0x183   :  { %2639 = vmatprep.mubr.f32.mxu1 %v20342_v37  ;;  %v1177_v35 = vpop.f32.mrf.mxu1  ;;  %v20350_v5 = vld [vmem:[#allocation148_spill] sm:$0xff] }
 0x184   :  { %20348 = vst [vmem:[#allocation46_spill] sm:$0xff] %v14421_v59  ;;  %v731_v15 = vpop.f32.mrf.mxu0  ;;  %v3310_v61 = vsub.f32 %v14410_v41, %v14421_v59  ;;  %v717_v35 = vadd.f32 %v12101_v12, %v716_v58  ;;  %v20352_v12 = vld [vmem:[#allocation156_spill] sm:$0xff] }
 0x185   :  { %v1182_v19 = vpop.f32.mrf.mxu1  ;;  %2334 = vmatmul.mubr.f32.gmra.mxu0 %v20349_v56  ;;  %v732_v58 = vadd.f32 %v12102_v49, %v731_v15  ;;  %v12103_v49 = vld [vmem:[%s18873_s1 + $0xf0] sm:$0xff] }
 0x186   :  { %2641 = vmatmul.mubr.f32.gmra.mxu1 %v20343_v7  ;;  %v14431_v53 = vadd.f32 %v1182_v19, %v702_v43  ;;  %v733_v26 = vpop.f32.mrf.mxu0  ;;  %2339 = vmatprep.mubr.f32.mxu0 %v20350_v5  ;;  %v3311_v44 = vand.u32 4294901760, %v3310_v61  ;;  %v20351_v7 = vld [vmem:[#allocation152_spill] sm:$0xff] }
 0x187   :  { %2646 = vmatprep.mubr.f32.mxu1 %v20344_v55  ;;  %v1184_v37 = vpop.f32.mrf.mxu1  ;;  %v20353_v55 = vld [vmem:[#allocation160_spill] sm:$0xff] }
 0x188   :  { %v746_v48 = vpop.f32.mrf.mxu0  ;;  %11270 = vmatprep.subr.mxu1 %v3311_v44 }
 0x189   :  { %v1189_v38 = vpop.f32.mrf.mxu1  ;;  %2341 = vmatmul.mubr.f32.gmra.mxu0 %v20351_v7  ;;  %11271 = vmatpush3.msra.mxu1 %v3311_v44  ;;  %v166_v44 = vld [vmem:[%s18875_s3 + $0x18] sm:$0xff] }
 0x18a   :  { %2648 = vmatmul.mubr.f32.gmra.mxu1 %v20345_v8  ;;  %v14440_v19 = vadd.f32 %v1189_v38, %v717_v35  ;;  %v748_v43 = vpop.f32.mrf.mxu0  ;;  %2346 = vmatprep.mubr.f32.mxu0 %v20352_v12  ;;  %v747_v38 = vadd.f32 %v12103_v49, %v746_v48  ;;  %v14458_v63 = vand.u32 4294901760, %v166_v44  ;;  %v12104_v48 = vld [vmem:[%s18873_s1 + $0xf8] sm:$0xff] }
 0x18b   :  { %2653 = vmatprep.mubr.f32.mxu1 %v20347_v13  ;;  %v1191_v37 = vpop.f32.mrf.mxu1  ;;  %v20354_v43 = vld [vmem:[#allocation164_spill] sm:$0xff] }
 0x18c   :  { %v761_v61 = vpop.f32.mrf.mxu0  ;;  %11212 = vmatprep.subr.mxu0 %v14458_v63  ;;  %v14473_v45 = vsub.f32 %v166_v44, %v14458_v63 }
 0x18d   :  { %v1196_v26 = vpop.f32.mrf.mxu1  ;;  %2348 = vmatmul.mubr.f32.gmra.mxu0 %v20353_v55 }
 0x18e   :  { %2655 = vmatmul.mubr.f32.gmra.mxu1 %v20349_v56  ;;  %v14449_v15 = vadd.f32 %v1196_v26, %v732_v58  ;;  %v763_v35 = vpop.f32.mrf.mxu0  ;;  %2353 = vmatprep.mubr.f32.mxu0 %v20354_v43  ;;  %v20355_v56 = vld [vmem:[#allocation168_spill] sm:$0xff]  ;;  %v762_v58 = vadd.f32 %v12104_v48, %v761_v61  ;;  %20357 = vst [vmem:[#allocation48_spill] sm:$0xff] %v14473_v45 }
 0x18f   :  { %2660 = vmatprep.mubr.f32.mxu1 %v20350_v5  ;;  %v1198_v37 = vpop.f32.mrf.mxu1  ;;  %v20356_v35 = vld [vmem:[#allocation169_spill] sm:$0xff]  ;;  %11213 = vmatpush3.msra.mxu0 %v14458_v63 }
 0x190   :  { %v165_v37 = vld [vmem:[%s18875_s3 + $0x10] sm:$0xff] }
 0x191   :  { %v1203_v13 = vpop.f32.mrf.mxu1  ;;  %v1348_v8 = vpop.f32.mrf.mxu0  ;;  %2355 = vmatmul.mubr.f32.gmra.mxu0 %v20355_v56  ;;  %v14475_v61 = vand.u32 4294901760, %v165_v37 }
 0x192   :  { %2662 = vmatmul.mubr.f32.gmra.mxu1 %v20351_v7  ;;  %v14463_v26 = vadd.f32 %v1203_v13, %v747_v38  ;;  %v1349_v49 = vadd.f32 %v1348_v8, %v14083_v42  ;;  %2360 = vmatprep.mubr.f32.mxu0 %v20356_v35  ;;  %v164_v8 = vld [vmem:[%s18875_s3 + $0x8] sm:$0xff]  ;;  %v20358_v38 = vld [vmem:[#allocation173_spill] sm:$0xff] }
 0x193   :  { %2667 = vmatprep.mubr.f32.mxu1 %v20352_v12  ;;  %v1205_v7 = vpop.f32.mrf.mxu1  ;;  %v1350_v5 = vpop.f32.mrf.mxu0  ;;  %v14489_v44 = vand.u32 4294901760, %v164_v8  ;;  %11214 = vmatprep.subr.mxu0 %v14475_v61 }
 0x194   :  { %v14484_v7 = vand.u32 4294901760, %v14473_v45  ;;  %v14487_v5 = vsub.f32 %v165_v37, %v14475_v61  ;;  %11215 = vmatpush3.msra.mxu0 %v14475_v61 }
 0x195   :  { %v1210_v42 = vpop.f32.mrf.mxu1  ;;  %v1357_v13 = vpop.f32.mrf.mxu0  ;;  %2362 = vmatmul.mubr.f32.gmra.mxu0 %v20358_v38  ;;  %11216 = vmatprep.subr.mxu0 %v14489_v44 }
 0x196   :  { %2669 = vmatmul.mubr.f32.gmra.mxu1 %v20353_v55  ;;  %20359 = vst [vmem:[#allocation53_spill] sm:$0xff] %v14484_v7  ;;  %20360 = vst [vmem:[#allocation11_spill] sm:$0xff] %v14487_v5  ;;  %v14491_v48 = vadd.f32 %v1210_v42, %v762_v58  ;;  %v1358_v12 = vadd.f32 %v1357_v13, %v14097_v47  ;;  %2367 = vmatprep.mubr.f32.mxu0 %v20361_v16  ;;  %v163_v55 = vld [vmem:[%s18875_s3] sm:$0xff]  ;;  %v14502_v1 = vand.u32 4294901760, %v14487_v5 }
 0x197   :  { %2674 = vmatprep.mubr.f32.mxu1 %v20354_v43  ;;  %v1212_v33 = vpop.f32.mrf.mxu1  ;;  %v1359_v31 = vpop.f32.mrf.mxu0  ;;  %v3317_v37 = vsub.f32 %v14473_v45, %v14484_v7  ;;  %v14505_v58 = vsub.f32 %v164_v8, %v14489_v44  ;;  %v14507_v47 = vand.u32 4294901760, %v163_v55  ;;  %v20363_v43 = vld [vmem:[#allocation184_spill] sm:$0xff]  ;;  %11217 = vmatpush3.msra.mxu0 %v14489_v44 }
 0x198   :  { %20362 = vst [vmem:[#allocation8_spill] sm:$0xff] %v14502_v1  ;;  %v3324_v33 = vsub.f32 %v14487_v5, %v14502_v1  ;;  %v20365_v45 = vld [vmem:[#allocation188_spill] sm:$0xff] }
 0x199   :  { %v1366_v42 = vpop.f32.mrf.mxu0  ;;  %v1735_v13 = vpop.f32.mrf.mxu1  ;;  %2369 = vmatmul.mubr.f32.gmra.mxu0 %v20363_v43  ;;  %v3318_v31 = vand.u32 4294901760, %v3317_v37  ;;  %v14516_v7 = vand.u32 4294901760, %v14505_v58  ;;  %v14519_v8 = vsub.f32 %v163_v55, %v14507_v47  ;;  %11218 = vmatprep.subr.mxu0 %v14507_v47 }
 0x19a   :  { %2676 = vmatmul.mubr.f32.gmra.mxu1 %v20355_v56  ;;  %v1367_v59 = vadd.f32 %v1366_v42, %v14111_v0  ;;  %v14522_v18 = vadd.f32 %v1735_v13, %v1349_v49  ;;  %2374 = vmatprep.mubr.f32.mxu0 %v20365_v45  ;;  %v3325_v37 = vand.u32 4294901760, %v3324_v33  ;;  %v20367_v49 = vld [vmem:[#allocation192_spill] sm:$0xff] }
 0x19b   :  { %20364 = vst [vmem:[#allocation13_spill] sm:$0xff] %v14516_v7  ;;  %2681 = vmatprep.mubr.f32.mxu1 %v20356_v35  ;;  %v1368_v41 = vpop.f32.mrf.mxu0  ;;  %v1737_v56 = vpop.f32.mrf.mxu1  ;;  %11272 = vmatprep.subr.mxu1 %v3318_v31  ;;  %v3331_v1 = vsub.f32 %v14505_v58, %v14516_v7  ;;  %v14529_v5 = vand.u32 4294901760, %v14519_v8  ;;  %v20368_v42 = vld [vmem:[#allocation196_spill] sm:$0xff] }
 0x19c   :  { %11273 = vmatpush3.msra.mxu1 %v3318_v31  ;;  %11219 = vmatpush3.msra.mxu0 %v14507_v47  ;;  %v20371_v7 = vld [vmem:[#allocation208_spill] sm:$0xff] }
 0x19d   :  { %20366 = vst [vmem:[#allocation9_spill] sm:$0xff] %v14529_v5  ;;  %v1375_v0 = vpop.f32.mrf.mxu0  ;;  %v1746_v55 = vpop.f32.mrf.mxu1  ;;  %2376 = vmatmul.mubr.f32.gmra.mxu0 %v20367_v49  ;;  %11274 = vmatprep.subr.mxu1 %v3325_v37  ;;  %v3332_v31 = vand.u32 4294901760, %v3331_v1  ;;  %v3338_v35 = vsub.f32 %v14519_v8, %v14529_v5 }
 0x19e   :  { %2683 = vmatmul.mubr.f32.gmra.mxu1 %v20358_v38  ;;  %v1376_v56 = vadd.f32 %v1375_v0, %v14125_v30  ;;  %v14536_v41 = vadd.f32 %v1746_v55, %v1358_v12  ;;  %2381 = vmatprep.mubr.f32.mxu0 %v20368_v42  ;;  %v20369_v12 = vld [vmem:[#allocation200_spill] sm:$0xff] }
 0x19f   :  { %2688 = vmatprep.mubr.f32.mxu1 %v20361_v16  ;;  %v1377_v13 = vpop.f32.mrf.mxu0  ;;  %v1748_v33 = vpop.f32.mrf.mxu1  ;;  %11275 = vmatpush3.msra.mxu1 %v3325_v37  ;;  %v3339_v37 = vand.u32 4294901760, %v3338_v35 }
 0x1a0   :  { %v20370_v13 = vld [vmem:[#allocation204_spill] sm:$0xff]  ;;  %11276 = vmatprep.subr.mxu1 %v3332_v31  ;;  %11328 = vmatprep.subr.mxu0 %v14348_v24 }
 0x1a1   :  { %v1384_v38 = vpop.f32.mrf.mxu0  ;;  %v1757_v30 = vpop.f32.mrf.mxu1  ;;  %2383 = vmatmul.mubr.f32.gmra.mxu0 %v20369_v12  ;;  %11277 = vmatpush3.msra.mxu1 %v3332_v31 }
 0x1a2   :  { %2690 = vmatmul.mubr.f32.gmra.mxu1 %v20363_v43  ;;  %v1385_v0 = vadd.f32 %v1384_v38, %v14139_v11  ;;  %v14547_v55 = vadd.f32 %v1757_v30, %v1367_v59  ;;  %2388 = vmatprep.mubr.f32.mxu0 %v20370_v13  ;;  %v20372_v38 = vld [vmem:[#allocation209_spill] sm:$0xff] }
 0x1a3   :  { %2695 = vmatprep.mubr.f32.mxu1 %v20365_v45  ;;  %v1386_v1 = vpop.f32.mrf.mxu0  ;;  %v1759_v33 = vpop.f32.mrf.mxu1  ;;  %11278 = vmatprep.subr.mxu1 %v3339_v37 }
 0x1a4   :  { %11279 = vmatpush3.msra.mxu1 %v3339_v37  ;;  %v20373_v33 = vld [vmem:[#allocation213_spill] sm:$0xff] }
 0x1a5   :  { %v1393_v16 = vpop.f32.mrf.mxu0  ;;  %v1768_v5 = vpop.f32.mrf.mxu1  ;;  %2390 = vmatmul.mubr.f32.gmra.mxu0 %v20371_v7  ;;  %11388 = vmatprep.subr.mxu1 %v14336_v6 }
 0x1a6   :  { %2697 = vmatmul.mubr.f32.gmra.mxu1 %v20367_v49  ;;  %v1394_v11 = vadd.f32 %v1393_v16, %v14153_v21  ;;  %v14555_v59 = vadd.f32 %v1768_v5, %v1376_v56  ;;  %2395 = vmatprep.mubr.f32.mxu0 %v20372_v38  ;;  %v20374_v21 = vld [vmem:[#allocation220_spill] sm:$0xff] }
 0x1a7   :  { %2702 = vmatprep.mubr.f32.mxu1 %v20368_v42  ;;  %v1395_v30 = vpop.f32.mrf.mxu0  ;;  %v1770_v1 = vpop.f32.mrf.mxu1 }
 0x1a8   :  { %v20375_v30 = vld [vmem:[#allocation224_spill] sm:$0xff] }
 0x1a9   :  { %v1402_v35 = vpop.f32.mrf.mxu0  ;;  %v1779_v31 = vpop.f32.mrf.mxu1  ;;  %2397 = vmatmul.mubr.f32.gmra.mxu0 %v20373_v33 }
 0x1aa   :  { %2704 = vmatmul.mubr.f32.gmra.mxu1 %v20369_v12  ;;  %v1403_v49 = vadd.f32 %v1402_v35, %v14167_v54  ;;  %v14562_v45 = vadd.f32 %v1779_v31, %v1385_v0  ;;  %2402 = vmatprep.mubr.f32.mxu0 %v20374_v21  ;;  %v20376_v54 = vld [vmem:[#allocation228_spill] sm:$0xff] }
 0x1ab   :  { %2709 = vmatprep.mubr.f32.mxu1 %v20370_v13  ;;  %v1404_v16 = vpop.f32.mrf.mxu0  ;;  %v1781_v5 = vpop.f32.mrf.mxu1 }
 0x1ac   :  { %v20377_v5 = vld [vmem:[#allocation232_spill] sm:$0xff] }
 0x1ad   :  { %v1411_v56 = vpop.f32.mrf.mxu0  ;;  %v1790_v37 = vpop.f32.mrf.mxu1  ;;  %2404 = vmatmul.mubr.f32.gmra.mxu0 %v20375_v30 }
 0x1ae   :  { %2711 = vmatmul.mubr.f32.gmra.mxu1 %v20371_v7  ;;  %v1412_v1 = vadd.f32 %v1411_v56, %v14181_v20  ;;  %v14570_v12 = vadd.f32 %v1790_v37, %v1394_v11  ;;  %2409 = vmatprep.mubr.f32.mxu0 %v20376_v54  ;;  %v20378_v7 = vld [vmem:[#allocation236_spill] sm:$0xff] }
 0x1af   :  { %2716 = vmatprep.mubr.f32.mxu1 %v20372_v38  ;;  %v1413_v0 = vpop.f32.mrf.mxu0  ;;  %v1792_v35 = vpop.f32.mrf.mxu1 }
 0x1b0   :  { %v20379_v0 = vld [vmem:[#allocation240_spill] sm:$0xff] }
 0x1b1   :  { %v1420_v31 = vpop.f32.mrf.mxu0  ;;  %v1801_v16 = vpop.f32.mrf.mxu1  ;;  %2411 = vmatmul.mubr.f32.gmra.mxu0 %v20377_v5 }
 0x1b2   :  { %2718 = vmatmul.mubr.f32.gmra.mxu1 %v20373_v33  ;;  %v1421_v13 = vadd.f32 %v1420_v31, %v14195_v28  ;;  %v14577_v42 = vadd.f32 %v1801_v16, %v1403_v49  ;;  %2416 = vmatprep.mubr.f32.mxu0 %v20378_v7  ;;  %v20380_v33 = vld [vmem:[#allocation244_spill] sm:$0xff] }
 0x1b3   :  { %2723 = vmatprep.mubr.f32.mxu1 %v20374_v21  ;;  %v1422_v20 = vpop.f32.mrf.mxu0  ;;  %v1803_v11 = vpop.f32.mrf.mxu1 }
 0x1b4   :  { %v20381_v20 = vld [vmem:[#allocation248_spill] sm:$0xff] }
 0x1b5   :  { %v1429_v56 = vpop.f32.mrf.mxu0  ;;  %v1812_v37 = vpop.f32.mrf.mxu1  ;;  %2418 = vmatmul.mubr.f32.gmra.mxu0 %v20379_v0 }
 0x1b6   :  { %2725 = vmatmul.mubr.f32.gmra.mxu1 %v20375_v30  ;;  %v1430_v35 = vadd.f32 %v1429_v56, %v14209_v39  ;;  %v14584_v38 = vadd.f32 %v1812_v37, %v1412_v1  ;;  %2423 = vmatprep.mubr.f32.mxu0 %v20380_v33 }
 0x1b7   :  { %2730 = vmatprep.mubr.f32.mxu1 %v20376_v54  ;;  %v1431_v28 = vpop.f32.mrf.mxu0  ;;  %v1814_v49 = vpop.f32.mrf.mxu1 }
 0x1b9   :  { %v1438_v31 = vpop.f32.mrf.mxu0  ;;  %v1823_v16 = vpop.f32.mrf.mxu1  ;;  %2425 = vmatmul.mubr.f32.gmra.mxu0 %v20381_v20 }
 0x1ba   :  { %2732 = vmatmul.mubr.f32.gmra.mxu1 %v20377_v5  ;;  %v1439_v11 = vadd.f32 %v1438_v31, %v14223_v25  ;;  %v14591_v21 = vadd.f32 %v1823_v16, %v1421_v13  ;;  %2430 = vmatprep.mubr.f32.mxu0 %v13638_v36 }
 0x1bb   :  { %2737 = vmatprep.mubr.f32.mxu1 %v20378_v7  ;;  %v1440_v39 = vpop.f32.mrf.mxu0  ;;  %v1825_v1 = vpop.f32.mrf.mxu1 }
 0x1bd   :  { %v1447_v56 = vpop.f32.mrf.mxu0  ;;  %v1834_v37 = vpop.f32.mrf.mxu1  ;;  %2432 = vmatmul.mubr.f32.gmra.mxu0 %v13654_v3 }
 0x1be   :  { %2739 = vmatmul.mubr.f32.gmra.mxu1 %v20379_v0  ;;  %v1448_v28 = vadd.f32 %v1447_v56, %v14237_v9  ;;  %v14598_v49 = vadd.f32 %v1834_v37, %v1430_v35  ;;  %2437 = vmatprep.mubr.f32.mxu0 %v13688_v23 }
 0x1bf   :  { %2744 = vmatprep.mubr.f32.mxu1 %v20380_v33  ;;  %v1449_v25 = vpop.f32.mrf.mxu0  ;;  %v1836_v13 = vpop.f32.mrf.mxu1 }
 0x1c0   :  { %v20382_v25 = vld [vmem:[#allocation271_spill] sm:$0xff] }
 0x1c1   :  { %v1456_v31 = vpop.f32.mrf.mxu0  ;;  %v1845_v16 = vpop.f32.mrf.mxu1  ;;  %2439 = vmatmul.mubr.f32.gmra.mxu0 %v13707_v40 }
 0x1c2   :  { %2746 = vmatmul.mubr.f32.gmra.mxu1 %v20381_v20  ;;  %v1457_v39 = vadd.f32 %v1456_v31, %v14251_v34  ;;  %v14605_v1 = vadd.f32 %v1845_v16, %v1439_v11  ;;  %2444 = vmatprep.mubr.f32.mxu0 %v13726_v29  ;;  %v20383_v20 = vld [vmem:[#allocation275_spill] sm:$0xff] }
 0x1c3   :  { %2751 = vmatprep.mubr.f32.mxu1 %v13638_v36  ;;  %v1458_v9 = vpop.f32.mrf.mxu0  ;;  %v1847_v35 = vpop.f32.mrf.mxu1 }
 0x1c4   :  { %v20384_v9 = vld [vmem:[#allocation279_spill] sm:$0xff] }
 0x1c5   :  { %v1465_v56 = vpop.f32.mrf.mxu0  ;;  %v1856_v37 = vpop.f32.mrf.mxu1  ;;  %2446 = vmatmul.mubr.f32.gmra.mxu0 %v20382_v25 }
 0x1c6   :  { %2753 = vmatmul.mubr.f32.gmra.mxu1 %v13654_v3  ;;  %v1466_v13 = vadd.f32 %v1465_v56, %v14265_v17  ;;  %v14612_v33 = vadd.f32 %v1856_v37, %v1448_v28  ;;  %2451 = vmatprep.mubr.f32.mxu0 %v20383_v20  ;;  %v20385_v3 = vld [vmem:[#allocation282_spill] sm:$0xff] }
 0x1c7   :  { %2758 = vmatprep.mubr.f32.mxu1 %v13688_v23  ;;  %v1467_v34 = vpop.f32.mrf.mxu0  ;;  %v1858_v11 = vpop.f32.mrf.mxu1 }
 0x1c8   :  { %v20386_v34 = vld [vmem:[#allocation285_spill] sm:$0xff] }
 0x1c9   :  { %v1474_v31 = vpop.f32.mrf.mxu0  ;;  %v1867_v16 = vpop.f32.mrf.mxu1  ;;  %2453 = vmatmul.mubr.f32.gmra.mxu0 %v20384_v9 }
 0x1ca   :  { %2760 = vmatmul.mubr.f32.gmra.mxu1 %v13707_v40  ;;  %v1475_v35 = vadd.f32 %v1474_v31, %v14280_v50  ;;  %v14619_v36 = vadd.f32 %v1867_v16, %v1457_v39  ;;  %2458 = vmatprep.mubr.f32.mxu0 %v20385_v3 }
 0x1cb   :  { %2765 = vmatprep.mubr.f32.mxu1 %v13726_v29  ;;  %v1476_v17 = vpop.f32.mrf.mxu0  ;;  %v1869_v28 = vpop.f32.mrf.mxu1 }
 0x1cd   :  { %v1483_v56 = vpop.f32.mrf.mxu0  ;;  %v1878_v37 = vpop.f32.mrf.mxu1  ;;  %2460 = vmatmul.mubr.f32.gmra.mxu0 %v20386_v34 }
 0x1ce   :  { %2767 = vmatmul.mubr.f32.gmra.mxu1 %v20382_v25  ;;  %v1484_v11 = vadd.f32 %v1483_v56, %v14292_v22  ;;  %v14626_v23 = vadd.f32 %v1878_v37, %v1466_v13 }
 0x1cf   :  { %2772 = vmatprep.mubr.f32.mxu1 %v20383_v20  ;;  %v1485_v50 = vpop.f32.mrf.mxu0  ;;  %v1880_v39 = vpop.f32.mrf.mxu1 }
 0x1d1   :  { %v1492_v31 = vpop.f32.mrf.mxu0  ;;  %v1889_v16 = vpop.f32.mrf.mxu1 }
 0x1d2   :  { %2774 = vmatmul.mubr.f32.gmra.mxu1 %v20384_v9  ;;  %v1493_v17 = vadd.f32 %v1492_v31, %v14302_v46  ;;  %v14631_v28 = vadd.f32 %v1889_v16, %v1475_v35 }
 0x1d3   :  { %2779 = vmatprep.mubr.f32.mxu1 %v20385_v3  ;;  %v1494_v29 = vpop.f32.mrf.mxu0  ;;  %v1891_v25 = vpop.f32.mrf.mxu1 }
 0x1d5   :  { %v1501_v40 = vpop.f32.mrf.mxu0  ;;  %v1900_v22 = vpop.f32.mrf.mxu1 }
 0x1d6   :  { %2781 = vmatmul.mubr.f32.gmra.mxu1 %v20386_v34  ;;  %v1502_v13 = vadd.f32 %v1501_v40, %v14311_v14  ;;  %v14636_v56 = vadd.f32 %v1900_v22, %v1484_v11 }
 0x1d7   :  { %v1503_v37 = vpop.f32.mrf.mxu0  ;;  %v1902_v50 = vpop.f32.mrf.mxu1 }
 0x1d9   :  { %v1510_v39 = vpop.f32.mrf.mxu0  ;;  %v1911_v9 = vpop.f32.mrf.mxu1 }
 0x1da   :  { %v1511_v46 = vadd.f32 %v1510_v39, %v14320_v51  ;;  %v14639_v35 = vadd.f32 %v1911_v9, %v1493_v17 }
 0x1db   :  { %v1512_v31 = vpop.f32.mrf.mxu0  ;;  %v1913_v16 = vpop.f32.mrf.mxu1 }
 0x1dd   :  { %v1519_v29 = vpop.f32.mrf.mxu0  ;;  %v1922_v25 = vpop.f32.mrf.mxu1 }
 0x1de   :  { %v1520_v3 = vadd.f32 %v1519_v29, %v14329_v52  ;;  %v14642_v20 = vadd.f32 %v1922_v25, %v1502_v13 }
 0x1df   :  { %v1521_v34 = vpop.f32.mrf.mxu0  ;;  %v1924_v40 = vpop.f32.mrf.mxu1 }
 0x1e1   :  { %v1528_v14 = vpop.f32.mrf.mxu0  ;;  %v1933_v11 = vpop.f32.mrf.mxu1 }
 0x1e2   :  { %v1529_v22 = vadd.f32 %v1528_v14, %v14343_v2  ;;  %v14645_v37 = vadd.f32 %v1933_v11, %v1511_v46 }
 0x1e3   :  { %v1530_v50 = vpop.f32.mrf.mxu0  ;;  %v1935_v51 = vpop.f32.mrf.mxu1 }
 0x1e5   :  { %v1537_v9 = vpop.f32.mrf.mxu0  ;;  %v1944_v17 = vpop.f32.mrf.mxu1 }
 0x1e6   :  { %v1538_v39 = vadd.f32 %v1537_v9, %v14360_v57  ;;  %v14648_v31 = vadd.f32 %v1944_v17, %v1520_v3 }
 0x1e7   :  { %v1539_v16 = vpop.f32.mrf.mxu0  ;;  %v1946_v52 = vpop.f32.mrf.mxu1 }
 0x1e9   :  { %v1546_v13 = vpop.f32.mrf.mxu0  ;;  %v1955_v29 = vpop.f32.mrf.mxu1 }
 0x1ea   :  { %v1547_v34 = vadd.f32 %v1546_v13, %v14371_v32  ;;  %v14651_v25 = vadd.f32 %v1955_v29, %v1529_v22 }
 0x1eb   :  { %v1548_v40 = vpop.f32.mrf.mxu0  ;;  %v1957_v2 = vpop.f32.mrf.mxu1 }
 0x1ed   :  { %v1555_v46 = vpop.f32.mrf.mxu0 }
 0x1ee   :  { %v1966_v14 = vpop.f32.mrf.mxu1  ;;  %v1556_v11 = vadd.f32 %v1555_v46, %v14380_v27 }
 0x1ef   :  { %v14654_v50 = vadd.f32 %v1966_v14, %v1538_v39  ;;  %v1557_v51 = vpop.f32.mrf.mxu0 }
 0x1f0   :  { %v1968_v57 = vpop.f32.mrf.mxu1 }
 0x1f1   :  { %v1564_v3 = vpop.f32.mrf.mxu0 }
 0x1f2   :  { %v1977_v9 = vpop.f32.mrf.mxu1  ;;  %v1565_v17 = vadd.f32 %v1564_v3, %v14389_v4 }
 0x1f3   :  { %v14657_v16 = vadd.f32 %v1977_v9, %v1547_v34  ;;  %v1566_v52 = vpop.f32.mrf.mxu0 }
 0x1f4   :  { %v1979_v32 = vpop.f32.mrf.mxu1 }
 0x1f5   :  { %v1573_v22 = vpop.f32.mrf.mxu0 }
 0x1f6   :  { %v1988_v13 = vpop.f32.mrf.mxu1  ;;  %v1574_v29 = vadd.f32 %v1573_v22, %v14398_v10 }
 0x1f7   :  { %v14660_v40 = vadd.f32 %v1988_v13, %v1556_v11  ;;  %v1575_v2 = vpop.f32.mrf.mxu0 }
 0x1f8   :  { %v1990_v27 = vpop.f32.mrf.mxu1 }
 0x1f9   :  { %v1582_v39 = vpop.f32.mrf.mxu0 }
 0x1fa   :  { %v1999_v46 = vpop.f32.mrf.mxu1  ;;  %v1583_v14 = vadd.f32 %v1582_v39, %v14415_v62 }
 0x1fb   :  { %v14663_v51 = vadd.f32 %v1999_v46, %v1565_v17  ;;  %v1584_v57 = vpop.f32.mrf.mxu0 }
 0x1fc   :  { %v2001_v4 = vpop.f32.mrf.mxu1 }
 0x1fd   :  { %v1591_v34 = vpop.f32.mrf.mxu0 }
 0x1fe   :  { %v2010_v3 = vpop.f32.mrf.mxu1  ;;  %v1592_v9 = vadd.f32 %v1591_v34, %v14431_v53 }
 0x1ff   :  { %v14666_v52 = vadd.f32 %v2010_v3, %v1574_v29  ;;  %v1593_v32 = vpop.f32.mrf.mxu0 }
 0x200   :  { %v2012_v10 = vpop.f32.mrf.mxu1 }
 0x201   :  { %v1600_v11 = vpop.f32.mrf.mxu0 }
 0x202   :  { %v2021_v22 = vpop.f32.mrf.mxu1  ;;  %v1601_v13 = vadd.f32 %v1600_v11, %v14440_v19 }
 0x203   :  { %v14669_v2 = vadd.f32 %v2021_v22, %v1583_v14  ;;  %v1602_v27 = vpop.f32.mrf.mxu0 }
 0x204   :  { %v2023_v62 = vpop.f32.mrf.mxu1 }
 0x205   :  { %v1609_v17 = vpop.f32.mrf.mxu0 }
 0x206   :  { %v2032_v39 = vpop.f32.mrf.mxu1  ;;  %v1610_v46 = vadd.f32 %v1609_v17, %v14449_v15 }
 0x207   :  { %v14672_v57 = vadd.f32 %v2032_v39, %v1592_v9  ;;  %v1611_v4 = vpop.f32.mrf.mxu0 }
 0x208   :  { %v2034_v53 = vpop.f32.mrf.mxu1 }
 0x209   :  { %v1618_v29 = vpop.f32.mrf.mxu0 }
 0x20a   :  { %v2043_v34 = vpop.f32.mrf.mxu1  ;;  %v1619_v3 = vadd.f32 %v1618_v29, %v14463_v26 }
 0x20b   :  { %v14675_v32 = vadd.f32 %v2043_v34, %v1601_v13  ;;  %v1620_v10 = vpop.f32.mrf.mxu0 }
 0x20c   :  { %v2045_v19 = vpop.f32.mrf.mxu1 }
 0x20d   :  { %v1627_v14 = vpop.f32.mrf.mxu0 }
 0x20e   :  { %v2054_v11 = vpop.f32.mrf.mxu1  ;;  %v1628_v22 = vadd.f32 %v1627_v14, %v14491_v48 }
 0x20f   :  { %v14678_v27 = vadd.f32 %v2054_v11, %v1610_v46  ;;  %v1629_v62 = vpop.f32.mrf.mxu0 }
 0x210   :  { %v2056_v15 = vpop.f32.mrf.mxu1 }
 0x211   :  { %v2244_v17 = vpop.f32.mrf.mxu0 }
 0x212   :  { %v2065_v9 = vpop.f32.mrf.mxu1  ;;  %v2245_v10 = vadd.f32 %v2244_v17, %v14522_v18 }
 0x213   :  { %v14680_v39 = vadd.f32 %v2065_v9, %v1619_v3  ;;  %v2246_v53 = vpop.f32.mrf.mxu0 }
 0x214   :  { %v2067_v4 = vpop.f32.mrf.mxu1 }
 0x215   :  { %v2251_v26 = vpop.f32.mrf.mxu0 }
 0x216   :  { %v2076_v0 = vpop.f32.mrf.mxu1  ;;  %v2252_v62 = vadd.f32 %v2251_v26, %v14536_v41 }
 0x217   :  { %v14682_v13 = vadd.f32 %v2076_v0, %v1628_v22  ;;  %v2253_v34 = vpop.f32.mrf.mxu0 }
 0x218   :  { %v2078_v29 = vpop.f32.mrf.mxu1 }
 0x219   :  { %v2258_v19 = vpop.f32.mrf.mxu0 }
 0x21a   :  { %v2565_v48 = vpop.f32.mrf.mxu1  ;;  %v2259_v17 = vadd.f32 %v2258_v19, %v14547_v55 }
 0x21b   :  { %v2566_v46 = vadd.f32 %v2565_v48, %v2245_v10  ;;  %v2260_v14 = vpop.f32.mrf.mxu0 }
 0x21c   :  { %v2567_v11 = vpop.f32.mrf.mxu1 }
 0x21d   :  { %v2793_v3 = vsel %vm2791_vm0, %v2566_v46, 0  ;;  %v2265_v9 = vpop.f32.mrf.mxu0 }
 0x21e   :  { %v14687_v15 = vand.u32 4294901760, %v2793_v3  ;;  %v2572_v4 = vpop.f32.mrf.mxu1  ;;  %v2266_v19 = vadd.f32 %v2265_v9, %v14555_v59 }
 0x21f   :  { %v2573_v0 = vadd.f32 %v2572_v4, %v2252_v62  ;;  %v2267_v53 = vpop.f32.mrf.mxu0 }
 0x220   :  { %v14690_v22 = vsub.f32 %v2793_v3, %v14687_v15  ;;  %v2574_v18 = vpop.f32.mrf.mxu1  ;;  %11280 = vmatprep.mubr.f32.mxu1 %v14687_v15 }
 0x221   :  { %v2796_v29 = vsel %vm2791_vm0, %v2573_v0, 0  ;;  %v2272_v41 = vpop.f32.mrf.mxu0 }
 0x222   :  { %v14695_v34 = vand.u32 4294901760, %v2796_v29  ;;  %v2579_v26 = vpop.f32.mrf.mxu1  ;;  %v19489_v10 = vand.u32 4294901760, %v14690_v22 }
 0x223   :  { %v2580_v48 = vadd.f32 %v2579_v26, %v2259_v17  ;;  %v2274_v14 = vpop.f32.mrf.mxu0 }
 0x224   :  { %v14699_v46 = vsub.f32 %v2796_v29, %v14695_v34  ;;  %v2581_v11 = vpop.f32.mrf.mxu1  ;;  %11281 = vmatmul.mubr.f32.vlgmr.msra.gmra.mxu1 %v14695_v34  ;;  %v2962_v55 = vsub.f32 %v14690_v22, %v19489_v10 }
 0x225   :  { %v2799_v62 = vsel %vm2791_vm0, %v2580_v48, 0  ;;  %11389 = vmatpush3.msra.mxu1 %v14336_v6  ;;  %v2279_v0 = vpop.f32.mrf.mxu0  ;;  %v2273_v48 = vadd.f32 %v2272_v41, %v14562_v45 }
 0x226   :  { %v19486_v3 = vand.u32 4294901760, %v14699_v46  ;;  %v14709_v4 = vand.u32 4294901760, %v2799_v62  ;;  %v2586_v53 = vpop.f32.mrf.mxu1  ;;  %v2963_v18 = vand.u32 4294901760, %v2962_v55  ;;  %11390 = vmatprep.subr.mxu1 %v14405_v60 }
 0x227   :  { %v2587_v17 = vadd.f32 %v2586_v53, %v2266_v19  ;;  %11391 = vmatpush3.msra.mxu1 %v14405_v60  ;;  %v2281_v29 = vpop.f32.mrf.mxu0 }
 0x228   :  { %v2972_v59 = vsub.f32 %v14699_v46, %v19486_v3  ;;  %v14717_v9 = vsub.f32 %v2799_v62, %v14709_v4  ;;  %v2588_v26 = vpop.f32.mrf.mxu1  ;;  %11220 = vmatprep.mubr.f32.mxu0 %v2963_v18  ;;  %11283 = vmatprep.mubr.f32.mxu1 %v14709_v4 }
 0x229   :  { %v2802_v14 = vsel %vm2791_vm0, %v2587_v17, 0  ;;  %11392 = vmatprep.subr.mxu1 %v14458_v63  ;;  %v2286_v19 = vpop.f32.mrf.mxu0 }
 0x22a   :  { %v2973_v11 = vand.u32 4294901760, %v2972_v59  ;;  %v14723_v55 = vand.u32 4294901760, %v2802_v14  ;;  %v2593_v53 = vpop.f32.mrf.mxu1  ;;  %v19488_v3 = vand.u32 4294901760, %v14717_v9  ;;  %11393 = vmatpush3.msra.mxu1 %v14458_v63  ;;  %v2280_v59 = vadd.f32 %v2279_v0, %v14570_v12 }
 0x22b   :  { %v2594_v62 = vadd.f32 %v2593_v53, %v2273_v48  ;;  %11394 = vmatprep.subr.mxu1 %v14475_v61  ;;  %v2288_v45 = vpop.f32.mrf.mxu0 }
 0x22c   :  { %v14729_v18 = vsub.f32 %v2802_v14, %v14723_v55  ;;  %v2595_v41 = vpop.f32.mrf.mxu1  ;;  %11221 = vmatmul.mubr.f32.vlgmr.msra.gmra.mxu0 %v2973_v11  ;;  %11284 = vmatmul.mubr.f32.gmra.mxu1 %v14723_v55  ;;  %v2982_v17 = vsub.f32 %v14717_v9, %v19488_v3  ;;  %v20387_v45 = vld [vmem:[#allocation55_spill] sm:$0xff] }
 0x22d   :  { %v2805_v29 = vsel %vm2791_vm0, %v2594_v62, 0  ;;  %11329 = vmatpush3.msra.mxu0 %v14348_v24  ;;  %11395 = vmatpush3.msra.mxu1 %v14475_v61  ;;  %v2293_v14 = vpop.f32.mrf.mxu0  ;;  %v20389_v3 = vld [vmem:[#allocation11_spill] sm:$0xff] }
 0x22e   :  { %v19487_v26 = vand.u32 4294901760, %v14729_v18  ;;  %v14740_v48 = vand.u32 4294901760, %v2805_v29  ;;  %v2600_v11 = vpop.f32.mrf.mxu1  ;;  %v2983_v53 = vand.u32 4294901760, %v2982_v17  ;;  %11330 = vmatprep.subr.mxu0 %v20387_v45  ;;  %11396 = vmatprep.subr.mxu1 %v14489_v44  ;;  %v2287_v17 = vadd.f32 %v2286_v19, %v14577_v42 }
 0x22f   :  { %v2601_v41 = vadd.f32 %v2600_v11, %v2280_v59  ;;  %11331 = vmatpush3.msra.mxu0 %v20387_v45  ;;  %11397 = vmatpush3.msra.mxu1 %v14489_v44  ;;  %v2295_v12 = vpop.f32.mrf.mxu0  ;;  %v20388_v11 = vld [vmem:[#allocation48_spill] sm:$0xff] }
 0x230   :  { %v14747_v24 = vsub.f32 %v2805_v29, %v14740_v48  ;;  %v2602_v0 = vpop.f32.mrf.mxu1  ;;  %11223 = vmatprep.mubr.f32.mxu0 %v2983_v53  ;;  %11286 = vmatprep.mubr.f32.mxu1 %v14740_v48  ;;  %v2992_v62 = vsub.f32 %v14729_v18, %v19487_v26 }
 0x231   :  { %v2808_v59 = vsel %vm2791_vm0, %v2601_v41, 0  ;;  %11332 = vmatprep.subr.mxu0 %v20388_v11  ;;  %11398 = vmatprep.subr.mxu1 %v14507_v47  ;;  %v2300_v29 = vpop.f32.mrf.mxu0 }
 0x232   :  { %v14757_v45 = vand.u32 4294901760, %v2808_v59  ;;  %v2607_v12 = vpop.f32.mrf.mxu1  ;;  %v2993_v0 = vand.u32 4294901760, %v2992_v62  ;;  %v19490_v53 = vand.u32 4294901760, %v14747_v24  ;;  %11333 = vmatpush3.msra.mxu0 %v20388_v11  ;;  %11399 = vmatpush3.msra.mxu1 %v14507_v47  ;;  %v2294_v11 = vadd.f32 %v2293_v14, %v14584_v38 }
 0x233   :  { %v2608_v26 = vadd.f32 %v2607_v12, %v2287_v17  ;;  %11334 = vmatprep.subr.mxu0 %v20389_v3  ;;  %11508 = vmatprep.subr.mxu1 %v14336_v6  ;;  %v2302_v19 = vpop.f32.mrf.mxu0 }
 0x234   :  { %v14765_v42 = vsub.f32 %v2808_v59, %v14757_v45  ;;  %v2609_v41 = vpop.f32.mrf.mxu1  ;;  %11224 = vmatmul.mubr.f32.gmra.mxu0 %v2993_v0  ;;  %11287 = vmatmul.mubr.f32.gmra.mxu1 %v14757_v45  ;;  %v3002_v62 = vsub.f32 %v14747_v24, %v19490_v53 }
 0x235   :  { %v2811_v17 = vsel %vm2791_vm0, %v2608_v26, 0  ;;  %11335 = vmatpush3.msra.mxu0 %v20389_v3  ;;  %v2307_v59 = vpop.f32.mrf.mxu0  ;;  %v2301_v26 = vadd.f32 %v2300_v29, %v14591_v21 }
 0x236   :  { %v19491_v12 = vand.u32 4294901760, %v14765_v42  ;;  %v14775_v10 = vand.u32 4294901760, %v2811_v17  ;;  %v2614_v19 = vpop.f32.mrf.mxu1  ;;  %v3003_v41 = vand.u32 4294901760, %v3002_v62  ;;  %11336 = vmatprep.subr.mxu0 %v14505_v58 }
 0x237   :  { %v2615_v0 = vadd.f32 %v2614_v19, %v2294_v11  ;;  %11337 = vmatpush3.msra.mxu0 %v14505_v58  ;;  %v2309_v38 = vpop.f32.mrf.mxu0 }
 0x238   :  { %v14780_v53 = vsub.f32 %v2811_v17, %v14775_v10  ;;  %v2616_v14 = vpop.f32.mrf.mxu1  ;;  %11226 = vmatprep.mubr.f32.mxu0 %v3003_v41  ;;  %11289 = vmatprep.mubr.f32.mxu1 %v14775_v10  ;;  %v3012_v3 = vsub.f32 %v14765_v42, %v19491_v12 }
 0x239   :  { %v2814_v62 = vsel %vm2791_vm0, %v2615_v0, 0  ;;  %11338 = vmatprep.subr.mxu0 %v14519_v8  ;;  %v2314_v58 = vpop.f32.mrf.mxu0  ;;  %v20390_v14 = vld [vmem:[#allocation44_spill] sm:$0xff] }
 0x23a   :  { %v14789_v11 = vand.u32 4294901760, %v2814_v62  ;;  %v2621_v17 = vpop.f32.mrf.mxu1  ;;  %v3013_v19 = vand.u32 4294901760, %v3012_v3  ;;  %v19495_v38 = vand.u32 4294901760, %v14780_v53  ;;  %11339 = vmatpush3.msra.mxu0 %v14519_v8  ;;  %v2308_v3 = vadd.f32 %v2307_v59, %v14598_v49 }
 0x23b   :  { %v2622_v41 = vadd.f32 %v2621_v17, %v2301_v26  ;;  %11448 = vmatprep.subr.mxu0 %v20390_v14  ;;  %v2316_v21 = vpop.f32.mrf.mxu0  ;;  %v2315_v59 = vadd.f32 %v2314_v58, %v14605_v1 }
 0x23c   :  { %v14795_v12 = vsub.f32 %v2814_v62, %v14789_v11  ;;  %v2623_v29 = vpop.f32.mrf.mxu1  ;;  %11227 = vmatmul.mubr.f32.gmra.mxu0 %v3013_v19  ;;  %11290 = vmatmul.mubr.f32.gmra.mxu1 %v14789_v11  ;;  %v3022_v0 = vsub.f32 %v14780_v53, %v19495_v38 }
 0x23d   :  { %v2817_v7 = vsel %vm2791_vm0, %v2622_v41, 0  ;;  %v2321_v17 = vpop.f32.mrf.mxu0 }
 0x23e   :  { %v19497_v8 = vand.u32 4294901760, %v14795_v12  ;;  %v14804_v26 = vand.u32 4294901760, %v2817_v7  ;;  %v2628_v62 = vpop.f32.mrf.mxu1  ;;  %v3023_v5 = vand.u32 4294901760, %v3022_v0  ;;  %v2322_v58 = vadd.f32 %v2321_v17, %v14612_v33 }
 0x23f   :  { %v2629_v21 = vadd.f32 %v2628_v62, %v2308_v3  ;;  %v2323_v29 = vpop.f32.mrf.mxu0 }
 0x240   :  { %v14807_v19 = vsub.f32 %v2817_v7, %v14804_v26  ;;  %v2630_v54 = vpop.f32.mrf.mxu1  ;;  %11229 = vmatprep.mubr.f32.mxu0 %v3023_v5  ;;  %11292 = vmatprep.mubr.f32.mxu1 %v14804_v26  ;;  %v3032_v49 = vsub.f32 %v14795_v12, %v19497_v8 }
 0x241   :  { %v2820_v41 = vsel %vm2791_vm0, %v2629_v21, 0  ;;  %v2328_v0 = vpop.f32.mrf.mxu0 }
 0x242   :  { %v14815_v38 = vand.u32 4294901760, %v2820_v41  ;;  %v2635_v3 = vpop.f32.mrf.mxu1  ;;  %v3033_v62 = vand.u32 4294901760, %v3032_v49  ;;  %v19499_v7 = vand.u32 4294901760, %v14807_v19  ;;  %v2329_v17 = vadd.f32 %v2328_v0, %v14619_v36 }
 0x243   :  { %v2636_v29 = vadd.f32 %v2635_v3, %v2315_v59  ;;  %v2330_v5 = vpop.f32.mrf.mxu0 }
 0x244   :  { %v14819_v54 = vsub.f32 %v2820_v41, %v14815_v38  ;;  %v2637_v30 = vpop.f32.mrf.mxu1  ;;  %11230 = vmatmul.mubr.f32.gmra.mxu0 %v3033_v62  ;;  %11293 = vmatmul.mubr.f32.gmra.mxu1 %v14815_v38  ;;  %v3042_v1 = vsub.f32 %v14807_v19, %v19499_v7 }
 0x245   :  { %v2823_v21 = vsel %vm2791_vm0, %v2636_v29, 0  ;;  %v2335_v59 = vpop.f32.mrf.mxu0 }
 0x246   :  { %v19502_v49 = vand.u32 4294901760, %v14819_v54  ;;  %v14828_v8 = vand.u32 4294901760, %v2823_v21  ;;  %v2642_v41 = vpop.f32.mrf.mxu1  ;;  %v3043_v3 = vand.u32 4294901760, %v3042_v1  ;;  %v2336_v0 = vadd.f32 %v2335_v59, %v14626_v23 }
 0x247   :  { %v2643_v5 = vadd.f32 %v2642_v41, %v2322_v58  ;;  %v2337_v62 = vpop.f32.mrf.mxu0 }
 0x248   :  { %20391 = vst [vmem:[#allocation15_spill] sm:$0xff] %v14828_v8  ;;  %v14831_v30 = vsub.f32 %v2823_v21, %v14828_v8  ;;  %v2644_v43 = vpop.f32.mrf.mxu1  ;;  %11232 = vmatprep.mubr.f32.mxu0 %v3043_v3  ;;  %11295 = vmatprep.mubr.f32.mxu1 %v14828_v8  ;;  %v3052_v33 = vsub.f32 %v14819_v54, %v19502_v49 }
 0x249   :  { %v2826_v29 = vsel %vm2791_vm0, %v2643_v5, 0  ;;  %v2342_v1 = vpop.f32.mrf.mxu0 }
 0x24a   :  { %v14839_v7 = vand.u32 4294901760, %v2826_v29  ;;  %v2649_v58 = vpop.f32.mrf.mxu1  ;;  %v3053_v41 = vand.u32 4294901760, %v3052_v33  ;;  %v19505_v21 = vand.u32 4294901760, %v14831_v30  ;;  %v2343_v59 = vadd.f32 %v2342_v1, %v14631_v28 }
 0x24b   :  { %v2650_v62 = vadd.f32 %v2649_v58, %v2329_v17  ;;  %v2344_v3 = vpop.f32.mrf.mxu0 }
 0x24c   :  { %20392 = vst [vmem:[#allocation10_spill] sm:$0xff] %v14839_v7  ;;  %v14843_v43 = vsub.f32 %v2826_v29, %v14839_v7  ;;  %v2651_v8 = vpop.f32.mrf.mxu1  ;;  %11233 = vmatmul.mubr.f32.gmra.mxu0 %v3053_v41  ;;  %11296 = vmatmul.mubr.f32.gmra.mxu1 %v14839_v7  ;;  %v3062_v36 = vsub.f32 %v14831_v30, %v19505_v21 }
 0x24d   :  { %v2829_v5 = vsel %vm2791_vm0, %v2650_v62, 0  ;;  %v2349_v17 = vpop.f32.mrf.mxu0 }
 0x24e   :  { %v19508_v33 = vand.u32 4294901760, %v14843_v43  ;;  %v14852_v49 = vand.u32 4294901760, %v2829_v5  ;;  %v2656_v29 = vpop.f32.mrf.mxu1  ;;  %v3063_v58 = vand.u32 4294901760, %v3062_v36  ;;  %v2350_v1 = vadd.f32 %v2349_v17, %v14636_v56 }
 0x24f   :  { %v2657_v3 = vadd.f32 %v2656_v29, %v2336_v0  ;;  %v2351_v41 = vpop.f32.mrf.mxu0 }
 0x250   :  { %20393 = vst [vmem:[#allocation17_spill] sm:$0xff] %v14852_v49  ;;  %v14855_v8 = vsub.f32 %v2829_v5, %v14852_v49  ;;  %v2658_v7 = vpop.f32.mrf.mxu1  ;;  %11235 = vmatprep.mubr.f32.mxu0 %v3063_v58  ;;  %11298 = vmatprep.mubr.f32.mxu1 %v14852_v49  ;;  %v3072_v23 = vsub.f32 %v14843_v43, %v19508_v33 }
 0x251   :  { %v2832_v62 = vsel %vm2791_vm0, %v2657_v3, 0  ;;  %v2356_v36 = vpop.f32.mrf.mxu0 }
 0x252   :  { %v14863_v21 = vand.u32 4294901760, %v2832_v62  ;;  %v2663_v0 = vpop.f32.mrf.mxu1  ;;  %v3073_v29 = vand.u32 4294901760, %v3072_v23  ;;  %v19511_v5 = vand.u32 4294901760, %v14855_v8  ;;  %v2357_v17 = vadd.f32 %v2356_v36, %v14639_v35 }
 0x253   :  { %v2664_v41 = vadd.f32 %v2663_v0, %v2343_v59  ;;  %v2358_v58 = vpop.f32.mrf.mxu0 }
 0x254   :  { %20394 = vst [vmem:[#allocation12_spill] sm:$0xff] %v14863_v21  ;;  %v14867_v7 = vsub.f32 %v2832_v62, %v14863_v21  ;;  %v2665_v49 = vpop.f32.mrf.mxu1  ;;  %11236 = vmatmul.mubr.f32.gmra.mxu0 %v3073_v29  ;;  %11299 = vmatmul.mubr.f32.gmra.mxu1 %v14863_v21  ;;  %v3082_v28 = vsub.f32 %v14855_v8, %v19511_v5 }
 0x255   :  { %v2835_v3 = vsel %vm2791_vm0, %v2664_v41, 0  ;;  %v2363_v59 = vpop.f32.mrf.mxu0 }
 0x256   :  { %v19514_v23 = vand.u32 4294901760, %v14867_v7  ;;  %v14876_v33 = vand.u32 4294901760, %v2835_v3  ;;  %v2670_v62 = vpop.f32.mrf.mxu1  ;;  %v3083_v0 = vand.u32 4294901760, %v3082_v28  ;;  %v2364_v36 = vadd.f32 %v2363_v59, %v14642_v20 }
 0x257   :  { %v2671_v58 = vadd.f32 %v2670_v62, %v2350_v1  ;;  %v2365_v29 = vpop.f32.mrf.mxu0 }
 0x258   :  { %20395 = vst [vmem:[#allocation19_spill] sm:$0xff] %v14876_v33  ;;  %v14879_v49 = vsub.f32 %v2835_v3, %v14876_v33  ;;  %v2672_v21 = vpop.f32.mrf.mxu1  ;;  %11238 = vmatprep.mubr.f32.mxu0 %v3083_v0  ;;  %11301 = vmatprep.mubr.f32.mxu1 %v14876_v33  ;;  %v3092_v56 = vsub.f32 %v14867_v7, %v19514_v23 }
 0x259   :  { %v2838_v41 = vsel %vm2791_vm0, %v2671_v58, 0  ;;  %v2370_v28 = vpop.f32.mrf.mxu0 }
 0x25a   :  { %v14887_v5 = vand.u32 4294901760, %v2838_v41  ;;  %v2677_v1 = vpop.f32.mrf.mxu1  ;;  %v3093_v62 = vand.u32 4294901760, %v3092_v56  ;;  %v19517_v3 = vand.u32 4294901760, %v14879_v49  ;;  %v2371_v59 = vadd.f32 %v2370_v28, %v14645_v37 }
 0x25b   :  { %v2678_v29 = vadd.f32 %v2677_v1, %v2357_v17  ;;  %v2372_v0 = vpop.f32.mrf.mxu0 }
 0x25c   :  { %20396 = vst [vmem:[#allocation14_spill] sm:$0xff] %v14887_v5  ;;  %v14891_v21 = vsub.f32 %v2838_v41, %v14887_v5  ;;  %v2679_v33 = vpop.f32.mrf.mxu1  ;;  %11239 = vmatmul.mubr.f32.gmra.mxu0 %v3093_v62  ;;  %11302 = vmatmul.mubr.f32.gmra.mxu1 %v14887_v5  ;;  %v3102_v35 = vsub.f32 %v14879_v49, %v19517_v3 }
 0x25d   :  { %v2841_v58 = vsel %vm2791_vm0, %v2678_v29, 0  ;;  %v2377_v17 = vpop.f32.mrf.mxu0 }
 0x25e   :  { %v19520_v56 = vand.u32 4294901760, %v14891_v21  ;;  %v14900_v23 = vand.u32 4294901760, %v2841_v58  ;;  %v2684_v41 = vpop.f32.mrf.mxu1  ;;  %v3103_v1 = vand.u32 4294901760, %v3102_v35  ;;  %v2378_v28 = vadd.f32 %v2377_v17, %v14648_v31 }
 0x25f   :  { %v2685_v0 = vadd.f32 %v2684_v41, %v2364_v36  ;;  %v2379_v62 = vpop.f32.mrf.mxu0 }
 0x260   :  { %20397 = vst [vmem:[#allocation21_spill] sm:$0xff] %v14900_v23  ;;  %v14903_v33 = vsub.f32 %v2841_v58, %v14900_v23  ;;  %v2686_v5 = vpop.f32.mrf.mxu1  ;;  %11241 = vmatprep.mubr.f32.mxu0 %v3103_v1  ;;  %11304 = vmatprep.mubr.f32.mxu1 %v14900_v23  ;;  %v3112_v20 = vsub.f32 %v14891_v21, %v19520_v56 }
 0x261   :  { %v2844_v29 = vsel %vm2791_vm0, %v2685_v0, 0  ;;  %v2384_v35 = vpop.f32.mrf.mxu0 }
 0x262   :  { %v14911_v3 = vand.u32 4294901760, %v2844_v29  ;;  %v2691_v36 = vpop.f32.mrf.mxu1  ;;  %v3113_v41 = vand.u32 4294901760, %v3112_v20  ;;  %v19523_v58 = vand.u32 4294901760, %v14903_v33  ;;  %v2385_v17 = vadd.f32 %v2384_v35, %v14651_v25 }
 0x263   :  { %v2692_v62 = vadd.f32 %v2691_v36, %v2371_v59  ;;  %v2386_v1 = vpop.f32.mrf.mxu0 }
 0x264   :  { %20398 = vst [vmem:[#allocation16_spill] sm:$0xff] %v14911_v3  ;;  %v14915_v5 = vsub.f32 %v2844_v29, %v14911_v3  ;;  %v2693_v23 = vpop.f32.mrf.mxu1  ;;  %11242 = vmatmul.mubr.f32.gmra.mxu0 %v3113_v41  ;;  %11305 = vmatmul.mubr.f32.gmra.mxu1 %v14911_v3  ;;  %v3122_v37 = vsub.f32 %v14903_v33, %v19523_v58 }
 0x265   :  { %v2847_v0 = vsel %vm2791_vm0, %v2692_v62, 0  ;;  %v2391_v59 = vpop.f32.mrf.mxu0 }
 0x266   :  { %v19526_v20 = vand.u32 4294901760, %v14915_v5  ;;  %v14924_v56 = vand.u32 4294901760, %v2847_v0  ;;  %v2698_v29 = vpop.f32.mrf.mxu1  ;;  %v3123_v36 = vand.u32 4294901760, %v3122_v37  ;;  %v2392_v35 = vadd.f32 %v2391_v59, %v14654_v50 }
 0x267   :  { %v2699_v1 = vadd.f32 %v2698_v29, %v2378_v28  ;;  %v2393_v41 = vpop.f32.mrf.mxu0 }
 0x268   :  { %20399 = vst [vmem:[#allocation23_spill] sm:$0xff] %v14924_v56  ;;  %v14927_v23 = vsub.f32 %v2847_v0, %v14924_v56  ;;  %v2700_v3 = vpop.f32.mrf.mxu1  ;;  %11244 = vmatprep.mubr.f32.mxu0 %v3123_v36  ;;  %11307 = vmatprep.mubr.f32.mxu1 %v14924_v56  ;;  %v3132_v31 = vsub.f32 %v14915_v5, %v19526_v20 }
 0x269   :  { %v2850_v62 = vsel %vm2791_vm0, %v2699_v1, 0  ;;  %v2398_v37 = vpop.f32.mrf.mxu0 }
 0x26a   :  { %v14935_v58 = vand.u32 4294901760, %v2850_v62  ;;  %v2705_v28 = vpop.f32.mrf.mxu1  ;;  %v3133_v29 = vand.u32 4294901760, %v3132_v31  ;;  %v19529_v0 = vand.u32 4294901760, %v14927_v23  ;;  %v2399_v59 = vadd.f32 %v2398_v37, %v14657_v16 }
 0x26b   :  { %v2706_v41 = vadd.f32 %v2705_v28, %v2385_v17  ;;  %v2400_v36 = vpop.f32.mrf.mxu0 }
 0x26c   :  { %20400 = vst [vmem:[#allocation18_spill] sm:$0xff] %v14935_v58  ;;  %v14939_v3 = vsub.f32 %v2850_v62, %v14935_v58  ;;  %v2707_v56 = vpop.f32.mrf.mxu1  ;;  %11245 = vmatmul.mubr.f32.gmra.mxu0 %v3133_v29  ;;  %11308 = vmatmul.mubr.f32.gmra.mxu1 %v14935_v58  ;;  %v3142_v25 = vsub.f32 %v14927_v23, %v19529_v0 }
 0x26d   :  { %v2853_v1 = vsel %vm2791_vm0, %v2706_v41, 0  ;;  %v2405_v17 = vpop.f32.mrf.mxu0 }
 0x26e   :  { %v19532_v31 = vand.u32 4294901760, %v14939_v3  ;;  %v14948_v20 = vand.u32 4294901760, %v2853_v1  ;;  %v2712_v62 = vpop.f32.mrf.mxu1  ;;  %v3143_v28 = vand.u32 4294901760, %v3142_v25  ;;  %v2406_v37 = vadd.f32 %v2405_v17, %v14660_v40 }
 0x26f   :  { %v2713_v36 = vadd.f32 %v2712_v62, %v2392_v35  ;;  %v2407_v29 = vpop.f32.mrf.mxu0 }
 0x270   :  { %20401 = vst [vmem:[#allocation25_spill] sm:$0xff] %v14948_v20  ;;  %v14951_v56 = vsub.f32 %v2853_v1, %v14948_v20  ;;  %v2714_v58 = vpop.f32.mrf.mxu1  ;;  %11247 = vmatprep.mubr.f32.mxu0 %v3143_v28  ;;  %11310 = vmatprep.mubr.f32.mxu1 %v14948_v20  ;;  %v3152_v50 = vsub.f32 %v14939_v3, %v19532_v31 }
 0x271   :  { %v2856_v41 = vsel %vm2791_vm0, %v2713_v36, 0  ;;  %v2412_v25 = vpop.f32.mrf.mxu0 }
 0x272   :  { %v14959_v0 = vand.u32 4294901760, %v2856_v41  ;;  %v2719_v35 = vpop.f32.mrf.mxu1  ;;  %v3153_v62 = vand.u32 4294901760, %v3152_v50  ;;  %v19535_v1 = vand.u32 4294901760, %v14951_v56  ;;  %v2413_v17 = vadd.f32 %v2412_v25, %v14663_v51 }
 0x273   :  { %v2720_v29 = vadd.f32 %v2719_v35, %v2399_v59  ;;  %v2414_v28 = vpop.f32.mrf.mxu0 }
 0x274   :  { %20402 = vst [vmem:[#allocation20_spill] sm:$0xff] %v14959_v0  ;;  %v14963_v58 = vsub.f32 %v2856_v41, %v14959_v0  ;;  %v2721_v20 = vpop.f32.mrf.mxu1  ;;  %11248 = vmatmul.mubr.f32.gmra.mxu0 %v3153_v62  ;;  %11311 = vmatmul.mubr.f32.gmra.mxu1 %v14959_v0  ;;  %v3162_v16 = vsub.f32 %v14951_v56, %v19535_v1 }
 0x275   :  { %v2859_v36 = vsel %vm2791_vm0, %v2720_v29, 0  ;;  %v2419_v59 = vpop.f32.mrf.mxu0 }
 0x276   :  { %v19538_v50 = vand.u32 4294901760, %v14963_v58  ;;  %v14972_v31 = vand.u32 4294901760, %v2859_v36  ;;  %v2726_v41 = vpop.f32.mrf.mxu1  ;;  %v3163_v35 = vand.u32 4294901760, %v3162_v16  ;;  %v2420_v25 = vadd.f32 %v2419_v59, %v14666_v52 }
 0x277   :  { %v2727_v28 = vadd.f32 %v2726_v41, %v2406_v37  ;;  %v2421_v62 = vpop.f32.mrf.mxu0 }
 0x278   :  { %20403 = vst [vmem:[#allocation27_spill] sm:$0xff] %v14972_v31  ;;  %v14975_v20 = vsub.f32 %v2859_v36, %v14972_v31  ;;  %v2728_v0 = vpop.f32.mrf.mxu1  ;;  %11250 = vmatprep.mubr.f32.mxu0 %v3163_v35  ;;  %11313 = vmatprep.mubr.f32.mxu1 %v14972_v31  ;;  %v3172_v40 = vsub.f32 %v14963_v58, %v19538_v50 }
 0x279   :  { %v2862_v29 = vsel %vm2791_vm0, %v2727_v28, 0  ;;  %v2426_v16 = vpop.f32.mrf.mxu0 }
 0x27a   :  { %v14983_v1 = vand.u32 4294901760, %v2862_v29  ;;  %v2733_v37 = vpop.f32.mrf.mxu1  ;;  %v3173_v41 = vand.u32 4294901760, %v3172_v40  ;;  %v19541_v36 = vand.u32 4294901760, %v14975_v20  ;;  %v2427_v59 = vadd.f32 %v2426_v16, %v14669_v2 }
 0x27b   :  { %v2734_v62 = vadd.f32 %v2733_v37, %v2413_v17  ;;  %v2428_v35 = vpop.f32.mrf.mxu0 }
 0x27c   :  { %20404 = vst [vmem:[#allocation22_spill] sm:$0xff] %v14983_v1  ;;  %v14987_v0 = vsub.f32 %v2862_v29, %v14983_v1  ;;  %v2735_v31 = vpop.f32.mrf.mxu1  ;;  %11251 = vmatmul.mubr.f32.gmra.mxu0 %v3173_v41  ;;  %11314 = vmatmul.mubr.f32.gmra.mxu1 %v14983_v1  ;;  %v3182_v51 = vsub.f32 %v14975_v20, %v19541_v36 }
 0x27d   :  { %v2865_v28 = vsel %vm2791_vm0, %v2734_v62, 0  ;;  %v2433_v17 = vpop.f32.mrf.mxu0 }
 0x27e   :  { %v19544_v40 = vand.u32 4294901760, %v14987_v0  ;;  %v14996_v50 = vand.u32 4294901760, %v2865_v28  ;;  %v2740_v29 = vpop.f32.mrf.mxu1  ;;  %v3183_v37 = vand.u32 4294901760, %v3182_v51  ;;  %v2434_v16 = vadd.f32 %v2433_v17, %v14672_v57 }
 0x27f   :  { %v2741_v35 = vadd.f32 %v2740_v29, %v2420_v25  ;;  %v2435_v41 = vpop.f32.mrf.mxu0 }
 0x280   :  { %20405 = vst [vmem:[#allocation29_spill] sm:$0xff] %v14996_v50  ;;  %v14999_v31 = vsub.f32 %v2865_v28, %v14996_v50  ;;  %v2742_v1 = vpop.f32.mrf.mxu1  ;;  %11253 = vmatprep.mubr.f32.mxu0 %v3183_v37  ;;  %11316 = vmatprep.mubr.f32.mxu1 %v14996_v50  ;;  %v3192_v52 = vsub.f32 %v14987_v0, %v19544_v40 }
 0x281   :  { %v2868_v62 = vsel %vm2791_vm0, %v2741_v35, 0  ;;  %v2440_v51 = vpop.f32.mrf.mxu0 }
 0x282   :  { %v15007_v36 = vand.u32 4294901760, %v2868_v62  ;;  %v2747_v25 = vpop.f32.mrf.mxu1  ;;  %v3193_v29 = vand.u32 4294901760, %v3192_v52  ;;  %v19547_v28 = vand.u32 4294901760, %v14999_v31  ;;  %v2441_v17 = vadd.f32 %v2440_v51, %v14675_v32 }
 0x283   :  { %v2748_v41 = vadd.f32 %v2747_v25, %v2427_v59  ;;  %v2442_v37 = vpop.f32.mrf.mxu0 }
 0x284   :  { %20406 = vst [vmem:[#allocation24_spill] sm:$0xff] %v15007_v36  ;;  %v15011_v1 = vsub.f32 %v2868_v62, %v15007_v36  ;;  %v2749_v50 = vpop.f32.mrf.mxu1  ;;  %11254 = vmatmul.mubr.f32.gmra.mxu0 %v3193_v29  ;;  %11317 = vmatmul.mubr.f32.gmra.mxu1 %v15007_v36  ;;  %v3202_v2 = vsub.f32 %v14999_v31, %v19547_v28 }
 0x285   :  { %v2871_v35 = vsel %vm2791_vm0, %v2748_v41, 0  ;;  %v2447_v59 = vpop.f32.mrf.mxu0 }
 0x286   :  { %v19550_v52 = vand.u32 4294901760, %v15011_v1  ;;  %v15020_v40 = vand.u32 4294901760, %v2871_v35  ;;  %v2754_v62 = vpop.f32.mrf.mxu1  ;;  %v3203_v25 = vand.u32 4294901760, %v3202_v2  ;;  %v2448_v51 = vadd.f32 %v2447_v59, %v14678_v27 }
 0x287   :  { %v2755_v37 = vadd.f32 %v2754_v62, %v2434_v16  ;;  %v2449_v29 = vpop.f32.mrf.mxu0 }
 0x288   :  { %20407 = vst [vmem:[#allocation31_spill] sm:$0xff] %v15020_v40  ;;  %v15023_v50 = vsub.f32 %v2871_v35, %v15020_v40  ;;  %v2756_v36 = vpop.f32.mrf.mxu1  ;;  %11256 = vmatprep.mubr.f32.mxu0 %v3203_v25  ;;  %11319 = vmatprep.mubr.f32.mxu1 %v15020_v40  ;;  %v3212_v57 = vsub.f32 %v15011_v1, %v19550_v52 }
 0x289   :  { %v2874_v41 = vsel %vm2791_vm0, %v2755_v37, 0  ;;  %v2454_v2 = vpop.f32.mrf.mxu0 }
 0x28a   :  { %v15031_v28 = vand.u32 4294901760, %v2874_v41  ;;  %v2761_v16 = vpop.f32.mrf.mxu1  ;;  %v3213_v62 = vand.u32 4294901760, %v3212_v57  ;;  %v19551_v35 = vand.u32 4294901760, %v15023_v50  ;;  %v2455_v59 = vadd.f32 %v2454_v2, %v14680_v39 }
 0x28b   :  { %v2762_v29 = vadd.f32 %v2761_v16, %v2441_v17  ;;  %v2456_v25 = vpop.f32.mrf.mxu0 }
 0x28c   :  { %20408 = vst [vmem:[#allocation33_spill] sm:$0xff] %v15031_v28  ;;  %v15035_v36 = vsub.f32 %v2874_v41, %v15031_v28  ;;  %v2763_v40 = vpop.f32.mrf.mxu1  ;;  %11257 = vmatmul.mubr.f32.gmra.mxu0 %v3213_v62  ;;  %11320 = vmatmul.mubr.f32.gmra.mxu1 %v15031_v28  ;;  %v3222_v32 = vsub.f32 %v15023_v50, %v19551_v35 }
 0x28d   :  { %v2877_v37 = vsel %vm2791_vm0, %v2762_v29, 0  ;;  %v2461_v17 = vpop.f32.mrf.mxu0 }
 0x28e   :  { %v19555_v57 = vand.u32 4294901760, %v15035_v36  ;;  %v15044_v52 = vand.u32 4294901760, %v2877_v37  ;;  %v2768_v41 = vpop.f32.mrf.mxu1  ;;  %v3223_v16 = vand.u32 4294901760, %v3222_v32  ;;  %v2462_v2 = vadd.f32 %v2461_v17, %v14682_v13 }
 0x28f   :  { %v2769_v25 = vadd.f32 %v2768_v41, %v2448_v51  ;;  %v2463_v35 = vpop.f32.mrf.mxu0 }
 0x290   :  { %v15047_v40 = vsub.f32 %v2877_v37, %v15044_v52  ;;  %v2770_v62 = vpop.f32.mrf.mxu1  ;;  %11259 = vmatprep.mubr.f32.mxu0 %v3223_v16  ;;  %11322 = vmatprep.mubr.f32.mxu1 %v15044_v52  ;;  %v3232_v27 = vsub.f32 %v15035_v36, %v19555_v57 }
 0x291   :  { %v2880_v29 = vsel %vm2791_vm0, %v2769_v25, 0 }
 0x292   :  { %v15055_v28 = vand.u32 4294901760, %v2880_v29  ;;  %v2775_v32 = vpop.f32.mrf.mxu1  ;;  %v3233_v51 = vand.u32 4294901760, %v3232_v27  ;;  %v19554_v37 = vand.u32 4294901760, %v15047_v40 }
 0x293   :  { %v2776_v41 = vadd.f32 %v2775_v32, %v2455_v59 }
 0x294   :  { %v15059_v16 = vsub.f32 %v2880_v29, %v15055_v28  ;;  %v2777_v62 = vpop.f32.mrf.mxu1  ;;  %11260 = vmatmul.mubr.f32.gmra.mxu0 %v3233_v51  ;;  %11323 = vmatmul.mubr.f32.gmra.mxu1 %v15055_v28  ;;  %v3242_v39 = vsub.f32 %v15047_v40, %v19554_v37 }
 0x295   :  { %v2883_v35 = vsel %vm2791_vm0, %v2776_v41, 0 }
 0x296   :  { %v3251_v25 = vand.u32 4294901760, %v15059_v16  ;;  %v15068_v27 = vand.u32 4294901760, %v2883_v35  ;;  %v2782_v59 = vpop.f32.mrf.mxu1  ;;  %v3243_v32 = vand.u32 4294901760, %v3242_v39 }
 0x297   :  { %v2783_v29 = vadd.f32 %v2782_v59, %v2462_v2  ;;  %v146_v59 = vld [vmem:[#allocation2 + $0x78] sm:$0xff] }
 0x298   :  { %v15071_v62 = vsub.f32 %v2883_v35, %v15068_v27  ;;  %v2784_v51 = vpop.f32.mrf.mxu1  ;;  %11262 = vmatprep.mubr.f32.mxu0 %v3243_v32  ;;  %11325 = vmatprep.mubr.f32.mxu1 %v15068_v27  ;;  %v3252_v13 = vsub.f32 %v15059_v16, %v3251_v25  ;;  %v20409_v35 = vand.u32 4294901760, %v14690_v22 }
 0x299   :  { %v2886_v17 = vsel %vm2791_vm0, %v2783_v29, 0  ;;  %4794 = vrot.lane.b32.xlu0 %v146_v59, %s12185_s0  ;;  %v144_v51 = vld [vmem:[#allocation2 + $0x68] sm:$0xff]  ;;  %v20412_v59 = vand.u32 4294901760, %v14729_v18 }
 0x29a   :  { %v15078_v41 = vand.u32 4294901760, %v2886_v17  ;;  %v3253_v37 = vand.u32 4294901760, %v3252_v13  ;;  %v19556_v57 = vand.u32 4294901760, %v15071_v62  ;;  %4790 = vrot.lane.b32.xlu1 %v144_v51, %s12185_s0  ;;  %v20425_v51 = vld [vmem:[#allocation13_spill] sm:$0xff] }
 0x29c   :  { %v15082_v39 = vsub.f32 %v2886_v17, %v15078_v41  ;;  %11263 = vmatmul.mubr.f32.gmra.mxu0 %v3253_v37  ;;  %11326 = vmatmul.mubr.f32.gmra.mxu1 %v15078_v41  ;;  %v3262_v2 = vsub.f32 %v15071_v62, %v19556_v57  ;;  %v20410_v37 = vand.u32 4294901760, %v14699_v46  ;;  %v20411_v17 = vand.u32 4294901760, %v14717_v9 }
 0x29d   :  { %11400 = vmatprep.mubr.f32.mxu1 %v20409_v35  ;;  %v145_v35 = vld [vmem:[#allocation2 + $0x70] sm:$0xff] }
 0x29e   :  { %v3271_v32 = vand.u32 4294901760, %v15082_v39  ;;  %v3263_v29 = vand.u32 4294901760, %v3262_v2  ;;  %4792 = vrot.lane.b32.xlu0 %v145_v35, %s12185_s0  ;;  %v143_v2 = vld [vmem:[#allocation2 + $0x60] sm:$0xff]  ;;  %v136_v35 = vld [vmem:[#allocation2 + $0x28] sm:$0xff] }
 0x29f   :  { %4788 = vrot.lane.b32.xlu1 %v143_v2, %s12185_s0  ;;  %v135_v2 = vld [vmem:[#allocation2 + $0x20] sm:$0xff] }
 0x2a0   :  { %11265 = vmatprep.mubr.f32.mxu0 %v3263_v29  ;;  %11401 = vmatmul.mubr.f32.vlgmr.msra.gmra.mxu1 %v20410_v37  ;;  %v3272_v13 = vsub.f32 %v15082_v39, %v3271_v32  ;;  %v20413_v29 = vand.u32 4294901760, %v14747_v24  ;;  %v138_v37 = vld [vmem:[#allocation2 + $0x38] sm:$0xff] }
 0x2a1   :  { %11403 = vmatprep.mubr.f32.mxu1 %v20411_v17  ;;  %11509 = vmatpush3.msra.mxu1 %v14336_v6  ;;  %v142_v6 = vld [vmem:[#allocation2 + $0x58] sm:$0xff]  ;;  %v137_v17 = vld [vmem:[#allocation2 + $0x30] sm:$0xff] }
 0x2a2   :  { %v3273_v57 = vand.u32 4294901760, %v3272_v13  ;;  %11510 = vmatprep.subr.mxu1 %v14405_v60  ;;  %4786 = vrot.lane.b32.xlu0 %v142_v6, %s12185_s0  ;;  %v20428_v13 = vld [vmem:[#allocation9_spill] sm:$0xff]  ;;  %v133_v6 = vld [vmem:[#allocation2 + $0x10] sm:$0xff] }
 0x2a3   :  { %11511 = vmatpush3.msra.mxu1 %v14405_v60  ;;  %v20414_v60 = vand.u32 4294901760, %v14765_v42 }
 0x2a4   :  { %11266 = vmatmul.mubr.f32.gmra.mxu0 %v3273_v57  ;;  %11404 = vmatmul.mubr.f32.gmra.mxu1 %v20412_v59  ;;  %v20416_v57 = vld [vmem:[#allocation46_spill] sm:$0xff]  ;;  %v20431_v59 = vmov 0.0  }
 0x2a5   :  { %11340 = vmatprep.mubr.f32.mxu0 %v14690_v22  ;;  %11406 = vmatprep.mubr.f32.mxu1 %v20413_v29  ;;  %v20415_v22 = vand.u32 4294901760, %v14780_v53  ;;  %v134_v29 = vld [vmem:[#allocation2 + $0x18] sm:$0xff] }
 0x2a6   :  { %11512 = vmatprep.subr.mxu1 %v14458_v63 }
 0x2a7   :  { %11513 = vmatpush3.msra.mxu1 %v14458_v63  ;;  %v20417_v63 = vand.u32 4294901760, %v14795_v12 }
 0x2a8   :  { %11341 = vmatmul.mubr.f32.vlgmr.msra.gmra.mxu0 %v14699_v46  ;;  %11407 = vmatmul.mubr.f32.gmra.mxu1 %v20414_v60  ;;  %v20418_v46 = vand.u32 4294901760, %v14807_v19  ;;  %v132_v60 = vld [vmem:[#allocation2 + $0x8] sm:$0xff] }
 0x2a9   :  { %11343 = vmatprep.mubr.f32.mxu0 %v14717_v9  ;;  %11409 = vmatprep.mubr.f32.mxu1 %v20415_v22  ;;  %v20419_v9 = vld [vmem:[#allocation53_spill] sm:$0xff]  ;;  %v131_v22 = vld [vmem:[#allocation2] sm:$0xff] }
 0x2aa   :  { %11449 = vmatpush3.msra.mxu0 %v20390_v14  ;;  %11514 = vmatprep.subr.mxu1 %v14475_v61  ;;  %v141_v14 = vld [vmem:[#allocation2 + $0x50] sm:$0xff] }
 0x2ab   :  { %11450 = vmatprep.subr.mxu0 %v20416_v57  ;;  %11515 = vmatpush3.msra.mxu1 %v14475_v61  ;;  %v20420_v61 = vand.u32 4294901760, %v14819_v54 }
 0x2ac   :  { %11344 = vmatmul.mubr.f32.gmra.mxu0 %v14729_v18  ;;  %11410 = vmatmul.mubr.f32.gmra.mxu1 %v20417_v63  ;;  %v20421_v18 = vand.u32 4294901760, %v14831_v30  ;;  %v20437_v63 = vand.u32 4294901760, %v14975_v20 }
 0x2ad   :  { %11346 = vmatprep.mubr.f32.mxu0 %v14747_v24  ;;  %11412 = vmatprep.mubr.f32.mxu1 %v20418_v46  ;;  %v20422_v24 = vld [vmem:[#allocation8_spill] sm:$0xff]  ;;  %v20438_v46 = vand.u32 4294901760, %v14987_v0 }
 0x2ae   :  { %11451 = vmatpush3.msra.mxu0 %v20416_v57  ;;  %11516 = vmatprep.subr.mxu1 %v14489_v44  ;;  %v20436_v57 = vand.u32 4294901760, %v14963_v58 }
 0x2af   :  { %11452 = vmatprep.subr.mxu0 %v20419_v9  ;;  %11517 = vmatpush3.msra.mxu1 %v14489_v44  ;;  %v20423_v44 = vand.u32 4294901760, %v14843_v43 }
 0x2b0   :  { %11347 = vmatmul.mubr.f32.gmra.mxu0 %v14765_v42  ;;  %11413 = vmatmul.mubr.f32.gmra.mxu1 %v20420_v61  ;;  %v140_v42 = vld [vmem:[#allocation2 + $0x48] sm:$0xff]  ;;  %v20440_v61 = vand.u32 4294901760, %v15011_v1 }
 0x2b1   :  { %11349 = vmatprep.mubr.f32.mxu0 %v14780_v53  ;;  %11415 = vmatprep.mubr.f32.mxu1 %v20421_v18  ;;  %v20424_v53 = vand.u32 4294901760, %v14855_v8  ;;  %v20441_v18 = vand.u32 4294901760, %v15023_v50 }
 0x2b2   :  { %11453 = vmatpush3.msra.mxu0 %v20419_v9  ;;  %11518 = vmatprep.subr.mxu1 %v14507_v47  ;;  %v20439_v9 = vand.u32 4294901760, %v14999_v31 }
 0x2b3   :  { %11454 = vmatprep.subr.mxu0 %v20422_v24  ;;  %11519 = vmatpush3.msra.mxu1 %v14507_v47  ;;  %v139_v47 = vld [vmem:[#allocation2 + $0x40] sm:$0xff] }
 0x2b4   :  { %11350 = vmatmul.mubr.f32.gmra.mxu0 %v14795_v12  ;;  %11416 = vmatmul.mubr.f32.gmra.mxu1 %v20423_v44  ;;  %v20426_v12 = vand.u32 4294901760, %v14867_v7  ;;  %v20444_v44 = vand.u32 4294901760, %v15071_v62 }
 0x2b5   :  { %11352 = vmatprep.mubr.f32.mxu0 %v14807_v19  ;;  %11418 = vmatprep.mubr.f32.mxu1 %v20424_v53  ;;  %v20427_v19 = vand.u32 4294901760, %v14879_v49 }
 0x2b6   :  { %11455 = vmatpush3.msra.mxu0 %v20422_v24  ;;  %4784 = vrot.lane.b32.xlu1 %v141_v14, %s12185_s0  ;;  %v20442_v24 = vand.u32 4294901760, %v15035_v36  ;;  %v20443_v14 = vand.u32 4294901760, %v15047_v40 }
 0x2b7   :  { %11456 = vmatprep.subr.mxu0 %v20425_v51  ;;  %4782 = vrot.lane.b32.xlu0 %v140_v42, %s12185_s0  ;;  %v150_v42 = vld [vmem:[#allocation2 + $0x98] sm:$0xff] }
 0x2b8   :  { %11353 = vmatmul.mubr.f32.gmra.mxu0 %v14819_v54  ;;  %11419 = vmatmul.mubr.f32.gmra.mxu1 %v20426_v12  ;;  %v20429_v54 = vand.u32 4294901760, %v14891_v21  ;;  %v20446_v12 = vld [vmem:[#allocation15_spill] sm:$0xff] }
 0x2b9   :  { %11355 = vmatprep.mubr.f32.mxu0 %v14831_v30  ;;  %11421 = vmatprep.mubr.f32.mxu1 %v20427_v19  ;;  %v20430_v30 = vand.u32 4294901760, %v14903_v33 }
 0x2ba   :  { %11457 = vmatpush3.msra.mxu0 %v20425_v51  ;;  %4780 = vrot.lane.b32.xlu1 %v139_v47, %s12185_s0  ;;  %v147_v51 = vld [vmem:[#allocation2 + $0x80] sm:$0xff] }
 0x2bb   :  { %11458 = vmatprep.subr.mxu0 %v20428_v13  ;;  %4778 = vrot.lane.b32.xlu0 %v138_v37, %s12185_s0 }
 0x2bc   :  { %11356 = vmatmul.mubr.f32.gmra.mxu0 %v14843_v43  ;;  %11422 = vmatmul.mubr.f32.gmra.mxu1 %v20429_v54  ;;  %v20432_v43 = vand.u32 4294901760, %v14915_v5 }
 0x2bd   :  { %11358 = vmatprep.mubr.f32.mxu0 %v14855_v8  ;;  %11424 = vmatprep.mubr.f32.mxu1 %v20430_v30  ;;  %v20433_v8 = vand.u32 4294901760, %v14927_v23 }
 0x2be   :  { %11459 = vmatpush3.msra.mxu0 %v20428_v13  ;;  %4776 = vrot.lane.b32.xlu1 %v137_v17, %s12185_s0 }
 0x2bf   :  { %4774 = vrot.lane.b32.xlu0 %v136_v35, %s12185_s0  ;;  %4924 = vmatprep.subr.mxu0 %v20431_v59  ;;  %v20450_v35 = vld [vmem:[#allocation19_spill] sm:$0xff] }
 0x2c0   :  { %11359 = vmatmul.mubr.f32.gmra.mxu0 %v14867_v7  ;;  %11425 = vmatmul.mubr.f32.gmra.mxu1 %v20432_v43  ;;  %v20434_v7 = vand.u32 4294901760, %v14939_v3 }
 0x2c1   :  { %11361 = vmatprep.mubr.f32.mxu0 %v14879_v49  ;;  %11427 = vmatprep.mubr.f32.mxu1 %v20433_v8  ;;  %v20435_v49 = vand.u32 4294901760, %v14951_v56 }
 0x2c2   :  { %4772 = vrot.lane.b32.xlu1 %v135_v2, %s12185_s0  ;;  %5501 = vmatprep.subr.mxu1 %v20431_v59 }
 0x2c3   :  { %4770 = vrot.lane.b32.xlu0 %v134_v29, %s12185_s0 }
 0x2c4   :  { %11362 = vmatmul.mubr.f32.gmra.mxu0 %v14891_v21  ;;  %11428 = vmatmul.mubr.f32.gmra.mxu1 %v20434_v7  ;;  %v162_v21 = vld [vmem:[#allocation2 + $0xf8] sm:$0xff]  ;;  %v20454_v7 = vld [vmem:[#allocation23_spill] sm:$0xff] }
 0x2c5   :  { %11364 = vmatprep.mubr.f32.mxu0 %v14903_v33  ;;  %11430 = vmatprep.mubr.f32.mxu1 %v20435_v49  ;;  %v161_v33 = vld [vmem:[#allocation2 + $0xf0] sm:$0xff] }
 0x2c6   :  { %4768 = vrot.lane.b32.xlu1 %v133_v6, %s12185_s0  ;;  %v20453_v6 = vld [vmem:[#allocation16_spill] sm:$0xff] }
 0x2c7   :  { %4766 = vrot.lane.b32.xlu0 %v132_v60, %s12185_s0 }
 0x2c8   :  { %11365 = vmatmul.mubr.f32.gmra.mxu0 %v14915_v5  ;;  %11431 = vmatmul.mubr.f32.gmra.mxu1 %v20436_v57  ;;  %v160_v5 = vld [vmem:[#allocation2 + $0xe8] sm:$0xff]  ;;  %v20455_v57 = vld [vmem:[#allocation18_spill] sm:$0xff] }
 0x2c9   :  { %11367 = vmatprep.mubr.f32.mxu0 %v14927_v23  ;;  %11433 = vmatprep.mubr.f32.mxu1 %v20437_v63  ;;  %v159_v23 = vld [vmem:[#allocation2 + $0xe0] sm:$0xff]  ;;  %v20456_v63 = vld [vmem:[#allocation25_spill] sm:$0xff] }
 0x2ca   :  { %4764 = vrot.lane.b32.xlu1 %v131_v22, %s12185_s0 }
 0x2cb   :  { %4826 = vrot.lane.b32.xlu0 %v162_v21, %s12185_s0 }
 0x2cc   :  { %11368 = vmatmul.mubr.f32.gmra.mxu0 %v14939_v3  ;;  %11434 = vmatmul.mubr.f32.gmra.mxu1 %v20438_v46  ;;  %v158_v3 = vld [vmem:[#allocation2 + $0xd8] sm:$0xff] }
 0x2cd   :  { %11370 = vmatprep.mubr.f32.mxu0 %v14951_v56  ;;  %11436 = vmatprep.mubr.f32.mxu1 %v20439_v9  ;;  %v157_v56 = vld [vmem:[#allocation2 + $0xd0] sm:$0xff]  ;;  %v20458_v9 = vld [vmem:[#allocation27_spill] sm:$0xff] }
 0x2ce   :  { %4824 = vrot.lane.b32.xlu1 %v161_v33, %s12185_s0 }
 0x2cf   :  { %4822 = vrot.lane.b32.xlu0 %v160_v5, %s12185_s0  ;;  %v20457_v5 = vld [vmem:[#allocation20_spill] sm:$0xff] }
 0x2d0   :  { %11371 = vmatmul.mubr.f32.gmra.mxu0 %v14963_v58  ;;  %11437 = vmatmul.mubr.f32.gmra.mxu1 %v20440_v61  ;;  %v156_v58 = vld [vmem:[#allocation2 + $0xc8] sm:$0xff] }
 0x2d1   :  { %11373 = vmatprep.mubr.f32.mxu0 %v14975_v20  ;;  %11439 = vmatprep.mubr.f32.mxu1 %v20441_v18  ;;  %v155_v20 = vld [vmem:[#allocation2 + $0xc0] sm:$0xff] }
 0x2d2   :  { %4820 = vrot.lane.b32.xlu1 %v159_v23, %s12185_s0  ;;  %v20459_v18 = vld [vmem:[#allocation22_spill] sm:$0xff] }
 0x2d3   :  { %4818 = vrot.lane.b32.xlu0 %v158_v3, %s12185_s0 }
 0x2d4   :  { %11374 = vmatmul.mubr.f32.gmra.mxu0 %v14987_v0  ;;  %11440 = vmatmul.mubr.f32.gmra.mxu1 %v20442_v24  ;;  %v154_v0 = vld [vmem:[#allocation2 + $0xb8] sm:$0xff] }
 0x2d5   :  { %11376 = vmatprep.mubr.f32.mxu0 %v14999_v31  ;;  %11442 = vmatprep.mubr.f32.mxu1 %v20443_v14  ;;  %v153_v31 = vld [vmem:[#allocation2 + $0xb0] sm:$0xff]  ;;  %v20460_v24 = vld [vmem:[#allocation29_spill] sm:$0xff] }
 0x2d6   :  { %4816 = vrot.lane.b32.xlu1 %v157_v56, %s12185_s0 }
 0x2d7   :  { %4814 = vrot.lane.b32.xlu0 %v156_v58, %s12185_s0 }
 0x2d8   :  { %11377 = vmatmul.mubr.f32.gmra.mxu0 %v15011_v1  ;;  %11443 = vmatmul.mubr.f32.gmra.mxu1 %v3251_v25  ;;  %v152_v1 = vld [vmem:[#allocation2 + $0xa8] sm:$0xff]  ;;  %v2787_v25 = vlaneseq }
 0x2d9   :  { %11379 = vmatprep.mubr.f32.mxu0 %v15023_v50  ;;  %11445 = vmatprep.mubr.f32.mxu1 %v20444_v44  ;;  %v151_v50 = vld [vmem:[#allocation2 + $0xa0] sm:$0xff] }
 0x2da   :  { %4812 = vrot.lane.b32.xlu1 %v155_v20, %s12185_s0  ;;  %v20461_v20 = vld [vmem:[#allocation24_spill] sm:$0xff] }
 0x2db   :  { %4810 = vrot.lane.b32.xlu0 %v154_v0, %s12185_s0  ;;  %v20462_v0 = vld [vmem:[#allocation31_spill] sm:$0xff] }
 0x2dc   :  { %11380 = vmatmul.mubr.f32.gmra.mxu0 %v15035_v36  ;;  %11446 = vmatmul.mubr.f32.gmra.mxu1 %v3271_v32  ;;  %v15241_v36 = vshrl.u32 %v2787_v25, 7  ;;  %v149_v32 = vld [vmem:[#allocation2 + $0x90] sm:$0xff]  ;;  %v20463_v25 = vld [vmem:[#allocation33_spill] sm:$0xff] }
 0x2dd   :  { %11382 = vmatprep.mubr.f32.mxu0 %v15047_v40  ;;  %11520 = vmatprep.mubr.f32.mxu1 %v14687_v15  ;;  %v185_v40 = vld [vmem:[%s18876_s4] sm:$0x1] }
 0x2de   :  { %4808 = vrot.lane.b32.xlu1 %v153_v31, %s12185_s0  ;;  %20445 = vst [vmem:[#allocation28_spill] sm:$0xff] %v15241_v36  ;;  %v19557_v53 = vsub.s32 0, %v15241_v36 }
 0x2df   :  { %4806 = vrot.lane.b32.xlu0 %v152_v1, %s12185_s0 }
 0x2e0   :  { %11383 = vmatmul.mubr.f32.gmra.mxu0 %v15059_v16  ;;  %11521 = vmatmul.mubr.f32.vlgmr.msra.gmra.mxu1 %v14695_v34  ;;  %v148_v16 = vld [vmem:[#allocation2 + $0x88] sm:$0xff] }
 0x2e1   :  { %11385 = vmatprep.mubr.f32.mxu0 %v15071_v62  ;;  %11523 = vmatprep.mubr.f32.mxu1 %v14709_v4  ;;  %v2786_v62 = vmul.f32 2.0, %v185_v40 }
 0x2e2   :  { %4804 = vrot.lane.b32.xlu1 %v151_v50, %s12185_s0 }
 0x2e3   :  { %4802 = vrot.lane.b32.xlu0 %v150_v42, %s12185_s0 }
 0x2e4   :  { %11386 = vmatmul.mubr.f32.gmra.mxu0 %v15082_v39  ;;  %11524 = vmatmul.mubr.f32.gmra.mxu1 %v14723_v55 }
 0x2e5   :  { %11460 = vmatprep.mubr.f32.mxu0 %v14687_v15  ;;  %11526 = vmatprep.mubr.f32.mxu1 %v14740_v48  ;;  %v15261_v15 = vrot.slane %v2786_v62, %v19557_v53 }
 0x2e6   :  { %4800 = vrot.lane.b32.xlu1 %v149_v32, %s12185_s0 }
 0x2e7   :  { %4798 = vrot.lane.b32.xlu0 %v148_v16, %s12185_s0 }
 0x2e8   :  { %11461 = vmatmul.mubr.f32.vlgmr.msra.gmra.mxu0 %v14695_v34  ;;  %11527 = vmatmul.mubr.f32.gmra.mxu1 %v14757_v45  ;;  %v11282_v34 = vpop.f32.mrf.mxu1 }
 0x2e9   :  { %11463 = vmatprep.mubr.f32.mxu0 %v14709_v4  ;;  %11529 = vmatprep.mubr.f32.mxu1 %v14775_v10 }
 0x2ea   :  { %4796 = vrot.lane.b32.xlu1 %v147_v51, %s12185_s0  ;;  %v15277_v37 = vpop.f32.mrf.mxu1 }
 0x2ec   :  { %v11222_v39 = vpop.f32.mrf.mxu0  ;;  %11464 = vmatmul.mubr.f32.gmra.mxu0 %v14723_v55  ;;  %11530 = vmatmul.mubr.f32.gmra.mxu1 %v14789_v11  ;;  %v11285_v17 = vpop.f32.mrf.mxu1 }
 0x2ed   :  { %v2976_v47 = vadd.f32 %v11222_v39, %v15261_v15  ;;  %11466 = vmatprep.mubr.f32.mxu0 %v14740_v48  ;;  %11532 = vmatprep.mubr.f32.mxu1 %v14804_v26  ;;  %v20447_v48 = vld [vmem:[#allocation10_spill] sm:$0xff]  ;;  %v20464_v39 = vld [vmem:[#allocation40_spill] sm:$0xff] }
 0x2ee   :  { %v15275_v55 = vpop.f32.mrf.mxu0  ;;  %v15292_v30 = vpop.f32.mrf.mxu1 }
 0x2ef   :  { %v15269_v4 = vadd.f32 %v11282_v34, %v2976_v47 }
 0x2f0   :  { %11467 = vmatmul.mubr.f32.gmra.mxu0 %v14757_v45  ;;  %11533 = vmatmul.mubr.f32.gmra.mxu1 %v14815_v38  ;;  %v20448_v45 = vld [vmem:[#allocation17_spill] sm:$0xff] }
 0x2f1   :  { %11469 = vmatprep.mubr.f32.mxu0 %v14775_v10  ;;  %11535 = vmatprep.mubr.f32.mxu1 %v20446_v12  ;;  %v20449_v10 = vld [vmem:[#allocation12_spill] sm:$0xff] }
 0x2f4   :  { %v11225_v19 = vpop.f32.mrf.mxu0  ;;  %11470 = vmatmul.mubr.f32.gmra.mxu0 %v14789_v11  ;;  %11536 = vmatmul.mubr.f32.gmra.mxu1 %v20447_v48  ;;  %v11288_v29 = vpop.f32.mrf.mxu1 }
 0x2f5   :  { %v2996_v13 = vadd.f32 %v11225_v19, %v15261_v15  ;;  %11472 = vmatprep.mubr.f32.mxu0 %v14804_v26  ;;  %11538 = vmatprep.mubr.f32.mxu1 %v20448_v45  ;;  %v20451_v26 = vld [vmem:[#allocation14_spill] sm:$0xff] }
 0x2f6   :  { %v15290_v11 = vpop.f32.mrf.mxu0  ;;  %v15307_v49 = vpop.f32.mrf.mxu1 }
 0x2f7   :  { %v15284_v54 = vadd.f32 %v11285_v17, %v2996_v13 }
 0x2f8   :  { %11473 = vmatmul.mubr.f32.gmra.mxu0 %v14815_v38  ;;  %11539 = vmatmul.mubr.f32.gmra.mxu1 %v20449_v10  ;;  %v20452_v38 = vld [vmem:[#allocation21_spill] sm:$0xff] }
 0x2f9   :  { %11475 = vmatprep.mubr.f32.mxu0 %v20446_v12  ;;  %11541 = vmatprep.mubr.f32.mxu1 %v20450_v35 }
 0x2fc   :  { %v11228_v2 = vpop.f32.mrf.mxu0  ;;  %11476 = vmatmul.mubr.f32.gmra.mxu0 %v20447_v48  ;;  %11542 = vmatmul.mubr.f32.gmra.mxu1 %v20451_v26  ;;  %v11291_v33 = vpop.f32.mrf.mxu1 }
 0x2fd   :  { %v3016_v43 = vadd.f32 %v11228_v2, %v15261_v15  ;;  %11478 = vmatprep.mubr.f32.mxu0 %v20448_v45  ;;  %11544 = vmatprep.mubr.f32.mxu1 %v20452_v38  ;;  %v20465_v45 = vld [vmem:[#allocation68_spill] sm:$0xff] }
 0x2fe   :  { %v15305_v60 = vpop.f32.mrf.mxu0  ;;  %v15322_v61 = vpop.f32.mrf.mxu1 }
 0x2ff   :  { %v15299_v8 = vadd.f32 %v11288_v29, %v3016_v43 }
 0x300   :  { %11479 = vmatmul.mubr.f32.gmra.mxu0 %v20449_v10  ;;  %11545 = vmatmul.mubr.f32.gmra.mxu1 %v20453_v6 }
 0x301   :  { %11481 = vmatprep.mubr.f32.mxu0 %v20450_v35  ;;  %11547 = vmatprep.mubr.f32.mxu1 %v20454_v7 }
 0x304   :  { %v11231_v22 = vpop.f32.mrf.mxu0  ;;  %11482 = vmatmul.mubr.f32.gmra.mxu0 %v20451_v26  ;;  %11548 = vmatmul.mubr.f32.gmra.mxu1 %v20455_v57  ;;  %v11294_v58 = vpop.f32.mrf.mxu1 }
 0x305   :  { %v3036_v21 = vadd.f32 %v11231_v22, %v15261_v15  ;;  %11484 = vmatprep.mubr.f32.mxu0 %v20452_v38  ;;  %11550 = vmatprep.mubr.f32.mxu1 %v20456_v63 }
 0x306   :  { %v15320_v23 = vpop.f32.mrf.mxu0  ;;  %v15337_v31 = vpop.f32.mrf.mxu1 }
 0x307   :  { %v15314_v46 = vadd.f32 %v11291_v33, %v3036_v21 }
 0x308   :  { %11485 = vmatmul.mubr.f32.gmra.mxu0 %v20453_v6  ;;  %11551 = vmatmul.mubr.f32.gmra.mxu1 %v20457_v5 }
 0x309   :  { %11487 = vmatprep.mubr.f32.mxu0 %v20454_v7  ;;  %11553 = vmatprep.mubr.f32.mxu1 %v20458_v9 }
 0x30c   :  { %v11234_v3 = vpop.f32.mrf.mxu0  ;;  %11488 = vmatmul.mubr.f32.gmra.mxu0 %v20455_v57  ;;  %11554 = vmatmul.mubr.f32.gmra.mxu1 %v20459_v18  ;;  %v11297_v42 = vpop.f32.mrf.mxu1 }
 0x30d   :  { %v3056_v56 = vadd.f32 %v11234_v3, %v15261_v15  ;;  %11490 = vmatprep.mubr.f32.mxu0 %v20456_v63  ;;  %11556 = vmatprep.mubr.f32.mxu1 %v20460_v24 }
 0x30e   :  { %v15335_v44 = vpop.f32.mrf.mxu0  ;;  %v15352_v16 = vpop.f32.mrf.mxu1 }
 0x30f   :  { %v15329_v14 = vadd.f32 %v11294_v58, %v3056_v56 }
 0x310   :  { %11491 = vmatmul.mubr.f32.gmra.mxu0 %v20457_v5  ;;  %11557 = vmatmul.mubr.f32.gmra.mxu1 %v20461_v20 }
 0x311   :  { %11493 = vmatprep.mubr.f32.mxu0 %v20458_v9  ;;  %11559 = vmatprep.mubr.f32.mxu1 %v20462_v0 }
 0x314   :  { %v11237_v1 = vpop.f32.mrf.mxu0  ;;  %11494 = vmatmul.mubr.f32.gmra.mxu0 %v20459_v18  ;;  %11560 = vmatmul.mubr.f32.gmra.mxu1 %v20463_v25  ;;  %v11300_v47 = vpop.f32.mrf.mxu1 }
 0x315   :  { %v3076_v50 = vadd.f32 %v11237_v1, %v15261_v15  ;;  %11496 = vmatprep.mubr.f32.mxu0 %v20460_v24  ;;  %11562 = vmatprep.mubr.f32.mxu1 %v15044_v52 }
 0x316   :  { %v15350_v32 = vpop.f32.mrf.mxu0  ;;  %v15365_v19 = vpop.f32.mrf.mxu1 }
 0x317   :  { %v15344_v40 = vadd.f32 %v11297_v42, %v3076_v50 }
 0x318   :  { %11497 = vmatmul.mubr.f32.gmra.mxu0 %v20461_v20  ;;  %11563 = vmatmul.mubr.f32.gmra.mxu1 %v15055_v28 }
 0x319   :  { %11499 = vmatprep.mubr.f32.mxu0 %v20462_v0  ;;  %11565 = vmatprep.mubr.f32.mxu1 %v15068_v27 }
 0x31c   :  { %v11240_v62 = vpop.f32.mrf.mxu0  ;;  %11500 = vmatmul.mubr.f32.gmra.mxu0 %v20463_v25  ;;  %11566 = vmatmul.mubr.f32.gmra.mxu1 %v15078_v41 }
 0x31d   :  { %v3096_v51 = vadd.f32 %v11240_v62, %v15261_v15  ;;  %11502 = vmatprep.mubr.f32.mxu0 %v15044_v52  ;;  %5726 = vmatprep.mubr.f32.mxu1 %v20464_v39  ;;  %v11303_v52 = vpop.f32.mrf.mxu1 }
 0x31e   :  { %v15363_v12 = vpop.f32.mrf.mxu0 }
 0x31f   :  { %v15359_v34 = vadd.f32 %v11300_v47, %v3096_v51  ;;  %v15374_v35 = vpop.f32.mrf.mxu1 }
 0x320   :  { %11503 = vmatmul.mubr.f32.gmra.mxu0 %v15055_v28 }
 0x321   :  { %11505 = vmatprep.mubr.f32.mxu0 %v15068_v27 }
 0x324   :  { %v11243_v48 = vpop.f32.mrf.mxu0  ;;  %11506 = vmatmul.mubr.f32.gmra.mxu0 %v15078_v41  ;;  %v11306_v2 = vpop.f32.mrf.mxu1 }
 0x325   :  { %v3116_v13 = vadd.f32 %v11243_v48, %v15261_v15  ;;  %5025 = vmatprep.mubr.f32.mxu0 %v20465_v45 }
 0x326   :  { %v15372_v10 = vpop.f32.mrf.mxu0  ;;  %v15381_v41 = vpop.f32.mrf.mxu1 }
 0x327   :  { %v15370_v17 = vadd.f32 %v11303_v52, %v3116_v13 }
 0x329   :  { %20466 = vst [vmem:[#allocation35_spill] sm:$0xff] %v15370_v17 }
 0x32c   :  { %v11246_v28 = vpop.f32.mrf.mxu0  ;;  %v11309_v6 = vpop.f32.mrf.mxu1 }
 0x32d   :  { %v3136_v27 = vadd.f32 %v11246_v28, %v15261_v15 }
 0x32e   :  { %v15379_v43 = vpop.f32.mrf.mxu0  ;;  %v15388_v57 = vpop.f32.mrf.mxu1 }
 0x32f   :  { %v15377_v26 = vadd.f32 %v11306_v2, %v3136_v27 }
 0x334   :  { %v11249_v38 = vpop.f32.mrf.mxu0  ;;  %v11312_v33 = vpop.f32.mrf.mxu1 }
 0x335   :  { %v3156_v29 = vadd.f32 %v11249_v38, %v15261_v15 }
 0x336   :  { %v15386_v22 = vpop.f32.mrf.mxu0  ;;  %v15393_v9 = vpop.f32.mrf.mxu1 }
 0x337   :  { %v15384_v7 = vadd.f32 %v11309_v6, %v3156_v29 }
 0x33c   :  { %v11252_v21 = vpop.f32.mrf.mxu0  ;;  %v11315_v18 = vpop.f32.mrf.mxu1 }
 0x33d   :  { %v3176_v63 = vadd.f32 %v11252_v21, %v15261_v15 }
 0x33e   :  { %v15395_v3 = vpop.f32.mrf.mxu0  ;;  %v15400_v20 = vpop.f32.mrf.mxu1 }
 0x33f   :  { %v15391_v5 = vadd.f32 %v11312_v33, %v3176_v63 }
 0x344   :  { %v11255_v56 = vpop.f32.mrf.mxu0  ;;  %v11318_v0 = vpop.f32.mrf.mxu1 }
 0x345   :  { %v3196_v24 = vadd.f32 %v11255_v56, %v15261_v15 }
 0x346   :  { %v15402_v1 = vpop.f32.mrf.mxu0  ;;  %v15405_v42 = vpop.f32.mrf.mxu1 }
 0x347   :  { %v15398_v58 = vadd.f32 %v11315_v18, %v3196_v24 }
 0x34c   :  { %v11258_v25 = vpop.f32.mrf.mxu0  ;;  %v11321_v51 = vpop.f32.mrf.mxu1 }
 0x34d   :  { %v3216_v50 = vadd.f32 %v11258_v25, %v15261_v15 }
 0x34e   :  { %v15409_v47 = vpop.f32.mrf.mxu0  ;;  %v15411_v48 = vpop.f32.mrf.mxu1 }
 0x34f   :  { %v15407_v62 = vadd.f32 %v11318_v0, %v3216_v50 }
 0x354   :  { %v11261_v13 = vpop.f32.mrf.mxu0  ;;  %v11324_v52 = vpop.f32.mrf.mxu1 }
 0x355   :  { %v3236_v45 = vadd.f32 %v11261_v13, %v15261_v15 }
 0x356   :  { %v15416_v27 = vpop.f32.mrf.mxu0  ;;  %v15418_v2 = vpop.f32.mrf.mxu1 }
 0x357   :  { %v15414_v28 = vadd.f32 %v11321_v51, %v3236_v45 }
 0x35c   :  { %v11264_v38 = vpop.f32.mrf.mxu0  ;;  %v11327_v29 = vpop.f32.mrf.mxu1 }
 0x35d   :  { %v3256_v6 = vadd.f32 %v11264_v38, %v15261_v15 }
 0x35e   :  { %v15421_v21 = vpop.f32.mrf.mxu1  ;;  %v15425_v18 = vpop.f32.mrf.mxu0 }
 0x35f   :  { %20467 = vst [vmem:[#allocation55_spill] sm:$0xff] %v15421_v21  ;;  %v15423_v63 = vadd.f32 %v11324_v52, %v3256_v6 }
 0x360   :  { %v11402_v33 = vpop.f32.mrf.mxu1 }
 0x362   :  { %v15427_v56 = vpop.f32.mrf.mxu1 }
 0x363   :  { %20468 = vst [vmem:[#allocation48_spill] sm:$0xff] %v15427_v56 }
 0x364   :  { %v11267_v24 = vpop.f32.mrf.mxu0  ;;  %v11405_v0 = vpop.f32.mrf.mxu1 }
 0x365   :  { %v3276_v25 = vadd.f32 %v11267_v24, %v15261_v15 }
 0x366   :  { %v15430_v50 = vpop.f32.mrf.mxu0  ;;  %v15432_v51 = vpop.f32.mrf.mxu1 }
 0x367   :  { %20469 = vst [vmem:[#allocation11_spill] sm:$0xff] %v15432_v51  ;;  %v15434_v13 = vadd.f32 %v11327_v29, %v3276_v25 }
 0x368   :  { %v11342_v45 = vpop.f32.mrf.mxu0  ;;  %v11408_v38 = vpop.f32.mrf.mxu1 }
 0x369   :  { %20470 = vst [vmem:[#allocation44_spill] sm:$0xff] %v15434_v13  ;;  %v3654_v52 = vadd.f32 %v11342_v45, %v15269_v4 }
 0x36a   :  { %v15437_v6 = vpop.f32.mrf.mxu0  ;;  %v15439_v53 = vpop.f32.mrf.mxu1 }
 0x36b   :  { %20471 = vst [vmem:[#allocation46_spill] sm:$0xff] %v15439_v53  ;;  %v15441_v36 = vadd.f32 %v11402_v33, %v3654_v52 }
 0x36c   :  { %v11345_v39 = vpop.f32.mrf.mxu0  ;;  %v11411_v59 = vpop.f32.mrf.mxu1 }
 0x36d   :  { %v3668_v24 = vadd.f32 %v11345_v39, %v15284_v54 }
 0x36e   :  { %v15444_v17 = vpop.f32.mrf.mxu0  ;;  %v15446_v56 = vpop.f32.mrf.mxu1 }
 0x36f   :  { %20472 = vst [vmem:[#allocation53_spill] sm:$0xff] %v15446_v56  ;;  %v15448_v29 = vadd.f32 %v11405_v0, %v3668_v24 }
 0x370   :  { %v11348_v25 = vpop.f32.mrf.mxu0  ;;  %v11414_v13 = vpop.f32.mrf.mxu1 }
 0x371   :  { %20473 = vst [vmem:[#allocation8_spill] sm:$0xff] %v15448_v29  ;;  %v3682_v4 = vadd.f32 %v11348_v25, %v15299_v8 }
 0x372   :  { %v15451_v45 = vpop.f32.mrf.mxu0  ;;  %v15453_v51 = vpop.f32.mrf.mxu1 }
 0x373   :  { %20474 = vst [vmem:[#allocation13_spill] sm:$0xff] %v15453_v51  ;;  %v15455_v33 = vadd.f32 %v11408_v38, %v3682_v4 }
 0x374   :  { %v11351_v52 = vpop.f32.mrf.mxu0  ;;  %v11417_v53 = vpop.f32.mrf.mxu1 }
 0x375   :  { %20475 = vst [vmem:[#allocation9_spill] sm:$0xff] %v15455_v33  ;;  %v3696_v54 = vadd.f32 %v11351_v52, %v15314_v46 }
 0x376   :  { %v15458_v39 = vpop.f32.mrf.mxu0  ;;  %v15460_v21 = vpop.f32.mrf.mxu1 }
 0x377   :  { %20476 = vst [vmem:[#allocation15_spill] sm:$0xff] %v15460_v21  ;;  %v15462_v0 = vadd.f32 %v11411_v59, %v3696_v54 }
 0x378   :  { %v11354_v24 = vpop.f32.mrf.mxu0  ;;  %v11420_v29 = vpop.f32.mrf.mxu1 }
 0x379   :  { %20477 = vst [vmem:[#allocation10_spill] sm:$0xff] %v15462_v0  ;;  %v3710_v8 = vadd.f32 %v11354_v24, %v15329_v14 }
 0x37a   :  { %v15465_v25 = vpop.f32.mrf.mxu0  ;;  %v15467_v56 = vpop.f32.mrf.mxu1 }
 0x37b   :  { %20478 = vst [vmem:[#allocation17_spill] sm:$0xff] %v15467_v56  ;;  %v15469_v38 = vadd.f32 %v11414_v13, %v3710_v8 }
 0x37c   :  { %v11357_v4 = vpop.f32.mrf.mxu0  ;;  %v15471_v33 = vpop.f32.mrf.mxu1 }
 0x37d   :  { %20479 = vst [vmem:[#allocation12_spill] sm:$0xff] %v15469_v38  ;;  %20480 = vst [vmem:[#allocation19_spill] sm:$0xff] %v15471_v33  ;;  %v3724_v46 = vadd.f32 %v11357_v4, %v15344_v40 }
 0x37e   :  { %v15474_v52 = vpop.f32.mrf.mxu0  ;;  %v15476_v21 = vpop.f32.mrf.mxu1 }
 0x37f   :  { %20481 = vst [vmem:[#allocation14_spill] sm:$0xff] %v15476_v21  ;;  %v15478_v59 = vadd.f32 %v11417_v53, %v3724_v46 }
 0x380   :  { %v11360_v54 = vpop.f32.mrf.mxu0  ;;  %v11426_v0 = vpop.f32.mrf.mxu1 }
 0x381   :  { %20482 = vst [vmem:[#allocation21_spill] sm:$0xff] %v15478_v59  ;;  %v3738_v14 = vadd.f32 %v11360_v54, %v15359_v34 }
 0x382   :  { %v15481_v24 = vpop.f32.mrf.mxu0  ;;  %v15483_v56 = vpop.f32.mrf.mxu1 }
 0x383   :  { %20483 = vst [vmem:[#allocation16_spill] sm:$0xff] %v15483_v56  ;;  %v15485_v13 = vadd.f32 %v11420_v29, %v3738_v14 }
 0x384   :  { %v15487_v8 = vpop.f32.mrf.mxu0  ;;  %v11429_v38 = vpop.f32.mrf.mxu1 }
 0x385   :  { %20484 = vst [vmem:[#allocation23_spill] sm:$0xff] %v15485_v13  ;;  %v15501_v13 = vpop.permute.xlu0 %4794 }
 0x386   :  { %v15489_v40 = vpop.f32.mrf.mxu0  ;;  %v15491_v4 = vpop.f32.mrf.mxu1  ;;  %20490 = vst [vmem:[#allocation29_spill] sm:$0xff] %v15501_v13 }
 0x387   :  { %20485 = vst [vmem:[#allocation18_spill] sm:$0xff] %v15489_v40  ;;  %20486 = vst [vmem:[#allocation25_spill] sm:$0xff] %v15491_v4  ;;  %v15518_v13 = vpop.permute.xlu1 %4790 }
 0x388   :  { %v11366_v21 = vpop.f32.mrf.mxu0  ;;  %v11432_v53 = vpop.f32.mrf.mxu1  ;;  %20495 = vst [vmem:[#allocation293_spill] sm:$0xff] %v15518_v13 }
 0x389   :  { %v3766_v46 = vadd.f32 %v11366_v21, %v15377_v26 }
 0x38a   :  { %v15494_v59 = vpop.f32.mrf.mxu0  ;;  %v15496_v34 = vpop.f32.mrf.mxu1 }
 0x38b   :  { %20487 = vst [vmem:[#allocation20_spill] sm:$0xff] %v15494_v59  ;;  %20488 = vst [vmem:[#allocation27_spill] sm:$0xff] %v15496_v34  ;;  %v15498_v54 = vadd.f32 %v11426_v0, %v3766_v46  ;;  %v15514_v46 = vpop.permute.xlu0 %4792 }
 0x38c   :  { %v11369_v56 = vpop.f32.mrf.mxu0  ;;  %v11435_v29 = vpop.f32.mrf.mxu1  ;;  %20493 = vst [vmem:[#allocation33_spill] sm:$0xff] %v15514_v46 }
 0x38d   :  { %20489 = vst [vmem:[#allocation22_spill] sm:$0xff] %v15498_v54  ;;  %v3780_v14 = vadd.f32 %v11369_v56, %v15384_v7 }
 0x38e   :  { %v15503_v33 = vpop.f32.mrf.mxu0  ;;  %v15505_v51 = vpop.f32.mrf.mxu1 }
 0x38f   :  { %20491 = vst [vmem:[#allocation24_spill] sm:$0xff] %v15505_v51  ;;  %v15507_v4 = vadd.f32 %v11429_v38, %v3780_v14  ;;  %v15527_v34 = vpop.permute.xlu0 %4786 }
 0x390   :  { %v11372_v40 = vpop.f32.mrf.mxu0  ;;  %v11438_v26 = vpop.f32.mrf.mxu1  ;;  %20498 = vst [vmem:[#allocation296_spill] sm:$0xff] %v15527_v34 }
 0x391   :  { %20492 = vst [vmem:[#allocation31_spill] sm:$0xff] %v15507_v4  ;;  %v3794_v21 = vadd.f32 %v11372_v40, %v15391_v5 }
 0x392   :  { %v15510_v59 = vpop.f32.mrf.mxu0  ;;  %v15512_v0 = vpop.f32.mrf.mxu1 }
 0x393   :  { %v15516_v54 = vadd.f32 %v11432_v53, %v3794_v21  ;;  %v15545_v34 = vpop.permute.xlu0 %4782 }
 0x394   :  { %v11375_v7 = vpop.f32.mrf.mxu0  ;;  %v11441_v56 = vpop.f32.mrf.mxu1  ;;  %20504 = vst [vmem:[#allocation302_spill] sm:$0xff] %v15545_v34 }
 0x395   :  { %20494 = vst [vmem:[#allocation68_spill] sm:$0xff] %v15516_v54  ;;  %v3808_v51 = vadd.f32 %v11375_v7, %v15398_v58  ;;  %v15534_v54 = vpop.permute.xlu1 %4788 }
 0x396   :  { %v15521_v38 = vpop.f32.mrf.mxu0  ;;  %v15523_v14 = vpop.f32.mrf.mxu1  ;;  %20500 = vst [vmem:[#allocation298_spill] sm:$0xff] %v15534_v54 }
 0x397   :  { %20496 = vst [vmem:[#allocation294_spill] sm:$0xff] %v15523_v14  ;;  %v15525_v4 = vadd.f32 %v11435_v29, %v3808_v51 }
 0x398   :  { %v11378_v5 = vpop.f32.mrf.mxu0  ;;  %v11444_v40 = vpop.f32.mrf.mxu1 }
 0x399   :  { %20497 = vst [vmem:[#allocation295_spill] sm:$0xff] %v15525_v4  ;;  %v3822_v46 = vadd.f32 %v11378_v5, %v15407_v62 }
 0x39a   :  { %v15530_v53 = vpop.f32.mrf.mxu0  ;;  %v15532_v21 = vpop.f32.mrf.mxu1 }
 0x39b   :  { %20499 = vst [vmem:[#allocation297_spill] sm:$0xff] %v15532_v21  ;;  %v15536_v13 = vadd.f32 %v11438_v26, %v3822_v46  ;;  %v15551_v21 = vpop.permute.xlu1 %4784 }
 0x39c   :  { %v11381_v58 = vpop.f32.mrf.mxu0  ;;  %v15538_v7 = vpop.f32.mrf.mxu1  ;;  %20506 = vst [vmem:[#allocation304_spill] sm:$0xff] %v15551_v21 }
 0x39d   :  { %20501 = vst [vmem:[#allocation299_spill] sm:$0xff] %v15536_v13  ;;  %20502 = vst [vmem:[#allocation300_spill] sm:$0xff] %v15538_v7  ;;  %v3836_v51 = vadd.f32 %v11381_v58, %v15414_v28  ;;  %v15564_v7 = vpop.permute.xlu0 %4778 }
 0x39e   :  { %v15541_v29 = vpop.f32.mrf.mxu0  ;;  %v15543_v4 = vpop.f32.mrf.mxu1  ;;  %20509 = vst [vmem:[#allocation307_spill] sm:$0xff] %v15564_v7  ;;  %v3006_v7 = vadd.f32 %v15305_v60, %v15261_v15 }
 0x39f   :  { %20503 = vst [vmem:[#allocation301_spill] sm:$0xff] %v15543_v4  ;;  %v15547_v62 = vadd.f32 %v11441_v56, %v3836_v51 }
 0x3a0   :  { %v11384_v5 = vpop.f32.mrf.mxu0  ;;  %v15549_v14 = vpop.f32.mrf.mxu1 }
 0x3a1   :  { %20505 = vst [vmem:[#allocation303_spill] sm:$0xff] %v15547_v62  ;;  %v3850_v26 = vadd.f32 %v11384_v5, %v15423_v63  ;;  %v15570_v62 = vpop.permute.xlu1 %4780 }
 0x3a2   :  { %v15554_v46 = vpop.f32.mrf.mxu0  ;;  %v15556_v13 = vpop.f32.mrf.mxu1  ;;  %20512 = vst [vmem:[#allocation310_spill] sm:$0xff] %v15570_v62 }
 0x3a3   :  { %v15558_v28 = vadd.f32 %v11444_v40, %v3850_v26  ;;  %v2966_v40 = vadd.f32 %v15275_v55, %v15261_v15  ;;  %v2986_v26 = vadd.f32 %v15290_v11, %v15261_v15  ;;  %v3046_v55 = vadd.f32 %v15335_v44, %v15261_v15 }
 0x3a4   :  { %v15560_v58 = vpop.f32.mrf.mxu0  ;;  %v15562_v4 = vpop.f32.mrf.mxu1 }
 0x3a5   :  { %20507 = vst [vmem:[#allocation305_spill] sm:$0xff] %v15558_v28  ;;  %20508 = vst [vmem:[#allocation306_spill] sm:$0xff] %v15560_v58  ;;  %v15582_v28 = vpop.permute.xlu0 %4774  ;;  %v3389_v60 = vadd.f32 %v15292_v30, %v2986_v26  ;;  %v3146_v30 = vadd.f32 %v15386_v22, %v15261_v15 }
 0x3a6   :  { %v15566_v56 = vpop.f32.mrf.mxu0  ;;  %v15568_v51 = vpop.f32.mrf.mxu1  ;;  %20515 = vst [vmem:[#allocation313_spill] sm:$0xff] %v15582_v28  ;;  %v3377_v28 = vadd.f32 %v15277_v37, %v2966_v40  ;;  %v3126_v37 = vadd.f32 %v15379_v43, %v15261_v15  ;;  %v3425_v43 = vadd.f32 %v15337_v31, %v3046_v55 }
 0x3a7   :  { %20510 = vst [vmem:[#allocation308_spill] sm:$0xff] %v15566_v56  ;;  %20511 = vst [vmem:[#allocation309_spill] sm:$0xff] %v15568_v51  ;;  %v15592_v51 = vpop.permute.xlu1 %4776  ;;  %v3066_v56 = vadd.f32 %v15350_v32, %v15261_v15  ;;  %v3166_v32 = vadd.f32 %v15395_v3, %v15261_v15  ;;  %v3266_v3 = vadd.f32 %v15430_v50, %v15261_v15 }
 0x3a8   :  { %v11462_v34 = vpop.f32.mrf.mxu0  ;;  %v15572_v63 = vpop.f32.mrf.mxu1  ;;  %20517 = vst [vmem:[#allocation315_spill] sm:$0xff] %v15592_v51  ;;  %v3401_v51 = vadd.f32 %v15307_v49, %v3006_v7  ;;  %v3186_v49 = vadd.f32 %v15402_v1, %v15261_v15  ;;  %v3226_v7 = vadd.f32 %v15416_v27, %v15261_v15  ;;  %v3647_v1 = vadd.f32 %v15437_v6, %v3377_v28  ;;  %v20522_v28 = vld [vmem:[#allocation55_spill] sm:$0xff] }
 0x3a9   :  { %20513 = vst [vmem:[#allocation311_spill] sm:$0xff] %v15572_v63  ;;  %v3026_v63 = vadd.f32 %v15320_v23, %v15261_v15  ;;  %v3106_v23 = vadd.f32 %v15372_v10, %v15261_v15  ;;  %v15620_v40 = vpop.permute.xlu0 %4770  ;;  %v3206_v10 = vadd.f32 %v15409_v47, %v15261_v15  ;;  %v4286_v47 = vadd.f32 %v11462_v34, %v15441_v36 }
 0x3aa   :  { %v15574_v5 = vpop.f32.mrf.mxu0  ;;  %v15576_v21 = vpop.f32.mrf.mxu1  ;;  %20519 = vst [vmem:[#allocation317_spill] sm:$0xff] %v15620_v40  ;;  %v3661_v27 = vadd.f32 %v15444_v17, %v3389_v60  ;;  %v3437_v31 = vadd.f32 %v15352_v16, %v3066_v56  ;;  %v3473_v50 = vadd.f32 %v15381_v41, %v3126_v37  ;;  %v3485_v6 = vadd.f32 %v15388_v57, %v3146_v30  ;;  %v20523_v56 = vld [vmem:[#allocation48_spill] sm:$0xff]  ;;  %v20526_v30 = vld [vmem:[#allocation35_spill] sm:$0xff] }
 0x3ab   :  { %20514 = vst [vmem:[#allocation312_spill] sm:$0xff] %v15576_v21  ;;  %v3497_v36 = vadd.f32 %v15393_v9, %v3166_v32  ;;  %v3509_v16 = vadd.f32 %v15400_v20, %v3186_v49  ;;  %v3557_v41 = vadd.f32 %v20522_v28, %v3266_v3  ;;  %v4549_v57 = vadd.f32 %v15549_v14, %v4286_v47  ;;  %v20527_v32 = vld [vmem:[#allocation18_spill] sm:$0xff]  ;;  %v20528_v14 = vld [vmem:[#allocation20_spill] sm:$0xff] }
 0x3ac   :  { %v15586_v54 = vpop.f32.mrf.mxu0  ;;  %v15588_v62 = vpop.f32.mrf.mxu1  ;;  %v3943_v9 = vadd.f32 %v20523_v56, %v3647_v1  ;;  %v3703_v20 = vadd.f32 %v15465_v25, %v3425_v43  ;;  %v3759_v49 = vadd.f32 %v20528_v14, %v3473_v50  ;;  %v3773_v25 = vadd.f32 %v15503_v33, %v3485_v6  ;;  %v20531_v43 = vld [vmem:[#allocation53_spill] sm:$0xff] }
 0x3ad   :  { %20516 = vst [vmem:[#allocation314_spill] sm:$0xff] %v15588_v62  ;;  %v3086_v62 = vadd.f32 %v15363_v12, %v15261_v15  ;;  %v3413_v12 = vadd.f32 %v15322_v61, %v3026_v63  ;;  %v3246_v61 = vadd.f32 %v15425_v18, %v15261_v15  ;;  %v15638_v63 = vpop.permute.xlu1 %4772  ;;  %v3675_v15 = vadd.f32 %v15451_v45, %v3401_v51  ;;  %v15665_v51 = vpop.permute.xlu0 %4766  ;;  %v20533_v33 = vld [vmem:[#allocation13_spill] sm:$0xff] }
 0x3ae   :  { %v15596_v21 = vpop.f32.mrf.mxu0  ;;  %v15598_v11 = vpop.f32.mrf.mxu1  ;;  %20521 = vst [vmem:[#allocation319_spill] sm:$0xff] %v15638_v63  ;;  %20524 = vst [vmem:[#allocation55_spill] sm:$0xff] %v15665_v51  ;;  %v4007_v50 = vadd.f32 %v20533_v33, %v3703_v20  ;;  %v20540_v20 = vld [vmem:[#allocation25_spill] sm:$0xff] }
 0x3af   :  { %20518 = vst [vmem:[#allocation316_spill] sm:$0xff] %v15598_v11  ;;  %v3449_v55 = vadd.f32 %v15365_v19, %v3086_v62  ;;  %v3461_v11 = vadd.f32 %v15374_v35, %v3106_v23  ;;  %v3689_v17 = vadd.f32 %v15458_v39, %v3413_v12  ;;  %v3521_v19 = vadd.f32 %v15405_v42, %v3206_v10  ;;  %v20525_v39 = vld [vmem:[#allocation11_spill] sm:$0xff] }
 0x3b0   :  { %v15609_v44 = vpop.f32.mrf.mxu0  ;;  %v15611_v58 = vpop.f32.mrf.mxu1  ;;  %v3533_v35 = vadd.f32 %v15411_v48, %v3226_v7  ;;  %v3545_v45 = vadd.f32 %v15418_v2, %v3246_v61  ;;  %v3717_v42 = vadd.f32 %v15474_v52, %v3437_v31  ;;  %v3959_v60 = vadd.f32 %v20525_v39, %v3661_v27  ;;  %v20530_v7 = vld [vmem:[#allocation46_spill] sm:$0xff] }
 0x3b1   :  { %v3731_v48 = vadd.f32 %v15481_v24, %v3449_v55  ;;  %v3752_v2 = vadd.f32 %v15487_v8, %v20526_v30  ;;  %v3745_v12 = vadd.f32 %v20527_v32, %v3461_v11  ;;  %v15675_v10 = vpop.permute.xlu1 %4768  ;;  %v15678_v61 = vadd.f32 %v20530_v7, %v3675_v15  ;;  %v20532_v55 = vld [vmem:[#allocation8_spill] sm:$0xff]  ;;  %v20541_v32 = vld [vmem:[#allocation27_spill] sm:$0xff] }
 0x3b2   :  { %v15629_v26 = vpop.f32.mrf.mxu0  ;;  %v15631_v22 = vpop.f32.mrf.mxu1  ;;  %20529 = vst [vmem:[#allocation48_spill] sm:$0xff] %v15675_v10  ;;  %v3787_v52 = vadd.f32 %v15510_v59, %v3497_v36  ;;  %v3801_v24 = vadd.f32 %v15521_v38, %v3509_v16  ;;  %v3991_v3 = vadd.f32 %v20531_v43, %v3689_v17  ;;  %v3815_v8 = vadd.f32 %v15530_v53, %v3521_v19  ;;  %v20534_v38 = vld [vmem:[#allocation15_spill] sm:$0xff]  ;;  %v20535_v17 = vld [vmem:[#allocation17_spill] sm:$0xff] }
 0x3b3   :  { %20520 = vst [vmem:[#allocation318_spill] sm:$0xff] %v15629_v26  ;;  %v3829_v11 = vadd.f32 %v15541_v29, %v3533_v35  ;;  %v4280_v27 = vadd.f32 %v15574_v5, %v3943_v9  ;;  %v4861_v31 = vmul.f32 %v15665_v51, %v4549_v57  ;;  %v4298_v15 = vadd.f32 %v15586_v54, %v20532_v55  ;;  %v20536_v53 = vld [vmem:[#allocation19_spill] sm:$0xff]  ;;  %v20537_v29 = vld [vmem:[#allocation14_spill] sm:$0xff]  ;;  %v20538_v5 = vld [vmem:[#allocation16_spill] sm:$0xff] }
 0x3b4   :  { %v15645_v26 = vpop.f32.mrf.mxu0  ;;  %v15647_v18 = vpop.f32.mrf.mxu1  ;;  %v4023_v36 = vadd.f32 %v20534_v38, %v3717_v42  ;;  %v4039_v16 = vadd.f32 %v20535_v17, %v3731_v48  ;;  %v3843_v28 = vadd.f32 %v15554_v46, %v3545_v45  ;;  %v4063_v19 = vadd.f32 %v20536_v53, %v3752_v2  ;;  %v20539_v57 = vld [vmem:[#allocation21_spill] sm:$0xff]  ;;  %v20542_v48 = vld [vmem:[#allocation24_spill] sm:$0xff]  ;;  %v20549_v38 = vld [vmem:[#allocation306_spill] sm:$0xff] }
 0x3b5   :  { %v4055_v35 = vadd.f32 %v20537_v29, %v3745_v12  ;;  %v15697_v56 = vadd.f32 %v20538_v5, %v3759_v49  ;;  %v15701_v30 = vadd.f32 %v20540_v20, %v3773_v25  ;;  %v15704_v42 = vadd.f32 %v20541_v32, %v3787_v52  ;;  %v15711_v45 = vpop.permute.xlu1 %4764  ;;  %v20545_v49 = vld [vmem:[#allocation294_spill] sm:$0xff]  ;;  %v20546_v43 = vld [vmem:[#allocation9_spill] sm:$0xff] }
 0x3b6   :  { %v15657_v34 = vpop.f32.mrf.mxu0  ;;  %v15659_v62 = vpop.f32.mrf.mxu1  ;;  %v15707_v14 = vadd.f32 %v20542_v48, %v3801_v24  ;;  %v15709_v46 = vmax.f32 %v4861_v31, 0.0  ;;  %20544 = vst [vmem:[#allocation35_spill] sm:$0xff] %v15711_v45  ;;  %v4543_v2 = vadd.f32 %v15556_v13, %v4280_v27  ;;  %v15715_v12 = vadd.f32 %v15512_v0, %v3815_v8  ;;  %v20550_v0 = vld [vmem:[#allocation12_spill] sm:$0xff]  ;;  %v20551_v27 = vld [vmem:[#allocation23_spill] sm:$0xff]  ;;  %v20552_v17 = vld [vmem:[#allocation297_spill] sm:$0xff] }
 0x3b7   :  { %v15718_v7 = vadd.f32 %v20545_v49, %v3829_v11  ;;  %v4561_v25 = vadd.f32 %v15562_v4, %v4298_v15  ;;  %v4292_v52 = vadd.f32 %v15596_v21, %v3959_v60  ;;  %v4310_v24 = vadd.f32 %v15609_v44, %v20546_v43  ;;  %v20553_v4 = vld [vmem:[#allocation308_spill] sm:$0xff]  ;;  %v20554_v60 = vld [vmem:[#allocation10_spill] sm:$0xff]  ;;  %v20558_v48 = vld [vmem:[#allocation311_spill] sm:$0xff] }
 0x3b8   :  { %v11474_v23 = vpop.f32.mrf.mxu0  ;;  %v11540_v37 = vpop.f32.mrf.mxu1  ;;  %20543 = vst [vmem:[#allocation11_spill] sm:$0xff] %v15709_v46  ;;  %v15733_v53 = vadd.f32 %v20552_v17, %v3843_v28  ;;  %v15736_v21 = vadd.f32 %v20553_v4, %v3557_v41  ;;  %v4322_v44 = vadd.f32 %v15645_v26, %v20554_v60  ;;  %v20557_v41 = vld [vmem:[#allocation309_spill] sm:$0xff]  ;;  %v20569_v60 = vld [vmem:[#allocation302_spill] sm:$0xff] }
 0x3b9   :  { %v4334_v8 = vadd.f32 %v11474_v23, %v20550_v0  ;;  %v4860_v23 = vmul.f32 %v15711_v45, %v4543_v2  ;;  %v4863_v20 = vmul.f32 %v15620_v40, %v4561_v25  ;;  %v4555_v32 = vadd.f32 %v20557_v41, %v4292_v52  ;;  %v20560_v2 = vld [vmem:[#allocation314_spill] sm:$0xff]  ;;  %v20561_v52 = vld [vmem:[#allocation296_spill] sm:$0xff] }
 0x3ba   :  { %v4327_v1 = vpop.f32.mrf.mxu0  ;;  %v4614_v47 = vpop.f32.mrf.mxu1  ;;  %v4573_v49 = vadd.f32 %v20558_v48, %v4310_v24 }
 0x3bb   :  { %v4328_v15 = vadd.f32 %v4327_v1, %v4007_v50  ;;  %v4597_v50 = vadd.f32 %v15611_v58, %v4334_v8 }
 0x3bc   :  { %v11477_v59 = vpop.f32.mrf.mxu0  ;;  %v11543_v6 = vpop.f32.mrf.mxu1 }
 0x3bd   :  { %v4346_v9 = vadd.f32 %v11477_v59, %v20539_v57  ;;  %v20548_v59 = vld [vmem:[#allocation44_spill] sm:$0xff]  ;;  %v15744_v57 = vand.u32 4294901760, %v15709_v46  ;;  %v4591_v25 = vadd.f32 %v15631_v22, %v4328_v15 }
 0x3be   :  { %v4339_v54 = vpop.f32.mrf.mxu0  ;;  %v4626_v39 = vpop.f32.mrf.mxu1  ;;  %v15728_v13 = vadd.f32 %v20549_v38, %v20548_v59 }
 0x3bf   :  { %v4340_v55 = vadd.f32 %v4339_v54, %v4023_v36  ;;  %v4609_v36 = vadd.f32 %v15647_v18, %v4346_v9  ;;  %20556 = vst [vmem:[#allocation46_spill] sm:$0xff] %v15744_v57  ;;  %v20559_v9 = vld [vmem:[#allocation293_spill] sm:$0xff] }
 0x3c0   :  { %v11480_v31 = vpop.f32.mrf.mxu0  ;;  %v15724_v33 = vpop.f32.mrf.mxu1 }
 0x3c1   :  { %20547 = vst [vmem:[#allocation18_spill] sm:$0xff] %v15724_v33  ;;  %v4358_v11 = vadd.f32 %v11480_v31, %v20551_v27  ;;  %v4603_v26 = vadd.f32 %v15659_v62, %v4340_v55  ;;  %v4871_v38 = vmul.f32 %v20561_v52, %v4609_v36  ;;  %v20564_v55 = vld [vmem:[#allocation298_spill] sm:$0xff]  ;;  %v20571_v36 = vld [vmem:[#allocation29_spill] sm:$0xff] }
 0x3c2   :  { %v4351_v29 = vpop.f32.mrf.mxu0  ;;  %v15741_v5 = vpop.f32.mrf.mxu1 }
 0x3c3   :  { %20555 = vst [vmem:[#allocation20_spill] sm:$0xff] %v15741_v5  ;;  %v4621_v54 = vadd.f32 %v11540_v37, %v4358_v11  ;;  %v4352_v28 = vadd.f32 %v4351_v29, %v4039_v16  ;;  %v4585_v37 = vadd.f32 %v20560_v2, %v4322_v44  ;;  %v4316_v16 = vadd.f32 %v15657_v34, %v3991_v3  ;;  %v20567_v3 = vld [vmem:[#allocation304_spill] sm:$0xff]  ;;  %v20572_v29 = vld [vmem:[#allocation313_spill] sm:$0xff] }
 0x3c4   :  { %v11483_v1 = vpop.f32.mrf.mxu0  ;;  %v15751_v18 = vpop.f32.mrf.mxu1  ;;  %v15764_v11 = vmax.f32 %v4860_v23, 0.0  ;;  %v4870_v22 = vmul.f32 %v20567_v3, %v4603_v26  ;;  %v4869_v44 = vmul.f32 %v20569_v60, %v4597_v50  ;;  %v4865_v23 = vmul.f32 %v20572_v29, %v4573_v49  ;;  %v20581_v49 = vld [vmem:[#allocation33_spill] sm:$0xff] }
 0x3c5   :  { %v4873_v43 = vmul.f32 %v20559_v9, %v4621_v54  ;;  %v4615_v31 = vadd.f32 %v4614_v47, %v4352_v28  ;;  %v4370_v59 = vadd.f32 %v11483_v1, %v4063_v19  ;;  %v4862_v47 = vmul.f32 %v15675_v10, %v4555_v32  ;;  %v20566_v19 = vld [vmem:[#allocation318_spill] sm:$0xff]  ;;  %v20573_v54 = vld [vmem:[#allocation307_spill] sm:$0xff]  ;;  %v15789_v26 = vpop.permute.xlu0 %4826  ;;  %v20578_v1 = vld [vmem:[#allocation316_spill] sm:$0xff] }
 0x3c6   :  { %v4363_v24 = vpop.f32.mrf.mxu0  ;;  %v15759_v0 = vpop.f32.mrf.mxu1  ;;  %20565 = vst [vmem:[#allocation13_spill] sm:$0xff] %v15764_v11  ;;  %v4304_v34 = vadd.f32 %v20566_v19, %v15678_v61  ;;  %v4867_v28 = vmul.f32 %v20573_v54, %v4585_v37  ;;  %v15780_v41 = vmax.f32 %v4871_v38, 0.0  ;;  %20577 = vst [vmem:[#allocation21_spill] sm:$0xff] %v15789_v26  ;;  %v4579_v50 = vadd.f32 %v20578_v1, %v4316_v16 }
 0x3c7   :  { %20562 = vst [vmem:[#allocation53_spill] sm:$0xff] %v15759_v0  ;;  %v15761_v62 = vmax.f32 %v4873_v43, 0.0  ;;  %v4872_v27 = vmul.f32 %v20564_v55, %v4615_v31  ;;  %v4633_v58 = vadd.f32 %v11543_v6, %v4370_v59  ;;  %v4364_v8 = vadd.f32 %v4363_v24, %v4055_v35  ;;  %v20579_v43 = vld [vmem:[#allocation310_spill] sm:$0xff] }
 0x3c8   :  { %v15770_v17 = vpop.f32.mrf.mxu0  ;;  %v15772_v4 = vpop.f32.mrf.mxu1  ;;  %20574 = vst [vmem:[#allocation19_spill] sm:$0xff] %v15780_v41  ;;  %v4868_v31 = vmul.f32 %v20579_v43, %v4591_v25  ;;  %v15798_v2 = vsub.f32 %v15709_v46, %v15744_v57  ;;  %v15800_v37 = vmax.f32 %v4863_v20, 0.0  ;;  %v15802_v38 = vmax.f32 %v4870_v22, 0.0 }
 0x3c9   :  { %20563 = vst [vmem:[#allocation8_spill] sm:$0xff] %v15761_v62  ;;  %20568 = vst [vmem:[#allocation15_spill] sm:$0xff] %v15772_v4  ;;  %v15775_v15 = vmax.f32 %v4872_v27, 0.0  ;;  %v4875_v6 = vmul.f32 %v20571_v36, %v4633_v58  ;;  %v4627_v35 = vadd.f32 %v4626_v39, %v4364_v8  ;;  %v15787_v48 = vand.u32 4294901760, %v15761_v62  ;;  %v20587_v58 = vld [vmem:[#allocation312_spill] sm:$0xff]  ;;  %v15864_v43 = vpop.permute.xlu0 %4822 }
 0x3ca   :  { %v15782_v61 = vpop.f32.mrf.mxu0  ;;  %v15784_v32 = vpop.f32.mrf.mxu1  ;;  %20582 = vst [vmem:[#allocation27_spill] sm:$0xff] %v15798_v2  ;;  %20583 = vst [vmem:[#allocation24_spill] sm:$0xff] %v15800_v37  ;;  %v15812_v25 = vand.u32 4294901760, %v15764_v11  ;;  %v4567_v8 = vadd.f32 %v20587_v58, %v4304_v34  ;;  %v15815_v19 = vmax.f32 %v4869_v44, 0.0  ;;  %v15819_v20 = vmax.f32 %v4862_v47, 0.0 }
 0x3cb   :  { %20570 = vst [vmem:[#allocation17_spill] sm:$0xff] %v15775_v15  ;;  %20575 = vst [vmem:[#allocation14_spill] sm:$0xff] %v15784_v32  ;;  %v15793_v39 = vmax.f32 %v4875_v6, 0.0  ;;  %v4874_v59 = vmul.f32 %v20581_v49, %v4627_v35  ;;  %v15809_v16 = vand.u32 4294901760, %v15775_v15  ;;  %v15829_v49 = vand.u32 4294901760, %v15780_v41  ;;  %v15837_v44 = vpop.permute.xlu1 %4824 }
 0x3cc   :  { %20576 = vst [vmem:[#allocation16_spill] sm:$0xff] %v15787_v48  ;;  %20584 = vst [vmem:[#allocation294_spill] sm:$0xff] %v15802_v38  ;;  %v15804_v24 = vpop.f32.mrf.mxu0  ;;  %v15806_v27 = vpop.f32.mrf.mxu1  ;;  %v15833_v36 = vsub.f32 %v15761_v62, %v15787_v48  ;;  %v15835_v34 = vmax.f32 %v4865_v23, 0.0  ;;  %v15839_v47 = vmax.f32 %v4867_v28, 0.0  ;;  %v15842_v55 = vmax.f32 %v4868_v31, 0.0 }
 0x3cd   :  { %20580 = vst [vmem:[#allocation25_spill] sm:$0xff] %v15793_v39  ;;  %20585 = vst [vmem:[#allocation9_spill] sm:$0xff] %v15809_v16  ;;  %v15817_v6 = vmax.f32 %v4874_v59, 0.0  ;;  %v15826_v1 = vand.u32 4294901760, %v15793_v39  ;;  %v20598_v59 = vld [vmem:[#allocation315_spill] sm:$0xff]  ;;  %v15857_v28 = vand.u32 4294901760, %v15802_v38  ;;  %v4864_v31 = vmul.f32 %v15638_v63, %v4567_v8 }
 0x3ce   :  { %20586 = vst [vmem:[#allocation44_spill] sm:$0xff] %v15812_v25  ;;  %20588 = vst [vmem:[#allocation306_spill] sm:$0xff] %v15815_v19  ;;  %v15821_v22 = vpop.f32.mrf.mxu0  ;;  %v15823_v35 = vpop.f32.mrf.mxu1  ;;  %v4866_v58 = vmul.f32 %v20598_v59, %v4579_v50  ;;  %v15861_v50 = vsub.f32 %v15775_v15, %v15809_v16  ;;  %v20605_v60 = vmov 0.0   ;;  %v15868_v59 = vand.u32 4294901760, %v15815_v19 }
 0x3cf   :  { %20589 = vst [vmem:[#allocation12_spill] sm:$0xff] %v15817_v6  ;;  %20590 = vst [vmem:[#allocation23_spill] sm:$0xff] %v15819_v20  ;;  %4926 = vmatpush1.msra.mxu0 %v15826_v1  ;;  %v15850_v52 = vand.u32 4294901760, %v15817_v6  ;;  %v15854_v23 = vsub.f32 %v15793_v39, %v15826_v1  ;;  %v15871_v54 = vand.u32 4294901760, %v15800_v37  ;;  %v15887_v51 = vsub.f32 %v15780_v41, %v15829_v49  ;;  %v15917_v5 = vpop.permute.xlu1 %4820 }
 0x3d0   :  { %20591 = vst [vmem:[#allocation297_spill] sm:$0xff] %v15823_v35  ;;  %20592 = vst [vmem:[#allocation308_spill] sm:$0xff] %v15826_v1  ;;  %v15845_v9 = vpop.f32.mrf.mxu0  ;;  %v15847_v3 = vpop.f32.mrf.mxu1  ;;  %4927 = vmatprep.subr.mxu0 %v20605_v60  ;;  %v15889_v39 = vmax.f32 %v4866_v58, 0.0  ;;  %v15893_v29 = vand.u32 4294901760, %v15842_v55  ;;  %v15896_v62 = vand.u32 4294901760, %v15839_v47  ;;  %v15899_v8 = vand.u32 4294901760, %v15835_v34 }
 0x3d1   :  { %20593 = vst [vmem:[#allocation10_spill] sm:$0xff] %v15829_v49  ;;  %20594 = vst [vmem:[#allocation309_spill] sm:$0xff] %v15833_v36  ;;  %4929 = vmatpush1.msra.mxu0 %v15850_v52  ;;  %v15882_v63 = vsub.f32 %v15817_v6, %v15850_v52  ;;  %v20611_v58 = vand.u32 4294901760, %v15854_v23  ;;  %v15915_v1 = vmax.f32 %v4864_v31, 0.0  ;;  %v15929_v46 = vsub.f32 %v15800_v37, %v15871_v54  ;;  %v15945_v37 = vpop.permute.xlu0 %4818 }
 0x3d2   :  { %20595 = vst [vmem:[#allocation311_spill] sm:$0xff] %v15835_v34  ;;  %20596 = vst [vmem:[#allocation314_spill] sm:$0xff] %v15837_v44  ;;  %v15875_v10 = vpop.f32.mrf.mxu0  ;;  %v15877_v40 = vpop.f32.mrf.mxu1  ;;  %4930 = vmatprep.subr.mxu0 %v20605_v60  ;;  %v20618_v33 = vand.u32 4294901760, %v15833_v36  ;;  %v15943_v32 = vsub.f32 %v15764_v11, %v15812_v25  ;;  %v20625_v4 = vand.u32 4294901760, %v15887_v51 }
 0x3d3   :  { %20597 = vst [vmem:[#allocation318_spill] sm:$0xff] %v15839_v47  ;;  %20599 = vst [vmem:[#allocation316_spill] sm:$0xff] %v15842_v55  ;;  %4932 = vmatpush1.msra.mxu0 %v15787_v48  ;;  %v5505_v15 = vsub.f32 %v15854_v23, %v20611_v58  ;;  %v15922_v48 = vsub.f32 %v15815_v19, %v15868_v59  ;;  %v15925_v58 = vand.u32 4294901760, %v15819_v20  ;;  %v15998_v57 = vpop.permute.xlu1 %4816 }
 0x3d4   :  { %20600 = vst [vmem:[#allocation312_spill] sm:$0xff] %v15850_v52  ;;  %20601 = vst [vmem:[#allocation320_spill] sm:$0xff] %v15854_v23  ;;  %v15902_v45 = vpop.f32.mrf.mxu0  ;;  %v15904_v6 = vpop.f32.mrf.mxu1  ;;  %v15913_v52 = vsub.f32 %v15802_v38, %v15857_v28  ;;  %4933 = vmatprep.subr.mxu0 %v20605_v60  ;;  %v20617_v38 = vand.u32 4294901760, %v15882_v63  ;;  %v5519_v19 = vsub.f32 %v15833_v36, %v20618_v33  ;;  %v20622_v36 = vand.u32 4294901760, %v15861_v50 }
 0x3d5   :  { %20602 = vst [vmem:[#allocation321_spill] sm:$0xff] %v15857_v28  ;;  %20603 = vst [vmem:[#allocation322_spill] sm:$0xff] %v15861_v50  ;;  %4935 = vmatpush1.msra.mxu0 %v15809_v16  ;;  %v5506_v31 = vand.u32 4294901760, %v5505_v15  ;;  %v15949_v15 = vand.u32 4294901760, %v15889_v39  ;;  %v15957_v33 = vsub.f32 %v15835_v34, %v15899_v8  ;;  %v20623_v34 = vld [vmem:[#allocation300_spill] sm:$0xff] }
 0x3d6   :  { %20604 = vst [vmem:[#allocation323_spill] sm:$0xff] %v15864_v43  ;;  %20606 = vst [vmem:[#allocation324_spill] sm:$0xff] %v15868_v59  ;;  %v15932_v41 = vpop.f32.mrf.mxu0  ;;  %v5512_v23 = vsub.f32 %v15882_v63, %v20617_v38  ;;  %4936 = vmatprep.subr.mxu0 %v20605_v60  ;;  %v15953_v38 = vsub.f32 %v15839_v47, %v15896_v62  ;;  %v15959_v0 = vpop.f32.mrf.mxu1  ;;  %v15970_v47 = vsub.f32 %v15842_v55, %v15893_v29 }
 0x3d7   :  { %20607 = vst [vmem:[#allocation325_spill] sm:$0xff] %v15882_v63  ;;  %20608 = vst [vmem:[#allocation326_spill] sm:$0xff] %v15887_v51  ;;  %4938 = vmatpush1.msra.mxu0 %v15829_v49  ;;  %5507 = vmatpush1.msra.mxu1 %v5506_v31  ;;  %v5526_v63 = vsub.f32 %v15861_v50, %v20622_v36  ;;  %v15976_v31 = vadd.f32 %v20623_v34, %v15728_v13  ;;  %v20624_v36 = vand.u32 4294901760, %v15798_v2 }
 0x3d8   :  { %20609 = vst [vmem:[#allocation327_spill] sm:$0xff] %v15889_v39  ;;  %20610 = vst [vmem:[#allocation328_spill] sm:$0xff] %v15896_v62  ;;  %v15962_v11 = vpop.f32.mrf.mxu0  ;;  %v5513_v16 = vand.u32 4294901760, %v5512_v23  ;;  %4939 = vmatprep.subr.mxu0 %v20605_v60  ;;  %5508 = vmatprep.subr.mxu1 %v20605_v60  ;;  %v15979_v23 = vand.u32 4294901760, %v15915_v1  ;;  %v5520_v50 = vand.u32 4294901760, %v5519_v19  ;;  %v5533_v13 = vsub.f32 %v15887_v51, %v20625_v4  ;;  %v16018_v19 = vpop.permute.xlu0 %4814 }
 0x3d9   :  { %20612 = vst [vmem:[#allocation329_spill] sm:$0xff] %v15913_v52  ;;  %20613 = vst [vmem:[#allocation330_spill] sm:$0xff] %v15915_v1  ;;  %v15985_v25 = vsub.f32 %v15798_v2, %v20624_v36  ;;  %4941 = vmatpush1.msra.mxu0 %v15857_v28  ;;  %v15996_v49 = vsub.f32 %v15819_v20, %v15925_v58  ;;  %v16009_v4 = vsub.f32 %v15889_v39, %v15949_v15  ;;  %v11564_v20 = vpop.f32.mrf.mxu1  ;;  %v20630_v39 = vld [vmem:[#allocation31_spill] sm:$0xff] }
 0x3da   :  { %20614 = vst [vmem:[#allocation331_spill] sm:$0xff] %v15917_v5  ;;  %20615 = vst [vmem:[#allocation332_spill] sm:$0xff] %v15925_v58  ;;  %5514 = vmatpush1.msra.mxu1 %v5513_v16  ;;  %v15988_v55 = vpop.f32.mrf.mxu0  ;;  %4942 = vmatprep.subr.mxu0 %v20605_v60  ;;  %v20627_v16 = vld [vmem:[#allocation301_spill] sm:$0xff]  ;;  %v5527_v28 = vand.u32 4294901760, %v5526_v63  ;;  %v20628_v51 = vand.u32 4294901760, %v15913_v52  ;;  %v4394_v35 = vadd.f32 %v15804_v24, %v20630_v39  ;;  %v5534_v24 = vand.u32 4294901760, %v5533_v13 }
 0x3db   :  { %20616 = vst [vmem:[#allocation333_spill] sm:$0xff] %v15929_v46  ;;  %20619 = vst [vmem:[#allocation334_spill] sm:$0xff] %v15943_v32  ;;  %5515 = vmatprep.subr.mxu1 %v20605_v60  ;;  %v16004_v36 = vadd.f32 %v20627_v16, %v15736_v21  ;;  %4944 = vmatpush1.msra.mxu0 %v15868_v59  ;;  %v16026_v63 = vsub.f32 %v15915_v1, %v15979_v23  ;;  %v20632_v21 = vld [vmem:[#allocation303_spill] sm:$0xff]  ;;  %v20633_v59 = vand.u32 4294901760, %v15922_v48  ;;  %v20634_v32 = vld [vmem:[#allocation22_spill] sm:$0xff] }
 0x3dc   :  { %20620 = vst [vmem:[#allocation335_spill] sm:$0xff] %v15945_v37  ;;  %20621 = vst [vmem:[#allocation336_spill] sm:$0xff] %v15957_v33  ;;  %5521 = vmatpush1.msra.mxu1 %v5520_v50  ;;  %v11501_v2 = vpop.f32.mrf.mxu0  ;;  %v5540_v44 = vsub.f32 %v15913_v52, %v20628_v51  ;;  %4945 = vmatprep.subr.mxu0 %v20605_v60  ;;  %v20631_v50 = vand.u32 4294901760, %v15929_v46  ;;  %v16042_v58 = vadd.f32 %v15770_v17, %v20634_v32  ;;  %v4710_v32 = vpop.f32.mrf.mxu1 }
 0x3dd   :  { %20626 = vst [vmem:[#allocation300_spill] sm:$0xff] %v15998_v57  ;;  %20629 = vst [vmem:[#allocation301_spill] sm:$0xff] %v16018_v19  ;;  %5522 = vmatprep.subr.mxu1 %v20605_v60  ;;  %v4442_v34 = vadd.f32 %v11501_v2, %v20632_v21  ;;  %4947 = vmatpush1.msra.mxu0 %v15893_v29  ;;  %v5547_v52 = vsub.f32 %v15922_v48, %v20633_v59  ;;  %v20635_v2 = vand.u32 4294901760, %v15953_v38 }
 0x3de   :  { %v16031_v51 = vsub.f32 %v15929_v46, %v20631_v50  ;;  %5528 = vmatpush1.msra.mxu1 %v5527_v28  ;;  %v4435_v39 = vpop.f32.mrf.mxu0  ;;  %4948 = vmatprep.subr.mxu0 %v20605_v60  ;;  %v20636_v21 = vand.u32 4294901760, %v15957_v33  ;;  %v16059_v17 = vadd.f32 %v15782_v61, %v15697_v56  ;;  %v20637_v1 = vand.u32 4294901760, %v15970_v47  ;;  %v20638_v56 = vld [vmem:[#allocation305_spill] sm:$0xff] }
 0x3df   :  { %5529 = vmatprep.subr.mxu1 %v20605_v60  ;;  %v16049_v28 = vsub.f32 %v15953_v38, %v20635_v2  ;;  %v4436_v50 = vadd.f32 %v4435_v39, %v15718_v7  ;;  %4950 = vmatpush1.msra.mxu0 %v15896_v62  ;;  %v5541_v2 = vand.u32 4294901760, %v5540_v44  ;;  %v16067_v46 = vadd.f32 %v15751_v18, %v4394_v35  ;;  %v16077_v44 = vpop.permute.xlu1 %4812  ;;  %v20640_v39 = vld [vmem:[#allocation295_spill] sm:$0xff] }
 0x3e0   :  { %v16055_v59 = vsub.f32 %v15957_v33, %v20636_v21  ;;  %5535 = vmatpush1.msra.mxu1 %v5534_v24  ;;  %v11504_v16 = vpop.f32.mrf.mxu0  ;;  %v5554_v13 = vsub.f32 %v15970_v47, %v20637_v1  ;;  %v16071_v21 = vadd.f32 %v15821_v22, %v15701_v30  ;;  %4951 = vmatprep.subr.mxu0 %v20605_v60  ;;  %v20641_v24 = vld [vmem:[#allocation299_spill] sm:$0xff]  ;;  %v5548_v22 = vand.u32 4294901760, %v5547_v52 }
 0x3e1   :  { %v4454_v61 = vadd.f32 %v11504_v16, %v20638_v56  ;;  %5536 = vmatprep.subr.mxu1 %v20605_v60  ;;  %20639 = vst [vmem:[#allocation31_spill] sm:$0xff] %v16077_v44  ;;  %v4418_v1 = vadd.f32 %v15902_v45, %v20640_v39  ;;  %v4430_v18 = vadd.f32 %v15962_v11, %v20641_v24  ;;  %v16085_v16 = vpop.permute.xlu0 %4810  ;;  %v5590_v45 = vand.u32 4294901760, %v16031_v51  ;;  %v20647_v24 = vld [vmem:[#allocation68_spill] sm:$0xff] }
 0x3e2   :  { %v4705_v35 = vadd.f32 %v15904_v6, %v4442_v34  ;;  %4953 = vmatpush1.msra.mxu0 %v15949_v15  ;;  %5542 = vmatpush1.msra.mxu1 %v5541_v2  ;;  %v4447_v30 = vpop.f32.mrf.mxu0  ;;  %20642 = vst [vmem:[#allocation303_spill] sm:$0xff] %v16085_v16  ;;  %v4412_v56 = vadd.f32 %v15932_v41, %v15707_v14  ;;  %v11567_v6 = vpop.f32.mrf.mxu1  ;;  %v5555_v14 = vand.u32 4294901760, %v5554_v13  ;;  %v20643_v41 = vand.u32 4294901760, %v16009_v4 }
 0x3e3   :  { %v4717_v7 = vadd.f32 %v11564_v20, %v4454_v61  ;;  %v4448_v62 = vadd.f32 %v4447_v30, %v15733_v53  ;;  %4954 = vmatprep.subr.mxu0 %v20605_v60  ;;  %5543 = vmatprep.subr.mxu1 %v20605_v60  ;;  %v4424_v11 = vadd.f32 %v15988_v55, %v15715_v12  ;;  %v5576_v12 = vand.u32 4294901760, %v16055_v59 }
 0x3e4   :  { %v4699_v52 = vadd.f32 %v15959_v0, %v4436_v50  ;;  %4956 = vmatpush1.msra.mxu0 %v15899_v8  ;;  %5549 = vmatpush1.msra.mxu1 %v5548_v22  ;;  %v11507_v34 = vpop.f32.mrf.mxu0  ;;  %v5568_v53 = vsub.f32 %v16009_v4, %v20643_v41  ;;  %v4693_v0 = vadd.f32 %v15847_v3, %v4430_v18  ;;  %v5562_v50 = vand.u32 4294901760, %v16049_v28  ;;  %v16118_v3 = vpop.permute.xlu1 %4808  ;;  %v20651_v41 = vld [vmem:[#allocation332_spill] sm:$0xff] }
 0x3e5   :  { %v4889_v20 = vmul.f32 %v15864_v43, %v4717_v7  ;;  %v4711_v2 = vadd.f32 %v4710_v32, %v4448_v62  ;;  %v4466_v61 = vadd.f32 %v11507_v34, %v15976_v31  ;;  %4957 = vmatprep.subr.mxu0 %v20605_v60  ;;  %5550 = vmatprep.subr.mxu1 %v20605_v60  ;;  %v20644_v62 = vand.u32 4294901760, %v16026_v63  ;;  %v4722_v30 = vpop.f32.mrf.mxu1 }
 0x3e6   :  { %v4887_v55 = vmul.f32 %v15945_v37, %v4705_v35  ;;  %4959 = vmatpush1.msra.mxu0 %v15979_v23  ;;  %5556 = vmatpush1.msra.mxu1 %v5555_v14  ;;  %v4459_v13 = vpop.f32.mrf.mxu0  ;;  %20646 = vst [vmem:[#allocation305_spill] sm:$0xff] %v16118_v3  ;;  %v4406_v28 = vadd.f32 %v15845_v9, %v20647_v24  ;;  %v5569_v22 = vand.u32 4294901760, %v5568_v53 }
 0x3e7   :  { %v5582_v31 = vsub.f32 %v16026_v63, %v20644_v62  ;;  %v16112_v32 = vmax.f32 %v4889_v20, 0.0  ;;  %v4888_v7 = vmul.f32 %v15917_v5, %v4711_v2  ;;  %v4729_v39 = vadd.f32 %v11567_v6, %v4466_v61  ;;  %4960 = vmatprep.subr.mxu0 %v20605_v60  ;;  %5557 = vmatprep.subr.mxu1 %v20605_v60  ;;  %v20654_v2 = vld [vmem:[#allocation314_spill] sm:$0xff]  ;;  %v20658_v62 = vld [vmem:[#allocation15_spill] sm:$0xff] }
 0x3e8   :  { %v4460_v59 = vadd.f32 %v4459_v13, %v16004_v36  ;;  %v4687_v18 = vadd.f32 %v15877_v40, %v4424_v11  ;;  %v4886_v35 = vmul.f32 %v15998_v57, %v4699_v52  ;;  %4962 = vmatpush1.msra.mxu0 %v15871_v54  ;;  %5563 = vmatpush1.msra.mxu1 %v5562_v50  ;;  %v16132_v40 = vpop.permute.xlu0 %4806  ;;  %v16136_v52 = vmax.f32 %v4887_v55, 0.0  ;;  %v20656_v55 = vld [vmem:[#allocation46_spill] sm:$0xff] }
 0x3e9   :  { %20645 = vst [vmem:[#allocation22_spill] sm:$0xff] %v16112_v32  ;;  %v4400_v36 = vadd.f32 %v15875_v10, %v15704_v42  ;;  %v16127_v6 = vmax.f32 %v4888_v7, 0.0  ;;  %v4891_v34 = vmul.f32 %v15789_v26, %v4729_v39  ;;  %4963 = vmatprep.subr.mxu0 %v20605_v60  ;;  %5564 = vmatprep.subr.mxu1 %v20605_v60  ;;  %20649 = vst [vmem:[#allocation299_spill] sm:$0xff] %v16132_v40  ;;  %v20652_v42 = vld [vmem:[#allocation297_spill] sm:$0xff]  ;;  %v20659_v39 = vld [vmem:[#allocation14_spill] sm:$0xff] }
 0x3ea   :  { %v4723_v14 = vadd.f32 %v4722_v30, %v4460_v59  ;;  %v4681_v9 = vadd.f32 %v15806_v27, %v4418_v1  ;;  %v4885_v11 = vmul.f32 %v16018_v19, %v4693_v0  ;;  %20650 = vst [vmem:[#allocation68_spill] sm:$0xff] %v16136_v52  ;;  %4965 = vmatpush1.msra.mxu0 %v20651_v41  ;;  %v16140_v10 = vand.u32 4294901760, %v16112_v32  ;;  %v20663_v30 = vld [vmem:[#allocation44_spill] sm:$0xff] }
 0x3eb   :  { %20648 = vst [vmem:[#allocation295_spill] sm:$0xff] %v16127_v6  ;;  %5570 = vmatpush1.msra.mxu1 %v5569_v22  ;;  %v4675_v53 = vadd.f32 %v20652_v42, %v4412_v56  ;;  %v16143_v20 = vmax.f32 %v4891_v34, 0.0  ;;  %4966 = vmatprep.subr.mxu0 %v20605_v60  ;;  %v5583_v27 = vand.u32 4294901760, %v5582_v31  ;;  %v4884_v1 = vmul.f32 %v16077_v44, %v4687_v18 }
 0x3ec   :  { %v4890_v61 = vmul.f32 %v20654_v2, %v4723_v14  ;;  %5571 = vmatprep.subr.mxu1 %v20605_v60  ;;  %v16149_v0 = vmax.f32 %v4886_v35, 0.0  ;;  %4968 = vmatpush1.msra.mxu0 %v20656_v55  ;;  %v20657_v13 = vand.u32 4294901760, %v15996_v49  ;;  %v16156_v50 = vand.u32 4294901760, %v16127_v6  ;;  %v20664_v14 = vld [vmem:[#allocation334_spill] sm:$0xff] }
 0x3ed   :  { %20653 = vst [vmem:[#allocation332_spill] sm:$0xff] %v16143_v20  ;;  %5577 = vmatpush1.msra.mxu1 %v5576_v12  ;;  %v4669_v7 = vadd.f32 %v20658_v62, %v4406_v28  ;;  %v4663_v59 = vadd.f32 %v20659_v39, %v4400_v36  ;;  %4969 = vmatprep.subr.mxu0 %v20605_v60  ;;  %v16165_v31 = vand.u32 4294901760, %v16143_v20  ;;  %v16167_v12 = vpop.permute.xlu1 %4804  ;;  %v16170_v35 = vmax.f32 %v4885_v11, 0.0 }
 0x3ee   :  { %20655 = vst [vmem:[#allocation297_spill] sm:$0xff] %v16149_v0  ;;  %v5596_v56 = vsub.f32 %v15996_v49, %v20657_v13  ;;  %v16160_v24 = vmax.f32 %v4890_v61, 0.0  ;;  %5578 = vmatprep.subr.mxu1 %v20605_v60  ;;  %20661 = vst [vmem:[#allocation15_spill] sm:$0xff] %v16167_v12  ;;  %v4883_v18 = vmul.f32 %v16085_v16, %v4681_v9  ;;  %4971 = vmatpush1.msra.mxu0 %v20663_v30  ;;  %v16193_v61 = vpop.permute.xlu0 %4802 }
 0x3ef   :  { %20662 = vst [vmem:[#allocation14_spill] sm:$0xff] %v16170_v35  ;;  %5584 = vmatpush1.msra.mxu1 %v5583_v27  ;;  %v16174_v28 = vand.u32 4294901760, %v16136_v52  ;;  %v16178_v22 = vsub.f32 %v16112_v32, %v16140_v10  ;;  %v4882_v36 = vmul.f32 %v16118_v3, %v4675_v53  ;;  %4972 = vmatprep.subr.mxu0 %v20605_v60  ;;  %v20665_v9 = vand.u32 4294901760, %v20664_v14 }
 0x3f0   :  { %20660 = vst [vmem:[#allocation46_spill] sm:$0xff] %v16160_v24  ;;  %5585 = vmatprep.subr.mxu1 %v20605_v60  ;;  %v16184_v34 = vand.u32 4294901760, %v16160_v24  ;;  %v16191_v42 = vsub.f32 %v16143_v20, %v16165_v31  ;;  %20666 = vst [vmem:[#allocation44_spill] sm:$0xff] %v16193_v61  ;;  %v16195_v27 = vmax.f32 %v4884_v1, 0.0  ;;  %4974 = vmatpush2.msra.mxu0 %v16165_v31  ;;  %v5597_v53 = vand.u32 4294901760, %v5596_v56 }
 0x3f1   :  { %v5610_v11 = vsub.f32 %v20664_v14, %v20665_v9  ;;  %5591 = vmatpush1.msra.mxu1 %v5590_v45  ;;  %v16201_v13 = vand.u32 4294901760, %v16149_v0  ;;  %v16205_v62 = vsub.f32 %v16127_v6, %v16156_v50  ;;  %v4879_v39 = vmul.f32 %v16193_v61, %v16067_v46  ;;  %4975 = vmatprep.subr.mxu0 %v20605_v60  ;;  %v16237_v5 = vpop.permute.xlu1 %4800 }
 0x3f2   :  { %20667 = vst [vmem:[#allocation334_spill] sm:$0xff] %v16195_v27  ;;  %v4881_v9 = vmul.f32 %v16132_v40, %v4669_v7  ;;  %5592 = vmatprep.subr.mxu1 %v20605_v60  ;;  %v16215_v45 = vsub.f32 %v16160_v24, %v16184_v34  ;;  %v16217_v1 = vmax.f32 %v4883_v18, 0.0  ;;  %4977 = vmatpush2.msra.mxu0 %v16184_v34  ;;  %v16221_v56 = vand.u32 4294901760, %v16170_v35 }
 0x3f3   :  { %5598 = vmatpush1.msra.mxu1 %v5597_v53  ;;  %v16226_v7 = vsub.f32 %v16136_v52, %v16174_v28  ;;  %v4880_v51 = vmul.f32 %v16167_v12, %v4663_v59  ;;  %v16229_v2 = vmax.f32 %v4882_v36, 0.0  ;;  %4978 = vmatprep.subr.mxu0 %v20605_v60  ;;  %v20670_v18 = vand.u32 4294901760, %v16191_v42  ;;  %20671 = vst [vmem:[#allocation339_spill] sm:$0xff] %v16237_v5 }
 0x3f4   :  { %20668 = vst [vmem:[#allocation337_spill] sm:$0xff] %v16217_v1  ;;  %5599 = vmatprep.subr.mxu1 %v20605_v60  ;;  %4980 = vmatpush2.msra.mxu0 %v16140_v10  ;;  %v20672_v46 = vand.u32 4294901760, %v15985_v25  ;;  %v5611_v59 = vand.u32 4294901760, %v5610_v11  ;;  %v16243_v36 = vand.u32 4294901760, %v16195_v27  ;;  %v16248_v57 = vsub.f32 %v16149_v0, %v16201_v13 }
 0x3f5   :  { %20669 = vst [vmem:[#allocation338_spill] sm:$0xff] %v16229_v2  ;;  %v5617_v53 = vsub.f32 %v16191_v42, %v20670_v18  ;;  %v20673_v18 = vld [vmem:[#allocation53_spill] sm:$0xff]  ;;  %v16252_v37 = vmax.f32 %v4881_v9, 0.0  ;;  %4981 = vmatprep.subr.mxu0 %v20605_v60  ;;  %v20675_v11 = vand.u32 4294901760, %v16215_v45  ;;  %v20676_v43 = vand.u32 4294901760, %v16178_v22  ;;  %v16301_v40 = vpop.permute.xlu1 %4796 }
 0x3f6   :  { %5605 = vmatpush1.msra.mxu1 %v20672_v46  ;;  %v4651_v26 = vadd.f32 %v20673_v18, %v16071_v21  ;;  %4983 = vmatpush2.msra.mxu0 %v16156_v50  ;;  %v16264_v21 = vand.u32 4294901760, %v16217_v1  ;;  %v16269_v18 = vsub.f32 %v16170_v35, %v16221_v56  ;;  %v20680_v9 = vand.u32 4294901760, %v16205_v62  ;;  %20684 = vst [vmem:[#allocation342_spill] sm:$0xff] %v16301_v40 }
 0x3f7   :  { %20674 = vst [vmem:[#allocation53_spill] sm:$0xff] %v16252_v37  ;;  %5606 = vmatprep.subr.mxu1 %v20605_v60  ;;  %v5618_v25 = vand.u32 4294901760, %v5617_v53  ;;  %v5624_v46 = vsub.f32 %v16215_v45, %v20675_v11  ;;  %v5631_v44 = vsub.f32 %v16178_v22, %v20676_v43  ;;  %v20677_v53 = vld [vmem:[#allocation18_spill] sm:$0xff]  ;;  %v16273_v11 = vmax.f32 %v4880_v51, 0.0  ;;  %4984 = vmatprep.subr.mxu0 %v20605_v60  ;;  %v16277_v43 = vpop.permute.xlu0 %4798 }
 0x3f8   :  { %5612 = vmatpush1.msra.mxu1 %v5611_v59  ;;  %v4645_v19 = vadd.f32 %v20677_v53, %v16042_v58  ;;  %20679 = vst [vmem:[#allocation340_spill] sm:$0xff] %v16277_v43  ;;  %4986 = vmatpush2.msra.mxu0 %v16174_v28  ;;  %v5638_v3 = vsub.f32 %v16205_v62, %v20680_v9  ;;  %v16284_v16 = vand.u32 4294901760, %v16229_v2  ;;  %v16291_v53 = vmax.f32 %v4879_v39, 0.0 }
 0x3f9   :  { %20678 = vst [vmem:[#allocation18_spill] sm:$0xff] %v16273_v11  ;;  %5613 = vmatprep.subr.mxu1 %v20605_v60  ;;  %v5625_v59 = vand.u32 4294901760, %v5624_v46  ;;  %v16289_v51 = vsub.f32 %v16195_v27, %v16243_v36  ;;  %v20682_v46 = vld [vmem:[#allocation20_spill] sm:$0xff]  ;;  %4987 = vmatprep.subr.mxu0 %v20605_v60  ;;  %v16299_v9 = vand.u32 4294901760, %v16252_v37  ;;  %v5632_v58 = vand.u32 4294901760, %v5631_v44 }
 0x3fa   :  { %5619 = vmatpush2.msra.mxu1 %v5618_v25  ;;  %20681 = vst [vmem:[#allocation341_spill] sm:$0xff] %v16291_v53  ;;  %v4639_v12 = vadd.f32 %v20682_v46, %v16059_v17  ;;  %v4878_v25 = vmul.f32 %v16237_v5, %v4651_v26  ;;  %4989 = vmatpush2.msra.mxu0 %v16201_v13  ;;  %v20685_v39 = vand.u32 4294901760, %v16226_v7  ;;  %v16316_v5 = vand.u32 4294901760, %v16273_v11 }
 0x3fb   :  { %5620 = vmatprep.subr.mxu1 %v20605_v60  ;;  %20683 = vst [vmem:[#allocation20_spill] sm:$0xff] %v16299_v9  ;;  %v16310_v26 = vsub.f32 %v16217_v1, %v16264_v21  ;;  %v4877_v46 = vmul.f32 %v16277_v43, %v4645_v19  ;;  %4990 = vmatprep.subr.mxu0 %v20605_v60  ;;  %v5639_v44 = vand.u32 4294901760, %v5638_v3  ;;  %v16333_v3 = vand.u32 4294901760, %v16291_v53 }
 0x3fc   :  { %5626 = vmatpush2.msra.mxu1 %v5625_v59  ;;  %v5645_v61 = vsub.f32 %v16226_v7, %v20685_v39  ;;  %20686 = vst [vmem:[#allocation343_spill] sm:$0xff] %v16316_v5  ;;  %4992 = vmatpush2.msra.mxu0 %v16221_v56  ;;  %v20687_v59 = vand.u32 4294901760, %v16248_v57  ;;  %v16325_v19 = vsub.f32 %v16229_v2, %v16284_v16  ;;  %v16328_v20 = vmax.f32 %v4878_v25, 0.0 }
 0x3fd   :  { %5627 = vmatprep.subr.mxu1 %v20605_v60  ;;  %v4876_v43 = vmul.f32 %v16301_v40, %v4639_v12  ;;  %4993 = vmatprep.subr.mxu0 %v20605_v60  ;;  %20689 = vst [vmem:[#allocation345_spill] sm:$0xff] %v16333_v3  ;;  %v16342_v12 = vsub.f32 %v16252_v37, %v16299_v9  ;;  %v16344_v25 = vmax.f32 %v4877_v46, 0.0  ;;  %v20704_v37 = vld [vmem:[#allocation70_spill] sm:$0xff] }
 0x3fe   :  { %5633 = vmatpush2.msra.mxu1 %v5632_v58  ;;  %v5652_v39 = vsub.f32 %v16248_v57, %v20687_v59  ;;  %20688 = vst [vmem:[#allocation344_spill] sm:$0xff] %v16328_v20  ;;  %4995 = vmatpush2.msra.mxu0 %v16243_v36  ;;  %v5646_v58 = vand.u32 4294901760, %v5645_v61  ;;  %v20690_v59 = vand.u32 4294901760, %v16269_v18  ;;  %v16355_v40 = vsub.f32 %v16273_v11, %v16316_v5  ;;  %v20708_v11 = vld [vmem:[#allocation77_spill] sm:$0xff] }
 0x3ff   :  { %5634 = vmatprep.subr.mxu1 %v20605_v60  ;;  %20691 = vst [vmem:[#allocation346_spill] sm:$0xff] %v16344_v25  ;;  %4996 = vmatprep.subr.mxu0 %v20605_v60  ;;  %v16357_v46 = vmax.f32 %v4876_v43, 0.0  ;;  %v16362_v32 = vand.u32 4294901760, %v16328_v20  ;;  %v16371_v43 = vsub.f32 %v16291_v53, %v16333_v3  ;;  %v16374_v6 = vand.u32 4294901760, %v16344_v25  ;;  %v20721_v53 = vld [vmem:[#allocation50_spill] sm:$0xff] }
 0x400   :  { %5640 = vmatpush2.msra.mxu1 %v5639_v44  ;;  %v5659_v17 = vsub.f32 %v16269_v18, %v20690_v59  ;;  %4998 = vmatpush2.msra.mxu0 %v16264_v21  ;;  %v5653_v61 = vand.u32 4294901760, %v5652_v39  ;;  %v20692_v44 = vand.u32 4294901760, %v16289_v51 }
 0x401   :  { %5641 = vmatprep.subr.mxu1 %v20605_v60  ;;  %20693 = vst [vmem:[#allocation347_spill] sm:$0xff] %v16357_v46  ;;  %4999 = vmatprep.subr.mxu0 %v20605_v60  ;;  %20694 = vst [vmem:[#allocation348_spill] sm:$0xff] %v16362_v32  ;;  %v16387_v52 = vsub.f32 %v16328_v20, %v16362_v32  ;;  %v16390_v0 = vand.u32 4294901760, %v16357_v46  ;;  %v16399_v35 = vsub.f32 %v16344_v25, %v16374_v6  ;;  %v20722_v20 = vld [vmem:[#allocation16_spill] sm:$0xff] }
 0x402   :  { %5647 = vmatpush2.msra.mxu1 %v5646_v58  ;;  %v5666_v59 = vsub.f32 %v16289_v51, %v20692_v44  ;;  %5001 = vmatpush2.msra.mxu0 %v16284_v16  ;;  %v5660_v39 = vand.u32 4294901760, %v5659_v17  ;;  %v20695_v58 = vand.u32 4294901760, %v16310_v26  ;;  %20696 = vst [vmem:[#allocation349_spill] sm:$0xff] %v16374_v6  ;;  %v20727_v25 = vld [vmem:[#allocation56_spill] sm:$0xff] }
 0x403   :  { %5648 = vmatprep.subr.mxu1 %v20605_v60  ;;  %5002 = vmatprep.subr.mxu0 %v20605_v60  ;;  %20698 = vst [vmem:[#allocation350_spill] sm:$0xff] %v16390_v0  ;;  %20700 = vst [vmem:[#allocation351_spill] sm:$0xff] %v16399_v35  ;;  %v16412_v24 = vsub.f32 %v16357_v46, %v16390_v0  ;;  %v20728_v46 = vld [vmem:[#allocation10_spill] sm:$0xff] }
 0x404   :  { %5654 = vmatpush2.msra.mxu1 %v5653_v61  ;;  %v5673_v44 = vsub.f32 %v16310_v26, %v20695_v58  ;;  %5004 = vmatpush2.msra.mxu0 %v16299_v9  ;;  %v5667_v17 = vand.u32 4294901760, %v5666_v59  ;;  %v20697_v61 = vand.u32 4294901760, %v16325_v19 }
 0x405   :  { %5655 = vmatprep.subr.mxu1 %v20605_v60  ;;  %5005 = vmatprep.subr.mxu0 %v20605_v60  ;;  %v19661_v2 = vand.u32 4294901760, %v16412_v24 }
 0x406   :  { %5661 = vmatpush2.msra.mxu1 %v5660_v39  ;;  %v5680_v58 = vsub.f32 %v16325_v19, %v20697_v61  ;;  %5007 = vmatpush2.msra.mxu0 %v16316_v5  ;;  %v5674_v59 = vand.u32 4294901760, %v5673_v44  ;;  %v20699_v39 = vand.u32 4294901760, %v16342_v12  ;;  %v20701_v44 = vand.u32 4294901760, %v16355_v40 }
 0x407   :  { %5662 = vmatprep.subr.mxu1 %v20605_v60  ;;  %5008 = vmatprep.subr.mxu0 %v20605_v60 }
 0x408   :  { %5668 = vmatpush2.msra.mxu1 %v5667_v17  ;;  %v5687_v61 = vsub.f32 %v16342_v12, %v20699_v39  ;;  %5010 = vmatpush2.msra.mxu0 %v16333_v3  ;;  %v5681_v27 = vand.u32 4294901760, %v5680_v58  ;;  %v5694_v17 = vsub.f32 %v16355_v40, %v20701_v44  ;;  %v20702_v58 = vand.u32 4294901760, %v16371_v43 }
 0x409   :  { %5669 = vmatprep.subr.mxu1 %v20605_v60  ;;  %5011 = vmatprep.subr.mxu0 %v20605_v60  ;;  %v19659_v44 = vand.u32 4294901760, %v16399_v35 }
 0x40a   :  { %5675 = vmatpush2.msra.mxu1 %v5674_v59  ;;  %5013 = vmatpush2.msra.mxu0 %v16362_v32  ;;  %v5688_v1 = vand.u32 4294901760, %v5687_v61  ;;  %v5701_v59 = vsub.f32 %v16371_v43, %v20702_v58  ;;  %v5695_v39 = vand.u32 4294901760, %v5694_v17  ;;  %v20705_v17 = vld [vmem:[#allocation320_spill] sm:$0xff] }
 0x40b   :  { %5676 = vmatprep.subr.mxu1 %v20605_v60  ;;  %5014 = vmatprep.subr.mxu0 %v20605_v60 }
 0x40c   :  { %5682 = vmatpush2.msra.mxu1 %v5681_v27  ;;  %5016 = vmatpush2.msra.mxu0 %v16374_v6  ;;  %v20703_v27 = vand.u32 4294901760, %v16387_v52  ;;  %v5702_v58 = vand.u32 4294901760, %v5701_v59  ;;  %v20707_v59 = vld [vmem:[#allocation325_spill] sm:$0xff] }
 0x40d   :  { %5683 = vmatprep.subr.mxu1 %v20605_v60  ;;  %5017 = vmatprep.subr.mxu0 %v20605_v60 }
 0x40e   :  { %5689 = vmatpush2.msra.mxu1 %v5688_v1  ;;  %v5708_v61 = vsub.f32 %v16387_v52, %v20703_v27  ;;  %5019 = vmatpush2.msra.mxu0 %v16390_v0  ;;  %v5715_v1 = vsub.f32 %v16399_v35, %v19659_v44 }
 0x40f   :  { %5690 = vmatprep.subr.mxu1 %v20605_v60  ;;  %5031 = vmatmul.mubr.f32.vlgmr.msra.gmra.mxu0 %v20704_v37  ;;  %v5722_v37 = vsub.f32 %v16412_v24, %v19661_v2  ;;  %v20715_v2 = vld [vmem:[#allocation308_spill] sm:$0xff] }
 0x410   :  { %5696 = vmatpush2.msra.mxu1 %v5695_v39  ;;  %5950 = vmatprep.subr.mxu0 %v20605_v60  ;;  %v5709_v27 = vand.u32 4294901760, %v5708_v61  ;;  %v20706_v39 = vld [vmem:[#allocation73_spill] sm:$0xff]  ;;  %v5716_v44 = vand.u32 4294901760, %v5715_v1 }
 0x411   :  { %5697 = vmatprep.subr.mxu1 %v20605_v60  ;;  %5953 = vmatpush1.msra.mxu0 %v20705_v17  ;;  %v20709_v61 = vld [vmem:[#allocation309_spill] sm:$0xff] }
 0x412   :  { %5703 = vmatpush2.msra.mxu1 %v5702_v58  ;;  %5954 = vmatprep.subr.mxu0 %v20605_v60  ;;  %v5723_v58 = vand.u32 4294901760, %v5722_v37  ;;  %v20712_v1 = vld [vmem:[#allocation85_spill] sm:$0xff]  ;;  %v20716_v37 = vld [vmem:[#allocation90_spill] sm:$0xff] }
 0x413   :  { %5704 = vmatprep.subr.mxu1 %v20605_v60  ;;  %5040 = vmatprep.mubr.f32.mxu0 %v20706_v39  ;;  %v20710_v39 = vld [vmem:[#allocation81_spill] sm:$0xff] }
 0x414   :  { %5710 = vmatpush2.msra.mxu1 %v5709_v27  ;;  %5957 = vmatpush1.msra.mxu0 %v20707_v59  ;;  %v20711_v27 = vld [vmem:[#allocation322_spill] sm:$0xff] }
 0x415   :  { %5046 = vmatmul.mubr.f32.gmra.mxu0 %v20708_v11  ;;  %5711 = vmatprep.subr.mxu1 %v20605_v60  ;;  %v20713_v11 = vld [vmem:[#allocation41_spill] sm:$0xff] }
 0x416   :  { %5958 = vmatprep.subr.mxu0 %v20605_v60  ;;  %5717 = vmatpush2.msra.mxu1 %v5716_v44  ;;  %v20714_v44 = vld [vmem:[#allocation326_spill] sm:$0xff] }
 0x417   :  { %5961 = vmatpush1.msra.mxu0 %v20709_v61  ;;  %5718 = vmatprep.subr.mxu1 %v20605_v60 }
 0x418   :  { %5962 = vmatprep.subr.mxu0 %v20605_v60  ;;  %5055 = vmatprep.mubr.f32.mxu0 %v20710_v39  ;;  %v20718_v39 = vld [vmem:[#allocation329_spill] sm:$0xff] }
 0x419   :  { %5724 = vmatpush2.msra.mxu1 %v5723_v58  ;;  %5965 = vmatpush1.msra.mxu0 %v20711_v27  ;;  %v20717_v58 = vld [vmem:[#allocation43_spill] sm:$0xff] }
 0x41a   :  { %5061 = vmatmul.mubr.f32.gmra.mxu0 %v20712_v1  ;;  %5728 = vmatmul.mubr.f32.vlgmr.msra.gmra.mxu1 %v20713_v11  ;;  %v20719_v1 = vld [vmem:[#allocation312_spill] sm:$0xff]  ;;  %v20720_v11 = vld [vmem:[#allocation94_spill] sm:$0xff] }
 0x41b   :  { %5966 = vmatprep.subr.mxu0 %v20605_v60  ;;  %6367 = vmatprep.subr.mxu1 %v20605_v60 }
 0x41c   :  { %5969 = vmatpush1.msra.mxu0 %v20714_v44  ;;  %6369 = vmatpush1.msra.mxu1 %v20715_v2 }
 0x41d   :  { %5970 = vmatprep.subr.mxu0 %v20605_v60  ;;  %6370 = vmatprep.subr.mxu1 %v20605_v60 }
 0x41e   :  { %5070 = vmatprep.mubr.f32.mxu0 %v20716_v37  ;;  %5733 = vmatprep.mubr.f32.mxu1 %v20717_v58  ;;  %v20723_v37 = vld [vmem:[#allocation98_spill] sm:$0xff]  ;;  %v20724_v58 = vld [vmem:[#allocation52_spill] sm:$0xff] }
 0x41f   :  { %5973 = vmatpush1.msra.mxu0 %v20718_v39  ;;  %6372 = vmatpush1.msra.mxu1 %v20719_v1 }
 0x420   :  { %5076 = vmatmul.mubr.f32.gmra.mxu0 %v20720_v11  ;;  %5735 = vmatmul.mubr.f32.gmra.mxu1 %v20721_v53  ;;  %v20725_v11 = vld [vmem:[#allocation9_spill] sm:$0xff]  ;;  %v20726_v53 = vld [vmem:[#allocation102_spill] sm:$0xff] }
 0x421   :  { %5974 = vmatprep.subr.mxu0 %v20605_v60  ;;  %6373 = vmatprep.subr.mxu1 %v20605_v60 }
 0x422   :  { %5977 = vmatpush1.msra.mxu0 %v15922_v48  ;;  %6375 = vmatpush1.msra.mxu1 %v20722_v20 }
 0x423   :  { %5978 = vmatprep.subr.mxu0 %v20605_v60  ;;  %6376 = vmatprep.subr.mxu1 %v20605_v60 }
 0x424   :  { %5085 = vmatprep.mubr.f32.mxu0 %v20723_v37  ;;  %5740 = vmatprep.mubr.f32.mxu1 %v20724_v58  ;;  %v20729_v37 = vld [vmem:[#allocation106_spill] sm:$0xff]  ;;  %v20730_v58 = vld [vmem:[#allocation61_spill] sm:$0xff] }
 0x425   :  { %5981 = vmatpush1.msra.mxu0 %v15970_v47  ;;  %6378 = vmatpush1.msra.mxu1 %v20725_v11  ;;  %v20733_v11 = vld [vmem:[#allocation64_spill] sm:$0xff] }
 0x426   :  { %5091 = vmatmul.mubr.f32.gmra.mxu0 %v20726_v53  ;;  %5742 = vmatmul.mubr.f32.gmra.mxu1 %v20727_v25  ;;  %v20731_v53 = vld [vmem:[#allocation321_spill] sm:$0xff]  ;;  %v20732_v25 = vld [vmem:[#allocation110_spill] sm:$0xff] }
 0x427   :  { %5982 = vmatprep.subr.mxu0 %v20605_v60  ;;  %6379 = vmatprep.subr.mxu1 %v20605_v60 }
 0x428   :  { %5985 = vmatpush1.msra.mxu0 %v15953_v38  ;;  %6381 = vmatpush1.msra.mxu1 %v20728_v46  ;;  %v20734_v46 = vld [vmem:[#allocation324_spill] sm:$0xff] }
 0x429   :  { %5986 = vmatprep.subr.mxu0 %v20605_v60  ;;  %6382 = vmatprep.subr.mxu1 %v20605_v60 }
 0x42a   :  { %5100 = vmatprep.mubr.f32.mxu0 %v20729_v37  ;;  %5747 = vmatprep.mubr.f32.mxu1 %v20730_v58  ;;  %v20735_v37 = vld [vmem:[#allocation113_spill] sm:$0xff]  ;;  %v20736_v58 = vld [vmem:[#allocation67_spill] sm:$0xff] }
 0x42b   :  { %5989 = vmatpush1.msra.mxu0 %v16009_v4  ;;  %6384 = vmatpush1.msra.mxu1 %v20731_v53 }
 0x42c   :  { %5106 = vmatmul.mubr.f32.gmra.mxu0 %v20732_v25  ;;  %5749 = vmatmul.mubr.f32.gmra.mxu1 %v20733_v11  ;;  %v20737_v25 = vld [vmem:[#allocation117_spill] sm:$0xff]  ;;  %v20738_v11 = vld [vmem:[#allocation72_spill] sm:$0xff] }
 0x42d   :  { %5990 = vmatprep.subr.mxu0 %v20605_v60  ;;  %6385 = vmatprep.subr.mxu1 %v20605_v60 }
 0x42e   :  { %5993 = vmatpush1.msra.mxu0 %v15957_v33  ;;  %6387 = vmatpush1.msra.mxu1 %v20734_v46  ;;  %v20739_v46 = vld [vmem:[#allocation333_spill] sm:$0xff]  ;;  %v20740_v33 = vld [vmem:[#allocation328_spill] sm:$0xff] }
 0x42f   :  { %5994 = vmatprep.subr.mxu0 %v20605_v60  ;;  %6388 = vmatprep.subr.mxu1 %v20605_v60 }
 0x430   :  { %5115 = vmatprep.mubr.f32.mxu0 %v20735_v37  ;;  %5754 = vmatprep.mubr.f32.mxu1 %v20736_v58  ;;  %v20741_v37 = vld [vmem:[#allocation121_spill] sm:$0xff]  ;;  %v20742_v58 = vld [vmem:[#allocation76_spill] sm:$0xff] }
 0x431   :  { %5997 = vmatpush1.msra.mxu0 %v16026_v63  ;;  %6390 = vmatpush1.msra.mxu1 %v15893_v29 }
 0x432   :  { %5121 = vmatmul.mubr.f32.gmra.mxu0 %v20737_v25  ;;  %5756 = vmatmul.mubr.f32.gmra.mxu1 %v20738_v11  ;;  %v20743_v25 = vld [vmem:[#allocation125_spill] sm:$0xff]  ;;  %v20744_v11 = vld [vmem:[#allocation80_spill] sm:$0xff] }
 0x433   :  { %5998 = vmatprep.subr.mxu0 %v20605_v60  ;;  %6391 = vmatprep.subr.mxu1 %v20605_v60 }
 0x434   :  { %6001 = vmatpush1.msra.mxu0 %v20739_v46  ;;  %6393 = vmatpush1.msra.mxu1 %v20740_v33  ;;  %v20745_v33 = vld [vmem:[#allocation27_spill] sm:$0xff] }
 0x435   :  { %6002 = vmatprep.subr.mxu0 %v20605_v60  ;;  %6394 = vmatprep.subr.mxu1 %v20605_v60 }
 0x436   :  { %5130 = vmatprep.mubr.f32.mxu0 %v20741_v37  ;;  %5761 = vmatprep.mubr.f32.mxu1 %v20742_v58  ;;  %v20746_v37 = vld [vmem:[#allocation130_spill] sm:$0xff]  ;;  %v20747_v58 = vld [vmem:[#allocation84_spill] sm:$0xff] }
 0x437   :  { %6005 = vmatpush1.msra.mxu0 %v15996_v49  ;;  %6396 = vmatpush1.msra.mxu1 %v15949_v15 }
 0x438   :  { %5136 = vmatmul.mubr.f32.gmra.mxu0 %v20743_v25  ;;  %5763 = vmatmul.mubr.f32.gmra.mxu1 %v20744_v11  ;;  %v20748_v25 = vld [vmem:[#allocation134_spill] sm:$0xff]  ;;  %v20749_v11 = vld [vmem:[#allocation88_spill] sm:$0xff] }
 0x439   :  { %6006 = vmatprep.subr.mxu0 %v20605_v60  ;;  %6397 = vmatprep.subr.mxu1 %v20605_v60 }
 0x43a   :  { %6009 = vmatpush1.msra.mxu0 %v20745_v33  ;;  %6399 = vmatpush1.msra.mxu1 %v15899_v8 }
 0x43b   :  { %6010 = vmatprep.subr.mxu0 %v20605_v60  ;;  %6400 = vmatprep.subr.mxu1 %v20605_v60 }
 0x43c   :  { %5145 = vmatprep.mubr.f32.mxu0 %v20746_v37  ;;  %5768 = vmatprep.mubr.f32.mxu1 %v20747_v58  ;;  %v20750_v37 = vld [vmem:[#allocation138_spill] sm:$0xff]  ;;  %v20751_v58 = vld [vmem:[#allocation89_spill] sm:$0xff] }
 0x43d   :  { %6013 = vmatpush1.msra.mxu0 %v20664_v14  ;;  %6402 = vmatpush1.msra.mxu1 %v15979_v23 }
 0x43e   :  { %5151 = vmatmul.mubr.f32.gmra.mxu0 %v20748_v25  ;;  %5770 = vmatmul.mubr.f32.gmra.mxu1 %v20749_v11  ;;  %v20752_v25 = vld [vmem:[#allocation142_spill] sm:$0xff]  ;;  %v20753_v11 = vld [vmem:[#allocation93_spill] sm:$0xff] }
 0x43f   :  { %6014 = vmatprep.subr.mxu0 %v20605_v60  ;;  %6403 = vmatprep.subr.mxu1 %v20605_v60 }
 0x440   :  { %6017 = vmatpush2.msra.mxu0 %v16191_v42  ;;  %6405 = vmatpush1.msra.mxu1 %v15871_v54 }
 0x441   :  { %6018 = vmatprep.subr.mxu0 %v20605_v60  ;;  %6406 = vmatprep.subr.mxu1 %v20605_v60 }
 0x442   :  { %5160 = vmatprep.mubr.f32.mxu0 %v20750_v37  ;;  %5775 = vmatprep.mubr.f32.mxu1 %v20751_v58  ;;  %v20754_v37 = vld [vmem:[#allocation146_spill] sm:$0xff]  ;;  %v20755_v58 = vld [vmem:[#allocation100_spill] sm:$0xff] }
 0x443   :  { %6021 = vmatpush2.msra.mxu0 %v16215_v45  ;;  %6408 = vmatpush1.msra.mxu1 %v20651_v41 }
 0x444   :  { %5166 = vmatmul.mubr.f32.gmra.mxu0 %v20752_v25  ;;  %5777 = vmatmul.mubr.f32.gmra.mxu1 %v20753_v11  ;;  %v20756_v25 = vld [vmem:[#allocation150_spill] sm:$0xff]  ;;  %v20757_v11 = vld [vmem:[#allocation104_spill] sm:$0xff] }
 0x445   :  { %6022 = vmatprep.subr.mxu0 %v20605_v60  ;;  %6409 = vmatprep.subr.mxu1 %v20605_v60 }
 0x446   :  { %6025 = vmatpush2.msra.mxu0 %v16178_v22  ;;  %6411 = vmatpush1.msra.mxu1 %v20656_v55 }
 0x447   :  { %6026 = vmatprep.subr.mxu0 %v20605_v60  ;;  %6412 = vmatprep.subr.mxu1 %v20605_v60 }
 0x448   :  { %5175 = vmatprep.mubr.f32.mxu0 %v20754_v37  ;;  %5782 = vmatprep.mubr.f32.mxu1 %v20755_v58  ;;  %v20758_v37 = vld [vmem:[#allocation153_spill] sm:$0xff]  ;;  %v20759_v58 = vld [vmem:[#allocation108_spill] sm:$0xff] }
 0x449   :  { %6029 = vmatpush2.msra.mxu0 %v16205_v62  ;;  %6414 = vmatpush1.msra.mxu1 %v20663_v30 }
 0x44a   :  { %5181 = vmatmul.mubr.f32.gmra.mxu0 %v20756_v25  ;;  %5784 = vmatmul.mubr.f32.gmra.mxu1 %v20757_v11  ;;  %v20760_v25 = vld [vmem:[#allocation157_spill] sm:$0xff]  ;;  %v20761_v11 = vld [vmem:[#allocation112_spill] sm:$0xff] }
 0x44b   :  { %6030 = vmatprep.subr.mxu0 %v20605_v60  ;;  %6415 = vmatprep.subr.mxu1 %v20605_v60 }
 0x44c   :  { %6033 = vmatpush2.msra.mxu0 %v16226_v7  ;;  %6417 = vmatpush2.msra.mxu1 %v16165_v31 }
 0x44d   :  { %6034 = vmatprep.subr.mxu0 %v20605_v60  ;;  %6418 = vmatprep.subr.mxu1 %v20605_v60 }
 0x44e   :  { %5190 = vmatprep.mubr.f32.mxu0 %v20758_v37  ;;  %5789 = vmatprep.mubr.f32.mxu1 %v20759_v58  ;;  %v20762_v37 = vld [vmem:[#allocation161_spill] sm:$0xff]  ;;  %v20763_v58 = vld [vmem:[#allocation116_spill] sm:$0xff] }
 0x44f   :  { %6037 = vmatpush2.msra.mxu0 %v16248_v57  ;;  %6420 = vmatpush2.msra.mxu1 %v16184_v34 }
 0x450   :  { %5196 = vmatmul.mubr.f32.gmra.mxu0 %v20760_v25  ;;  %5791 = vmatmul.mubr.f32.gmra.mxu1 %v20761_v11  ;;  %v20764_v25 = vld [vmem:[#allocation165_spill] sm:$0xff]  ;;  %v20765_v11 = vld [vmem:[#allocation120_spill] sm:$0xff] }
 0x451   :  { %6038 = vmatprep.subr.mxu0 %v20605_v60  ;;  %6421 = vmatprep.subr.mxu1 %v20605_v60 }
 0x452   :  { %6041 = vmatpush2.msra.mxu0 %v16269_v18  ;;  %6423 = vmatpush2.msra.mxu1 %v16140_v10 }
 0x453   :  { %6042 = vmatprep.subr.mxu0 %v20605_v60  ;;  %6424 = vmatprep.subr.mxu1 %v20605_v60 }
 0x454   :  { %5205 = vmatprep.mubr.f32.mxu0 %v20762_v37  ;;  %5796 = vmatprep.mubr.f32.mxu1 %v20763_v58  ;;  %v20766_v37 = vld [vmem:[#allocation170_spill] sm:$0xff]  ;;  %v20767_v58 = vld [vmem:[#allocation124_spill] sm:$0xff] }
 0x455   :  { %6045 = vmatpush2.msra.mxu0 %v16289_v51  ;;  %6426 = vmatpush2.msra.mxu1 %v16156_v50 }
 0x456   :  { %5211 = vmatmul.mubr.f32.gmra.mxu0 %v20764_v25  ;;  %5798 = vmatmul.mubr.f32.gmra.mxu1 %v20765_v11  ;;  %v20768_v25 = vld [vmem:[#allocation174_spill] sm:$0xff]  ;;  %v20769_v11 = vld [vmem:[#allocation128_spill] sm:$0xff] }
 0x457   :  { %6046 = vmatprep.subr.mxu0 %v20605_v60  ;;  %6427 = vmatprep.subr.mxu1 %v20605_v60 }
 0x458   :  { %6049 = vmatpush2.msra.mxu0 %v16310_v26  ;;  %6429 = vmatpush2.msra.mxu1 %v16174_v28 }
 0x459   :  { %6050 = vmatprep.subr.mxu0 %v20605_v60  ;;  %6430 = vmatprep.subr.mxu1 %v20605_v60 }
 0x45a   :  { %5220 = vmatprep.mubr.f32.mxu0 %v20766_v37  ;;  %5803 = vmatprep.mubr.f32.mxu1 %v20767_v58  ;;  %v20770_v37 = vld [vmem:[#allocation178_spill] sm:$0xff]  ;;  %v20771_v58 = vld [vmem:[#allocation129_spill] sm:$0xff] }
 0x45b   :  { %6053 = vmatpush2.msra.mxu0 %v16325_v19  ;;  %6432 = vmatpush2.msra.mxu1 %v16201_v13 }
 0x45c   :  { %5226 = vmatmul.mubr.f32.gmra.mxu0 %v20768_v25  ;;  %5805 = vmatmul.mubr.f32.gmra.mxu1 %v20769_v11  ;;  %v20772_v25 = vld [vmem:[#allocation182_spill] sm:$0xff]  ;;  %v20773_v11 = vld [vmem:[#allocation133_spill] sm:$0xff] }
 0x45d   :  { %6054 = vmatprep.subr.mxu0 %v20605_v60  ;;  %6433 = vmatprep.subr.mxu1 %v20605_v60 }
 0x45e   :  { %6057 = vmatpush2.msra.mxu0 %v16342_v12  ;;  %6435 = vmatpush2.msra.mxu1 %v16221_v56 }
 0x45f   :  { %6058 = vmatprep.subr.mxu0 %v20605_v60  ;;  %6436 = vmatprep.subr.mxu1 %v20605_v60 }
 0x460   :  { %5235 = vmatprep.mubr.f32.mxu0 %v20770_v37  ;;  %5810 = vmatprep.mubr.f32.mxu1 %v20771_v58  ;;  %v20774_v37 = vld [vmem:[#allocation186_spill] sm:$0xff]  ;;  %v20775_v58 = vld [vmem:[#allocation140_spill] sm:$0xff] }
 0x461   :  { %6061 = vmatpush2.msra.mxu0 %v16355_v40  ;;  %6438 = vmatpush2.msra.mxu1 %v16243_v36 }
 0x462   :  { %5241 = vmatmul.mubr.f32.gmra.mxu0 %v20772_v25  ;;  %5812 = vmatmul.mubr.f32.gmra.mxu1 %v20773_v11  ;;  %v20776_v25 = vld [vmem:[#allocation190_spill] sm:$0xff]  ;;  %v20777_v11 = vld [vmem:[#allocation144_spill] sm:$0xff] }
 0x463   :  { %6062 = vmatprep.subr.mxu0 %v20605_v60  ;;  %6439 = vmatprep.subr.mxu1 %v20605_v60 }
 0x464   :  { %6065 = vmatpush2.msra.mxu0 %v16371_v43  ;;  %6441 = vmatpush2.msra.mxu1 %v16264_v21 }
 0x465   :  { %6066 = vmatprep.subr.mxu0 %v20605_v60  ;;  %6442 = vmatprep.subr.mxu1 %v20605_v60 }
 0x466   :  { %5250 = vmatprep.mubr.f32.mxu0 %v20774_v37  ;;  %5817 = vmatprep.mubr.f32.mxu1 %v20775_v58  ;;  %v20778_v37 = vld [vmem:[#allocation193_spill] sm:$0xff]  ;;  %v20779_v58 = vld [vmem:[#allocation148_spill] sm:$0xff] }
 0x467   :  { %6069 = vmatpush2.msra.mxu0 %v16387_v52  ;;  %6444 = vmatpush2.msra.mxu1 %v16284_v16 }
 0x468   :  { %5256 = vmatmul.mubr.f32.gmra.mxu0 %v20776_v25  ;;  %5819 = vmatmul.mubr.f32.gmra.mxu1 %v20777_v11  ;;  %v20780_v25 = vld [vmem:[#allocation197_spill] sm:$0xff]  ;;  %v20781_v11 = vld [vmem:[#allocation152_spill] sm:$0xff] }
 0x469   :  { %6070 = vmatprep.subr.mxu0 %v20605_v60  ;;  %6445 = vmatprep.subr.mxu1 %v20605_v60 }
 0x46a   :  { %6073 = vmatpush2.msra.mxu0 %v16399_v35  ;;  %6447 = vmatpush2.msra.mxu1 %v16299_v9  ;;  %v20782_v35 = vld [vmem:[#allocation201_spill] sm:$0xff]  ;;  %v20783_v9 = vld [vmem:[#allocation156_spill] sm:$0xff] }
 0x46b   :  { %6074 = vmatprep.subr.mxu0 %v20605_v60  ;;  %6448 = vmatprep.subr.mxu1 %v20605_v60 }
 0x46c   :  { %5265 = vmatprep.mubr.f32.mxu0 %v20778_v37  ;;  %5824 = vmatprep.mubr.f32.mxu1 %v20779_v58  ;;  %v20784_v37 = vld [vmem:[#allocation205_spill] sm:$0xff]  ;;  %v20785_v58 = vld [vmem:[#allocation160_spill] sm:$0xff] }
 0x46d   :  { %6077 = vmatpush2.msra.mxu0 %v16412_v24  ;;  %6450 = vmatpush2.msra.mxu1 %v16316_v5  ;;  %v20802_v5 = vld [vmem:[#allocation241_spill] sm:$0xff] }
 0x46e   :  { %5271 = vmatmul.mubr.f32.gmra.mxu0 %v20780_v25  ;;  %5826 = vmatmul.mubr.f32.gmra.mxu1 %v20781_v11  ;;  %v20786_v25 = vld [vmem:[#allocation210_spill] sm:$0xff]  ;;  %v20789_v11 = vld [vmem:[#allocation168_spill] sm:$0xff] }
 0x46f   :  { %6451 = vmatprep.subr.mxu1 %v20605_v60  ;;  %5280 = vmatprep.mubr.f32.mxu0 %v20782_v35  ;;  %v20787_v35 = vld [vmem:[#allocation164_spill] sm:$0xff] }
 0x470   :  { %6453 = vmatpush2.msra.mxu1 %v16333_v3  ;;  %5831 = vmatprep.mubr.f32.mxu1 %v20783_v9  ;;  %v20788_v9 = vld [vmem:[#allocation214_spill] sm:$0xff]  ;;  %v20795_v3 = vld [vmem:[#allocation180_spill] sm:$0xff] }
 0x471   :  { %6454 = vmatprep.subr.mxu1 %v20605_v60  ;;  %6816 = vmatprep.subr.mxu0 %v20605_v60 }
 0x472   :  { %6456 = vmatpush2.msra.mxu1 %v16362_v32  ;;  %5286 = vmatmul.mubr.f32.gmra.mxu0 %v20784_v37  ;;  %v20790_v32 = vld [vmem:[#allocation218_spill] sm:$0xff]  ;;  %v20791_v37 = vld [vmem:[#allocation169_spill] sm:$0xff] }
 0x473   :  { %5833 = vmatmul.mubr.f32.gmra.mxu1 %v20785_v58  ;;  %6457 = vmatprep.subr.mxu1 %v20605_v60  ;;  %v20792_v58 = vld [vmem:[#allocation222_spill] sm:$0xff] }
 0x474   :  { %6459 = vmatpush2.msra.mxu1 %v16374_v6  ;;  %5295 = vmatprep.mubr.f32.mxu0 %v20786_v25  ;;  %v20793_v6 = vld [vmem:[#allocation173_spill] sm:$0xff]  ;;  %v20794_v25 = vld [vmem:[#allocation226_spill] sm:$0xff] }
 0x475   :  { %6460 = vmatprep.subr.mxu1 %v20605_v60  ;;  %5838 = vmatprep.mubr.f32.mxu1 %v20787_v35  ;;  %v20796_v35 = vld [vmem:[#allocation230_spill] sm:$0xff] }
 0x476   :  { %6462 = vmatpush2.msra.mxu1 %v16390_v0  ;;  %5301 = vmatmul.mubr.f32.gmra.mxu0 %v20788_v9  ;;  %v20797_v0 = vld [vmem:[#allocation184_spill] sm:$0xff]  ;;  %v20798_v9 = vld [vmem:[#allocation233_spill] sm:$0xff] }
 0x477   :  { %5840 = vmatmul.mubr.f32.gmra.mxu1 %v20789_v11  ;;  %5310 = vmatprep.mubr.f32.mxu0 %v20790_v32  ;;  %v20799_v11 = vld [vmem:[#allocation188_spill] sm:$0xff]  ;;  %v20800_v32 = vld [vmem:[#allocation237_spill] sm:$0xff] }
 0x478   :  { %5845 = vmatprep.mubr.f32.mxu1 %v20791_v37  ;;  %7201 = vmatprep.subr.mxu1 %v20605_v60  ;;  %v20801_v37 = vld [vmem:[#allocation192_spill] sm:$0xff] }
 0x47a   :  { %5316 = vmatmul.mubr.f32.gmra.mxu0 %v20792_v58  ;;  %v20803_v58 = vld [vmem:[#allocation196_spill] sm:$0xff] }
 0x47b   :  { %5847 = vmatmul.mubr.f32.gmra.mxu1 %v20793_v6  ;;  %5325 = vmatprep.mubr.f32.mxu0 %v20794_v25  ;;  %v20804_v6 = vld [vmem:[#allocation245_spill] sm:$0xff]  ;;  %v20805_v25 = vld [vmem:[#allocation200_spill] sm:$0xff] }
 0x47c   :  { %5852 = vmatprep.mubr.f32.mxu1 %v20795_v3  ;;  %v20806_v3 = vld [vmem:[#allocation250_spill] sm:$0xff] }
 0x47e   :  { %5331 = vmatmul.mubr.f32.gmra.mxu0 %v20796_v35  ;;  %v20807_v35 = vld [vmem:[#allocation204_spill] sm:$0xff] }
 0x47f   :  { %5854 = vmatmul.mubr.f32.gmra.mxu1 %v20797_v0  ;;  %5340 = vmatprep.mubr.f32.mxu0 %v20798_v9  ;;  %v20808_v0 = vld [vmem:[#allocation254_spill] sm:$0xff]  ;;  %v20809_v9 = vld [vmem:[#allocation208_spill] sm:$0xff] }
 0x480   :  { %5859 = vmatprep.mubr.f32.mxu1 %v20799_v11  ;;  %v20810_v11 = vld [vmem:[#allocation258_spill] sm:$0xff] }
 0x482   :  { %5346 = vmatmul.mubr.f32.gmra.mxu0 %v20800_v32  ;;  %v20811_v32 = vld [vmem:[#allocation209_spill] sm:$0xff] }
 0x483   :  { %5861 = vmatmul.mubr.f32.gmra.mxu1 %v20801_v37  ;;  %5355 = vmatprep.mubr.f32.mxu0 %v20802_v5  ;;  %v20812_v37 = vld [vmem:[#allocation262_spill] sm:$0xff]  ;;  %v20813_v5 = vld [vmem:[#allocation213_spill] sm:$0xff] }
 0x484   :  { %5866 = vmatprep.mubr.f32.mxu1 %v20803_v58  ;;  %v20814_v58 = vld [vmem:[#allocation26_spill] sm:$0xff] }
 0x486   :  { %5361 = vmatmul.mubr.f32.gmra.mxu0 %v20804_v6  ;;  %v20815_v6 = vld [vmem:[#allocation220_spill] sm:$0xff] }
 0x487   :  { %5868 = vmatmul.mubr.f32.gmra.mxu1 %v20805_v25  ;;  %5370 = vmatprep.mubr.f32.mxu0 %v20806_v3  ;;  %v20816_v25 = vld [vmem:[#allocation269_spill] sm:$0xff]  ;;  %v20817_v3 = vld [vmem:[#allocation224_spill] sm:$0xff] }
 0x488   :  { %5873 = vmatprep.mubr.f32.mxu1 %v20807_v35  ;;  %v20818_v35 = vld [vmem:[#allocation272_spill] sm:$0xff] }
 0x48a   :  { %5376 = vmatmul.mubr.f32.gmra.mxu0 %v20808_v0  ;;  %v20819_v0 = vld [vmem:[#allocation228_spill] sm:$0xff] }
 0x48b   :  { %5875 = vmatmul.mubr.f32.gmra.mxu1 %v20809_v9  ;;  %5385 = vmatprep.mubr.f32.mxu0 %v20810_v11  ;;  %v20820_v9 = vld [vmem:[#allocation276_spill] sm:$0xff] }
 0x48c   :  { %5880 = vmatprep.mubr.f32.mxu1 %v20811_v32  ;;  %v20821_v11 = vld [vmem:[#allocation232_spill] sm:$0xff] }
 0x48d   :  { %v20822_v32 = vld [vmem:[#allocation280_spill] sm:$0xff] }
 0x48e   :  { %5391 = vmatmul.mubr.f32.gmra.mxu0 %v20812_v37  ;;  %v20823_v37 = vld [vmem:[#allocation236_spill] sm:$0xff] }
 0x48f   :  { %5882 = vmatmul.mubr.f32.gmra.mxu1 %v20813_v5  ;;  %5400 = vmatprep.mubr.f32.mxu0 %v20814_v58  ;;  %v20824_v5 = vld [vmem:[#allocation36_spill] sm:$0xff] }
 0x490   :  { %5887 = vmatprep.mubr.f32.mxu1 %v20815_v6  ;;  %v20825_v58 = vld [vmem:[#allocation240_spill] sm:$0xff] }
 0x491   :  { %v20826_v6 = vld [vmem:[#allocation32_spill] sm:$0xff] }
 0x492   :  { %5406 = vmatmul.mubr.f32.gmra.mxu0 %v20816_v25  ;;  %v20827_v25 = vld [vmem:[#allocation244_spill] sm:$0xff] }
 0x493   :  { %5889 = vmatmul.mubr.f32.gmra.mxu1 %v20817_v3  ;;  %5415 = vmatprep.mubr.f32.mxu0 %v20818_v35  ;;  %v20828_v3 = vld [vmem:[#allocation39_spill] sm:$0xff]  ;;  %v20829_v35 = vld [vmem:[#allocation248_spill] sm:$0xff] }
 0x494   :  { %5894 = vmatprep.mubr.f32.mxu1 %v20819_v0  ;;  %v20830_v0 = vld [vmem:[#allocation34_spill] sm:$0xff] }
 0x496   :  { %5421 = vmatmul.mubr.f32.gmra.mxu0 %v20820_v9  ;;  %v20831_v9 = vld [vmem:[#allocation249_spill] sm:$0xff] }
 0x497   :  { %5896 = vmatmul.mubr.f32.gmra.mxu1 %v20821_v11  ;;  %5430 = vmatprep.mubr.f32.mxu0 %v20822_v32  ;;  %v20832_v11 = vld [vmem:[#allocation42_spill] sm:$0xff]  ;;  %v20833_v32 = vld [vmem:[#allocation253_spill] sm:$0xff] }
 0x498   :  { %5901 = vmatprep.mubr.f32.mxu1 %v20823_v37  ;;  %v20834_v37 = vld [vmem:[#allocation37_spill] sm:$0xff] }
 0x49a   :  { %5436 = vmatmul.mubr.f32.gmra.mxu0 %v20824_v5  ;;  %v20835_v5 = vld [vmem:[#allocation260_spill] sm:$0xff] }
 0x49b   :  { %5903 = vmatmul.mubr.f32.gmra.mxu1 %v20825_v58  ;;  %5445 = vmatprep.mubr.f32.mxu0 %v20826_v6  ;;  %v20836_v58 = vld [vmem:[#allocation45_spill] sm:$0xff]  ;;  %v20837_v6 = vld [vmem:[#allocation264_spill] sm:$0xff] }
 0x49c   :  { %5908 = vmatprep.mubr.f32.mxu1 %v20827_v25  ;;  %v20838_v25 = vld [vmem:[#allocation38_spill] sm:$0xff] }
 0x49e   :  { %5451 = vmatmul.mubr.f32.gmra.mxu0 %v20828_v3  ;;  %v20839_v3 = vld [vmem:[#allocation267_spill] sm:$0xff] }
 0x49f   :  { %5910 = vmatmul.mubr.f32.gmra.mxu1 %v20829_v35  ;;  %5460 = vmatprep.mubr.f32.mxu0 %v20830_v0  ;;  %v20840_v35 = vld [vmem:[#allocation292_spill] sm:$0xff]  ;;  %v20841_v0 = vld [vmem:[#allocation271_spill] sm:$0xff] }
 0x4a0   :  { %5915 = vmatprep.mubr.f32.mxu1 %v20831_v9  ;;  %v20842_v9 = vld [vmem:[#allocation47_spill] sm:$0xff] }
 0x4a2   :  { %5466 = vmatmul.mubr.f32.gmra.mxu0 %v20832_v11  ;;  %v20843_v11 = vld [vmem:[#allocation275_spill] sm:$0xff] }
 0x4a3   :  { %5917 = vmatmul.mubr.f32.gmra.mxu1 %v20833_v32  ;;  %5475 = vmatprep.mubr.f32.mxu0 %v20834_v37  ;;  %v20844_v32 = vld [vmem:[#allocation49_spill] sm:$0xff]  ;;  %v20845_v37 = vld [vmem:[#allocation279_spill] sm:$0xff] }
 0x4a4   :  { %5922 = vmatprep.mubr.f32.mxu1 %v20835_v5 }
 0x4a6   :  { %5481 = vmatmul.mubr.f32.gmra.mxu0 %v20836_v58  ;;  %v20846_v58 = vand.u32 4294901760, %v20705_v17  ;;  %v20853_v17 = vld [vmem:[#allocation60_spill] sm:$0xff] }
 0x4a7   :  { %5924 = vmatmul.mubr.f32.gmra.mxu1 %v20837_v6  ;;  %5490 = vmatprep.mubr.f32.mxu0 %v20838_v25  ;;  %v20847_v25 = vld [vmem:[#allocation282_spill] sm:$0xff] }
 0x4a8   :  { %5929 = vmatprep.mubr.f32.mxu1 %v20839_v3  ;;  %v20848_v3 = vand.u32 4294901760, %v20707_v59  ;;  %v20855_v59 = vld [vmem:[#allocation54_spill] sm:$0xff] }
 0x4aa   :  { %5496 = vmatmul.mubr.f32.gmra.mxu0 %v20840_v35  ;;  %v20849_v35 = vld [vmem:[#allocation51_spill] sm:$0xff] }
 0x4ab   :  { %5931 = vmatmul.mubr.f32.gmra.mxu1 %v20841_v0  ;;  %6080 = vmatprep.mubr.f32.mxu0 %v20842_v9  ;;  %v20850_v9 = vld [vmem:[#allocation58_spill] sm:$0xff] }
 0x4ac   :  { %5936 = vmatprep.mubr.f32.mxu1 %v20843_v11  ;;  %v20851_v11 = vld [vmem:[#allocation285_spill] sm:$0xff] }
 0x4ae   :  { %6083 = vmatmul.mubr.f32.vlgmr.msra.gmra.mxu0 %v20844_v32  ;;  %v20852_v32 = vand.u32 4294901760, %v20709_v61  ;;  %v20859_v61 = vand.u32 4294901760, %v20718_v39  ;;  %v20865_v39 = vand.u32 4294901760, %v15970_v47  ;;  %v20873_v47 = vand.u32 4294901760, %v16009_v4 }
 0x4af   :  { %5938 = vmatmul.mubr.f32.gmra.mxu1 %v20845_v37  ;;  %6820 = vmatpush1.msra.mxu0 %v20846_v58  ;;  %v20854_v58 = vand.u32 4294901760, %v20711_v27  ;;  %v20860_v27 = vld [vmem:[#allocation66_spill] sm:$0xff]  ;;  %v20881_v4 = vand.u32 4294901760, %v16026_v63  ;;  %v20888_v63 = vand.u32 4294901760, %v15996_v49 }
 0x4b0   :  { %6821 = vmatprep.subr.mxu0 %v20605_v60  ;;  %5943 = vmatprep.mubr.f32.mxu1 %v20847_v25 }
 0x4b1   :  { %6825 = vmatpush1.msra.mxu0 %v20848_v3  ;;  %6089 = vmatprep.mubr.f32.mxu0 %v20849_v35  ;;  %v20856_v3 = vld [vmem:[#allocation62_spill] sm:$0xff]  ;;  %v20857_v35 = vld [vmem:[#allocation57_spill] sm:$0xff] }
 0x4b2   :  { %6826 = vmatprep.subr.mxu0 %v20605_v60  ;;  %6092 = vmatmul.mubr.f32.gmra.mxu0 %v20850_v9  ;;  %v20858_v9 = vand.u32 4294901760, %v20714_v44  ;;  %v20862_v44 = vld [vmem:[#allocation71_spill] sm:$0xff] }
 0x4b3   :  { %5945 = vmatmul.mubr.f32.gmra.mxu1 %v20851_v11  ;;  %6830 = vmatpush1.msra.mxu0 %v20852_v32  ;;  %v20861_v32 = vld [vmem:[#allocation59_spill] sm:$0xff] }
 0x4b4   :  { %6831 = vmatprep.subr.mxu0 %v20605_v60  ;;  %6098 = vmatprep.mubr.f32.mxu0 %v20853_v17  ;;  %v20864_v17 = vand.u32 4294901760, %v15922_v48  ;;  %v20869_v48 = vld [vmem:[#allocation79_spill] sm:$0xff] }
 0x4b5   :  { %6835 = vmatpush1.msra.mxu0 %v20854_v58  ;;  %6466 = vmatprep.mubr.f32.mxu1 %v20855_v59  ;;  %v20867_v58 = vld [vmem:[#allocation75_spill] sm:$0xff]  ;;  %v20868_v59 = vld [vmem:[#allocation65_spill] sm:$0xff] }
 0x4b6   :  { %6836 = vmatprep.subr.mxu0 %v20605_v60  ;;  %6101 = vmatmul.mubr.f32.gmra.mxu0 %v20856_v3  ;;  %v20871_v3 = vand.u32 4294901760, %v15953_v38  ;;  %v20876_v38 = vld [vmem:[#allocation87_spill] sm:$0xff] }
 0x4b7   :  { %6470 = vmatmul.mubr.f32.vlgmr.msra.gmra.mxu1 %v20857_v35  ;;  %6840 = vmatpush1.msra.mxu0 %v20858_v9  ;;  %v20872_v35 = vld [vmem:[#allocation10_spill] sm:$0xff]  ;;  %v20874_v9 = vld [vmem:[#allocation83_spill] sm:$0xff] }
 0x4b8   :  { %7203 = vmatpush1.msra.mxu1 %v20715_v2  ;;  %6841 = vmatprep.subr.mxu0 %v20605_v60  ;;  %v20863_v2 = vld [vmem:[#allocation63_spill] sm:$0xff] }
 0x4b9   :  { %7204 = vmatprep.subr.mxu1 %v20605_v60  ;;  %6845 = vmatpush1.msra.mxu0 %v20859_v61  ;;  %v20875_v61 = vld [vmem:[#allocation74_spill] sm:$0xff] }
 0x4ba   :  { %7206 = vmatpush1.msra.mxu1 %v20719_v1  ;;  %6107 = vmatprep.mubr.f32.mxu0 %v20860_v27  ;;  %v20866_v1 = vld [vmem:[#allocation9_spill] sm:$0xff]  ;;  %v20877_v27 = vld [vmem:[#allocation78_spill] sm:$0xff] }
 0x4bb   :  { %6477 = vmatprep.mubr.f32.mxu1 %v20861_v32  ;;  %6846 = vmatprep.subr.mxu0 %v20605_v60  ;;  %v20878_v32 = vld [vmem:[#allocation336_spill] sm:$0xff] }
 0x4bc   :  { %7207 = vmatprep.subr.mxu1 %v20605_v60  ;;  %6110 = vmatmul.mubr.f32.gmra.mxu0 %v20862_v44  ;;  %v20879_v44 = vand.u32 4294901760, %v20878_v32 }
 0x4bd   :  { %6481 = vmatmul.mubr.f32.gmra.mxu1 %v20863_v2  ;;  %6850 = vmatpush1.msra.mxu0 %v20864_v17  ;;  %v20880_v2 = vld [vmem:[#allocation324_spill] sm:$0xff]  ;;  %v20883_v17 = vld [vmem:[#allocation82_spill] sm:$0xff] }
 0x4be   :  { %7209 = vmatpush1.msra.mxu1 %v20722_v20  ;;  %6851 = vmatprep.subr.mxu0 %v20605_v60  ;;  %v20870_v20 = vld [vmem:[#allocation69_spill] sm:$0xff] }
 0x4bf   :  { %7210 = vmatprep.subr.mxu1 %v20605_v60  ;;  %6855 = vmatpush1.msra.mxu0 %v20865_v39  ;;  %v20884_v39 = vld [vmem:[#allocation96_spill] sm:$0xff] }
 0x4c0   :  { %7212 = vmatpush1.msra.mxu1 %v20866_v1  ;;  %6116 = vmatprep.mubr.f32.mxu0 %v20867_v58  ;;  %v20885_v1 = vld [vmem:[#allocation86_spill] sm:$0xff]  ;;  %v20886_v58 = vand.u32 4294901760, %v20739_v46  ;;  %v20891_v46 = vld [vmem:[#allocation101_spill] sm:$0xff] }
 0x4c1   :  { %6488 = vmatprep.mubr.f32.mxu1 %v20868_v59  ;;  %6856 = vmatprep.subr.mxu0 %v20605_v60  ;;  %v20887_v59 = vld [vmem:[#allocation328_spill] sm:$0xff] }
 0x4c2   :  { %7213 = vmatprep.subr.mxu1 %v20605_v60  ;;  %6119 = vmatmul.mubr.f32.gmra.mxu0 %v20869_v48  ;;  %v20889_v48 = vld [vmem:[#allocation97_spill] sm:$0xff] }
 0x4c3   :  { %6492 = vmatmul.mubr.f32.gmra.mxu1 %v20870_v20  ;;  %6860 = vmatpush1.msra.mxu0 %v20871_v3  ;;  %v20890_v3 = vld [vmem:[#allocation91_spill] sm:$0xff] }
 0x4c4   :  { %7215 = vmatpush1.msra.mxu1 %v20872_v35  ;;  %6861 = vmatprep.subr.mxu0 %v20605_v60  ;;  %v20892_v35 = vld [vmem:[#allocation95_spill] sm:$0xff] }
 0x4c5   :  { %7216 = vmatprep.subr.mxu1 %v20605_v60  ;;  %6865 = vmatpush1.msra.mxu0 %v20873_v47  ;;  %v20893_v47 = vand.u32 4294901760, %v20745_v33  ;;  %v20897_v33 = vld [vmem:[#allocation13_spill] sm:$0xff] }
 0x4c6   :  { %7218 = vmatpush1.msra.mxu1 %v20731_v53  ;;  %6125 = vmatprep.mubr.f32.mxu0 %v20874_v9  ;;  %v20882_v53 = vld [vmem:[#allocation92_spill] sm:$0xff] }
 0x4c7   :  { %6499 = vmatprep.mubr.f32.mxu1 %v20875_v61  ;;  %6866 = vmatprep.subr.mxu0 %v20605_v60  ;;  %v20895_v61 = vld [vmem:[#allocation107_spill] sm:$0xff] }
 0x4c8   :  { %7219 = vmatprep.subr.mxu1 %v20605_v60  ;;  %6128 = vmatmul.mubr.f32.gmra.mxu0 %v20876_v38  ;;  %v20896_v38 = vld [vmem:[#allocation99_spill] sm:$0xff] }
 0x4c9   :  { %6503 = vmatmul.mubr.f32.gmra.mxu1 %v20877_v27  ;;  %6870 = vmatpush1.msra.mxu0 %v20879_v44 }
 0x4ca   :  { %7221 = vmatpush1.msra.mxu1 %v20880_v2  ;;  %6871 = vmatprep.subr.mxu0 %v20605_v60  ;;  %v20899_v2 = vld [vmem:[#allocation103_spill] sm:$0xff] }
 0x4cb   :  { %7222 = vmatprep.subr.mxu1 %v20605_v60  ;;  %6875 = vmatpush1.msra.mxu0 %v20881_v4 }
 0x4cc   :  { %7224 = vmatpush1.msra.mxu1 %v15893_v29  ;;  %6134 = vmatprep.mubr.f32.mxu0 %v20882_v53 }
 0x4cd   :  { %6510 = vmatprep.mubr.f32.mxu1 %v20883_v17  ;;  %6876 = vmatprep.subr.mxu0 %v20605_v60  ;;  %v20901_v17 = vand.u32 4294901760, %v16215_v45  ;;  %v20907_v45 = vand.u32 4294901760, %v16178_v22  ;;  %v20911_v22 = vld [vmem:[#allocation23_spill] sm:$0xff] }
 0x4ce   :  { %7225 = vmatprep.subr.mxu1 %v20605_v60  ;;  %6137 = vmatmul.mubr.f32.gmra.mxu0 %v20884_v39  ;;  %v20902_v39 = vld [vmem:[#allocation115_spill] sm:$0xff] }
 0x4cf   :  { %6514 = vmatmul.mubr.f32.gmra.mxu1 %v20885_v1  ;;  %6880 = vmatpush1.msra.mxu0 %v20886_v58  ;;  %v5032_v29 = vpop.f32.mrf.mxu0  ;;  %v20903_v1 = vld [vmem:[#allocation105_spill] sm:$0xff] }
 0x4d0   :  { %7227 = vmatpush1.msra.mxu1 %v20887_v59  ;;  %6881 = vmatprep.subr.mxu0 %v20605_v60  ;;  %v5033_v27 = vadd.f32 %v5032_v29, %v20897_v33  ;;  %v20915_v33 = vand.u32 4294901760, %v16248_v57  ;;  %v20921_v57 = vand.u32 4294901760, %v16269_v18  ;;  %v20925_v18 = vld [vmem:[#allocation330_spill] sm:$0xff] }
 0x4d1   :  { %7228 = vmatprep.subr.mxu1 %v20605_v60  ;;  %6885 = vmatpush1.msra.mxu0 %v20888_v63  ;;  %v5034_v20 = vpop.f32.mrf.mxu0  ;;  %v20906_v63 = vld [vmem:[#allocation109_spill] sm:$0xff] }
 0x4d2   :  { %7230 = vmatpush1.msra.mxu1 %v15949_v15  ;;  %6143 = vmatprep.mubr.f32.mxu0 %v20889_v48  ;;  %v20894_v15 = vand.u32 4294901760, %v20664_v14  ;;  %v20900_v14 = vand.u32 4294901760, %v16191_v42  ;;  %v20904_v42 = vld [vmem:[#allocation11_spill] sm:$0xff] }
 0x4d3   :  { %6521 = vmatprep.mubr.f32.mxu1 %v20890_v3  ;;  %6886 = vmatprep.subr.mxu0 %v20605_v60  ;;  %v20908_v3 = vand.u32 4294901760, %v16205_v62  ;;  %v20914_v62 = vand.u32 4294901760, %v16226_v7  ;;  %v20918_v7 = vld [vmem:[#allocation24_spill] sm:$0xff] }
 0x4d4   :  { %7231 = vmatprep.subr.mxu1 %v20605_v60  ;;  %6146 = vmatmul.mubr.f32.gmra.mxu0 %v20891_v46  ;;  %v20909_v46 = vld [vmem:[#allocation123_spill] sm:$0xff] }
 0x4d5   :  { %6525 = vmatmul.mubr.f32.gmra.mxu1 %v20892_v35  ;;  %6890 = vmatpush1.msra.mxu0 %v20893_v47  ;;  %v5047_v49 = vpop.f32.mrf.mxu0  ;;  %v20910_v35 = vld [vmem:[#allocation114_spill] sm:$0xff] }
 0x4d6   :  { %7233 = vmatpush1.msra.mxu1 %v15899_v8  ;;  %6891 = vmatprep.subr.mxu0 %v20605_v60  ;;  %v20898_v8 = vld [vmem:[#allocation111_spill] sm:$0xff]  ;;  %v5048_v58 = vadd.f32 %v5047_v49, %v20904_v42 }
 0x4d7   :  { %7234 = vmatprep.subr.mxu1 %v20605_v60  ;;  %6895 = vmatpush1.msra.mxu0 %v20894_v15  ;;  %v5049_v9 = vpop.f32.mrf.mxu0 }
 0x4d8   :  { %7236 = vmatpush1.msra.mxu1 %v15979_v23  ;;  %6152 = vmatprep.mubr.f32.mxu0 %v20895_v61  ;;  %v20913_v9 = vld [vmem:[#allocation118_spill] sm:$0xff] }
 0x4d9   :  { %6532 = vmatprep.mubr.f32.mxu1 %v20896_v38  ;;  %6896 = vmatprep.subr.mxu0 %v20605_v60 }
 0x4da   :  { %7237 = vmatprep.subr.mxu1 %v20605_v60  ;;  %6155 = vmatmul.mubr.f32.gmra.mxu0 %v20898_v8  ;;  %v5062_v32 = vpop.f32.mrf.mxu0  ;;  %v5729_v44 = vpop.f32.mrf.mxu1  ;;  %v20917_v8 = vld [vmem:[#allocation122_spill] sm:$0xff] }
 0x4db   :  { %6536 = vmatmul.mubr.f32.gmra.mxu1 %v20899_v2  ;;  %6900 = vmatpush2.msra.mxu0 %v20900_v14  ;;  %v16802_v23 = vadd.f32 %v5729_v44, %v5033_v27  ;;  %v5063_v47 = vadd.f32 %v5062_v32, %v20911_v22  ;;  %v20916_v27 = vld [vmem:[#allocation132_spill] sm:$0xff]  ;;  %v20920_v14 = vld [vmem:[#allocation126_spill] sm:$0xff]  ;;  %v20934_v22 = vld [vmem:[#allocation143_spill] sm:$0xff] }
 0x4dc   :  { %7239 = vmatpush1.msra.mxu1 %v15871_v54  ;;  %6901 = vmatprep.subr.mxu0 %v20605_v60  ;;  %v5064_v4 = vpop.f32.mrf.mxu0  ;;  %v5731_v53 = vpop.f32.mrf.mxu1  ;;  %v20905_v54 = vld [vmem:[#allocation119_spill] sm:$0xff] }
 0x4dd   :  { %7240 = vmatprep.subr.mxu1 %v20605_v60  ;;  %6905 = vmatpush2.msra.mxu0 %v20901_v17  ;;  %v20922_v17 = vand.u32 4294901760, %v16289_v51  ;;  %v20928_v51 = vand.u32 4294901760, %v16310_v26  ;;  %v20932_v26 = vld [vmem:[#allocation311_spill] sm:$0xff] }
 0x4de   :  { %7242 = vmatpush1.msra.mxu1 %v20651_v41  ;;  %6161 = vmatprep.mubr.f32.mxu0 %v20902_v39  ;;  %v20923_v39 = vld [vmem:[#allocation137_spill] sm:$0xff] }
 0x4df   :  { %6543 = vmatprep.mubr.f32.mxu1 %v20903_v1  ;;  %6906 = vmatprep.subr.mxu0 %v20605_v60  ;;  %v20924_v1 = vld [vmem:[#allocation131_spill] sm:$0xff] }
 0x4e0   :  { %7243 = vmatprep.subr.mxu1 %v20605_v60  ;;  %6164 = vmatmul.mubr.f32.gmra.mxu0 %v20905_v54  ;;  %v5077_v59 = vpop.f32.mrf.mxu0  ;;  %v5736_v29 = vpop.f32.mrf.mxu1 }
 0x4e1   :  { %6547 = vmatmul.mubr.f32.gmra.mxu1 %v20906_v63  ;;  %6910 = vmatpush2.msra.mxu0 %v20907_v45  ;;  %v16819_v41 = vadd.f32 %v5736_v29, %v5048_v58  ;;  %v5078_v32 = vadd.f32 %v5077_v59, %v20918_v7  ;;  %v20927_v59 = vld [vmem:[#allocation135_spill] sm:$0xff]  ;;  %v20929_v45 = vand.u32 4294901760, %v16325_v19  ;;  %v20935_v19 = vand.u32 4294901760, %v16342_v12 }
 0x4e2   :  { %7245 = vmatpush1.msra.mxu1 %v20656_v55  ;;  %6911 = vmatprep.subr.mxu0 %v20605_v60  ;;  %v5079_v48 = vpop.f32.mrf.mxu0  ;;  %v5738_v20 = vpop.f32.mrf.mxu1  ;;  %v20912_v55 = vld [vmem:[#allocation127_spill] sm:$0xff]  ;;  %v20943_v7 = vand.u32 4294901760, %v16387_v52 }
 0x4e3   :  { %7246 = vmatprep.subr.mxu1 %v20605_v60  ;;  %6915 = vmatpush2.msra.mxu0 %v20908_v3  ;;  %v20930_v48 = vld [vmem:[#allocation147_spill] sm:$0xff] }
 0x4e4   :  { %7248 = vmatpush1.msra.mxu1 %v20663_v30  ;;  %6170 = vmatprep.mubr.f32.mxu0 %v20909_v46  ;;  %v20931_v20 = vld [vmem:[#allocation139_spill] sm:$0xff] }
 0x4e5   :  { %6554 = vmatprep.mubr.f32.mxu1 %v20910_v35  ;;  %6916 = vmatprep.subr.mxu0 %v20605_v60  ;;  %v20939_v12 = vld [vmem:[#allocation327_spill] sm:$0xff] }
 0x4e6   :  { %7249 = vmatprep.subr.mxu1 %v20605_v60  ;;  %6173 = vmatmul.mubr.f32.gmra.mxu0 %v20912_v55  ;;  %v5092_v49 = vpop.f32.mrf.mxu0  ;;  %v5743_v15 = vpop.f32.mrf.mxu1  ;;  %v20949_v52 = vld [vmem:[#allocation351_spill] sm:$0xff] }
 0x4e7   :  { %6558 = vmatmul.mubr.f32.gmra.mxu1 %v20913_v9  ;;  %6920 = vmatpush2.msra.mxu0 %v20914_v62  ;;  %v16836_v30 = vadd.f32 %v5743_v15, %v5063_v47  ;;  %v5093_v42 = vadd.f32 %v5092_v49, %v20925_v18  ;;  %v20936_v49 = vand.u32 4294901760, %v16355_v40  ;;  %v20937_v15 = vld [vmem:[#allocation155_spill] sm:$0xff]  ;;  %v20938_v9 = vld [vmem:[#allocation145_spill] sm:$0xff]  ;;  %v20942_v40 = vand.u32 4294901760, %v16371_v43  ;;  %v20946_v43 = vld [vmem:[#allocation318_spill] sm:$0xff] }
 0x4e8   :  { %7251 = vmatpush2.msra.mxu1 %v16165_v31  ;;  %6921 = vmatprep.subr.mxu0 %v20605_v60  ;;  %v5094_v61 = vpop.f32.mrf.mxu0  ;;  %v5745_v38 = vpop.f32.mrf.mxu1  ;;  %v20919_v31 = vld [vmem:[#allocation136_spill] sm:$0xff]  ;;  %v20953_v18 = vld [vmem:[#allocation343_spill] sm:$0xff] }
 0x4e9   :  { %7252 = vmatprep.subr.mxu1 %v20605_v60  ;;  %6925 = vmatpush2.msra.mxu0 %v20915_v33  ;;  %v20941_v33 = vld [vmem:[#allocation149_spill] sm:$0xff] }
 0x4ea   :  { %7254 = vmatpush2.msra.mxu1 %v16184_v34  ;;  %6179 = vmatprep.mubr.f32.mxu0 %v20916_v27 }
 0x4eb   :  { %6565 = vmatprep.mubr.f32.mxu1 %v20917_v8  ;;  %6926 = vmatprep.subr.mxu0 %v20605_v60 }
 0x4ec   :  { %7255 = vmatprep.subr.mxu1 %v20605_v60  ;;  %6182 = vmatmul.mubr.f32.gmra.mxu0 %v20919_v31  ;;  %v5107_v44 = vpop.f32.mrf.mxu0  ;;  %v5750_v2 = vpop.f32.mrf.mxu1  ;;  %v20945_v31 = vld [vmem:[#allocation154_spill] sm:$0xff] }
 0x4ed   :  { %6569 = vmatmul.mubr.f32.gmra.mxu1 %v20920_v14  ;;  %6930 = vmatpush2.msra.mxu0 %v20921_v57  ;;  %v16853_v34 = vadd.f32 %v5750_v2, %v5078_v32  ;;  %v5108_v3 = vadd.f32 %v5107_v44, %v20932_v26  ;;  %v20944_v32 = vld [vmem:[#allocation163_spill] sm:$0xff]  ;;  %v20948_v57 = vld [vmem:[#allocation158_spill] sm:$0xff] }
 0x4ee   :  { %7257 = vmatpush2.msra.mxu1 %v16140_v10  ;;  %6931 = vmatprep.subr.mxu0 %v20605_v60  ;;  %v5109_v4 = vpop.f32.mrf.mxu0  ;;  %v5752_v53 = vpop.f32.mrf.mxu1  ;;  %v20926_v10 = vld [vmem:[#allocation141_spill] sm:$0xff] }
 0x4ef   :  { %7258 = vmatprep.subr.mxu1 %v20605_v60  ;;  %6935 = vmatpush2.msra.mxu0 %v20922_v17  ;;  %v20950_v4 = vand.u32 4294901760, %v20949_v52  ;;  %v20951_v53 = vld [vmem:[#allocation20_spill] sm:$0xff]  ;;  %v20979_v52 = vld [vmem:[#allocation207_spill] sm:$0xff] }
 0x4f0   :  { %7260 = vmatpush2.msra.mxu1 %v16156_v50  ;;  %6188 = vmatprep.mubr.f32.mxu0 %v20923_v39 }
 0x4f1   :  { %6576 = vmatprep.mubr.f32.mxu1 %v20924_v1  ;;  %6936 = vmatprep.subr.mxu0 %v20605_v60  ;;  %v20952_v1 = vand.u32 4294901760, %v16412_v24  ;;  %v20960_v24 = vld [vmem:[#allocation177_spill] sm:$0xff] }
 0x4f2   :  { %7261 = vmatprep.subr.mxu1 %v20605_v60  ;;  %6191 = vmatmul.mubr.f32.gmra.mxu0 %v20926_v10  ;;  %v5122_v58 = vpop.f32.mrf.mxu0  ;;  %v5757_v54 = vpop.f32.mrf.mxu1  ;;  %v20955_v10 = vld [vmem:[#allocation162_spill] sm:$0xff] }
 0x4f3   :  { %6580 = vmatmul.mubr.f32.gmra.mxu1 %v20927_v59  ;;  %6940 = vmatpush2.msra.mxu0 %v20928_v51  ;;  %v16870_v50 = vadd.f32 %v5757_v54, %v5093_v42  ;;  %v5123_v62 = vadd.f32 %v5122_v58, %v20939_v12  ;;  %v20954_v42 = vld [vmem:[#allocation172_spill] sm:$0xff]  ;;  %v20958_v51 = vld [vmem:[#allocation166_spill] sm:$0xff] }
 0x4f4   :  { %7263 = vmatpush2.msra.mxu1 %v16174_v28  ;;  %6941 = vmatprep.subr.mxu0 %v20605_v60  ;;  %v5124_v29 = vpop.f32.mrf.mxu0  ;;  %v5759_v63 = vpop.f32.mrf.mxu1  ;;  %v20933_v28 = vld [vmem:[#allocation151_spill] sm:$0xff]  ;;  %v20956_v58 = vld [vmem:[#allocation316_spill] sm:$0xff] }
 0x4f5   :  { %7264 = vmatprep.subr.mxu1 %v20605_v60  ;;  %6945 = vmatpush2.msra.mxu0 %v20929_v45  ;;  %v20957_v59 = vld [vmem:[#allocation176_spill] sm:$0xff]  ;;  %v20959_v45 = vld [vmem:[#allocation345_spill] sm:$0xff] }
 0x4f6   :  { %7266 = vmatpush2.msra.mxu1 %v16201_v13  ;;  %6197 = vmatprep.mubr.f32.mxu0 %v20930_v48 }
 0x4f7   :  { %6587 = vmatprep.mubr.f32.mxu1 %v20931_v20  ;;  %6946 = vmatprep.subr.mxu0 %v20605_v60  ;;  %v20961_v20 = vld [vmem:[#allocation171_spill] sm:$0xff] }
 0x4f8   :  { %7267 = vmatprep.subr.mxu1 %v20605_v60  ;;  %6200 = vmatmul.mubr.f32.gmra.mxu0 %v20933_v28  ;;  %v5137_v46 = vpop.f32.mrf.mxu0  ;;  %v5764_v35 = vpop.f32.mrf.mxu1  ;;  %v20962_v28 = vld [vmem:[#allocation348_spill] sm:$0xff] }
 0x4f9   :  { %6591 = vmatmul.mubr.f32.gmra.mxu1 %v20934_v22  ;;  %6950 = vmatpush2.msra.mxu0 %v20935_v19  ;;  %v16887_v13 = vadd.f32 %v5764_v35, %v5108_v3  ;;  %v5138_v44 = vadd.f32 %v5137_v46, %v20946_v43  ;;  %v20963_v46 = vld [vmem:[#allocation181_spill] sm:$0xff]  ;;  %v20964_v35 = vld [vmem:[#allocation175_spill] sm:$0xff]  ;;  %v20966_v19 = vld [vmem:[#allocation306_spill] sm:$0xff] }
 0x4fa   :  { %7269 = vmatpush2.msra.mxu1 %v16221_v56  ;;  %6951 = vmatprep.subr.mxu0 %v20605_v60  ;;  %v5139_v47 = vpop.f32.mrf.mxu0  ;;  %v5766_v55 = vpop.f32.mrf.mxu1  ;;  %v20940_v56 = vld [vmem:[#allocation159_spill] sm:$0xff]  ;;  %v20976_v43 = vld [vmem:[#allocation189_spill] sm:$0xff] }
 0x4fb   :  { %7270 = vmatprep.subr.mxu1 %v20605_v60  ;;  %6955 = vmatpush2.msra.mxu0 %v20936_v49  ;;  %v20965_v22 = vld [vmem:[#allocation187_spill] sm:$0xff]  ;;  %v20967_v55 = vld [vmem:[#allocation349_spill] sm:$0xff] }
 0x4fc   :  { %7272 = vmatpush2.msra.mxu1 %v16243_v36  ;;  %6206 = vmatprep.mubr.f32.mxu0 %v20937_v15  ;;  %v20968_v49 = vld [vmem:[#allocation179_spill] sm:$0xff] }
 0x4fd   :  { %6598 = vmatprep.mubr.f32.mxu1 %v20938_v9  ;;  %6956 = vmatprep.subr.mxu0 %v20605_v60 }
 0x4fe   :  { %7273 = vmatprep.subr.mxu1 %v20605_v60  ;;  %6209 = vmatmul.mubr.f32.gmra.mxu0 %v20940_v56  ;;  %v5152_v61 = vpop.f32.mrf.mxu0  ;;  %v5771_v38 = vpop.f32.mrf.mxu1  ;;  %v20970_v56 = vld [vmem:[#allocation191_spill] sm:$0xff] }
 0x4ff   :  { %6602 = vmatmul.mubr.f32.gmra.mxu1 %v20941_v33  ;;  %6960 = vmatpush2.msra.mxu0 %v20942_v40  ;;  %v16904_v36 = vadd.f32 %v5771_v38, %v5123_v62  ;;  %v5153_v54 = vadd.f32 %v5152_v61, %v20956_v58  ;;  %v20969_v62 = vld [vmem:[#allocation350_spill] sm:$0xff]  ;;  %v20971_v33 = vld [vmem:[#allocation183_spill] sm:$0xff]  ;;  %v20984_v58 = vld [vmem:[#allocation216_spill] sm:$0xff] }
 0x500   :  { %7275 = vmatpush2.msra.mxu1 %v16264_v21  ;;  %6961 = vmatprep.subr.mxu0 %v20605_v60  ;;  %v5154_v27 = vpop.f32.mrf.mxu0  ;;  %v5773_v8 = vpop.f32.mrf.mxu1  ;;  %v20947_v21 = vld [vmem:[#allocation167_spill] sm:$0xff] }
 0x501   :  { %7276 = vmatprep.subr.mxu1 %v20605_v60  ;;  %6965 = vmatpush2.msra.mxu0 %v20943_v7  ;;  %v20972_v40 = vld [vmem:[#allocation195_spill] sm:$0xff]  ;;  %v20973_v27 = vld [vmem:[#allocation185_spill] sm:$0xff]  ;;  %v20974_v8 = vld [vmem:[#allocation294_spill] sm:$0xff] }
 0x502   :  { %7278 = vmatpush2.msra.mxu1 %v16284_v16  ;;  %6215 = vmatprep.mubr.f32.mxu0 %v20944_v32  ;;  %v20975_v32 = vld [vmem:[#allocation199_spill] sm:$0xff] }
 0x503   :  { %6609 = vmatprep.mubr.f32.mxu1 %v20945_v31  ;;  %6966 = vmatprep.subr.mxu0 %v20605_v60 }
 0x504   :  { %7279 = vmatprep.subr.mxu1 %v20605_v60  ;;  %6218 = vmatmul.mubr.f32.gmra.mxu0 %v20947_v21  ;;  %v5167_v2 = vpop.f32.mrf.mxu0  ;;  %v5778_v14 = vpop.f32.mrf.mxu1 }
 0x505   :  { %6613 = vmatmul.mubr.f32.gmra.mxu1 %v20948_v57  ;;  %6970 = vmatpush2.msra.mxu0 %v20950_v4  ;;  %v16921_v16 = vadd.f32 %v5778_v14, %v5138_v44  ;;  %v5168_v47 = vadd.f32 %v5167_v2, %v20966_v19  ;;  %v20977_v44 = vld [vmem:[#allocation203_spill] sm:$0xff]  ;;  %v20978_v2 = vld [vmem:[#allocation194_spill] sm:$0xff] }
 0x506   :  { %7281 = vmatpush2.msra.mxu1 %v20951_v53  ;;  %6971 = vmatprep.subr.mxu0 %v20605_v60  ;;  %v5169_v17 = vpop.f32.mrf.mxu0  ;;  %v5780_v39 = vpop.f32.mrf.mxu1  ;;  %v20980_v4 = vld [vmem:[#allocation198_spill] sm:$0xff]  ;;  %v20981_v53 = vld [vmem:[#allocation212_spill] sm:$0xff] }
 0x507   :  { %7282 = vmatprep.subr.mxu1 %v20605_v60  ;;  %6975 = vmatpush2.msra.mxu0 %v20952_v1  ;;  %v20982_v17 = vld [vmem:[#allocation19_spill] sm:$0xff]  ;;  %v20983_v1 = vld [vmem:[#allocation202_spill] sm:$0xff] }
 0x508   :  { %7284 = vmatpush2.msra.mxu1 %v20953_v18  ;;  %6224 = vmatprep.mubr.f32.mxu0 %v20954_v42 }
 0x509   :  { %6620 = vmatprep.mubr.f32.mxu1 %v20955_v10  ;;  %7285 = vmatprep.subr.mxu1 %v20605_v60 }
 0x50a   :  { %6227 = vmatmul.mubr.f32.gmra.mxu0 %v20957_v59  ;;  %6624 = vmatmul.mubr.f32.gmra.mxu1 %v20958_v51  ;;  %v5182_v29 = vpop.f32.mrf.mxu0  ;;  %v5785_v63 = vpop.f32.mrf.mxu1  ;;  %v20985_v51 = vld [vmem:[#allocation206_spill] sm:$0xff] }
 0x50b   :  { %7287 = vmatpush2.msra.mxu1 %v20959_v45  ;;  %6233 = vmatprep.mubr.f32.mxu0 %v20960_v24  ;;  %v16937_v48 = vadd.f32 %v5785_v63, %v5153_v54  ;;  %v5183_v7 = vadd.f32 %v5182_v29, %v20974_v8  ;;  %v20986_v29 = vld [vmem:[#allocation217_spill] sm:$0xff]  ;;  %v20987_v63 = vld [vmem:[#allocation211_spill] sm:$0xff] }
 0x50c   :  { %7288 = vmatprep.subr.mxu1 %v20605_v60  ;;  %6631 = vmatprep.mubr.f32.mxu1 %v20961_v20  ;;  %v5184_v26 = vpop.f32.mrf.mxu0  ;;  %v5787_v3 = vpop.f32.mrf.mxu1  ;;  %v20988_v45 = vld [vmem:[#allocation17_spill] sm:$0xff] }
 0x50d   :  { %7290 = vmatpush2.msra.mxu1 %v20962_v28  ;;  %v20989_v20 = vld [vmem:[#allocation221_spill] sm:$0xff]  ;;  %v20990_v28 = vld [vmem:[#allocation215_spill] sm:$0xff] }
 0x50e   :  { %7291 = vmatprep.subr.mxu1 %v20605_v60  ;;  %6236 = vmatmul.mubr.f32.gmra.mxu0 %v20963_v46  ;;  %v20991_v46 = vld [vmem:[#allocation227_spill] sm:$0xff] }
 0x50f   :  { %6635 = vmatmul.mubr.f32.gmra.mxu1 %v20964_v35  ;;  %6242 = vmatprep.mubr.f32.mxu0 %v20965_v22  ;;  %v20992_v22 = vld [vmem:[#allocation219_spill] sm:$0xff] }
 0x510   :  { %7293 = vmatpush2.msra.mxu1 %v20967_v55  ;;  %6642 = vmatprep.mubr.f32.mxu1 %v20968_v49  ;;  %v5197_v15 = vpop.f32.mrf.mxu0  ;;  %v5792_v9 = vpop.f32.mrf.mxu1  ;;  %v20993_v55 = vld [vmem:[#allocation231_spill] sm:$0xff] }
 0x511   :  { %7294 = vmatprep.subr.mxu1 %v20605_v60  ;;  %v16950_v12 = vadd.f32 %v5792_v9, %v5168_v47  ;;  %v5198_v39 = vadd.f32 %v5197_v15, %v20982_v17  ;;  %v20994_v49 = vld [vmem:[#allocation223_spill] sm:$0xff]  ;;  %v20996_v9 = vld [vmem:[#allocation8_spill] sm:$0xff] }
 0x512   :  { %7296 = vmatpush2.msra.mxu1 %v20969_v62  ;;  %6245 = vmatmul.mubr.f32.gmra.mxu0 %v20970_v56  ;;  %v5199_v61 = vpop.f32.mrf.mxu0  ;;  %v5794_v38 = vpop.f32.mrf.mxu1  ;;  %v20995_v15 = vld [vmem:[#allocation235_spill] sm:$0xff]  ;;  %v20997_v56 = vld [vmem:[#allocation225_spill] sm:$0xff] }
 0x513   :  { %6646 = vmatmul.mubr.f32.gmra.mxu1 %v20971_v33  ;;  %6251 = vmatprep.mubr.f32.mxu0 %v20972_v40  ;;  %v20998_v40 = vld [vmem:[#allocation239_spill] sm:$0xff] }
 0x514   :  { %6653 = vmatprep.mubr.f32.mxu1 %v20973_v27 }
 0x516   :  { %6254 = vmatmul.mubr.f32.gmra.mxu0 %v20975_v32  ;;  %v5212_v31 = vpop.f32.mrf.mxu0  ;;  %v5799_v60 = vpop.f32.mrf.mxu1  ;;  %v21000_v32 = vld [vmem:[#allocation243_spill] sm:$0xff] }
 0x517   :  { %6657 = vmatmul.mubr.f32.gmra.mxu1 %v20976_v43  ;;  %6260 = vmatprep.mubr.f32.mxu0 %v20977_v44  ;;  %v16961_v21 = vadd.f32 %v5799_v60, %v5183_v7  ;;  %v5213_v24 = vadd.f32 %v5212_v31, %v20988_v45  ;;  %v20999_v7 = vld [vmem:[#allocation229_spill] sm:$0xff]  ;;  %v21001_v31 = vld [vmem:[#allocation234_spill] sm:$0xff]  ;;  %v21002_v60 = vld [vmem:[#allocation12_spill] sm:$0xff] }
 0x518   :  { %6664 = vmatprep.mubr.f32.mxu1 %v20978_v2  ;;  %v5214_v14 = vpop.f32.mrf.mxu0  ;;  %v5801_v57 = vpop.f32.mrf.mxu1  ;;  %v21003_v44 = vld [vmem:[#allocation247_spill] sm:$0xff] }
 0x519   :  { %v21004_v57 = vld [vmem:[#allocation238_spill] sm:$0xff] }
 0x51a   :  { %6263 = vmatmul.mubr.f32.gmra.mxu0 %v20979_v52  ;;  %v21005_v52 = vld [vmem:[#allocation252_spill] sm:$0xff] }
 0x51b   :  { %6668 = vmatmul.mubr.f32.gmra.mxu1 %v20980_v4  ;;  %6269 = vmatprep.mubr.f32.mxu0 %v20981_v53  ;;  %v21006_v53 = vld [vmem:[#allocation242_spill] sm:$0xff] }
 0x51c   :  { %6675 = vmatprep.mubr.f32.mxu1 %v20983_v1  ;;  %v5227_v18 = vpop.f32.mrf.mxu0  ;;  %v5806_v42 = vpop.f32.mrf.mxu1  ;;  %v21007_v1 = vld [vmem:[#allocation256_spill] sm:$0xff] }
 0x51d   :  { %v16969_v10 = vadd.f32 %v5806_v42, %v5198_v39  ;;  %v5228_v62 = vadd.f32 %v5227_v18, %v20996_v9  ;;  %v21008_v18 = vld [vmem:[#allocation25_spill] sm:$0xff]  ;;  %v21017_v9 = vld [vmem:[#allocation270_spill] sm:$0xff] }
 0x51e   :  { %6272 = vmatmul.mubr.f32.gmra.mxu0 %v20984_v58  ;;  %v5229_v54 = vpop.f32.mrf.mxu0  ;;  %v5808_v59 = vpop.f32.mrf.mxu1 }
 0x51f   :  { %6679 = vmatmul.mubr.f32.gmra.mxu1 %v20985_v51  ;;  %6278 = vmatprep.mubr.f32.mxu0 %v20986_v29  ;;  %v21009_v54 = vld [vmem:[#allocation246_spill] sm:$0xff]  ;;  %v21010_v59 = vld [vmem:[#allocation257_spill] sm:$0xff]  ;;  %v21011_v29 = vld [vmem:[#allocation251_spill] sm:$0xff] }
 0x520   :  { %6686 = vmatprep.mubr.f32.mxu1 %v20987_v63 }
 0x522   :  { %6281 = vmatmul.mubr.f32.gmra.mxu0 %v20989_v20  ;;  %v5242_v26 = vpop.f32.mrf.mxu0  ;;  %v5813_v3 = vpop.f32.mrf.mxu1  ;;  %v21012_v20 = vld [vmem:[#allocation261_spill] sm:$0xff] }
 0x523   :  { %6690 = vmatmul.mubr.f32.gmra.mxu1 %v20990_v28  ;;  %6287 = vmatprep.mubr.f32.mxu0 %v20991_v46  ;;  %v16979_v35 = vadd.f32 %v5813_v3, %v5213_v24  ;;  %v5243_v43 = vadd.f32 %v5242_v26, %v21002_v60  ;;  %v21013_v26 = vld [vmem:[#allocation347_spill] sm:$0xff]  ;;  %v21022_v60 = vld [vmem:[#allocation278_spill] sm:$0xff] }
 0x524   :  { %6697 = vmatprep.mubr.f32.mxu1 %v20992_v22  ;;  %v5244_v19 = vpop.f32.mrf.mxu0  ;;  %v5815_v47 = vpop.f32.mrf.mxu1  ;;  %v21014_v46 = vld [vmem:[#allocation255_spill] sm:$0xff]  ;;  %v21015_v22 = vld [vmem:[#allocation266_spill] sm:$0xff] }
 0x525   :  { %v21016_v47 = vld [vmem:[#allocation259_spill] sm:$0xff] }
 0x526   :  { %6290 = vmatmul.mubr.f32.gmra.mxu0 %v20993_v55 }
 0x527   :  { %6701 = vmatmul.mubr.f32.gmra.mxu1 %v20994_v49  ;;  %6296 = vmatprep.mubr.f32.mxu0 %v20995_v15 }
 0x528   :  { %6708 = vmatprep.mubr.f32.mxu1 %v20997_v56  ;;  %v5257_v61 = vpop.f32.mrf.mxu0  ;;  %v5820_v38 = vpop.f32.mrf.mxu1 }
 0x529   :  { %v16987_v33 = vadd.f32 %v5820_v38, %v5228_v62  ;;  %v5258_v42 = vadd.f32 %v5257_v61, %v21008_v18  ;;  %v21018_v62 = vld [vmem:[#allocation346_spill] sm:$0xff]  ;;  %v21019_v38 = vld [vmem:[#allocation263_spill] sm:$0xff]  ;;  %v21027_v18 = vld [vmem:[#allocation284_spill] sm:$0xff] }
 0x52a   :  { %6299 = vmatmul.mubr.f32.gmra.mxu0 %v20998_v40  ;;  %v5259_v27 = vpop.f32.mrf.mxu0  ;;  %v5822_v8 = vpop.f32.mrf.mxu1  ;;  %v21020_v40 = vld [vmem:[#allocation274_spill] sm:$0xff] }
 0x52b   :  { %6712 = vmatmul.mubr.f32.gmra.mxu1 %v20999_v7  ;;  %6305 = vmatprep.mubr.f32.mxu0 %v21000_v32  ;;  %v21021_v8 = vld [vmem:[#allocation265_spill] sm:$0xff] }
 0x52c   :  { %6719 = vmatprep.mubr.f32.mxu1 %v21001_v31 }
 0x52e   :  { %6308 = vmatmul.mubr.f32.gmra.mxu0 %v21003_v44  ;;  %v5272_v2 = vpop.f32.mrf.mxu0  ;;  %v5827_v14 = vpop.f32.mrf.mxu1 }
 0x52f   :  { %6723 = vmatmul.mubr.f32.gmra.mxu1 %v21004_v57  ;;  %6314 = vmatprep.mubr.f32.mxu0 %v21005_v52  ;;  %v16997_v4 = vadd.f32 %v5827_v14, %v5243_v43  ;;  %v5273_v3 = vadd.f32 %v5272_v2, %v21013_v26  ;;  %v21023_v43 = vld [vmem:[#allocation344_spill] sm:$0xff]  ;;  %v21025_v57 = vld [vmem:[#allocation281_spill] sm:$0xff] }
 0x530   :  { %6730 = vmatprep.mubr.f32.mxu1 %v21006_v53  ;;  %v5274_v17 = vpop.f32.mrf.mxu0  ;;  %v5829_v39 = vpop.f32.mrf.mxu1  ;;  %v21024_v14 = vld [vmem:[#allocation268_spill] sm:$0xff]  ;;  %v21026_v53 = vld [vmem:[#allocation273_spill] sm:$0xff] }
 0x532   :  { %6317 = vmatmul.mubr.f32.gmra.mxu0 %v21007_v1  ;;  %v5287_v58 = vpop.f32.mrf.mxu0 }
 0x533   :  { %6734 = vmatmul.mubr.f32.gmra.mxu1 %v21009_v54  ;;  %6323 = vmatprep.mubr.f32.mxu0 %v21010_v59  ;;  %v5834_v51 = vpop.f32.mrf.mxu1  ;;  %v5288_v56 = vadd.f32 %v5287_v58, %v21018_v62  ;;  %v21029_v59 = vld [vmem:[#allocation277_spill] sm:$0xff] }
 0x534   :  { %6741 = vmatprep.mubr.f32.mxu1 %v21011_v29  ;;  %v17005_v63 = vadd.f32 %v5834_v51, %v5258_v42  ;;  %v5289_v45 = vpop.f32.mrf.mxu0  ;;  %v21028_v42 = vld [vmem:[#allocation341_spill] sm:$0xff]  ;;  %v21030_v51 = vld [vmem:[#allocation287_spill] sm:$0xff] }
 0x535   :  { %v5836_v24 = vpop.f32.mrf.mxu1  ;;  %v21031_v45 = vld [vmem:[#allocation30_spill] sm:$0xff] }
 0x536   :  { %6326 = vmatmul.mubr.f32.gmra.mxu0 %v21012_v20  ;;  %v5302_v28 = vpop.f32.mrf.mxu0 }
 0x537   :  { %6745 = vmatmul.mubr.f32.gmra.mxu1 %v21014_v46  ;;  %6332 = vmatprep.mubr.f32.mxu0 %v21015_v22  ;;  %v5841_v19 = vpop.f32.mrf.mxu1  ;;  %v5303_v44 = vadd.f32 %v5302_v28, %v21023_v43  ;;  %v21033_v28 = vld [vmem:[#allocation18_spill] sm:$0xff] }
 0x538   :  { %6752 = vmatprep.mubr.f32.mxu1 %v21016_v47  ;;  %v17012_v55 = vadd.f32 %v5841_v19, %v5273_v3  ;;  %v5304_v49 = vpop.f32.mrf.mxu0  ;;  %v21032_v3 = vld [vmem:[#allocation289_spill] sm:$0xff]  ;;  %v21034_v19 = vld [vmem:[#allocation283_spill] sm:$0xff]  ;;  %v21035_v47 = vld [vmem:[#allocation40_spill] sm:$0xff] }
 0x539   :  { %v5843_v15 = vpop.f32.mrf.mxu1 }
 0x53a   :  { %6335 = vmatmul.mubr.f32.gmra.mxu0 %v21017_v9  ;;  %v5317_v61 = vpop.f32.mrf.mxu0  ;;  %v21036_v15 = vld [vmem:[#allocation286_spill] sm:$0xff] }
 0x53b   :  { %6756 = vmatmul.mubr.f32.gmra.mxu1 %v21019_v38  ;;  %6341 = vmatprep.mubr.f32.mxu0 %v21020_v40  ;;  %v5848_v27 = vpop.f32.mrf.mxu1  ;;  %v5318_v58 = vadd.f32 %v5317_v61, %v21028_v42  ;;  %v21037_v61 = vld [vmem:[#allocation41_spill] sm:$0xff] }
 0x53c   :  { %6763 = vmatprep.mubr.f32.mxu1 %v21021_v8  ;;  %v17019_v7 = vadd.f32 %v5848_v27, %v5288_v56  ;;  %v5319_v32 = vpop.f32.mrf.mxu0  ;;  %v21038_v38 = vld [vmem:[#allocation53_spill] sm:$0xff]  ;;  %v21039_v8 = vld [vmem:[#allocation288_spill] sm:$0xff] }
 0x53d   :  { %v5850_v31 = vpop.f32.mrf.mxu1  ;;  %v21040_v32 = vld [vmem:[#allocation43_spill] sm:$0xff] }
 0x53e   :  { %6344 = vmatmul.mubr.f32.gmra.mxu0 %v21022_v60  ;;  %v5332_v2 = vpop.f32.mrf.mxu0  ;;  %v21041_v60 = vld [vmem:[#allocation290_spill] sm:$0xff] }
 0x53f   :  { %6767 = vmatmul.mubr.f32.gmra.mxu1 %v21024_v14  ;;  %6350 = vmatprep.mubr.f32.mxu0 %v21025_v57  ;;  %v5855_v52 = vpop.f32.mrf.mxu1  ;;  %v5333_v46 = vadd.f32 %v5332_v2, %v21033_v28  ;;  %v21042_v14 = vld [vmem:[#allocation50_spill] sm:$0xff] }
 0x540   :  { %6774 = vmatprep.mubr.f32.mxu1 %v21026_v53  ;;  %v17026_v17 = vadd.f32 %v5855_v52, %v5303_v44  ;;  %v5334_v39 = vpop.f32.mrf.mxu0  ;;  %v21043_v57 = vld [vmem:[#allocation338_spill] sm:$0xff] }
 0x541   :  { %v5857_v1 = vpop.f32.mrf.mxu1  ;;  %v21044_v39 = vld [vmem:[#allocation291_spill] sm:$0xff] }
 0x542   :  { %6353 = vmatmul.mubr.f32.gmra.mxu0 %v21027_v18  ;;  %v5347_v54 = vpop.f32.mrf.mxu0  ;;  %v21045_v1 = vld [vmem:[#allocation52_spill] sm:$0xff] }
 0x543   :  { %6778 = vmatmul.mubr.f32.gmra.mxu1 %v21029_v59  ;;  %6359 = vmatprep.mubr.f32.mxu0 %v21030_v51  ;;  %v5862_v29 = vpop.f32.mrf.mxu1  ;;  %v5348_v40 = vadd.f32 %v5347_v54, %v21038_v38  ;;  %v21046_v59 = vld [vmem:[#allocation56_spill] sm:$0xff]  ;;  %v21047_v51 = vld [vmem:[#allocation337_spill] sm:$0xff] }
 0x544   :  { %6785 = vmatprep.mubr.f32.mxu1 %v21031_v45  ;;  %v17033_v24 = vadd.f32 %v5862_v29, %v5318_v58  ;;  %v5349_v20 = vpop.f32.mrf.mxu0 }
 0x545   :  { %v5864_v26 = vpop.f32.mrf.mxu1  ;;  %v21048_v20 = vld [vmem:[#allocation61_spill] sm:$0xff] }
 0x546   :  { %6362 = vmatmul.mubr.f32.gmra.mxu0 %v21032_v3  ;;  %v5362_v22 = vpop.f32.mrf.mxu0 }
 0x547   :  { %6789 = vmatmul.mubr.f32.gmra.mxu1 %v21034_v19  ;;  %6977 = vmatprep.mubr.f32.mxu0 %v21035_v47  ;;  %v5869_v49 = vpop.f32.mrf.mxu1  ;;  %v5363_v52 = vadd.f32 %v5362_v22, %v21043_v57  ;;  %v21049_v22 = vld [vmem:[#allocation64_spill] sm:$0xff]  ;;  %v21050_v19 = vld [vmem:[#allocation334_spill] sm:$0xff] }
 0x548   :  { %6796 = vmatprep.mubr.f32.mxu1 %v21036_v15  ;;  %v17040_v9 = vadd.f32 %v5869_v49, %v5333_v46  ;;  %v5364_v62 = vpop.f32.mrf.mxu0  ;;  %v21051_v15 = vld [vmem:[#allocation67_spill] sm:$0xff]  ;;  %v21055_v57 = vld [vmem:[#allocation80_spill] sm:$0xff] }
 0x549   :  { %v5871_v56 = vpop.f32.mrf.mxu1 }
 0x54a   :  { %6979 = vmatmul.mubr.f32.vlgmr.msra.gmra.mxu0 %v21037_v61  ;;  %v5377_v27 = vpop.f32.mrf.mxu0 }
 0x54b   :  { %6800 = vmatmul.mubr.f32.gmra.mxu1 %v21039_v8  ;;  %6984 = vmatprep.mubr.f32.mxu0 %v21040_v32  ;;  %v5876_v31 = vpop.f32.mrf.mxu1  ;;  %v5378_v29 = vadd.f32 %v5377_v27, %v21047_v51  ;;  %v21053_v27 = vld [vmem:[#allocation14_spill] sm:$0xff]  ;;  %v172_v51 = vld [vmem:[%s18875_s3 + $0x48] sm:$0xff] }
 0x54c   :  { %6807 = vmatprep.mubr.f32.mxu1 %v21041_v60  ;;  %v17047_v43 = vadd.f32 %v5876_v31, %v5348_v40  ;;  %v5379_v44 = vpop.f32.mrf.mxu0  ;;  %v21052_v40 = vld [vmem:[#allocation72_spill] sm:$0xff] }
 0x54d   :  { %v5878_v2 = vpop.f32.mrf.mxu1  ;;  %v21054_v31 = vld [vmem:[#allocation76_spill] sm:$0xff] }
 0x54e   :  { %6986 = vmatmul.mubr.f32.gmra.mxu0 %v21042_v14  ;;  %v5392_v53 = vpop.f32.mrf.mxu0 }
 0x54f   :  { %6811 = vmatmul.mubr.f32.gmra.mxu1 %v21044_v39  ;;  %6991 = vmatprep.mubr.f32.mxu0 %v21045_v1  ;;  %v5883_v18 = vpop.f32.mrf.mxu1 }
 0x550   :  { %7298 = vmatprep.mubr.f32.mxu1 %v21035_v47  ;;  %v17054_v42 = vadd.f32 %v5883_v18, %v5363_v52  ;;  %v5394_v58 = vpop.f32.mrf.mxu0  ;;  %v5393_v47 = vadd.f32 %v5392_v53, %v21050_v19  ;;  %v21056_v52 = vld [vmem:[#allocation297_spill] sm:$0xff] }
 0x551   :  { %v5885_v54 = vpop.f32.mrf.mxu1 }
 0x552   :  { %6993 = vmatmul.mubr.f32.gmra.mxu0 %v21046_v59  ;;  %v5407_v45 = vpop.f32.mrf.mxu0 }
 0x553   :  { %7300 = vmatmul.mubr.f32.vlgmr.msra.gmra.mxu1 %v21037_v61  ;;  %6998 = vmatprep.mubr.f32.mxu0 %v21048_v20  ;;  %v5890_v26 = vpop.f32.mrf.mxu1  ;;  %v5408_v8 = vadd.f32 %v5407_v45, %v21053_v27  ;;  %v21059_v45 = vld [vmem:[#allocation68_spill] sm:$0xff] }
 0x554   :  { %7305 = vmatprep.mubr.f32.mxu1 %v21040_v32  ;;  %v17061_v3 = vadd.f32 %v5890_v26, %v5378_v29  ;;  %v5409_v28 = vpop.f32.mrf.mxu0  ;;  %v21058_v29 = vld [vmem:[#allocation88_spill] sm:$0xff] }
 0x555   :  { %v5892_v46 = vpop.f32.mrf.mxu1  ;;  %v17089_v28 = vand.u32 4294901760, %v172_v51 }
 0x556   :  { %7000 = vmatmul.mubr.f32.gmra.mxu0 %v21049_v22  ;;  %v5422_v49 = vpop.f32.mrf.mxu0  ;;  %v21060_v46 = vld [vmem:[#allocation89_spill] sm:$0xff] }
 0x557   :  { %7307 = vmatmul.mubr.f32.gmra.mxu1 %v21042_v14  ;;  %7005 = vmatprep.mubr.f32.mxu0 %v21051_v15  ;;  %v5897_v62 = vpop.f32.mrf.mxu1  ;;  %v5423_v53 = vadd.f32 %v5422_v49, %v21056_v52  ;;  %v17098_v49 = vsub.f32 %v172_v51, %v17089_v28  ;;  %v21064_v52 = vld [vmem:[#allocation104_spill] sm:$0xff] }
 0x558   :  { %7312 = vmatprep.mubr.f32.mxu1 %v21045_v1  ;;  %v17068_v56 = vadd.f32 %v5897_v62, %v5393_v47  ;;  %v5424_v61 = vpop.f32.mrf.mxu0  ;;  %v21057_v1 = vld [vmem:[#allocation84_spill] sm:$0xff]  ;;  %11568 = vmatprep.subr.mxu0 %v17089_v28  ;;  %v21061_v62 = vld [vmem:[#allocation93_spill] sm:$0xff] }
 0x559   :  { %v5899_v38 = vpop.f32.mrf.mxu1  ;;  %11569 = vmatpush3.msra.mxu0 %v17089_v28  ;;  %v21062_v61 = vld [vmem:[#allocation295_spill] sm:$0xff]  ;;  %v17104_v27 = vand.u32 4294901760, %v17098_v49 }
 0x55a   :  { %7007 = vmatmul.mubr.f32.gmra.mxu0 %v21052_v40  ;;  %v5437_v32 = vpop.f32.mrf.mxu0 }
 0x55b   :  { %7314 = vmatmul.mubr.f32.gmra.mxu1 %v21046_v59  ;;  %7012 = vmatprep.mubr.f32.mxu0 %v21054_v31  ;;  %v5904_v60 = vpop.f32.mrf.mxu1 }
 0x55c   :  { %7319 = vmatprep.mubr.f32.mxu1 %v21048_v20  ;;  %v17075_v44 = vadd.f32 %v5904_v60, %v5408_v8  ;;  %v5439_v2 = vpop.f32.mrf.mxu0  ;;  %v5438_v20 = vadd.f32 %v5437_v32, %v21059_v45  ;;  %v21063_v8 = vld [vmem:[#allocation100_spill] sm:$0xff] }
 0x55d   :  { %v5906_v14 = vpop.f32.mrf.mxu1  ;;  %v8041_v2 = vsub.f32 %v17098_v49, %v17104_v27 }
 0x55e   :  { %7014 = vmatmul.mubr.f32.gmra.mxu0 %v21055_v57  ;;  %v5452_v39 = vpop.f32.mrf.mxu0 }
 0x55f   :  { %7321 = vmatmul.mubr.f32.gmra.mxu1 %v21049_v22  ;;  %7019 = vmatprep.mubr.f32.mxu0 %v21057_v1  ;;  %v5911_v18 = vpop.f32.mrf.mxu1  ;;  %v5453_v38 = vadd.f32 %v5452_v39, %v21062_v61 }
 0x560   :  { %7326 = vmatprep.mubr.f32.mxu1 %v21051_v15  ;;  %v17082_v58 = vadd.f32 %v5911_v18, %v5423_v53  ;;  %v5454_v54 = vpop.f32.mrf.mxu0  ;;  %v21065_v53 = vld [vmem:[#allocation22_spill] sm:$0xff] }
 0x561   :  { %v5913_v59 = vpop.f32.mrf.mxu1  ;;  %v8042_v54 = vand.u32 4294901760, %v8041_v2  ;;  %v21071_v2 = vld [vmem:[#allocation332_spill] sm:$0xff] }
 0x562   :  { %7021 = vmatmul.mubr.f32.gmra.mxu0 %v21058_v29  ;;  %v5467_v26 = vpop.f32.mrf.mxu0 }
 0x563   :  { %7328 = vmatmul.mubr.f32.gmra.mxu1 %v21052_v40  ;;  %7026 = vmatprep.mubr.f32.mxu0 %v21060_v46  ;;  %v5918_v22 = vpop.f32.mrf.mxu1  ;;  %v5468_v39 = vadd.f32 %v5467_v26, %v21065_v53 }
 0x564   :  { %7333 = vmatprep.mubr.f32.mxu1 %v21054_v31  ;;  %v17094_v19 = vadd.f32 %v5918_v22, %v5438_v20  ;;  %v5469_v47 = vpop.f32.mrf.mxu0  ;;  %11624 = vmatprep.subr.mxu1 %v8042_v54  ;;  %v21067_v20 = vld [vmem:[#allocation112_spill] sm:$0xff]  ;;  %v21068_v22 = vld [vmem:[#allocation46_spill] sm:$0xff] }
 0x565   :  { %v5920_v15 = vpop.f32.mrf.mxu1  ;;  %11625 = vmatpush3.msra.mxu1 %v8042_v54 }
 0x566   :  { %7028 = vmatmul.mubr.f32.gmra.mxu0 %v21061_v62  ;;  %v5482_v40 = vpop.f32.mrf.mxu0  ;;  %v21069_v15 = vld [vmem:[#allocation116_spill] sm:$0xff] }
 0x567   :  { %7335 = vmatmul.mubr.f32.gmra.mxu1 %v21055_v57  ;;  %7033 = vmatprep.mubr.f32.mxu0 %v21063_v8  ;;  %v5925_v32 = vpop.f32.mrf.mxu1  ;;  %v21066_v57 = vld [vmem:[#allocation108_spill] sm:$0xff]  ;;  %v5483_v47 = vadd.f32 %v5482_v40, %v21068_v22 }
 0x568   :  { %7340 = vmatprep.mubr.f32.mxu1 %v21057_v1  ;;  %v17109_v31 = vadd.f32 %v5925_v32, %v5453_v38  ;;  %v5484_v60 = vpop.f32.mrf.mxu0  ;;  %v21072_v40 = vld [vmem:[#allocation124_spill] sm:$0xff] }
 0x569   :  { %v5927_v14 = vpop.f32.mrf.mxu1  ;;  %v21070_v60 = vld [vmem:[#allocation120_spill] sm:$0xff] }
 0x56a   :  { %7035 = vmatmul.mubr.f32.gmra.mxu0 %v21064_v52  ;;  %v5497_v18 = vpop.f32.mrf.mxu0 }
 0x56b   :  { %7342 = vmatmul.mubr.f32.gmra.mxu1 %v21058_v29  ;;  %7040 = vmatprep.mubr.f32.mxu0 %v21066_v57  ;;  %v5932_v59 = vpop.f32.mrf.mxu1  ;;  %v5498_v14 = vadd.f32 %v5497_v18, %v21071_v2  ;;  %v21074_v18 = vld [vmem:[#allocation129_spill] sm:$0xff] }
 0x56c   :  { %7347 = vmatprep.mubr.f32.mxu1 %v21060_v46  ;;  %v17118_v1 = vadd.f32 %v5932_v59, %v5468_v39  ;;  %v5499_v51 = vpop.f32.mrf.mxu0  ;;  %v21073_v59 = vld [vmem:[#allocation128_spill] sm:$0xff] }
 0x56d   :  { %v5934_v45 = vpop.f32.mrf.mxu1 }
 0x56e   :  { %7042 = vmatmul.mubr.f32.gmra.mxu0 %v21067_v20  ;;  %v6084_v26 = vpop.f32.mrf.mxu0 }
 0x56f   :  { %7349 = vmatmul.mubr.f32.gmra.mxu1 %v21061_v62  ;;  %7047 = vmatprep.mubr.f32.mxu0 %v21069_v15  ;;  %v5939_v29 = vpop.f32.mrf.mxu1  ;;  %v6085_v61 = vadd.f32 %v6084_v26, %v16802_v23  ;;  %v21076_v26 = vld [vmem:[#allocation140_spill] sm:$0xff] }
 0x570   :  { %7354 = vmatprep.mubr.f32.mxu1 %v21063_v8  ;;  %v17126_v46 = vadd.f32 %v5939_v29, %v5483_v47  ;;  %v6086_v38 = vpop.f32.mrf.mxu0  ;;  %v21075_v47 = vld [vmem:[#allocation133_spill] sm:$0xff] }
 0x571   :  { %v5941_v32 = vpop.f32.mrf.mxu1 }
 0x572   :  { %7049 = vmatmul.mubr.f32.gmra.mxu0 %v21070_v60  ;;  %v6093_v53 = vpop.f32.mrf.mxu0 }
 0x573   :  { %7356 = vmatmul.mubr.f32.gmra.mxu1 %v21064_v52  ;;  %7054 = vmatprep.mubr.f32.mxu0 %v21072_v40  ;;  %v5946_v62 = vpop.f32.mrf.mxu1  ;;  %v6094_v39 = vadd.f32 %v6093_v53, %v16819_v41 }
 0x574   :  { %7361 = vmatprep.mubr.f32.mxu1 %v21066_v57  ;;  %v17134_v23 = vadd.f32 %v5946_v62, %v5498_v14  ;;  %v6095_v8 = vpop.f32.mrf.mxu0  ;;  %v21079_v14 = vld [vmem:[#allocation152_spill] sm:$0xff] }
 0x575   :  { %v5948_v54 = vpop.f32.mrf.mxu1 }
 0x576   :  { %7056 = vmatmul.mubr.f32.gmra.mxu0 %v21073_v59  ;;  %v6102_v51 = vpop.f32.mrf.mxu0 }
 0x577   :  { %7363 = vmatmul.mubr.f32.gmra.mxu1 %v21067_v20  ;;  %7061 = vmatprep.mubr.f32.mxu0 %v21074_v18  ;;  %v6103_v52 = vadd.f32 %v6102_v51, %v16836_v30  ;;  %v6471_v45 = vpop.f32.mrf.mxu1  ;;  %v21077_v30 = vld [vmem:[#allocation144_spill] sm:$0xff] }
 0x578   :  { %7368 = vmatprep.mubr.f32.mxu1 %v21069_v15  ;;  %v17141_v22 = vadd.f32 %v6471_v45, %v6085_v61  ;;  %v6104_v41 = vpop.f32.mrf.mxu0  ;;  %v21078_v61 = vld [vmem:[#allocation148_spill] sm:$0xff] }
 0x579   :  { %v6473_v57 = vpop.f32.mrf.mxu1 }
 0x57a   :  { %7063 = vmatmul.mubr.f32.gmra.mxu0 %v21075_v47 }
 0x57b   :  { %7370 = vmatmul.mubr.f32.gmra.mxu1 %v21070_v60  ;;  %7068 = vmatprep.mubr.f32.mxu0 %v21076_v26  ;;  %v171_v60 = vld [vmem:[%s18875_s3 + $0x40] sm:$0xff] }
 0x57c   :  { %7375 = vmatprep.mubr.f32.mxu1 %v21072_v40  ;;  %v6111_v20 = vpop.f32.mrf.mxu0  ;;  %v17158_v53 = vand.u32 4294901760, %v171_v60  ;;  %v21080_v40 = vld [vmem:[#allocation156_spill] sm:$0xff] }
 0x57d   :  { %v6112_v29 = vadd.f32 %v6111_v20, %v16853_v34  ;;  %v6482_v38 = vpop.f32.mrf.mxu1 }
 0x57e   :  { %7070 = vmatmul.mubr.f32.gmra.mxu0 %v21077_v30  ;;  %v17149_v32 = vadd.f32 %v6482_v38, %v6094_v39  ;;  %v6113_v15 = vpop.f32.mrf.mxu0  ;;  %11570 = vmatprep.subr.mxu0 %v17158_v53 }
 0x57f   :  { %7377 = vmatmul.mubr.f32.gmra.mxu1 %v21073_v59  ;;  %7075 = vmatprep.mubr.f32.mxu0 %v21078_v61  ;;  %v6484_v2 = vpop.f32.mrf.mxu1  ;;  %v17168_v59 = vsub.f32 %v171_v60, %v17158_v53 }
 0x580   :  { %7382 = vmatprep.mubr.f32.mxu1 %v21074_v18  ;;  %11571 = vmatpush3.msra.mxu0 %v17158_v53  ;;  %v21081_v18 = vld [vmem:[#allocation160_spill] sm:$0xff] }
 0x581   :  { %v17173_v45 = vand.u32 4294901760, %v17168_v59 }
 0x582   :  { %7077 = vmatmul.mubr.f32.gmra.mxu0 %v21079_v14  ;;  %v6120_v34 = vpop.f32.mrf.mxu0 }
 0x583   :  { %7384 = vmatmul.mubr.f32.gmra.mxu1 %v21075_v47  ;;  %7082 = vmatprep.mubr.f32.mxu0 %v21080_v40  ;;  %v6121_v62 = vadd.f32 %v6120_v34, %v16870_v50  ;;  %v6493_v39 = vpop.f32.mrf.mxu1  ;;  %v21082_v50 = vld [vmem:[#allocation164_spill] sm:$0xff]  ;;  %v8048_v41 = vsub.f32 %v17168_v59, %v17173_v45 }
 0x584   :  { %7389 = vmatprep.mubr.f32.mxu1 %v21076_v26  ;;  %v17164_v8 = vadd.f32 %v6493_v39, %v6103_v52  ;;  %v6122_v54 = vpop.f32.mrf.mxu0  ;;  %v21083_v26 = vld [vmem:[#allocation168_spill] sm:$0xff] }
 0x585   :  { %v6495_v51 = vpop.f32.mrf.mxu1  ;;  %v8049_v15 = vand.u32 4294901760, %v8048_v41 }
 0x586   :  { %7084 = vmatmul.mubr.f32.gmra.mxu0 %v21081_v18 }
 0x587   :  { %7391 = vmatmul.mubr.f32.gmra.mxu1 %v21077_v30  ;;  %7089 = vmatprep.mubr.f32.mxu0 %v21082_v50  ;;  %v21084_v30 = vld [vmem:[#allocation169_spill] sm:$0xff] }
 0x588   :  { %7396 = vmatprep.mubr.f32.mxu1 %v21078_v61  ;;  %v6129_v52 = vpop.f32.mrf.mxu0  ;;  %11626 = vmatprep.subr.mxu1 %v8049_v15  ;;  %v21085_v61 = vld [vmem:[#allocation173_spill] sm:$0xff] }
 0x589   :  { %v6130_v57 = vadd.f32 %v6129_v52, %v16887_v13  ;;  %v6504_v47 = vpop.f32.mrf.mxu1  ;;  %11627 = vmatpush3.msra.mxu1 %v8049_v15  ;;  %v21086_v13 = vld [vmem:[#allocation180_spill] sm:$0xff] }
 0x58a   :  { %7091 = vmatmul.mubr.f32.gmra.mxu0 %v21083_v26  ;;  %v17182_v20 = vadd.f32 %v6504_v47, %v6112_v29  ;;  %v6131_v38 = vpop.f32.mrf.mxu0  ;;  %v21087_v52 = vld [vmem:[#allocation184_spill] sm:$0xff] }
 0x58b   :  { %7398 = vmatmul.mubr.f32.gmra.mxu1 %v21079_v14  ;;  %7096 = vmatprep.mubr.f32.mxu0 %v21084_v30  ;;  %v6506_v2 = vpop.f32.mrf.mxu1  ;;  %v170_v14 = vld [vmem:[%s18875_s3 + $0x38] sm:$0xff] }
 0x58c   :  { %7403 = vmatprep.mubr.f32.mxu1 %v21080_v40  ;;  %v17197_v54 = vand.u32 4294901760, %v170_v14 }
 0x58e   :  { %7098 = vmatmul.mubr.f32.gmra.mxu0 %v21085_v61  ;;  %v6138_v60 = vpop.f32.mrf.mxu0  ;;  %11572 = vmatprep.subr.mxu0 %v17197_v54 }
 0x58f   :  { %7405 = vmatmul.mubr.f32.gmra.mxu1 %v21081_v18  ;;  %7103 = vmatprep.mubr.f32.mxu0 %v21086_v13  ;;  %v6139_v29 = vadd.f32 %v6138_v60, %v16904_v36  ;;  %v6515_v34 = vpop.f32.mrf.mxu1  ;;  %v169_v18 = vld [vmem:[%s18875_s3 + $0x30] sm:$0xff]  ;;  %v17204_v36 = vsub.f32 %v170_v14, %v17197_v54 }
 0x590   :  { %7410 = vmatprep.mubr.f32.mxu1 %v21082_v50  ;;  %v17195_v39 = vadd.f32 %v6515_v34, %v6121_v62  ;;  %v6140_v40 = vpop.f32.mrf.mxu0  ;;  %v17206_v41 = vand.u32 4294901760, %v169_v18  ;;  %v21088_v62 = vld [vmem:[#allocation188_spill] sm:$0xff]  ;;  %11573 = vmatpush3.msra.mxu0 %v17197_v54 }
 0x591   :  { %v6517_v51 = vpop.f32.mrf.mxu1  ;;  %v17213_v47 = vand.u32 4294901760, %v17204_v36  ;;  %v21090_v60 = vld [vmem:[#allocation192_spill] sm:$0xff] }
 0x592   :  { %7105 = vmatmul.mubr.f32.gmra.mxu0 %v21087_v52  ;;  %v17216_v38 = vsub.f32 %v169_v18, %v17206_v41  ;;  %11574 = vmatprep.subr.mxu0 %v17206_v41  ;;  %v21092_v40 = vld [vmem:[#allocation196_spill] sm:$0xff] }
 0x593   :  { %7412 = vmatmul.mubr.f32.gmra.mxu1 %v21083_v26  ;;  %7110 = vmatprep.mubr.f32.mxu0 %v21088_v62  ;;  %21089 = vst [vmem:[#allocation70_spill] sm:$0xff] %v17213_v47 }
 0x594   :  { %7417 = vmatprep.mubr.f32.mxu1 %v21084_v30  ;;  %v6147_v50 = vpop.f32.mrf.mxu0  ;;  %v8055_v30 = vsub.f32 %v17204_v36, %v17213_v47  ;;  %v17227_v14 = vand.u32 4294901760, %v17216_v38  ;;  %11575 = vmatpush3.msra.mxu0 %v17206_v41  ;;  %v21095_v47 = vld [vmem:[#allocation208_spill] sm:$0xff] }
 0x595   :  { %v6148_v15 = vadd.f32 %v6147_v50, %v16921_v16  ;;  %v6526_v2 = vpop.f32.mrf.mxu1  ;;  %11680 = vmatprep.subr.mxu0 %v17098_v49 }
 0x596   :  { %7112 = vmatmul.mubr.f32.gmra.mxu0 %v21090_v60  ;;  %v17222_v26 = vadd.f32 %v6526_v2, %v6130_v57  ;;  %v6149_v34 = vpop.f32.mrf.mxu0  ;;  %21091 = vst [vmem:[#allocation320_spill] sm:$0xff] %v17227_v14  ;;  %v8056_v16 = vand.u32 4294901760, %v8055_v30  ;;  %v8062_v18 = vsub.f32 %v17216_v38, %v17227_v14  ;;  %v21093_v57 = vld [vmem:[#allocation200_spill] sm:$0xff] }
 0x597   :  { %7419 = vmatmul.mubr.f32.gmra.mxu1 %v21085_v61  ;;  %7117 = vmatprep.mubr.f32.mxu0 %v21092_v40  ;;  %v6528_v51 = vpop.f32.mrf.mxu1  ;;  %v21094_v61 = vld [vmem:[#allocation204_spill] sm:$0xff] }
 0x598   :  { %7424 = vmatprep.mubr.f32.mxu1 %v21086_v13  ;;  %11628 = vmatprep.subr.mxu1 %v8056_v16  ;;  %v8063_v2 = vand.u32 4294901760, %v8062_v18  ;;  %v21096_v18 = vld [vmem:[#allocation209_spill] sm:$0xff] }
 0x599   :  { %11629 = vmatpush3.msra.mxu1 %v8056_v16 }
 0x59a   :  { %7119 = vmatmul.mubr.f32.gmra.mxu0 %v21093_v57  ;;  %v6156_v50 = vpop.f32.mrf.mxu0  ;;  %11630 = vmatprep.subr.mxu1 %v8063_v2 }
 0x59b   :  { %7426 = vmatmul.mubr.f32.gmra.mxu1 %v21087_v52  ;;  %7124 = vmatprep.mubr.f32.mxu0 %v21094_v61  ;;  %v6157_v34 = vadd.f32 %v6156_v50, %v16937_v48  ;;  %v6537_v13 = vpop.f32.mrf.mxu1  ;;  %v21098_v50 = vld [vmem:[#allocation220_spill] sm:$0xff] }
 0x59c   :  { %7431 = vmatprep.mubr.f32.mxu1 %v21088_v62  ;;  %v17241_v30 = vadd.f32 %v6537_v13, %v6139_v29  ;;  %v6158_v51 = vpop.f32.mrf.mxu0  ;;  %11631 = vmatpush3.msra.mxu1 %v8063_v2  ;;  %v21097_v62 = vld [vmem:[#allocation213_spill] sm:$0xff]  ;;  %v21099_v2 = vld [vmem:[#allocation224_spill] sm:$0xff] }
 0x59d   :  { %v6539_v14 = vpop.f32.mrf.mxu1  ;;  %11736 = vmatprep.subr.mxu1 %v17089_v28  ;;  %v21100_v13 = vld [vmem:[#allocation228_spill] sm:$0xff] }
 0x59e   :  { %7126 = vmatmul.mubr.f32.gmra.mxu0 %v21095_v47 }
 0x59f   :  { %7433 = vmatmul.mubr.f32.gmra.mxu1 %v21090_v60  ;;  %7131 = vmatprep.mubr.f32.mxu0 %v21096_v18 }
 0x5a0   :  { %7438 = vmatprep.mubr.f32.mxu1 %v21092_v40  ;;  %v6165_v52 = vpop.f32.mrf.mxu0 }
 0x5a1   :  { %v6166_v48 = vadd.f32 %v6165_v52, %v16950_v12  ;;  %v6548_v29 = vpop.f32.mrf.mxu1 }
 0x5a2   :  { %7133 = vmatmul.mubr.f32.gmra.mxu0 %v21097_v62  ;;  %v17250_v16 = vadd.f32 %v6548_v29, %v6148_v15  ;;  %v6167_v14 = vpop.f32.mrf.mxu0  ;;  %v21101_v29 = vld [vmem:[#allocation232_spill] sm:$0xff] }
 0x5a3   :  { %7440 = vmatmul.mubr.f32.gmra.mxu1 %v21093_v57  ;;  %7138 = vmatprep.mubr.f32.mxu0 %v21098_v50  ;;  %v6550_v60 = vpop.f32.mrf.mxu1 }
 0x5a4   :  { %7445 = vmatprep.mubr.f32.mxu1 %v21094_v61  ;;  %v21102_v61 = vld [vmem:[#allocation236_spill] sm:$0xff] }
 0x5a6   :  { %7140 = vmatmul.mubr.f32.gmra.mxu0 %v21099_v2  ;;  %v6174_v40 = vpop.f32.mrf.mxu0 }
 0x5a7   :  { %7447 = vmatmul.mubr.f32.gmra.mxu1 %v21095_v47  ;;  %7145 = vmatprep.mubr.f32.mxu0 %v21100_v13  ;;  %v6175_v12 = vadd.f32 %v6174_v40, %v16961_v21  ;;  %v6559_v51 = vpop.f32.mrf.mxu1  ;;  %v21103_v21 = vld [vmem:[#allocation240_spill] sm:$0xff] }
 0x5a8   :  { %7452 = vmatprep.mubr.f32.mxu1 %v21096_v18  ;;  %v17260_v15 = vadd.f32 %v6559_v51, %v6157_v34  ;;  %v6176_v57 = vpop.f32.mrf.mxu0  ;;  %v21104_v18 = vld [vmem:[#allocation244_spill] sm:$0xff] }
 0x5a9   :  { %v6561_v52 = vpop.f32.mrf.mxu1 }
 0x5aa   :  { %7147 = vmatmul.mubr.f32.gmra.mxu0 %v21101_v29 }
 0x5ab   :  { %7454 = vmatmul.mubr.f32.gmra.mxu1 %v21097_v62  ;;  %7152 = vmatprep.mubr.f32.mxu0 %v21102_v61  ;;  %v21105_v62 = vld [vmem:[#allocation248_spill] sm:$0xff] }
 0x5ac   :  { %7459 = vmatprep.mubr.f32.mxu1 %v21098_v50  ;;  %v6183_v47 = vpop.f32.mrf.mxu0  ;;  %v21106_v50 = vld [vmem:[#allocation249_spill] sm:$0xff] }
 0x5ad   :  { %v6184_v14 = vadd.f32 %v6183_v47, %v16969_v10  ;;  %v6570_v60 = vpop.f32.mrf.mxu1 }
 0x5ae   :  { %7154 = vmatmul.mubr.f32.gmra.mxu0 %v21103_v21  ;;  %v17268_v40 = vadd.f32 %v6570_v60, %v6166_v48  ;;  %v6185_v34 = vpop.f32.mrf.mxu0  ;;  %v21107_v60 = vld [vmem:[#allocation253_spill] sm:$0xff] }
 0x5af   :  { %7461 = vmatmul.mubr.f32.gmra.mxu1 %v21099_v2  ;;  %7159 = vmatprep.mubr.f32.mxu0 %v21104_v18  ;;  %v6572_v51 = vpop.f32.mrf.mxu1 }
 0x5b0   :  { %7466 = vmatprep.mubr.f32.mxu1 %v21100_v13 }
 0x5b2   :  { %7161 = vmatmul.mubr.f32.gmra.mxu0 %v21105_v62  ;;  %v6192_v57 = vpop.f32.mrf.mxu0 }
 0x5b3   :  { %7468 = vmatmul.mubr.f32.gmra.mxu1 %v21101_v29  ;;  %7166 = vmatprep.mubr.f32.mxu0 %v21106_v50  ;;  %v6193_v10 = vadd.f32 %v6192_v57, %v16979_v35  ;;  %v6581_v52 = vpop.f32.mrf.mxu1 }
 0x5b4   :  { %7473 = vmatprep.mubr.f32.mxu1 %v21102_v61  ;;  %v17278_v48 = vadd.f32 %v6581_v52, %v6175_v12  ;;  %v6194_v2 = vpop.f32.mrf.mxu0  ;;  %v21108_v61 = vld [vmem:[#allocation267_spill] sm:$0xff] }
 0x5b5   :  { %v6583_v47 = vpop.f32.mrf.mxu1 }
 0x5b6   :  { %7168 = vmatmul.mubr.f32.gmra.mxu0 %v21107_v60 }
 0x5b7   :  { %7475 = vmatmul.mubr.f32.gmra.mxu1 %v21103_v21  ;;  %7173 = vmatprep.mubr.f32.mxu0 %v20835_v5 }
 0x5b8   :  { %7480 = vmatprep.mubr.f32.mxu1 %v21104_v18  ;;  %v6201_v13 = vpop.f32.mrf.mxu0  ;;  %v21109_v18 = vld [vmem:[#allocation275_spill] sm:$0xff] }
 0x5b9   :  { %v6202_v29 = vadd.f32 %v6201_v13, %v16987_v33  ;;  %v6592_v34 = vpop.f32.mrf.mxu1 }
 0x5ba   :  { %7175 = vmatmul.mubr.f32.gmra.mxu0 %v20837_v6  ;;  %v17286_v35 = vadd.f32 %v6592_v34, %v6184_v14  ;;  %v6203_v12 = vpop.f32.mrf.mxu0 }
 0x5bb   :  { %7482 = vmatmul.mubr.f32.gmra.mxu1 %v21105_v62  ;;  %7180 = vmatprep.mubr.f32.mxu0 %v21108_v61  ;;  %v6594_v51 = vpop.f32.mrf.mxu1 }
 0x5bc   :  { %7487 = vmatprep.mubr.f32.mxu1 %v21106_v50 }
 0x5be   :  { %7182 = vmatmul.mubr.f32.gmra.mxu0 %v20841_v0  ;;  %v6210_v21 = vpop.f32.mrf.mxu0 }
 0x5bf   :  { %7489 = vmatmul.mubr.f32.gmra.mxu1 %v21107_v60  ;;  %7187 = vmatprep.mubr.f32.mxu0 %v21109_v18  ;;  %v6211_v33 = vadd.f32 %v6210_v21, %v16997_v4  ;;  %v6603_v57 = vpop.f32.mrf.mxu1 }
 0x5c0   :  { %7494 = vmatprep.mubr.f32.mxu1 %v20835_v5  ;;  %v17296_v14 = vadd.f32 %v6603_v57, %v6193_v10  ;;  %v6212_v62 = vpop.f32.mrf.mxu0 }
 0x5c1   :  { %v6605_v52 = vpop.f32.mrf.mxu1 }
 0x5c2   :  { %7189 = vmatmul.mubr.f32.gmra.mxu0 %v20845_v37 }
 0x5c3   :  { %7496 = vmatmul.mubr.f32.gmra.mxu1 %v20837_v6  ;;  %7194 = vmatprep.mubr.f32.mxu0 %v20847_v25 }
 0x5c4   :  { %7501 = vmatprep.mubr.f32.mxu1 %v21108_v61  ;;  %v6219_v50 = vpop.f32.mrf.mxu0 }
 0x5c5   :  { %v6220_v2 = vadd.f32 %v6219_v50, %v17005_v63  ;;  %v6614_v47 = vpop.f32.mrf.mxu1 }
 0x5c6   :  { %v17303_v4 = vadd.f32 %v6614_v47, %v6202_v29  ;;  %7196 = vmatmul.mubr.f32.gmra.mxu0 %v20851_v11  ;;  %v6221_v5 = vpop.f32.mrf.mxu0 }
 0x5c7   :  { %7503 = vmatmul.mubr.f32.gmra.mxu1 %v20841_v0  ;;  %v6616_v10 = vpop.f32.mrf.mxu1 }
 0x5c8   :  { %7508 = vmatprep.mubr.f32.mxu1 %v21109_v18 }
 0x5ca   :  { %v6228_v60 = vpop.f32.mrf.mxu0  ;;  %v6625_v6 = vpop.f32.mrf.mxu1 }
 0x5cb   :  { %v6229_v13 = vadd.f32 %v6228_v60, %v17012_v55  ;;  %v17309_v34 = vadd.f32 %v6625_v6, %v6211_v33  ;;  %7510 = vmatmul.mubr.f32.gmra.mxu1 %v20845_v37 }
 0x5cc   :  { %v6230_v63 = vpop.f32.mrf.mxu0  ;;  %v6627_v12 = vpop.f32.mrf.mxu1  ;;  %7515 = vmatprep.mubr.f32.mxu1 %v20847_v25 }
 0x5ce   :  { %v6237_v29 = vpop.f32.mrf.mxu0 }
 0x5cf   :  { %v6238_v61 = vadd.f32 %v6237_v29, %v17019_v7  ;;  %v6636_v51 = vpop.f32.mrf.mxu1  ;;  %7517 = vmatmul.mubr.f32.gmra.mxu1 %v20851_v11 }
 0x5d0   :  { %v17315_v0 = vadd.f32 %v6636_v51, %v6220_v2  ;;  %v6239_v21 = vpop.f32.mrf.mxu0 }
 0x5d1   :  { %v6638_v18 = vpop.f32.mrf.mxu1 }
 0x5d2   :  { %v6246_v57 = vpop.f32.mrf.mxu0 }
 0x5d3   :  { %v6247_v55 = vadd.f32 %v6246_v57, %v17026_v17  ;;  %v6647_v33 = vpop.f32.mrf.mxu1 }
 0x5d4   :  { %v17318_v62 = vadd.f32 %v6647_v33, %v6229_v13  ;;  %v6248_v37 = vpop.f32.mrf.mxu0 }
 0x5d5   :  { %v6649_v52 = vpop.f32.mrf.mxu1 }
 0x5d6   :  { %v6255_v50 = vpop.f32.mrf.mxu0 }
 0x5d7   :  { %v6256_v25 = vadd.f32 %v6255_v50, %v17033_v24  ;;  %v6658_v47 = vpop.f32.mrf.mxu1 }
 0x5d8   :  { %v17321_v7 = vadd.f32 %v6658_v47, %v6238_v61  ;;  %v6257_v5 = vpop.f32.mrf.mxu0 }
 0x5d9   :  { %v6660_v11 = vpop.f32.mrf.mxu1 }
 0x5da   :  { %v6264_v2 = vpop.f32.mrf.mxu0 }
 0x5db   :  { %v6265_v10 = vadd.f32 %v6264_v2, %v17040_v9  ;;  %v6669_v60 = vpop.f32.mrf.mxu1 }
 0x5dc   :  { %v17324_v6 = vadd.f32 %v6669_v60, %v6247_v55  ;;  %v6266_v17 = vpop.f32.mrf.mxu0 }
 0x5dd   :  { %v6671_v63 = vpop.f32.mrf.mxu1 }
 0x5de   :  { %v6273_v13 = vpop.f32.mrf.mxu0 }
 0x5df   :  { %v6274_v12 = vadd.f32 %v6273_v13, %v17047_v43  ;;  %v6680_v29 = vpop.f32.mrf.mxu1 }
 0x5e0   :  { %v17327_v51 = vadd.f32 %v6680_v29, %v6256_v25  ;;  %v6275_v24 = vpop.f32.mrf.mxu0 }
 0x5e1   :  { %v6682_v21 = vpop.f32.mrf.mxu1 }
 0x5e2   :  { %v6282_v61 = vpop.f32.mrf.mxu0 }
 0x5e3   :  { %v6283_v18 = vadd.f32 %v6282_v61, %v17054_v42  ;;  %v6691_v57 = vpop.f32.mrf.mxu1 }
 0x5e4   :  { %v17330_v33 = vadd.f32 %v6691_v57, %v6265_v10  ;;  %v6284_v9 = vpop.f32.mrf.mxu0 }
 0x5e5   :  { %v6693_v37 = vpop.f32.mrf.mxu1 }
 0x5e6   :  { %v6291_v55 = vpop.f32.mrf.mxu0 }
 0x5e7   :  { %v6292_v52 = vadd.f32 %v6291_v55, %v17061_v3  ;;  %v6702_v50 = vpop.f32.mrf.mxu1 }
 0x5e8   :  { %v17333_v47 = vadd.f32 %v6702_v50, %v6274_v12  ;;  %v6293_v43 = vpop.f32.mrf.mxu0 }
 0x5e9   :  { %v6704_v5 = vpop.f32.mrf.mxu1 }
 0x5ea   :  { %v6300_v25 = vpop.f32.mrf.mxu0 }
 0x5eb   :  { %v6301_v11 = vadd.f32 %v6300_v25, %v17068_v56  ;;  %v6713_v2 = vpop.f32.mrf.mxu1 }
 0x5ec   :  { %v17336_v60 = vadd.f32 %v6713_v2, %v6283_v18  ;;  %v6302_v42 = vpop.f32.mrf.mxu0 }
 0x5ed   :  { %v6715_v17 = vpop.f32.mrf.mxu1 }
 0x5ee   :  { %v6309_v10 = vpop.f32.mrf.mxu0 }
 0x5ef   :  { %v6310_v63 = vadd.f32 %v6309_v10, %v17075_v44  ;;  %v6724_v13 = vpop.f32.mrf.mxu1 }
 0x5f0   :  { %v17339_v29 = vadd.f32 %v6724_v13, %v6292_v52  ;;  %v6311_v3 = vpop.f32.mrf.mxu0 }
 0x5f1   :  { %v6726_v24 = vpop.f32.mrf.mxu1 }
 0x5f2   :  { %v6318_v12 = vpop.f32.mrf.mxu0 }
 0x5f3   :  { %v6319_v21 = vadd.f32 %v6318_v12, %v17082_v58  ;;  %v6735_v61 = vpop.f32.mrf.mxu1 }
 0x5f4   :  { %v17342_v57 = vadd.f32 %v6735_v61, %v6301_v11  ;;  %v6320_v56 = vpop.f32.mrf.mxu0 }
 0x5f5   :  { %v6737_v9 = vpop.f32.mrf.mxu1 }
 0x5f6   :  { %v6327_v18 = vpop.f32.mrf.mxu0 }
 0x5f7   :  { %v6328_v37 = vadd.f32 %v6327_v18, %v17094_v19  ;;  %v6746_v55 = vpop.f32.mrf.mxu1 }
 0x5f8   :  { %v17345_v50 = vadd.f32 %v6746_v55, %v6310_v63  ;;  %v6329_v44 = vpop.f32.mrf.mxu0 }
 0x5f9   :  { %v6748_v43 = vpop.f32.mrf.mxu1 }
 0x5fa   :  { %v6336_v52 = vpop.f32.mrf.mxu0 }
 0x5fb   :  { %v6337_v5 = vadd.f32 %v6336_v52, %v17109_v31  ;;  %v6757_v25 = vpop.f32.mrf.mxu1 }
 0x5fc   :  { %v17348_v2 = vadd.f32 %v6757_v25, %v6319_v21  ;;  %v6338_v58 = vpop.f32.mrf.mxu0 }
 0x5fd   :  { %v6759_v42 = vpop.f32.mrf.mxu1 }
 0x5fe   :  { %v6345_v11 = vpop.f32.mrf.mxu0 }
 0x5ff   :  { %v6346_v17 = vadd.f32 %v6345_v11, %v17118_v1  ;;  %v6768_v10 = vpop.f32.mrf.mxu1 }
 0x600   :  { %v17351_v13 = vadd.f32 %v6768_v10, %v6328_v37  ;;  %v6347_v19 = vpop.f32.mrf.mxu0 }
 0x601   :  { %v6770_v3 = vpop.f32.mrf.mxu1 }
 0x602   :  { %v6354_v63 = vpop.f32.mrf.mxu0 }
 0x603   :  { %v6355_v24 = vadd.f32 %v6354_v63, %v17126_v46  ;;  %v6779_v12 = vpop.f32.mrf.mxu1 }
 0x604   :  { %v17354_v61 = vadd.f32 %v6779_v12, %v6337_v5  ;;  %v6356_v31 = vpop.f32.mrf.mxu0 }
 0x605   :  { %v6781_v56 = vpop.f32.mrf.mxu1 }
 0x606   :  { %v6363_v21 = vpop.f32.mrf.mxu0 }
 0x607   :  { %v6364_v9 = vadd.f32 %v6363_v21, %v17134_v23  ;;  %v6790_v18 = vpop.f32.mrf.mxu1 }
 0x608   :  { %v17357_v55 = vadd.f32 %v6790_v18, %v6346_v17  ;;  %v6365_v1 = vpop.f32.mrf.mxu0 }
 0x609   :  { %v6792_v44 = vpop.f32.mrf.mxu1 }
 0x60a   :  { %v6980_v37 = vpop.f32.mrf.mxu0 }
 0x60b   :  { %v6801_v43 = vpop.f32.mrf.mxu1  ;;  %v6981_v19 = vadd.f32 %v6980_v37, %v17141_v22 }
 0x60c   :  { %v17359_v52 = vadd.f32 %v6801_v43, %v6355_v24  ;;  %v6982_v25 = vpop.f32.mrf.mxu0 }
 0x60d   :  { %v6803_v58 = vpop.f32.mrf.mxu1 }
 0x60e   :  { %v6987_v46 = vpop.f32.mrf.mxu0 }
 0x60f   :  { %v6812_v42 = vpop.f32.mrf.mxu1  ;;  %v6988_v31 = vadd.f32 %v6987_v46, %v17149_v32 }
 0x610   :  { %v17361_v5 = vadd.f32 %v6812_v42, %v6364_v9  ;;  %v6989_v11 = vpop.f32.mrf.mxu0 }
 0x611   :  { %v6814_v10 = vpop.f32.mrf.mxu1 }
 0x612   :  { %v6994_v23 = vpop.f32.mrf.mxu0 }
 0x613   :  { %v7301_v3 = vpop.f32.mrf.mxu1  ;;  %v6995_v37 = vadd.f32 %v6994_v23, %v17164_v8 }
 0x614   :  { %v7302_v17 = vadd.f32 %v7301_v3, %v6981_v19  ;;  %v6996_v63 = vpop.f32.mrf.mxu0 }
 0x615   :  { %v7303_v12 = vpop.f32.mrf.mxu1 }
 0x616   :  { %v7529_v24 = vsel %vm7527_vm1, %v7302_v17, 0  ;;  %v7001_v56 = vpop.f32.mrf.mxu0 }
 0x617   :  { %v17366_v21 = vand.u32 4294901760, %v7529_v24  ;;  %v7308_v18 = vpop.f32.mrf.mxu1  ;;  %v7002_v23 = vadd.f32 %v7001_v56, %v17182_v20 }
 0x618   :  { %v7309_v9 = vadd.f32 %v7308_v18, %v6988_v31  ;;  %v7003_v1 = vpop.f32.mrf.mxu0 }
 0x619   :  { %v17369_v44 = vsub.f32 %v7529_v24, %v17366_v21  ;;  %v7310_v22 = vpop.f32.mrf.mxu1  ;;  %11632 = vmatprep.mubr.f32.mxu1 %v17366_v21 }
 0x61a   :  { %v7532_v43 = vsel %vm7527_vm1, %v7309_v9, 0  ;;  %v7008_v25 = vpop.f32.mrf.mxu0 }
 0x61b   :  { %v17374_v32 = vand.u32 4294901760, %v7532_v43  ;;  %v7315_v58 = vpop.f32.mrf.mxu1  ;;  %v19686_v46 = vand.u32 4294901760, %v17369_v44  ;;  %v7009_v22 = vadd.f32 %v7008_v25, %v17195_v39 }
 0x61c   :  { %v7316_v42 = vadd.f32 %v7315_v58, %v6995_v37  ;;  %v7010_v11 = vpop.f32.mrf.mxu0 }
 0x61d   :  { %v17378_v10 = vsub.f32 %v7532_v43, %v17374_v32  ;;  %v7317_v19 = vpop.f32.mrf.mxu1  ;;  %11633 = vmatmul.mubr.f32.vlgmr.msra.gmra.mxu1 %v17374_v32  ;;  %v7696_v8 = vsub.f32 %v17369_v44, %v19686_v46 }
 0x61e   :  { %v7535_v3 = vsel %vm7527_vm1, %v7316_v42, 0  ;;  %v7015_v17 = vpop.f32.mrf.mxu0  ;;  %11737 = vmatpush3.msra.mxu1 %v17089_v28 }
 0x61f   :  { %v19684_v63 = vand.u32 4294901760, %v17378_v10  ;;  %v17388_v12 = vand.u32 4294901760, %v7535_v3  ;;  %v7322_v31 = vpop.f32.mrf.mxu1  ;;  %v7697_v24 = vand.u32 4294901760, %v7696_v8  ;;  %11738 = vmatprep.subr.mxu1 %v17158_v53 }
 0x620   :  { %v7323_v18 = vadd.f32 %v7322_v31, %v7002_v23  ;;  %v7017_v9 = vpop.f32.mrf.mxu0  ;;  %11739 = vmatpush3.msra.mxu1 %v17158_v53  ;;  %v7016_v31 = vadd.f32 %v7015_v17, %v17222_v26 }
 0x621   :  { %v7706_v20 = vsub.f32 %v17378_v10, %v19684_v63  ;;  %v17396_v56 = vsub.f32 %v7535_v3, %v17388_v12  ;;  %v7324_v1 = vpop.f32.mrf.mxu1  ;;  %11576 = vmatprep.mubr.f32.mxu0 %v7697_v24  ;;  %11635 = vmatprep.mubr.f32.mxu1 %v17388_v12 }
 0x622   :  { %v7538_v37 = vsel %vm7527_vm1, %v7323_v18, 0  ;;  %v7022_v43 = vpop.f32.mrf.mxu0  ;;  %11740 = vmatprep.subr.mxu1 %v17197_v54 }
 0x623   :  { %v7707_v58 = vand.u32 4294901760, %v7706_v20  ;;  %v17402_v42 = vand.u32 4294901760, %v7538_v37  ;;  %v7329_v11 = vpop.f32.mrf.mxu1  ;;  %v19682_v19 = vand.u32 4294901760, %v17396_v56  ;;  %11741 = vmatpush3.msra.mxu1 %v17197_v54 }
 0x624   :  { %v7330_v8 = vadd.f32 %v7329_v11, %v7009_v22  ;;  %v7024_v23 = vpop.f32.mrf.mxu0  ;;  %11742 = vmatprep.subr.mxu1 %v17206_v41  ;;  %v7023_v11 = vadd.f32 %v7022_v43, %v17241_v30 }
 0x625   :  { %v17408_v3 = vsub.f32 %v7538_v37, %v17402_v42  ;;  %v7331_v39 = vpop.f32.mrf.mxu1  ;;  %11577 = vmatmul.mubr.f32.vlgmr.msra.gmra.mxu0 %v7707_v58  ;;  %11636 = vmatmul.mubr.f32.gmra.mxu1 %v17402_v42  ;;  %v7716_v25 = vsub.f32 %v17396_v56, %v19682_v19 }
 0x626   :  { %v7541_v24 = vsel %vm7527_vm1, %v7330_v8, 0  ;;  %v7029_v18 = vpop.f32.mrf.mxu0  ;;  %11681 = vmatpush3.msra.mxu0 %v17098_v49  ;;  %11743 = vmatpush3.msra.mxu1 %v17206_v41 }
 0x627   :  { %v19680_v9 = vand.u32 4294901760, %v17408_v3  ;;  %v17419_v20 = vand.u32 4294901760, %v7541_v24  ;;  %v7336_v1 = vpop.f32.mrf.mxu1  ;;  %v7717_v22 = vand.u32 4294901760, %v7716_v25  ;;  %11682 = vmatprep.subr.mxu0 %v17168_v59  ;;  %11848 = vmatprep.subr.mxu1 %v17089_v28 }
 0x628   :  { %v7337_v37 = vadd.f32 %v7336_v1, %v7016_v31  ;;  %v7031_v58 = vpop.f32.mrf.mxu0  ;;  %11683 = vmatpush3.msra.mxu0 %v17168_v59 }
 0x629   :  { %v17425_v26 = vsub.f32 %v7541_v24, %v17419_v20  ;;  %v7338_v49 = vpop.f32.mrf.mxu1  ;;  %11579 = vmatprep.mubr.f32.mxu0 %v7717_v22  ;;  %11638 = vmatprep.mubr.f32.mxu1 %v17419_v20  ;;  %v7726_v17 = vsub.f32 %v17408_v3, %v19680_v9 }
 0x62a   :  { %v7544_v8 = vsel %vm7527_vm1, %v7337_v37, 0  ;;  %v7036_v23 = vpop.f32.mrf.mxu0  ;;  %11684 = vmatprep.subr.mxu0 %v17204_v36  ;;  %v7030_v37 = vadd.f32 %v7029_v18, %v17250_v16 }
 0x62b   :  { %v17434_v39 = vand.u32 4294901760, %v7544_v8  ;;  %v7343_v59 = vpop.f32.mrf.mxu1  ;;  %v7727_v25 = vand.u32 4294901760, %v7726_v17  ;;  %v19678_v31 = vand.u32 4294901760, %v17425_v26  ;;  %11685 = vmatpush3.msra.mxu0 %v17204_v36  ;;  %v7037_v16 = vadd.f32 %v7036_v23, %v17260_v15 }
 0x62c   :  { %v7344_v24 = vadd.f32 %v7343_v59, %v7023_v11  ;;  %v7038_v1 = vpop.f32.mrf.mxu0  ;;  %11686 = vmatprep.subr.mxu0 %v17216_v38 }
 0x62d   :  { %v17440_v22 = vsub.f32 %v7544_v8, %v17434_v39  ;;  %v7345_v30 = vpop.f32.mrf.mxu1  ;;  %11580 = vmatmul.mubr.f32.gmra.mxu0 %v7727_v25  ;;  %11639 = vmatmul.mubr.f32.gmra.mxu1 %v17434_v39  ;;  %v7736_v43 = vsub.f32 %v17425_v26, %v19678_v31 }
 0x62e   :  { %v7547_v58 = vsel %vm7527_vm1, %v7344_v24, 0  ;;  %v7043_v36 = vpop.f32.mrf.mxu0  ;;  %11687 = vmatpush3.msra.mxu0 %v17216_v38 }
 0x62f   :  { %v19679_v49 = vand.u32 4294901760, %v17440_v22  ;;  %v17450_v17 = vand.u32 4294901760, %v7547_v58  ;;  %v7350_v11 = vpop.f32.mrf.mxu1  ;;  %v7737_v8 = vand.u32 4294901760, %v7736_v43  ;;  %11792 = vmatprep.subr.mxu0 %v17104_v27  ;;  %v7044_v23 = vadd.f32 %v7043_v36, %v17268_v40 }
 0x630   :  { %v7351_v59 = vadd.f32 %v7350_v11, %v7030_v37  ;;  %v7045_v25 = vpop.f32.mrf.mxu0 }
 0x631   :  { %v17454_v1 = vsub.f32 %v7547_v58, %v17450_v17  ;;  %v7352_v30 = vpop.f32.mrf.mxu1  ;;  %11582 = vmatprep.mubr.f32.mxu0 %v7737_v8  ;;  %11641 = vmatprep.mubr.f32.mxu1 %v17450_v17  ;;  %v7746_v38 = vsub.f32 %v17440_v22, %v19679_v49 }
 0x632   :  { %v7550_v18 = vsel %vm7527_vm1, %v7351_v59, 0  ;;  %v7050_v24 = vpop.f32.mrf.mxu0 }
 0x633   :  { %v17462_v43 = vand.u32 4294901760, %v7550_v18  ;;  %v7357_v37 = vpop.f32.mrf.mxu1  ;;  %v7747_v11 = vand.u32 4294901760, %v7746_v38  ;;  %v19681_v58 = vand.u32 4294901760, %v17454_v1  ;;  %v7051_v36 = vadd.f32 %v7050_v24, %v17278_v48 }
 0x634   :  { %v7358_v25 = vadd.f32 %v7357_v37, %v7037_v16  ;;  %v7052_v30 = vpop.f32.mrf.mxu0 }
 0x635   :  { %v17466_v8 = vsub.f32 %v7550_v18, %v17462_v43  ;;  %v7359_v31 = vpop.f32.mrf.mxu1  ;;  %11583 = vmatmul.mubr.f32.gmra.mxu0 %v7747_v11  ;;  %11642 = vmatmul.mubr.f32.gmra.mxu1 %v17462_v43  ;;  %v7756_v15 = vsub.f32 %v17454_v1, %v19681_v58 }
 0x636   :  { %v7553_v59 = vsel %vm7527_vm1, %v7358_v25, 0  ;;  %v7057_v38 = vpop.f32.mrf.mxu0 }
 0x637   :  { %v19683_v49 = vand.u32 4294901760, %v17466_v8  ;;  %v17475_v16 = vand.u32 4294901760, %v7553_v59  ;;  %v7364_v37 = vpop.f32.mrf.mxu1  ;;  %v7757_v18 = vand.u32 4294901760, %v7756_v15  ;;  %v7058_v24 = vadd.f32 %v7057_v38, %v17286_v35 }
 0x638   :  { %v7365_v30 = vadd.f32 %v7364_v37, %v7044_v23  ;;  %v7059_v31 = vpop.f32.mrf.mxu0 }
 0x639   :  { %v17478_v11 = vsub.f32 %v7553_v59, %v17475_v16  ;;  %v7366_v9 = vpop.f32.mrf.mxu1  ;;  %11585 = vmatprep.mubr.f32.mxu0 %v7757_v18  ;;  %11644 = vmatprep.mubr.f32.mxu1 %v17475_v16  ;;  %v7766_v40 = vsub.f32 %v17466_v8, %v19683_v49 }
 0x63a   :  { %v7556_v25 = vsel %vm7527_vm1, %v7365_v30, 0  ;;  %v7064_v58 = vpop.f32.mrf.mxu0 }
 0x63b   :  { %v17486_v19 = vand.u32 4294901760, %v7556_v25  ;;  %v7371_v15 = vpop.f32.mrf.mxu1  ;;  %v7767_v23 = vand.u32 4294901760, %v7766_v40  ;;  %v19685_v59 = vand.u32 4294901760, %v17478_v11  ;;  %v7065_v38 = vadd.f32 %v7064_v58, %v17296_v14 }
 0x63c   :  { %v7372_v37 = vadd.f32 %v7371_v15, %v7051_v36  ;;  %v7066_v9 = vpop.f32.mrf.mxu0 }
 0x63d   :  { %v17490_v18 = vsub.f32 %v7556_v25, %v17486_v19  ;;  %v7373_v31 = vpop.f32.mrf.mxu1  ;;  %11586 = vmatmul.mubr.f32.gmra.mxu0 %v7767_v23  ;;  %11645 = vmatmul.mubr.f32.gmra.mxu1 %v17486_v19  ;;  %v7776_v48 = vsub.f32 %v17478_v11, %v19685_v59 }
 0x63e   :  { %v7559_v30 = vsel %vm7527_vm1, %v7372_v37, 0  ;;  %v7071_v40 = vpop.f32.mrf.mxu0 }
 0x63f   :  { %v19687_v49 = vand.u32 4294901760, %v17490_v18  ;;  %v17499_v36 = vand.u32 4294901760, %v7559_v30  ;;  %v7378_v15 = vpop.f32.mrf.mxu1  ;;  %v7777_v25 = vand.u32 4294901760, %v7776_v48  ;;  %v7072_v58 = vadd.f32 %v7071_v40, %v17303_v4 }
 0x640   :  { %v7379_v9 = vadd.f32 %v7378_v15, %v7058_v24  ;;  %v7073_v31 = vpop.f32.mrf.mxu0 }
 0x641   :  { %21110 = vst [vmem:[#allocation73_spill] sm:$0xff] %v17499_v36  ;;  %v17502_v23 = vsub.f32 %v7559_v30, %v17499_v36  ;;  %v7380_v63 = vpop.f32.mrf.mxu1  ;;  %11588 = vmatprep.mubr.f32.mxu0 %v7777_v25  ;;  %11647 = vmatprep.mubr.f32.mxu1 %v17499_v36  ;;  %v7786_v35 = vsub.f32 %v17490_v18, %v19687_v49 }
 0x642   :  { %v7562_v37 = vsel %vm7527_vm1, %v7379_v9, 0  ;;  %v7078_v59 = vpop.f32.mrf.mxu0 }
 0x643   :  { %v17510_v46 = vand.u32 4294901760, %v7562_v37  ;;  %v7385_v48 = vpop.f32.mrf.mxu1  ;;  %v7787_v24 = vand.u32 4294901760, %v7786_v35  ;;  %v19690_v30 = vand.u32 4294901760, %v17502_v23  ;;  %v7079_v40 = vadd.f32 %v7078_v59, %v17309_v34 }
 0x644   :  { %v7386_v15 = vadd.f32 %v7385_v48, %v7065_v38  ;;  %v7080_v63 = vpop.f32.mrf.mxu0 }
 0x645   :  { %21111 = vst [vmem:[#allocation325_spill] sm:$0xff] %v17510_v46  ;;  %v17514_v25 = vsub.f32 %v7562_v37, %v17510_v46  ;;  %v7387_v31 = vpop.f32.mrf.mxu1  ;;  %11589 = vmatmul.mubr.f32.gmra.mxu0 %v7787_v24  ;;  %11648 = vmatmul.mubr.f32.gmra.mxu1 %v17510_v46  ;;  %v7796_v14 = vsub.f32 %v17502_v23, %v19690_v30 }
 0x646   :  { %v7565_v9 = vsel %vm7527_vm1, %v7386_v15, 0  ;;  %v7085_v35 = vpop.f32.mrf.mxu0 }
 0x647   :  { %v19693_v49 = vand.u32 4294901760, %v17514_v25  ;;  %v17523_v38 = vand.u32 4294901760, %v7565_v9  ;;  %v7392_v48 = vpop.f32.mrf.mxu1  ;;  %v7797_v37 = vand.u32 4294901760, %v7796_v14  ;;  %v7086_v59 = vadd.f32 %v7085_v35, %v17315_v0 }
 0x648   :  { %v7393_v63 = vadd.f32 %v7392_v48, %v7072_v58  ;;  %v7087_v31 = vpop.f32.mrf.mxu0 }
 0x649   :  { %21112 = vst [vmem:[#allocation77_spill] sm:$0xff] %v17523_v38  ;;  %v17526_v24 = vsub.f32 %v7565_v9, %v17523_v38  ;;  %v7394_v46 = vpop.f32.mrf.mxu1  ;;  %11591 = vmatprep.mubr.f32.mxu0 %v7797_v37  ;;  %11650 = vmatprep.mubr.f32.mxu1 %v17523_v38  ;;  %v7806_v4 = vsub.f32 %v17514_v25, %v19693_v49 }
 0x64a   :  { %v7568_v15 = vsel %vm7527_vm1, %v7393_v63, 0  ;;  %v7092_v30 = vpop.f32.mrf.mxu0 }
 0x64b   :  { %v17534_v36 = vand.u32 4294901760, %v7568_v15  ;;  %v7399_v14 = vpop.f32.mrf.mxu1  ;;  %v7807_v58 = vand.u32 4294901760, %v7806_v4  ;;  %v19696_v9 = vand.u32 4294901760, %v17526_v24  ;;  %v7093_v35 = vadd.f32 %v7092_v30, %v17318_v62 }
 0x64c   :  { %v7400_v48 = vadd.f32 %v7399_v14, %v7079_v40  ;;  %v7094_v46 = vpop.f32.mrf.mxu0 }
 0x64d   :  { %21113 = vst [vmem:[#allocation309_spill] sm:$0xff] %v17534_v36  ;;  %v17538_v37 = vsub.f32 %v7568_v15, %v17534_v36  ;;  %v7401_v31 = vpop.f32.mrf.mxu1  ;;  %11592 = vmatmul.mubr.f32.gmra.mxu0 %v7807_v58  ;;  %11651 = vmatmul.mubr.f32.gmra.mxu1 %v17534_v36  ;;  %v7816_v34 = vsub.f32 %v17526_v24, %v19696_v9 }
 0x64e   :  { %v7571_v63 = vsel %vm7527_vm1, %v7400_v48, 0  ;;  %v7099_v4 = vpop.f32.mrf.mxu0 }
 0x64f   :  { %v19699_v49 = vand.u32 4294901760, %v17538_v37  ;;  %v17547_v40 = vand.u32 4294901760, %v7571_v63  ;;  %v7406_v14 = vpop.f32.mrf.mxu1  ;;  %v7817_v15 = vand.u32 4294901760, %v7816_v34  ;;  %v7100_v30 = vadd.f32 %v7099_v4, %v17321_v7 }
 0x650   :  { %v7407_v46 = vadd.f32 %v7406_v14, %v7086_v59  ;;  %v7101_v31 = vpop.f32.mrf.mxu0 }
 0x651   :  { %21114 = vst [vmem:[#allocation81_spill] sm:$0xff] %v17547_v40  ;;  %v17550_v58 = vsub.f32 %v7571_v63, %v17547_v40  ;;  %v7408_v36 = vpop.f32.mrf.mxu1  ;;  %11594 = vmatprep.mubr.f32.mxu0 %v7817_v15  ;;  %11653 = vmatprep.mubr.f32.mxu1 %v17547_v40  ;;  %v7826_v0 = vsub.f32 %v17538_v37, %v19699_v49 }
 0x652   :  { %v7574_v48 = vsel %vm7527_vm1, %v7407_v46, 0  ;;  %v7106_v9 = vpop.f32.mrf.mxu0 }
 0x653   :  { %v17558_v38 = vand.u32 4294901760, %v7574_v48  ;;  %v7413_v34 = vpop.f32.mrf.mxu1  ;;  %v7827_v59 = vand.u32 4294901760, %v7826_v0  ;;  %v19702_v63 = vand.u32 4294901760, %v17550_v58  ;;  %v7107_v4 = vadd.f32 %v7106_v9, %v17324_v6 }
 0x654   :  { %v7414_v14 = vadd.f32 %v7413_v34, %v7093_v35  ;;  %v7108_v36 = vpop.f32.mrf.mxu0 }
 0x655   :  { %21115 = vst [vmem:[#allocation322_spill] sm:$0xff] %v17558_v38  ;;  %v17562_v15 = vsub.f32 %v7574_v48, %v17558_v38  ;;  %v7415_v31 = vpop.f32.mrf.mxu1  ;;  %11595 = vmatmul.mubr.f32.gmra.mxu0 %v7827_v59  ;;  %11654 = vmatmul.mubr.f32.gmra.mxu1 %v17558_v38  ;;  %v7836_v62 = vsub.f32 %v17550_v58, %v19702_v63 }
 0x656   :  { %v7577_v46 = vsel %vm7527_vm1, %v7414_v14, 0  ;;  %v7113_v0 = vpop.f32.mrf.mxu0 }
 0x657   :  { %v19705_v49 = vand.u32 4294901760, %v17562_v15  ;;  %v17571_v35 = vand.u32 4294901760, %v7577_v46  ;;  %v7420_v34 = vpop.f32.mrf.mxu1  ;;  %v7837_v48 = vand.u32 4294901760, %v7836_v62  ;;  %v7114_v9 = vadd.f32 %v7113_v0, %v17327_v51 }
 0x658   :  { %v7421_v36 = vadd.f32 %v7420_v34, %v7100_v30  ;;  %v7115_v31 = vpop.f32.mrf.mxu0 }
 0x659   :  { %21116 = vst [vmem:[#allocation85_spill] sm:$0xff] %v17571_v35  ;;  %v17574_v59 = vsub.f32 %v7577_v46, %v17571_v35  ;;  %v7422_v38 = vpop.f32.mrf.mxu1  ;;  %11597 = vmatprep.mubr.f32.mxu0 %v7837_v48  ;;  %11656 = vmatprep.mubr.f32.mxu1 %v17571_v35  ;;  %v7846_v7 = vsub.f32 %v17562_v15, %v19705_v49 }
 0x65a   :  { %v7580_v14 = vsel %vm7527_vm1, %v7421_v36, 0  ;;  %v7120_v63 = vpop.f32.mrf.mxu0 }
 0x65b   :  { %v17582_v40 = vand.u32 4294901760, %v7580_v14  ;;  %v7427_v62 = vpop.f32.mrf.mxu1  ;;  %v7847_v30 = vand.u32 4294901760, %v7846_v7  ;;  %v19708_v46 = vand.u32 4294901760, %v17574_v59  ;;  %v7121_v0 = vadd.f32 %v7120_v63, %v17330_v33 }
 0x65c   :  { %v7428_v34 = vadd.f32 %v7427_v62, %v7107_v4  ;;  %v7122_v38 = vpop.f32.mrf.mxu0 }
 0x65d   :  { %21117 = vst [vmem:[#allocation326_spill] sm:$0xff] %v17582_v40  ;;  %v17586_v48 = vsub.f32 %v7580_v14, %v17582_v40  ;;  %v7429_v31 = vpop.f32.mrf.mxu1  ;;  %11598 = vmatmul.mubr.f32.gmra.mxu0 %v7847_v30  ;;  %11657 = vmatmul.mubr.f32.gmra.mxu1 %v17582_v40  ;;  %v7856_v6 = vsub.f32 %v17574_v59, %v19708_v46 }
 0x65e   :  { %v7583_v36 = vsel %vm7527_vm1, %v7428_v34, 0  ;;  %v7127_v7 = vpop.f32.mrf.mxu0 }
 0x65f   :  { %v19711_v49 = vand.u32 4294901760, %v17586_v48  ;;  %v17595_v4 = vand.u32 4294901760, %v7583_v36  ;;  %v7434_v62 = vpop.f32.mrf.mxu1  ;;  %v7857_v14 = vand.u32 4294901760, %v7856_v6  ;;  %v7128_v63 = vadd.f32 %v7127_v7, %v17333_v47 }
 0x660   :  { %v7435_v38 = vadd.f32 %v7434_v62, %v7114_v9  ;;  %v7129_v31 = vpop.f32.mrf.mxu0 }
 0x661   :  { %21118 = vst [vmem:[#allocation308_spill] sm:$0xff] %v17595_v4  ;;  %v17598_v30 = vsub.f32 %v7583_v36, %v17595_v4  ;;  %v7436_v40 = vpop.f32.mrf.mxu1  ;;  %11600 = vmatprep.mubr.f32.mxu0 %v7857_v14  ;;  %11659 = vmatprep.mubr.f32.mxu1 %v17595_v4  ;;  %v7866_v51 = vsub.f32 %v17586_v48, %v19711_v49 }
 0x662   :  { %v7586_v34 = vsel %vm7527_vm1, %v7435_v38, 0  ;;  %v7134_v46 = vpop.f32.mrf.mxu0 }
 0x663   :  { %v17606_v35 = vand.u32 4294901760, %v7586_v34  ;;  %v7441_v6 = vpop.f32.mrf.mxu1  ;;  %v7867_v9 = vand.u32 4294901760, %v7866_v51  ;;  %v19714_v36 = vand.u32 4294901760, %v17598_v30  ;;  %v7135_v7 = vadd.f32 %v7134_v46, %v17336_v60 }
 0x664   :  { %v7442_v62 = vadd.f32 %v7441_v6, %v7121_v0  ;;  %v7136_v40 = vpop.f32.mrf.mxu0 }
 0x665   :  { %21119 = vst [vmem:[#allocation90_spill] sm:$0xff] %v17606_v35  ;;  %v17610_v14 = vsub.f32 %v7586_v34, %v17606_v35  ;;  %v7443_v31 = vpop.f32.mrf.mxu1  ;;  %11601 = vmatmul.mubr.f32.gmra.mxu0 %v7867_v9  ;;  %11660 = vmatmul.mubr.f32.gmra.mxu1 %v17606_v35  ;;  %v7876_v33 = vsub.f32 %v17598_v30, %v19714_v36 }
 0x666   :  { %v7589_v38 = vsel %vm7527_vm1, %v7442_v62, 0  ;;  %v7141_v51 = vpop.f32.mrf.mxu0 }
 0x667   :  { %v19717_v49 = vand.u32 4294901760, %v17610_v14  ;;  %v17619_v0 = vand.u32 4294901760, %v7589_v38  ;;  %v7448_v6 = vpop.f32.mrf.mxu1  ;;  %v7877_v34 = vand.u32 4294901760, %v7876_v33  ;;  %v7142_v46 = vadd.f32 %v7141_v51, %v17339_v29 }
 0x668   :  { %v7449_v40 = vadd.f32 %v7448_v6, %v7128_v63  ;;  %v7143_v31 = vpop.f32.mrf.mxu0 }
 0x669   :  { %21120 = vst [vmem:[#allocation329_spill] sm:$0xff] %v17619_v0  ;;  %v17622_v9 = vsub.f32 %v7589_v38, %v17619_v0  ;;  %v7450_v35 = vpop.f32.mrf.mxu1  ;;  %11603 = vmatprep.mubr.f32.mxu0 %v7877_v34  ;;  %11662 = vmatprep.mubr.f32.mxu1 %v17619_v0  ;;  %v7886_v47 = vsub.f32 %v17610_v14, %v19717_v49 }
 0x66a   :  { %v7592_v62 = vsel %vm7527_vm1, %v7449_v40, 0  ;;  %v7148_v36 = vpop.f32.mrf.mxu0 }
 0x66b   :  { %v17630_v4 = vand.u32 4294901760, %v7592_v62  ;;  %v7455_v33 = vpop.f32.mrf.mxu1  ;;  %v7887_v63 = vand.u32 4294901760, %v7886_v47  ;;  %v19720_v38 = vand.u32 4294901760, %v17622_v9  ;;  %v7149_v51 = vadd.f32 %v7148_v36, %v17342_v57 }
 0x66c   :  { %v7456_v6 = vadd.f32 %v7455_v33, %v7135_v7  ;;  %v7150_v35 = vpop.f32.mrf.mxu0 }
 0x66d   :  { %21121 = vst [vmem:[#allocation312_spill] sm:$0xff] %v17630_v4  ;;  %v17634_v34 = vsub.f32 %v7592_v62, %v17630_v4  ;;  %v7457_v31 = vpop.f32.mrf.mxu1  ;;  %11604 = vmatmul.mubr.f32.gmra.mxu0 %v7887_v63  ;;  %11663 = vmatmul.mubr.f32.gmra.mxu1 %v17630_v4  ;;  %v7896_v60 = vsub.f32 %v17622_v9, %v19720_v38 }
 0x66e   :  { %v7595_v40 = vsel %vm7527_vm1, %v7456_v6, 0  ;;  %v7155_v47 = vpop.f32.mrf.mxu0 }
 0x66f   :  { %v19723_v49 = vand.u32 4294901760, %v17634_v34  ;;  %v17643_v7 = vand.u32 4294901760, %v7595_v40  ;;  %v7462_v33 = vpop.f32.mrf.mxu1  ;;  %v7897_v62 = vand.u32 4294901760, %v7896_v60  ;;  %v7156_v36 = vadd.f32 %v7155_v47, %v17345_v50 }
 0x670   :  { %v7463_v35 = vadd.f32 %v7462_v33, %v7142_v46  ;;  %v7157_v31 = vpop.f32.mrf.mxu0 }
 0x671   :  { %21122 = vst [vmem:[#allocation94_spill] sm:$0xff] %v17643_v7  ;;  %v17646_v63 = vsub.f32 %v7595_v40, %v17643_v7  ;;  %v7464_v4 = vpop.f32.mrf.mxu1  ;;  %11606 = vmatprep.mubr.f32.mxu0 %v7897_v62  ;;  %11665 = vmatprep.mubr.f32.mxu1 %v17643_v7  ;;  %v7906_v29 = vsub.f32 %v17634_v34, %v19723_v49 }
 0x672   :  { %v7598_v6 = vsel %vm7527_vm1, %v7463_v35, 0  ;;  %v7162_v38 = vpop.f32.mrf.mxu0 }
 0x673   :  { %v17654_v0 = vand.u32 4294901760, %v7598_v6  ;;  %v7469_v60 = vpop.f32.mrf.mxu1  ;;  %v7907_v46 = vand.u32 4294901760, %v7906_v29  ;;  %v19726_v40 = vand.u32 4294901760, %v17646_v63  ;;  %v7163_v47 = vadd.f32 %v7162_v38, %v17348_v2 }
 0x674   :  { %v7470_v33 = vadd.f32 %v7469_v60, %v7149_v51  ;;  %v7164_v4 = vpop.f32.mrf.mxu0 }
 0x675   :  { %21123 = vst [vmem:[#allocation16_spill] sm:$0xff] %v17654_v0  ;;  %v17658_v62 = vsub.f32 %v7598_v6, %v17654_v0  ;;  %v7471_v31 = vpop.f32.mrf.mxu1  ;;  %11607 = vmatmul.mubr.f32.gmra.mxu0 %v7907_v46  ;;  %11666 = vmatmul.mubr.f32.gmra.mxu1 %v17654_v0  ;;  %v7916_v57 = vsub.f32 %v17646_v63, %v19726_v40 }
 0x676   :  { %v7601_v35 = vsel %vm7527_vm1, %v7470_v33, 0  ;;  %v7169_v29 = vpop.f32.mrf.mxu0 }
 0x677   :  { %v19729_v49 = vand.u32 4294901760, %v17658_v62  ;;  %v17667_v51 = vand.u32 4294901760, %v7601_v35  ;;  %v7476_v60 = vpop.f32.mrf.mxu1  ;;  %v7917_v6 = vand.u32 4294901760, %v7916_v57  ;;  %v7170_v38 = vadd.f32 %v7169_v29, %v17351_v13 }
 0x678   :  { %v7477_v4 = vadd.f32 %v7476_v60, %v7156_v36  ;;  %v7171_v31 = vpop.f32.mrf.mxu0 }
 0x679   :  { %21124 = vst [vmem:[#allocation98_spill] sm:$0xff] %v17667_v51  ;;  %v17670_v46 = vsub.f32 %v7601_v35, %v17667_v51  ;;  %v7478_v0 = vpop.f32.mrf.mxu1  ;;  %11609 = vmatprep.mubr.f32.mxu0 %v7917_v6  ;;  %11668 = vmatprep.mubr.f32.mxu1 %v17667_v51  ;;  %v7926_v50 = vsub.f32 %v17658_v62, %v19729_v49 }
 0x67a   :  { %v7604_v33 = vsel %vm7527_vm1, %v7477_v4, 0  ;;  %v7176_v40 = vpop.f32.mrf.mxu0 }
 0x67b   :  { %v17678_v7 = vand.u32 4294901760, %v7604_v33  ;;  %v7483_v57 = vpop.f32.mrf.mxu1  ;;  %v7927_v36 = vand.u32 4294901760, %v7926_v50  ;;  %v19732_v35 = vand.u32 4294901760, %v17670_v46  ;;  %v7177_v29 = vadd.f32 %v7176_v40, %v17354_v61 }
 0x67c   :  { %v7484_v60 = vadd.f32 %v7483_v57, %v7163_v47  ;;  %v7178_v0 = vpop.f32.mrf.mxu0 }
 0x67d   :  { %21125 = vst [vmem:[#allocation102_spill] sm:$0xff] %v17678_v7  ;;  %v17682_v6 = vsub.f32 %v7604_v33, %v17678_v7  ;;  %v7485_v31 = vpop.f32.mrf.mxu1  ;;  %11610 = vmatmul.mubr.f32.gmra.mxu0 %v7927_v36  ;;  %11669 = vmatmul.mubr.f32.gmra.mxu1 %v17678_v7  ;;  %v7936_v2 = vsub.f32 %v17670_v46, %v19732_v35 }
 0x67e   :  { %v7607_v4 = vsel %vm7527_vm1, %v7484_v60, 0  ;;  %v7183_v50 = vpop.f32.mrf.mxu0 }
 0x67f   :  { %v19735_v49 = vand.u32 4294901760, %v17682_v6  ;;  %v17691_v47 = vand.u32 4294901760, %v7607_v4  ;;  %v7490_v57 = vpop.f32.mrf.mxu1  ;;  %v7937_v33 = vand.u32 4294901760, %v7936_v2  ;;  %v7184_v40 = vadd.f32 %v7183_v50, %v17357_v55 }
 0x680   :  { %v7491_v0 = vadd.f32 %v7490_v57, %v7170_v38  ;;  %v7185_v31 = vpop.f32.mrf.mxu0 }
 0x681   :  { %v17694_v36 = vsub.f32 %v7607_v4, %v17691_v47  ;;  %v7492_v7 = vpop.f32.mrf.mxu1  ;;  %11612 = vmatprep.mubr.f32.mxu0 %v7937_v33  ;;  %11671 = vmatprep.mubr.f32.mxu1 %v17691_v47  ;;  %v7946_v13 = vsub.f32 %v17682_v6, %v19735_v49 }
 0x682   :  { %v7610_v60 = vsel %vm7527_vm1, %v7491_v0, 0  ;;  %v7190_v35 = vpop.f32.mrf.mxu0 }
 0x683   :  { %v17702_v51 = vand.u32 4294901760, %v7610_v60  ;;  %v7497_v2 = vpop.f32.mrf.mxu1  ;;  %v7947_v38 = vand.u32 4294901760, %v7946_v13  ;;  %v19738_v4 = vand.u32 4294901760, %v17694_v36  ;;  %v7191_v50 = vadd.f32 %v7190_v35, %v17359_v52 }
 0x684   :  { %v7498_v57 = vadd.f32 %v7497_v2, %v7177_v29  ;;  %v7192_v7 = vpop.f32.mrf.mxu0 }
 0x685   :  { %21126 = vst [vmem:[#allocation106_spill] sm:$0xff] %v17702_v51  ;;  %v17706_v33 = vsub.f32 %v7610_v60, %v17702_v51  ;;  %v7499_v31 = vpop.f32.mrf.mxu1  ;;  %11613 = vmatmul.mubr.f32.gmra.mxu0 %v7947_v38  ;;  %11672 = vmatmul.mubr.f32.gmra.mxu1 %v17702_v51  ;;  %v7956_v61 = vsub.f32 %v17694_v36, %v19738_v4 }
 0x686   :  { %v7613_v0 = vsel %vm7527_vm1, %v7498_v57, 0  ;;  %v7197_v13 = vpop.f32.mrf.mxu0 }
 0x687   :  { %v19740_v49 = vand.u32 4294901760, %v17706_v33  ;;  %v17715_v29 = vand.u32 4294901760, %v7613_v0  ;;  %v7504_v2 = vpop.f32.mrf.mxu1  ;;  %v7957_v60 = vand.u32 4294901760, %v7956_v61  ;;  %v7198_v35 = vadd.f32 %v7197_v13, %v17361_v5 }
 0x688   :  { %v7505_v7 = vadd.f32 %v7504_v2, %v7184_v40  ;;  %v7199_v31 = vpop.f32.mrf.mxu0 }
 0x689   :  { %v17718_v38 = vsub.f32 %v7613_v0, %v17715_v29  ;;  %v7506_v51 = vpop.f32.mrf.mxu1  ;;  %11615 = vmatprep.mubr.f32.mxu0 %v7957_v60  ;;  %11674 = vmatprep.mubr.f32.mxu1 %v17715_v29  ;;  %v7966_v55 = vsub.f32 %v17706_v33, %v19740_v49 }
 0x68a   :  { %v7616_v57 = vsel %vm7527_vm1, %v7505_v7, 0 }
 0x68b   :  { %v17726_v4 = vand.u32 4294901760, %v7616_v57  ;;  %v7511_v61 = vpop.f32.mrf.mxu1  ;;  %v7967_v40 = vand.u32 4294901760, %v7966_v55  ;;  %v19739_v2 = vand.u32 4294901760, %v17718_v38 }
 0x68c   :  { %v7512_v0 = vadd.f32 %v7511_v61, %v7191_v50 }
 0x68d   :  { %v17730_v51 = vsub.f32 %v7616_v57, %v17726_v4  ;;  %v7513_v60 = vpop.f32.mrf.mxu1  ;;  %11616 = vmatmul.mubr.f32.gmra.mxu0 %v7967_v40  ;;  %11675 = vmatmul.mubr.f32.gmra.mxu1 %v17726_v4  ;;  %v7976_v52 = vsub.f32 %v17718_v38, %v19739_v2 }
 0x68e   :  { %v7619_v7 = vsel %vm7527_vm1, %v7512_v0, 0 }
 0x68f   :  { %v7985_v31 = vand.u32 4294901760, %v17730_v51  ;;  %v17739_v55 = vand.u32 4294901760, %v7619_v7  ;;  %v7518_v50 = vpop.f32.mrf.mxu1  ;;  %v7977_v61 = vand.u32 4294901760, %v7976_v52 }
 0x690   :  { %v7519_v57 = vadd.f32 %v7518_v50, %v7198_v35 }
 0x691   :  { %v17742_v60 = vsub.f32 %v7619_v7, %v17739_v55  ;;  %v7520_v40 = vpop.f32.mrf.mxu1  ;;  %11618 = vmatprep.mubr.f32.mxu0 %v7977_v61  ;;  %11677 = vmatprep.mubr.f32.mxu1 %v17739_v55  ;;  %v7986_v5 = vsub.f32 %v17730_v51, %v7985_v31  ;;  %v21127_v7 = vand.u32 4294901760, %v17369_v44 }
 0x692   :  { %v7622_v13 = vsel %vm7527_vm1, %v7519_v57, 0  ;;  %v21128_v57 = vand.u32 4294901760, %v17378_v10  ;;  %v21129_v40 = vand.u32 4294901760, %v17396_v56 }
 0x693   :  { %v17749_v0 = vand.u32 4294901760, %v7622_v13  ;;  %v7987_v2 = vand.u32 4294901760, %v7986_v5  ;;  %v7995_v49 = vand.u32 4294901760, %v17742_v60 }
 0x695   :  { %v17753_v52 = vsub.f32 %v7622_v13, %v17749_v0  ;;  %11619 = vmatmul.mubr.f32.gmra.mxu0 %v7987_v2  ;;  %11678 = vmatmul.mubr.f32.gmra.mxu1 %v17749_v0  ;;  %v7996_v35 = vsub.f32 %v17742_v60, %v7995_v49  ;;  %v21130_v13 = vand.u32 4294901760, %v17408_v3 }
 0x696   :  { %11744 = vmatprep.mubr.f32.mxu1 %v21127_v7 }
 0x697   :  { %v8005_v50 = vand.u32 4294901760, %v17753_v52  ;;  %v7997_v61 = vand.u32 4294901760, %v7996_v35  ;;  %v21131_v35 = vand.u32 4294901760, %v17425_v26 }
 0x699   :  { %11621 = vmatprep.mubr.f32.mxu0 %v7997_v61  ;;  %11745 = vmatmul.mubr.f32.vlgmr.msra.gmra.mxu1 %v21128_v57  ;;  %v8006_v2 = vsub.f32 %v17753_v52, %v8005_v50  ;;  %v21163_v61 = vld [vmem:[#allocation309_spill] sm:$0xff] }
 0x69a   :  { %11747 = vmatprep.mubr.f32.mxu1 %v21129_v40  ;;  %11849 = vmatpush3.msra.mxu1 %v17089_v28  ;;  %v21132_v28 = vand.u32 4294901760, %v17440_v22  ;;  %v21165_v40 = vld [vmem:[#allocation322_spill] sm:$0xff] }
 0x69b   :  { %v8007_v5 = vand.u32 4294901760, %v8006_v2  ;;  %11850 = vmatprep.subr.mxu1 %v17158_v53 }
 0x69c   :  { %11851 = vmatpush3.msra.mxu1 %v17158_v53  ;;  %v21133_v53 = vand.u32 4294901760, %v17454_v1 }
 0x69d   :  { %11622 = vmatmul.mubr.f32.gmra.mxu0 %v8007_v5  ;;  %11748 = vmatmul.mubr.f32.gmra.mxu1 %v21130_v13  ;;  %v21166_v13 = vld [vmem:[#allocation85_spill] sm:$0xff] }
 0x69e   :  { %11688 = vmatprep.mubr.f32.mxu0 %v17369_v44  ;;  %11750 = vmatprep.mubr.f32.mxu1 %v21131_v35  ;;  %v21135_v44 = vand.u32 4294901760, %v17478_v11 }
 0x69f   :  { %11852 = vmatprep.subr.mxu1 %v17197_v54 }
 0x6a0   :  { %11853 = vmatpush3.msra.mxu1 %v17197_v54  ;;  %v21134_v54 = vand.u32 4294901760, %v17466_v8 }
 0x6a1   :  { %11689 = vmatmul.mubr.f32.vlgmr.msra.gmra.mxu0 %v17378_v10  ;;  %11751 = vmatmul.mubr.f32.gmra.mxu1 %v21132_v28  ;;  %v21136_v10 = vld [vmem:[#allocation70_spill] sm:$0xff] }
 0x6a2   :  { %11691 = vmatprep.mubr.f32.mxu0 %v17396_v56  ;;  %11753 = vmatprep.mubr.f32.mxu1 %v21133_v53  ;;  %v21139_v56 = vld [vmem:[#allocation320_spill] sm:$0xff] }
 0x6a3   :  { %11793 = vmatpush3.msra.mxu0 %v17104_v27  ;;  %11854 = vmatprep.subr.mxu1 %v17206_v41  ;;  %v21137_v27 = vand.u32 4294901760, %v17490_v18 }
 0x6a4   :  { %11794 = vmatprep.subr.mxu0 %v17173_v45  ;;  %11855 = vmatpush3.msra.mxu1 %v17206_v41  ;;  %v21138_v41 = vand.u32 4294901760, %v17502_v23 }
 0x6a5   :  { %11692 = vmatmul.mubr.f32.gmra.mxu0 %v17408_v3  ;;  %11754 = vmatmul.mubr.f32.gmra.mxu1 %v21134_v54  ;;  %v21141_v3 = vand.u32 4294901760, %v17526_v24  ;;  %v21167_v54 = vld [vmem:[#allocation326_spill] sm:$0xff] }
 0x6a6   :  { %11694 = vmatprep.mubr.f32.mxu0 %v17425_v26  ;;  %11756 = vmatprep.mubr.f32.mxu1 %v21135_v44  ;;  %v21142_v26 = vand.u32 4294901760, %v17538_v37  ;;  %v21168_v44 = vld [vmem:[#allocation308_spill] sm:$0xff] }
 0x6a7   :  { %11795 = vmatpush3.msra.mxu0 %v17173_v45  ;;  %v21140_v45 = vand.u32 4294901760, %v17514_v25 }
 0x6a8   :  { %11796 = vmatprep.subr.mxu0 %v21136_v10 }
 0x6a9   :  { %11695 = vmatmul.mubr.f32.gmra.mxu0 %v17440_v22  ;;  %11757 = vmatmul.mubr.f32.gmra.mxu1 %v21137_v27  ;;  %v21143_v22 = vand.u32 4294901760, %v17550_v58 }
 0x6aa   :  { %11697 = vmatprep.mubr.f32.mxu0 %v17454_v1  ;;  %11759 = vmatprep.mubr.f32.mxu1 %v21138_v41  ;;  %v21144_v1 = vand.u32 4294901760, %v17562_v15 }
 0x6ab   :  { %11797 = vmatpush3.msra.mxu0 %v21136_v10 }
 0x6ac   :  { %11798 = vmatprep.subr.mxu0 %v21139_v56 }
 0x6ad   :  { %11698 = vmatmul.mubr.f32.gmra.mxu0 %v17466_v8  ;;  %11760 = vmatmul.mubr.f32.gmra.mxu1 %v21140_v45  ;;  %v21145_v8 = vand.u32 4294901760, %v17574_v59 }
 0x6ae   :  { %11700 = vmatprep.mubr.f32.mxu0 %v17478_v11  ;;  %11762 = vmatprep.mubr.f32.mxu1 %v21141_v3  ;;  %v21146_v11 = vand.u32 4294901760, %v17586_v48  ;;  %v21170_v3 = vld [vmem:[#allocation329_spill] sm:$0xff] }
 0x6af   :  { %11799 = vmatpush3.msra.mxu0 %v21139_v56  ;;  %v21169_v56 = vld [vmem:[#allocation90_spill] sm:$0xff] }
 0x6b1   :  { %11701 = vmatmul.mubr.f32.gmra.mxu0 %v17490_v18  ;;  %11763 = vmatmul.mubr.f32.gmra.mxu1 %v21142_v26  ;;  %v21147_v18 = vand.u32 4294901760, %v17598_v30 }
 0x6b2   :  { %11703 = vmatprep.mubr.f32.mxu0 %v17502_v23  ;;  %11765 = vmatprep.mubr.f32.mxu1 %v21143_v22  ;;  %v21148_v23 = vand.u32 4294901760, %v17610_v14 }
 0x6b5   :  { %11704 = vmatmul.mubr.f32.gmra.mxu0 %v17514_v25  ;;  %11766 = vmatmul.mubr.f32.gmra.mxu1 %v21144_v1  ;;  %v21149_v25 = vand.u32 4294901760, %v17622_v9 }
 0x6b6   :  { %11706 = vmatprep.mubr.f32.mxu0 %v17526_v24  ;;  %11768 = vmatprep.mubr.f32.mxu1 %v21145_v8  ;;  %v21150_v24 = vand.u32 4294901760, %v17634_v34 }
 0x6b9   :  { %11707 = vmatmul.mubr.f32.gmra.mxu0 %v17538_v37  ;;  %11769 = vmatmul.mubr.f32.gmra.mxu1 %v21146_v11  ;;  %v21151_v37 = vand.u32 4294901760, %v17646_v63  ;;  %v21171_v11 = vld [vmem:[#allocation312_spill] sm:$0xff] }
 0x6ba   :  { %11709 = vmatprep.mubr.f32.mxu0 %v17550_v58  ;;  %11771 = vmatprep.mubr.f32.mxu1 %v21147_v18  ;;  %v21152_v58 = vand.u32 4294901760, %v17658_v62  ;;  %v21172_v18 = vld [vmem:[#allocation94_spill] sm:$0xff] }
 0x6bd   :  { %11710 = vmatmul.mubr.f32.gmra.mxu0 %v17562_v15  ;;  %11772 = vmatmul.mubr.f32.gmra.mxu1 %v21148_v23  ;;  %v21153_v15 = vand.u32 4294901760, %v17670_v46 }
 0x6be   :  { %11712 = vmatprep.mubr.f32.mxu0 %v17574_v59  ;;  %11774 = vmatprep.mubr.f32.mxu1 %v21149_v25  ;;  %v21154_v59 = vand.u32 4294901760, %v17682_v6 }
 0x6c1   :  { %11713 = vmatmul.mubr.f32.gmra.mxu0 %v17586_v48  ;;  %11775 = vmatmul.mubr.f32.gmra.mxu1 %v21150_v24  ;;  %v21155_v48 = vand.u32 4294901760, %v17694_v36 }
 0x6c2   :  { %11715 = vmatprep.mubr.f32.mxu0 %v17598_v30  ;;  %11777 = vmatprep.mubr.f32.mxu1 %v21151_v37  ;;  %v21156_v30 = vand.u32 4294901760, %v17706_v33  ;;  %v21173_v37 = vld [vmem:[#allocation16_spill] sm:$0xff] }
 0x6c5   :  { %11716 = vmatmul.mubr.f32.gmra.mxu0 %v17610_v14  ;;  %11778 = vmatmul.mubr.f32.gmra.mxu1 %v21152_v58  ;;  %v21157_v14 = vand.u32 4294901760, %v17718_v38 }
 0x6c6   :  { %11718 = vmatprep.mubr.f32.mxu0 %v17622_v9  ;;  %11780 = vmatprep.mubr.f32.mxu1 %v21153_v15  ;;  %v21174_v15 = vld [vmem:[#allocation98_spill] sm:$0xff] }
 0x6c9   :  { %11719 = vmatmul.mubr.f32.gmra.mxu0 %v17634_v34  ;;  %11781 = vmatmul.mubr.f32.gmra.mxu1 %v21154_v59  ;;  %v21158_v34 = vld [vmem:[#allocation28_spill] sm:$0xff] }
 0x6ca   :  { %11721 = vmatprep.mubr.f32.mxu0 %v17646_v63  ;;  %11783 = vmatprep.mubr.f32.mxu1 %v21155_v48  ;;  %v21159_v63 = vsub.s32 0, %v21158_v34 }
 0x6cd   :  { %11722 = vmatmul.mubr.f32.gmra.mxu0 %v17658_v62  ;;  %11784 = vmatmul.mubr.f32.gmra.mxu1 %v21156_v30 }
 0x6ce   :  { %11724 = vmatprep.mubr.f32.mxu0 %v17670_v46  ;;  %11786 = vmatprep.mubr.f32.mxu1 %v21157_v14 }
 0x6d1   :  { %11725 = vmatmul.mubr.f32.gmra.mxu0 %v17682_v6  ;;  %11787 = vmatmul.mubr.f32.gmra.mxu1 %v7985_v31  ;;  %v21161_v31 = vld [vmem:[#allocation325_spill] sm:$0xff] }
 0x6d2   :  { %11727 = vmatprep.mubr.f32.mxu0 %v17694_v36  ;;  %11789 = vmatprep.mubr.f32.mxu1 %v7995_v49  ;;  %v186_v49 = vld [vmem:[%s18876_s4 + $0x1] sm:$0x1] }
 0x6d3   :  { %v7522_v9 = vmul.f32 2.0, %v186_v49  ;;  %v21175_v49 = vld [vmem:[#allocation102_spill] sm:$0xff] }
 0x6d5   :  { %11728 = vmatmul.mubr.f32.gmra.mxu0 %v17706_v33  ;;  %11790 = vmatmul.mubr.f32.gmra.mxu1 %v8005_v50  ;;  %v17888_v62 = vrot.slane %v7522_v9, %v21159_v63 }
 0x6d6   :  { %11730 = vmatprep.mubr.f32.mxu0 %v17718_v38  ;;  %11856 = vmatprep.mubr.f32.mxu1 %v17366_v21 }
 0x6d9   :  { %11731 = vmatmul.mubr.f32.gmra.mxu0 %v17730_v51  ;;  %11857 = vmatmul.mubr.f32.vlgmr.msra.gmra.mxu1 %v17374_v32 }
 0x6da   :  { %11733 = vmatprep.mubr.f32.mxu0 %v17742_v60  ;;  %11859 = vmatprep.mubr.f32.mxu1 %v17388_v12 }
 0x6dd   :  { %11734 = vmatmul.mubr.f32.gmra.mxu0 %v17753_v52  ;;  %11860 = vmatmul.mubr.f32.gmra.mxu1 %v17402_v42  ;;  %v11634_v46 = vpop.f32.mrf.mxu1  ;;  %v21162_v52 = vld [vmem:[#allocation77_spill] sm:$0xff] }
 0x6de   :  { %11800 = vmatprep.mubr.f32.mxu0 %v17366_v21  ;;  %11862 = vmatprep.mubr.f32.mxu1 %v17419_v20 }
 0x6df   :  { %v8100_v33 = vpop.f32.mrf.mxu1 }
 0x6e1   :  { %11801 = vmatmul.mubr.f32.vlgmr.msra.gmra.mxu0 %v17374_v32  ;;  %11863 = vmatmul.mubr.f32.gmra.mxu1 %v17434_v39 }
 0x6e2   :  { %11803 = vmatprep.mubr.f32.mxu0 %v17388_v12  ;;  %11865 = vmatprep.mubr.f32.mxu1 %v17450_v17 }
 0x6e5   :  { %v11578_v6 = vpop.f32.mrf.mxu0  ;;  %11804 = vmatmul.mubr.f32.gmra.mxu0 %v17402_v42  ;;  %11866 = vmatmul.mubr.f32.gmra.mxu1 %v17462_v43  ;;  %v21160_v42 = vld [vmem:[#allocation73_spill] sm:$0xff]  ;;  %v11637_v51 = vpop.f32.mrf.mxu1 }
 0x6e6   :  { %v7710_v21 = vadd.f32 %v11578_v6, %v17888_v62  ;;  %11806 = vmatprep.mubr.f32.mxu0 %v17419_v20  ;;  %11868 = vmatprep.mubr.f32.mxu1 %v17475_v16 }
 0x6e7   :  { %v7699_v32 = vpop.f32.mrf.mxu0  ;;  %v8112_v50 = vpop.f32.mrf.mxu1 }
 0x6e8   :  { %v7700_v12 = vadd.f32 %v7699_v32, %v17888_v62  ;;  %v17896_v36 = vadd.f32 %v11634_v46, %v7710_v21  ;;  %v21176_v46 = vld [vmem:[#allocation106_spill] sm:$0xff] }
 0x6e9   :  { %11807 = vmatmul.mubr.f32.gmra.mxu0 %v17434_v39  ;;  %11869 = vmatmul.mubr.f32.gmra.mxu1 %v17486_v19 }
 0x6ea   :  { %11809 = vmatprep.mubr.f32.mxu0 %v17450_v17  ;;  %11871 = vmatprep.mubr.f32.mxu1 %v21160_v42  ;;  %v17902_v38 = vadd.f32 %v8100_v33, %v7700_v12 }
 0x6ed   :  { %v11581_v20 = vpop.f32.mrf.mxu0  ;;  %11810 = vmatmul.mubr.f32.gmra.mxu0 %v17462_v43  ;;  %11872 = vmatmul.mubr.f32.gmra.mxu1 %v21161_v31  ;;  %v21164_v43 = vld [vmem:[#allocation81_spill] sm:$0xff]  ;;  %v11640_v2 = vpop.f32.mrf.mxu1 }
 0x6ee   :  { %v7730_v60 = vadd.f32 %v11581_v20, %v17888_v62  ;;  %11812 = vmatprep.mubr.f32.mxu0 %v17475_v16  ;;  %11874 = vmatprep.mubr.f32.mxu1 %v21162_v52 }
 0x6ef   :  { %v7719_v39 = vpop.f32.mrf.mxu0  ;;  %v8124_v53 = vpop.f32.mrf.mxu1 }
 0x6f0   :  { %v7720_v7 = vadd.f32 %v7719_v39, %v17888_v62  ;;  %v17910_v17 = vadd.f32 %v11637_v51, %v7730_v60 }
 0x6f1   :  { %11813 = vmatmul.mubr.f32.gmra.mxu0 %v17486_v19  ;;  %11875 = vmatmul.mubr.f32.gmra.mxu1 %v21163_v61 }
 0x6f2   :  { %11815 = vmatprep.mubr.f32.mxu0 %v21160_v42  ;;  %11877 = vmatprep.mubr.f32.mxu1 %v21164_v43  ;;  %v17916_v57 = vadd.f32 %v8112_v50, %v7720_v7 }
 0x6f5   :  { %v11584_v16 = vpop.f32.mrf.mxu0  ;;  %11816 = vmatmul.mubr.f32.gmra.mxu0 %v21161_v31  ;;  %11878 = vmatmul.mubr.f32.gmra.mxu1 %v21165_v40  ;;  %v11643_v27 = vpop.f32.mrf.mxu1 }
 0x6f6   :  { %v7750_v5 = vadd.f32 %v11584_v16, %v17888_v62  ;;  %11818 = vmatprep.mubr.f32.mxu0 %v21162_v52  ;;  %11880 = vmatprep.mubr.f32.mxu1 %v21166_v13 }
 0x6f7   :  { %v7739_v19 = vpop.f32.mrf.mxu0  ;;  %v8136_v8 = vpop.f32.mrf.mxu1 }
 0x6f8   :  { %v7740_v35 = vadd.f32 %v7739_v19, %v17888_v62  ;;  %v17924_v28 = vadd.f32 %v11640_v2, %v7750_v5 }
 0x6f9   :  { %11819 = vmatmul.mubr.f32.gmra.mxu0 %v21163_v61  ;;  %11881 = vmatmul.mubr.f32.gmra.mxu1 %v21167_v54 }
 0x6fa   :  { %11821 = vmatprep.mubr.f32.mxu0 %v21164_v43  ;;  %11883 = vmatprep.mubr.f32.mxu1 %v21168_v44  ;;  %v17930_v10 = vadd.f32 %v8124_v53, %v7740_v35 }
 0x6fd   :  { %v11587_v41 = vpop.f32.mrf.mxu0  ;;  %11822 = vmatmul.mubr.f32.gmra.mxu0 %v21165_v40  ;;  %11884 = vmatmul.mubr.f32.gmra.mxu1 %v21169_v56  ;;  %v11646_v25 = vpop.f32.mrf.mxu1 }
 0x6fe   :  { %v7770_v45 = vadd.f32 %v11587_v41, %v17888_v62  ;;  %11824 = vmatprep.mubr.f32.mxu0 %v21166_v13  ;;  %11886 = vmatprep.mubr.f32.mxu1 %v21170_v3 }
 0x6ff   :  { %v7759_v26 = vpop.f32.mrf.mxu0  ;;  %v8148_v14 = vpop.f32.mrf.mxu1 }
 0x700   :  { %v7760_v22 = vadd.f32 %v7759_v26, %v17888_v62  ;;  %v17938_v1 = vadd.f32 %v11643_v27, %v7770_v45 }
 0x701   :  { %11825 = vmatmul.mubr.f32.gmra.mxu0 %v21167_v54  ;;  %11887 = vmatmul.mubr.f32.gmra.mxu1 %v21171_v11 }
 0x702   :  { %11827 = vmatprep.mubr.f32.mxu0 %v21168_v44  ;;  %11889 = vmatprep.mubr.f32.mxu1 %v21172_v18  ;;  %v17944_v23 = vadd.f32 %v8136_v8, %v7760_v22 }
 0x705   :  { %v11590_v24 = vpop.f32.mrf.mxu0  ;;  %11828 = vmatmul.mubr.f32.gmra.mxu0 %v21169_v56  ;;  %11890 = vmatmul.mubr.f32.gmra.mxu1 %v21173_v37  ;;  %v11649_v34 = vpop.f32.mrf.mxu1 }
 0x706   :  { %v7790_v58 = vadd.f32 %v11590_v24, %v17888_v62  ;;  %11830 = vmatprep.mubr.f32.mxu0 %v21170_v3  ;;  %11892 = vmatprep.mubr.f32.mxu1 %v21174_v15 }
 0x707   :  { %v7779_v59 = vpop.f32.mrf.mxu0  ;;  %v8160_v33 = vpop.f32.mrf.mxu1 }
 0x708   :  { %v7780_v48 = vadd.f32 %v7779_v59, %v17888_v62  ;;  %v17952_v30 = vadd.f32 %v11646_v25, %v7790_v58 }
 0x709   :  { %11831 = vmatmul.mubr.f32.gmra.mxu0 %v21171_v11  ;;  %11893 = vmatmul.mubr.f32.gmra.mxu1 %v21175_v49 }
 0x70a   :  { %11833 = vmatprep.mubr.f32.mxu0 %v21172_v18  ;;  %11895 = vmatprep.mubr.f32.mxu1 %v17691_v47  ;;  %v17958_v9 = vadd.f32 %v8148_v14, %v7780_v48 }
 0x70d   :  { %v11593_v63 = vpop.f32.mrf.mxu0  ;;  %11834 = vmatmul.mubr.f32.gmra.mxu0 %v21173_v37  ;;  %11896 = vmatmul.mubr.f32.gmra.mxu1 %v21176_v46  ;;  %v11652_v51 = vpop.f32.mrf.mxu1 }
 0x70e   :  { %v7810_v6 = vadd.f32 %v11593_v63, %v17888_v62  ;;  %11836 = vmatprep.mubr.f32.mxu0 %v21174_v15  ;;  %11898 = vmatprep.mubr.f32.mxu1 %v17715_v29 }
 0x70f   :  { %v7799_v21 = vpop.f32.mrf.mxu0 }
 0x710   :  { %v7800_v32 = vadd.f32 %v7799_v21, %v17888_v62  ;;  %v17966_v12 = vadd.f32 %v11649_v34, %v7810_v6 }
 0x711   :  { %11837 = vmatmul.mubr.f32.gmra.mxu0 %v21175_v49  ;;  %11899 = vmatmul.mubr.f32.gmra.mxu1 %v17726_v4 }
 0x712   :  { %11839 = vmatprep.mubr.f32.mxu0 %v17691_v47  ;;  %11901 = vmatprep.mubr.f32.mxu1 %v17739_v55  ;;  %v17972_v42 = vadd.f32 %v8160_v33, %v7800_v32  ;;  %v8172_v47 = vpop.f32.mrf.mxu1 }
 0x715   :  { %v11596_v20 = vpop.f32.mrf.mxu0  ;;  %11840 = vmatmul.mubr.f32.gmra.mxu0 %v21176_v46  ;;  %11902 = vmatmul.mubr.f32.gmra.mxu1 %v17749_v0  ;;  %v11655_v50 = vpop.f32.mrf.mxu1 }
 0x716   :  { %v7830_v31 = vadd.f32 %v11596_v20, %v17888_v62  ;;  %11842 = vmatprep.mubr.f32.mxu0 %v17715_v29 }
 0x717   :  { %v7819_v60 = vpop.f32.mrf.mxu0  ;;  %v8184_v40 = vpop.f32.mrf.mxu1 }
 0x718   :  { %v7820_v52 = vadd.f32 %v7819_v60, %v17888_v62  ;;  %v17979_v39 = vadd.f32 %v11652_v51, %v7830_v31 }
 0x719   :  { %11843 = vmatmul.mubr.f32.gmra.mxu0 %v17726_v4 }
 0x71a   :  { %11845 = vmatprep.mubr.f32.mxu0 %v17739_v55  ;;  %v17983_v7 = vadd.f32 %v8172_v47, %v7820_v52 }
 0x71d   :  { %v11599_v61 = vpop.f32.mrf.mxu0  ;;  %11846 = vmatmul.mubr.f32.gmra.mxu0 %v17749_v0  ;;  %v11658_v13 = vpop.f32.mrf.mxu1 }
 0x71e   :  { %v7850_v43 = vadd.f32 %v11599_v61, %v17888_v62 }
 0x71f   :  { %v7839_v2 = vpop.f32.mrf.mxu0  ;;  %v8196_v0 = vpop.f32.mrf.mxu1 }
 0x720   :  { %v7840_v29 = vadd.f32 %v7839_v2, %v17888_v62  ;;  %v17988_v16 = vadd.f32 %v11655_v50, %v7850_v43 }
 0x722   :  { %v17990_v5 = vadd.f32 %v8184_v40, %v7840_v29 }
 0x725   :  { %v11602_v4 = vpop.f32.mrf.mxu0  ;;  %v11661_v44 = vpop.f32.mrf.mxu1 }
 0x726   :  { %v7870_v55 = vadd.f32 %v11602_v4, %v17888_v62 }
 0x727   :  { %v7859_v19 = vpop.f32.mrf.mxu0  ;;  %v8208_v26 = vpop.f32.mrf.mxu1 }
 0x728   :  { %v7860_v35 = vadd.f32 %v7859_v19, %v17888_v62  ;;  %v17994_v53 = vadd.f32 %v11658_v13, %v7870_v55 }
 0x72a   :  { %v17996_v54 = vadd.f32 %v8196_v0, %v7860_v35 }
 0x72d   :  { %v11605_v27 = vpop.f32.mrf.mxu0  ;;  %v11664_v8 = vpop.f32.mrf.mxu1 }
 0x72e   :  { %v7890_v41 = vadd.f32 %v11605_v27, %v17888_v62 }
 0x72f   :  { %v7879_v56 = vpop.f32.mrf.mxu0  ;;  %v8220_v58 = vpop.f32.mrf.mxu1 }
 0x730   :  { %v7880_v45 = vadd.f32 %v7879_v56, %v17888_v62  ;;  %v18000_v3 = vadd.f32 %v11661_v44, %v7890_v41 }
 0x732   :  { %v18002_v22 = vadd.f32 %v8208_v26, %v7880_v45 }
 0x735   :  { %v11608_v11 = vpop.f32.mrf.mxu0  ;;  %v11667_v59 = vpop.f32.mrf.mxu1 }
 0x736   :  { %v7910_v18 = vadd.f32 %v11608_v11, %v17888_v62 }
 0x737   :  { %v7899_v25 = vpop.f32.mrf.mxu0  ;;  %v8232_v46 = vpop.f32.mrf.mxu1 }
 0x738   :  { %v7900_v24 = vadd.f32 %v7899_v25, %v17888_v62  ;;  %v18006_v37 = vadd.f32 %v11664_v8, %v7910_v18 }
 0x73a   :  { %v18008_v15 = vadd.f32 %v8220_v58, %v7900_v24 }
 0x73d   :  { %v11611_v48 = vpop.f32.mrf.mxu0  ;;  %v11670_v21 = vpop.f32.mrf.mxu1 }
 0x73e   :  { %v7930_v14 = vadd.f32 %v11611_v48, %v17888_v62 }
 0x73f   :  { %v7919_v49 = vpop.f32.mrf.mxu0  ;;  %v8244_v51 = vpop.f32.mrf.mxu1 }
 0x740   :  { %v7920_v34 = vadd.f32 %v7919_v49, %v17888_v62  ;;  %v18012_v63 = vadd.f32 %v11667_v59, %v7930_v14 }
 0x742   :  { %v18014_v6 = vadd.f32 %v8232_v46, %v7920_v34 }
 0x745   :  { %v11614_v32 = vpop.f32.mrf.mxu0  ;;  %v11673_v52 = vpop.f32.mrf.mxu1 }
 0x746   :  { %v7950_v33 = vadd.f32 %v11614_v32, %v17888_v62 }
 0x747   :  { %v7939_v20 = vpop.f32.mrf.mxu0  ;;  %v8256_v50 = vpop.f32.mrf.mxu1 }
 0x748   :  { %v7940_v31 = vadd.f32 %v7939_v20, %v17888_v62  ;;  %v18018_v60 = vadd.f32 %v11670_v21, %v7950_v33 }
 0x74a   :  { %v18020_v47 = vadd.f32 %v8244_v51, %v7940_v31 }
 0x74d   :  { %v11617_v61 = vpop.f32.mrf.mxu0  ;;  %v11676_v2 = vpop.f32.mrf.mxu1 }
 0x74e   :  { %v7970_v43 = vadd.f32 %v11617_v61, %v17888_v62 }
 0x74f   :  { %v7959_v29 = vpop.f32.mrf.mxu0  ;;  %v8268_v55 = vpop.f32.mrf.mxu1 }
 0x750   :  { %v7960_v40 = vadd.f32 %v7959_v29, %v17888_v62  ;;  %v18024_v13 = vadd.f32 %v11673_v52, %v7970_v43 }
 0x752   :  { %v18026_v4 = vadd.f32 %v8256_v50, %v7960_v40 }
 0x755   :  { %v11620_v19 = vpop.f32.mrf.mxu0  ;;  %v11679_v35 = vpop.f32.mrf.mxu1 }
 0x756   :  { %v7990_v0 = vadd.f32 %v11620_v19, %v17888_v62 }
 0x757   :  { %v7979_v44 = vpop.f32.mrf.mxu0  ;;  %v8280_v27 = vpop.f32.mrf.mxu1 }
 0x758   :  { %v7980_v41 = vadd.f32 %v7979_v44, %v17888_v62  ;;  %v18030_v56 = vadd.f32 %v11676_v2, %v7990_v0 }
 0x759   :  { %v18032_v45 = vpop.f32.mrf.mxu1 }
 0x75a   :  { %v18034_v26 = vadd.f32 %v8268_v55, %v7980_v41 }
 0x75b   :  { %v18036_v8 = vpop.f32.mrf.mxu1 }
 0x75d   :  { %v11623_v11 = vpop.f32.mrf.mxu0  ;;  %v11749_v18 = vpop.f32.mrf.mxu1 }
 0x75e   :  { %v8010_v25 = vadd.f32 %v11623_v11, %v17888_v62 }
 0x75f   :  { %v7999_v24 = vpop.f32.mrf.mxu0  ;;  %v8676_v58 = vpop.f32.mrf.mxu1 }
 0x760   :  { %v8000_v59 = vadd.f32 %v7999_v24, %v17888_v62  ;;  %v18040_v48 = vadd.f32 %v11679_v35, %v8010_v25 }
 0x761   :  { %v18042_v14 = vpop.f32.mrf.mxu0  ;;  %v11752_v49 = vpop.f32.mrf.mxu1 }
 0x762   :  { %v18044_v34 = vadd.f32 %v8280_v27, %v8000_v59 }
 0x763   :  { %v18046_v46 = vpop.f32.mrf.mxu0  ;;  %v8692_v21 = vpop.f32.mrf.mxu1 }
 0x765   :  { %v11693_v32 = vpop.f32.mrf.mxu0  ;;  %v11755_v33 = vpop.f32.mrf.mxu1 }
 0x766   :  { %v8388_v51 = vadd.f32 %v11693_v32, %v17910_v17 }
 0x767   :  { %v8380_v20 = vpop.f32.mrf.mxu0  ;;  %v8708_v31 = vpop.f32.mrf.mxu1 }
 0x768   :  { %v8381_v52 = vadd.f32 %v8380_v20, %v17916_v57  ;;  %v18050_v50 = vadd.f32 %v11749_v18, %v8388_v51 }
 0x769   :  { %v11696_v62 = vpop.f32.mrf.mxu0  ;;  %v11758_v61 = vpop.f32.mrf.mxu1 }
 0x76a   :  { %v8402_v43 = vadd.f32 %v11696_v62, %v17924_v28  ;;  %v18053_v2 = vadd.f32 %v8676_v58, %v8381_v52 }
 0x76b   :  { %v8394_v29 = vpop.f32.mrf.mxu0  ;;  %v8724_v40 = vpop.f32.mrf.mxu1 }
 0x76c   :  { %v8395_v55 = vadd.f32 %v8394_v29, %v17930_v10  ;;  %v18056_v19 = vadd.f32 %v11752_v49, %v8402_v43 }
 0x76d   :  { %v11699_v35 = vpop.f32.mrf.mxu0  ;;  %v11761_v17 = vpop.f32.mrf.mxu1 }
 0x76e   :  { %v8416_v0 = vadd.f32 %v11699_v35, %v17938_v1  ;;  %v18059_v44 = vadd.f32 %v8692_v21, %v8395_v55 }
 0x76f   :  { %v8408_v57 = vpop.f32.mrf.mxu0  ;;  %v8740_v27 = vpop.f32.mrf.mxu1 }
 0x770   :  { %v8409_v41 = vadd.f32 %v8408_v57, %v17944_v23  ;;  %v18062_v11 = vadd.f32 %v11755_v33, %v8416_v0 }
 0x771   :  { %v11702_v28 = vpop.f32.mrf.mxu0  ;;  %v11764_v18 = vpop.f32.mrf.mxu1 }
 0x772   :  { %v8430_v25 = vadd.f32 %v11702_v28, %v17952_v30  ;;  %v18065_v24 = vadd.f32 %v8708_v31, %v8409_v41 }
 0x773   :  { %v8422_v10 = vpop.f32.mrf.mxu0  ;;  %v8756_v58 = vpop.f32.mrf.mxu1 }
 0x774   :  { %v8423_v59 = vadd.f32 %v8422_v10, %v17958_v9  ;;  %v18068_v49 = vadd.f32 %v11758_v61, %v8430_v25 }
 0x775   :  { %v11705_v1 = vpop.f32.mrf.mxu0  ;;  %v11767_v21 = vpop.f32.mrf.mxu1 }
 0x776   :  { %v8444_v32 = vadd.f32 %v11705_v1, %v17966_v12  ;;  %v18071_v51 = vadd.f32 %v8724_v40, %v8423_v59 }
 0x777   :  { %v8436_v23 = vpop.f32.mrf.mxu0  ;;  %v8772_v33 = vpop.f32.mrf.mxu1 }
 0x778   :  { %v8437_v20 = vadd.f32 %v8436_v23, %v17972_v42  ;;  %v18074_v52 = vadd.f32 %v11761_v17, %v8444_v32 }
 0x779   :  { %v11708_v30 = vpop.f32.mrf.mxu0  ;;  %v11770_v31 = vpop.f32.mrf.mxu1 }
 0x77a   :  { %v8458_v62 = vadd.f32 %v11708_v30, %v17979_v39  ;;  %v18077_v43 = vadd.f32 %v8740_v27, %v8437_v20 }
 0x77b   :  { %v8450_v9 = vpop.f32.mrf.mxu0  ;;  %v8788_v61 = vpop.f32.mrf.mxu1 }
 0x77c   :  { %v8451_v29 = vadd.f32 %v8450_v9, %v17983_v7  ;;  %v18080_v55 = vadd.f32 %v11764_v18, %v8458_v62 }
 0x77d   :  { %v11711_v12 = vpop.f32.mrf.mxu0  ;;  %v11773_v40 = vpop.f32.mrf.mxu1 }
 0x77e   :  { %v8472_v35 = vadd.f32 %v11711_v12, %v17988_v16  ;;  %v18083_v0 = vadd.f32 %v8756_v58, %v8451_v29 }
 0x77f   :  { %v8464_v42 = vpop.f32.mrf.mxu0  ;;  %v8804_v17 = vpop.f32.mrf.mxu1 }
 0x780   :  { %v8465_v57 = vadd.f32 %v8464_v42, %v17990_v5  ;;  %v18086_v41 = vadd.f32 %v11767_v21, %v8472_v35 }
 0x781   :  { %v11714_v39 = vpop.f32.mrf.mxu0  ;;  %v11776_v27 = vpop.f32.mrf.mxu1 }
 0x782   :  { %v8486_v28 = vadd.f32 %v11714_v39, %v17994_v53  ;;  %v18089_v25 = vadd.f32 %v8772_v33, %v8465_v57 }
 0x783   :  { %v8478_v7 = vpop.f32.mrf.mxu0  ;;  %v8820_v18 = vpop.f32.mrf.mxu1 }
 0x784   :  { %v8479_v10 = vadd.f32 %v8478_v7, %v17996_v54  ;;  %v18092_v59 = vadd.f32 %v11770_v31, %v8486_v28 }
 0x785   :  { %v11717_v16 = vpop.f32.mrf.mxu0  ;;  %v11779_v58 = vpop.f32.mrf.mxu1 }
 0x786   :  { %v8500_v1 = vadd.f32 %v11717_v16, %v18000_v3  ;;  %v18095_v32 = vadd.f32 %v8788_v61, %v8479_v10 }
 0x787   :  { %v8492_v5 = vpop.f32.mrf.mxu0  ;;  %v8836_v21 = vpop.f32.mrf.mxu1 }
 0x788   :  { %v8493_v23 = vadd.f32 %v8492_v5, %v18002_v22  ;;  %v18098_v20 = vadd.f32 %v11773_v40, %v8500_v1 }
 0x789   :  { %v11720_v53 = vpop.f32.mrf.mxu0  ;;  %v11782_v33 = vpop.f32.mrf.mxu1 }
 0x78a   :  { %v8514_v30 = vadd.f32 %v11720_v53, %v18006_v37  ;;  %v18101_v62 = vadd.f32 %v8804_v17, %v8493_v23 }
 0x78b   :  { %v8506_v54 = vpop.f32.mrf.mxu0  ;;  %v8852_v31 = vpop.f32.mrf.mxu1 }
 0x78c   :  { %v8507_v9 = vadd.f32 %v8506_v54, %v18008_v15  ;;  %v18104_v29 = vadd.f32 %v11776_v27, %v8514_v30 }
 0x78d   :  { %v11723_v3 = vpop.f32.mrf.mxu0  ;;  %v11785_v61 = vpop.f32.mrf.mxu1 }
 0x78e   :  { %v8528_v12 = vadd.f32 %v11723_v3, %v18012_v63  ;;  %v18107_v35 = vadd.f32 %v8820_v18, %v8507_v9 }
 0x78f   :  { %v8520_v22 = vpop.f32.mrf.mxu0  ;;  %v8868_v40 = vpop.f32.mrf.mxu1 }
 0x790   :  { %v8521_v42 = vadd.f32 %v8520_v22, %v18014_v6  ;;  %v18110_v57 = vadd.f32 %v11779_v58, %v8528_v12 }
 0x791   :  { %v11726_v37 = vpop.f32.mrf.mxu0  ;;  %v11788_v17 = vpop.f32.mrf.mxu1 }
 0x792   :  { %v8542_v39 = vadd.f32 %v11726_v37, %v18018_v60  ;;  %v18113_v28 = vadd.f32 %v8836_v21, %v8521_v42 }
 0x793   :  { %v8534_v15 = vpop.f32.mrf.mxu0  ;;  %v8884_v27 = vpop.f32.mrf.mxu1 }
 0x794   :  { %v8535_v7 = vadd.f32 %v8534_v15, %v18020_v47  ;;  %v18116_v10 = vadd.f32 %v11782_v33, %v8542_v39  ;;  %v8374_v33 = vadd.f32 %v18042_v14, %v17896_v36 }
 0x795   :  { %v11729_v63 = vpop.f32.mrf.mxu0  ;;  %v11791_v18 = vpop.f32.mrf.mxu1 }
 0x796   :  { %v8556_v16 = vadd.f32 %v11729_v63, %v18024_v13  ;;  %v18119_v1 = vadd.f32 %v8852_v31, %v8535_v7  ;;  %v8669_v12 = vadd.f32 %v18032_v45, %v8374_v33 }
 0x797   :  { %v8548_v6 = vpop.f32.mrf.mxu0  ;;  %v8900_v60 = vpop.f32.mrf.mxu1 }
 0x798   :  { %v8549_v58 = vadd.f32 %v8548_v6, %v18026_v4  ;;  %v18122_v5 = vadd.f32 %v11785_v61, %v8556_v16  ;;  %v8367_v4 = vadd.f32 %v18046_v46, %v17902_v38  ;;  %v21178_v16 = vld [vmem:[#allocation35_spill] sm:$0xff] }
 0x799   :  { %v11732_v21 = vpop.f32.mrf.mxu0  ;;  %v11858_v54 = vpop.f32.mrf.mxu1 }
 0x79a   :  { %v8570_v23 = vadd.f32 %v11732_v21, %v18030_v56  ;;  %v18125_v53 = vadd.f32 %v8868_v40, %v8549_v58  ;;  %v8661_v40 = vadd.f32 %v18036_v8, %v8367_v4 }
 0x79b   :  { %v8562_v47 = vpop.f32.mrf.mxu0  ;;  %v9252_v36 = vpop.f32.mrf.mxu1 }
 0x79c   :  { %v8563_v30 = vadd.f32 %v8562_v47, %v18034_v26  ;;  %v18130_v13 = vadd.f32 %v11788_v17, %v8570_v23  ;;  %v21179_v47 = vld [vmem:[#allocation317_spill] sm:$0xff] }
 0x79d   :  { %v11735_v31 = vpop.f32.mrf.mxu0 }
 0x79e   :  { %v8584_v9 = vadd.f32 %v11735_v31, %v18040_v48  ;;  %v18135_v3 = vadd.f32 %v8884_v27, %v8563_v30  ;;  %v11861_v48 = vpop.f32.mrf.mxu1 }
 0x79f   :  { %v8576_v56 = vpop.f32.mrf.mxu0 }
 0x7a0   :  { %v8577_v61 = vadd.f32 %v8576_v56, %v18044_v34  ;;  %v18139_v22 = vadd.f32 %v11791_v18, %v8584_v9  ;;  %v21177_v34 = vld [vmem:[#allocation55_spill] sm:$0xff]  ;;  %v9264_v6 = vpop.f32.mrf.mxu1 }
 0x7a1   :  { %v11802_v26 = vpop.f32.mrf.mxu0 }
 0x7a2   :  { %v8998_v14 = vadd.f32 %v11802_v26, %v8669_v12  ;;  %v18142_v42 = vadd.f32 %v8900_v60, %v8577_v61  ;;  %v11864_v33 = vpop.f32.mrf.mxu1  ;;  %v21181_v26 = vld [vmem:[#allocation313_spill] sm:$0xff] }
 0x7a3   :  { %v8991_v37 = vpop.f32.mrf.mxu0 }
 0x7a4   :  { %v9259_v38 = vadd.f32 %v11858_v54, %v8998_v14  ;;  %v8992_v46 = vadd.f32 %v8991_v37, %v8661_v40  ;;  %v21180_v54 = vld [vmem:[#allocation48_spill] sm:$0xff]  ;;  %v9276_v56 = vpop.f32.mrf.mxu1 }
 0x7a5   :  { %v11805_v17 = vpop.f32.mrf.mxu0 }
 0x7a6   :  { %v9253_v39 = vadd.f32 %v9252_v36, %v8992_v46  ;;  %v9010_v15 = vadd.f32 %v11805_v17, %v18050_v50  ;;  %v9443_v27 = vmul.f32 %v9259_v38, %v21177_v34  ;;  %v11867_v40 = vpop.f32.mrf.mxu1  ;;  %v21182_v38 = vld [vmem:[#allocation319_spill] sm:$0xff] }
 0x7a7   :  { %v9003_v45 = vpop.f32.mrf.mxu0 }
 0x7a8   :  { %v9271_v7 = vadd.f32 %v11861_v48, %v9010_v15  ;;  %v9004_v63 = vadd.f32 %v9003_v45, %v18053_v2  ;;  %v18147_v18 = vmax.f32 %v9443_v27, 0.0  ;;  %v9442_v8 = vmul.f32 %v9253_v39, %v21178_v16  ;;  %v21183_v45 = vld [vmem:[#allocation307_spill] sm:$0xff] }
 0x7a9   :  { %v11808_v58 = vpop.f32.mrf.mxu0 }
 0x7aa   :  { %v9265_v60 = vadd.f32 %v9264_v6, %v9004_v63  ;;  %9540 = vrot.lane.b32.xlu1 %v18147_v18, %s12185_s0  ;;  %v18152_v21 = vmax.f32 %v9442_v8, 0.0  ;;  %v9022_v50 = vadd.f32 %v11808_v58, %v18056_v19  ;;  %v9445_v2 = vmul.f32 %v9271_v7, %v21179_v47  ;;  %v21184_v8 = vld [vmem:[#allocation315_spill] sm:$0xff] }
 0x7ab   :  { %v9015_v23 = vpop.f32.mrf.mxu0 }
 0x7ac   :  { %9538 = vrot.lane.b32.xlu0 %v18152_v21, %s12185_s0  ;;  %v9016_v30 = vadd.f32 %v9015_v23, %v18059_v44  ;;  %v9444_v31 = vmul.f32 %v9265_v60, %v21180_v54  ;;  %v9283_v9 = vadd.f32 %v11864_v33, %v9022_v50  ;;  %v18164_v19 = vmax.f32 %v9445_v2, 0.0  ;;  %v21185_v33 = vld [vmem:[#allocation302_spill] sm:$0xff] }
 0x7ad   :  { %v11811_v4 = vpop.f32.mrf.mxu0 }
 0x7ae   :  { %9636 = vrot.lane.b32.xlu1 %v18147_v18, %s12186_s11  ;;  %v9277_v61 = vadd.f32 %v9276_v56, %v9016_v30  ;;  %v18168_v12 = vmax.f32 %v9444_v31, 0.0  ;;  %v9034_v36 = vadd.f32 %v11811_v4, %v18062_v11  ;;  %v9447_v14 = vmul.f32 %v9283_v9, %v21181_v26  ;;  %v9288_v11 = vpop.f32.mrf.mxu1  ;;  %v21186_v4 = vld [vmem:[#allocation310_spill] sm:$0xff] }
 0x7af   :  { %v9027_v44 = vpop.f32.mrf.mxu0 }
 0x7b0   :  { %9634 = vrot.lane.b32.xlu0 %v18152_v21, %s12186_s11  ;;  %v9028_v37 = vadd.f32 %v9027_v44, %v18065_v24  ;;  %v9446_v46 = vmul.f32 %v9277_v61, %v21182_v38  ;;  %v9295_v17 = vadd.f32 %v11867_v40, %v9034_v36  ;;  %v18180_v39 = vmax.f32 %v9447_v14, 0.0  ;;  %v11870_v63 = vpop.f32.mrf.mxu1  ;;  %v21187_v40 = vld [vmem:[#allocation296_spill] sm:$0xff] }
 0x7b1   :  { %v11814_v48 = vpop.f32.mrf.mxu0 }
 0x7b2   :  { %9544 = vrot.lane.b32.xlu1 %v18164_v19, %s12185_s0  ;;  %v9289_v15 = vadd.f32 %v9288_v11, %v9028_v37  ;;  %v18184_v34 = vmax.f32 %v9446_v46, 0.0  ;;  %v9046_v27 = vadd.f32 %v11814_v48, %v18068_v49  ;;  %v9449_v7 = vmul.f32 %v9295_v17, %v21183_v45  ;;  %v9300_v49 = vpop.f32.mrf.mxu1  ;;  %v21188_v48 = vld [vmem:[#allocation304_spill] sm:$0xff] }
 0x7b3   :  { %v9039_v24 = vpop.f32.mrf.mxu0 }
 0x7b4   :  { %9542 = vrot.lane.b32.xlu0 %v18168_v12, %s12185_s0  ;;  %v9040_v16 = vadd.f32 %v9039_v24, %v18071_v51  ;;  %v9448_v6 = vmul.f32 %v9289_v15, %v21184_v8  ;;  %v9307_v60 = vadd.f32 %v11870_v63, %v9046_v27  ;;  %v18196_v23 = vmax.f32 %v9449_v7, 0.0  ;;  %v11873_v54 = vpop.f32.mrf.mxu1  ;;  %v21189_v63 = vld [vmem:[#allocation293_spill] sm:$0xff] }
 0x7b5   :  { %v11817_v58 = vpop.f32.mrf.mxu0 }
 0x7b6   :  { %9640 = vrot.lane.b32.xlu1 %v18164_v19, %s12186_s11  ;;  %v9301_v50 = vadd.f32 %v9300_v49, %v9040_v16  ;;  %v18200_v47 = vmax.f32 %v9448_v6, 0.0  ;;  %v9058_v2 = vadd.f32 %v11817_v58, %v18074_v52  ;;  %v9451_v30 = vmul.f32 %v9307_v60, %v21185_v33  ;;  %v9312_v52 = vpop.f32.mrf.mxu1  ;;  %v21190_v58 = vld [vmem:[#allocation298_spill] sm:$0xff] }
 0x7b7   :  { %v9051_v51 = vpop.f32.mrf.mxu0 }
 0x7b8   :  { %9638 = vrot.lane.b32.xlu0 %v18168_v12, %s12186_s11  ;;  %v9052_v31 = vadd.f32 %v9051_v51, %v18077_v43  ;;  %v9450_v9 = vmul.f32 %v9301_v50, %v21186_v4  ;;  %v9319_v61 = vadd.f32 %v11873_v54, %v9058_v2  ;;  %v18212_v44 = vmax.f32 %v9451_v30, 0.0  ;;  %v11876_v38 = vpop.f32.mrf.mxu1  ;;  %v21191_v54 = vld [vmem:[#allocation29_spill] sm:$0xff] }
 0x7b9   :  { %v11820_v56 = vpop.f32.mrf.mxu0 }
 0x7ba   :  { %9548 = vrot.lane.b32.xlu1 %v18180_v39, %s12185_s0  ;;  %v9313_v36 = vadd.f32 %v9312_v52, %v9052_v31  ;;  %v18216_v26 = vmax.f32 %v9450_v9, 0.0  ;;  %v9070_v14 = vadd.f32 %v11820_v56, %v18080_v55  ;;  %v9453_v37 = vmul.f32 %v9319_v61, %v21187_v40  ;;  %v9324_v55 = vpop.f32.mrf.mxu1  ;;  %v21192_v56 = vld [vmem:[#allocation33_spill] sm:$0xff] }
 0x7bb   :  { %v9063_v43 = vpop.f32.mrf.mxu0 }
 0x7bc   :  { %9546 = vrot.lane.b32.xlu0 %v18184_v34, %s12185_s0  ;;  %v9064_v46 = vadd.f32 %v9063_v43, %v18083_v0  ;;  %v9452_v17 = vmul.f32 %v9313_v36, %v21188_v48  ;;  %v9331_v15 = vadd.f32 %v11876_v38, %v9070_v14  ;;  %v18228_v24 = vmax.f32 %v9453_v37, 0.0  ;;  %v11879_v8 = vpop.f32.mrf.mxu1  ;;  %v21193_v38 = vld [vmem:[#allocation340_spill] sm:$0xff] }
 0x7bd   :  { %v11823_v11 = vpop.f32.mrf.mxu0 }
 0x7be   :  { %9644 = vrot.lane.b32.xlu1 %v18180_v39, %s12186_s11  ;;  %v9325_v27 = vadd.f32 %v9324_v55, %v9064_v46  ;;  %v18232_v45 = vmax.f32 %v9452_v17, 0.0  ;;  %v9082_v7 = vadd.f32 %v11823_v11, %v18086_v41  ;;  %v9455_v16 = vmul.f32 %v9331_v15, %v21189_v63  ;;  %v9336_v41 = vpop.f32.mrf.mxu1  ;;  %v21194_v11 = vld [vmem:[#allocation342_spill] sm:$0xff] }
 0x7bf   :  { %v9075_v0 = vpop.f32.mrf.mxu0 }
 0x7c0   :  { %9642 = vrot.lane.b32.xlu0 %v18184_v34, %s12186_s11  ;;  %v9076_v6 = vadd.f32 %v9075_v0, %v18089_v25  ;;  %v9454_v60 = vmul.f32 %v9325_v27, %v21190_v58  ;;  %v9343_v50 = vadd.f32 %v11879_v8, %v9082_v7  ;;  %v18244_v51 = vmax.f32 %v9455_v16, 0.0  ;;  %v11882_v4 = vpop.f32.mrf.mxu1  ;;  %v21195_v8 = vld [vmem:[#allocation44_spill] sm:$0xff] }
 0x7c1   :  { %v11826_v49 = vpop.f32.mrf.mxu0 }
 0x7c2   :  { %9552 = vrot.lane.b32.xlu1 %v18196_v23, %s12185_s0  ;;  %v9337_v2 = vadd.f32 %v9336_v41, %v9076_v6  ;;  %v18248_v33 = vmax.f32 %v9454_v60, 0.0  ;;  %v9094_v30 = vadd.f32 %v11826_v49, %v18092_v59  ;;  %v9457_v31 = vmul.f32 %v9343_v50, %v21191_v54  ;;  %v9348_v59 = vpop.f32.mrf.mxu1  ;;  %v21196_v49 = vld [vmem:[#allocation339_spill] sm:$0xff] }
 0x7c3   :  { %v9087_v25 = vpop.f32.mrf.mxu0 }
 0x7c4   :  { %9550 = vrot.lane.b32.xlu0 %v18200_v47, %s12185_s0  ;;  %v9088_v9 = vadd.f32 %v9087_v25, %v18095_v32  ;;  %v9456_v61 = vmul.f32 %v9337_v2, %v21192_v56  ;;  %v9355_v36 = vadd.f32 %v11882_v4, %v9094_v30  ;;  %v18260_v43 = vmax.f32 %v9457_v31, 0.0  ;;  %v11885_v48 = vpop.f32.mrf.mxu1  ;;  %v21197_v4 = vld [vmem:[#allocation299_spill] sm:$0xff] }
 0x7c5   :  { %v11829_v52 = vpop.f32.mrf.mxu0 }
 0x7c6   :  { %9648 = vrot.lane.b32.xlu1 %v18196_v23, %s12186_s11  ;;  %v9349_v14 = vadd.f32 %v9348_v59, %v9088_v9  ;;  %v18264_v40 = vmax.f32 %v9456_v61, 0.0  ;;  %v9106_v37 = vadd.f32 %v11829_v52, %v18098_v20  ;;  %v9459_v46 = vmul.f32 %v9355_v36, %v21193_v38  ;;  %v9360_v20 = vpop.f32.mrf.mxu1  ;;  %v21198_v52 = vld [vmem:[#allocation15_spill] sm:$0xff] }
 0x7c7   :  { %v9099_v32 = vpop.f32.mrf.mxu0 }
 0x7c8   :  { %9646 = vrot.lane.b32.xlu0 %v18200_v47, %s12186_s11  ;;  %v9100_v17 = vadd.f32 %v9099_v32, %v18101_v62  ;;  %v9458_v15 = vmul.f32 %v9349_v14, %v21194_v11  ;;  %v9367_v27 = vadd.f32 %v11885_v48, %v9106_v37  ;;  %v18276_v0 = vmax.f32 %v9459_v46, 0.0  ;;  %v11888_v58 = vpop.f32.mrf.mxu1  ;;  %v21199_v48 = vld [vmem:[#allocation303_spill] sm:$0xff] }
 0x7c9   :  { %v11832_v55 = vpop.f32.mrf.mxu0 }
 0x7ca   :  { %9556 = vrot.lane.b32.xlu1 %v18212_v44, %s12185_s0  ;;  %v9361_v7 = vadd.f32 %v9360_v20, %v9100_v17  ;;  %v18280_v63 = vmax.f32 %v9458_v15, 0.0  ;;  %v9118_v16 = vadd.f32 %v11832_v55, %v18104_v29  ;;  %v9461_v6 = vmul.f32 %v9367_v27, %v21195_v8  ;;  %v9372_v29 = vpop.f32.mrf.mxu1  ;;  %v21200_v55 = vld [vmem:[#allocation305_spill] sm:$0xff] }
 0x7cb   :  { %v9111_v62 = vpop.f32.mrf.mxu0 }
 0x7cc   :  { %9554 = vrot.lane.b32.xlu0 %v18216_v26, %s12185_s0  ;;  %v9112_v60 = vadd.f32 %v9111_v62, %v18107_v35  ;;  %v9460_v50 = vmul.f32 %v9361_v7, %v21196_v49  ;;  %v9379_v2 = vadd.f32 %v11888_v58, %v9118_v16  ;;  %v18292_v25 = vmax.f32 %v9461_v6, 0.0  ;;  %v11891_v56 = vpop.f32.mrf.mxu1  ;;  %v184_v6 = vld [vmem:[%s18875_s3 + $0xa8] sm:$0xff] }
 0x7cd   :  { %v11835_v41 = vpop.f32.mrf.mxu0 }
 0x7ce   :  { %9652 = vrot.lane.b32.xlu1 %v18212_v44, %s12186_s11  ;;  %v9373_v30 = vadd.f32 %v9372_v29, %v9112_v60  ;;  %v18296_v54 = vmax.f32 %v9460_v50, 0.0  ;;  %v9130_v31 = vadd.f32 %v11835_v41, %v18110_v57  ;;  %v9463_v9 = vmul.f32 %v9379_v2, %v21197_v4  ;;  %v9384_v57 = vpop.f32.mrf.mxu1  ;;  %v21201_v60 = vld [vmem:[#allocation301_spill] sm:$0xff]  ;;  %v21202_v29 = vld [vmem:[#allocation31_spill] sm:$0xff] }
 0x7cf   :  { %v9123_v35 = vpop.f32.mrf.mxu0  ;;  %v18337_v50 = vand.u32 4294901760, %v184_v6 }
 0x7d0   :  { %9650 = vrot.lane.b32.xlu0 %v18216_v26, %s12186_s11  ;;  %v9124_v61 = vadd.f32 %v9123_v35, %v18113_v28  ;;  %v9462_v36 = vmul.f32 %v9373_v30, %v21198_v52  ;;  %v9391_v14 = vadd.f32 %v11891_v56, %v9130_v31  ;;  %v18308_v32 = vmax.f32 %v9463_v9, 0.0  ;;  %v11894_v11 = vpop.f32.mrf.mxu1  ;;  %v183_v52 = vld [vmem:[%s18875_s3 + $0xa0] sm:$0xff] }
 0x7d1   :  { %v11838_v59 = vpop.f32.mrf.mxu0  ;;  %11904 = vmatprep.subr.mxu0 %v18337_v50 }
 0x7d2   :  { %9560 = vrot.lane.b32.xlu1 %v18228_v24, %s12185_s0  ;;  %v9385_v37 = vadd.f32 %v9384_v57, %v9124_v61  ;;  %v18312_v38 = vmax.f32 %v9462_v36, 0.0  ;;  %v9142_v46 = vadd.f32 %v11838_v59, %v18116_v10  ;;  %v9465_v17 = vmul.f32 %v9391_v14, %v21199_v48  ;;  %v9396_v10 = vpop.f32.mrf.mxu1  ;;  %11905 = vmatpush3.msra.mxu0 %v18337_v50  ;;  %v21203_v59 = vld [vmem:[#allocation335_spill] sm:$0xff]  ;;  %v21205_v48 = vld [vmem:[#allocation300_spill] sm:$0xff] }
 0x7d3   :  { %v9135_v28 = vpop.f32.mrf.mxu0  ;;  %v18354_v61 = vsub.f32 %v184_v6, %v18337_v50  ;;  %v18363_v57 = vand.u32 4294901760, %v183_v52  ;;  %v182_v6 = vld [vmem:[%s18875_s3 + $0x98] sm:$0xff] }
 0x7d4   :  { %9558 = vrot.lane.b32.xlu0 %v18232_v45, %s12185_s0  ;;  %v9136_v15 = vadd.f32 %v9135_v28, %v18119_v1  ;;  %v9464_v27 = vmul.f32 %v9385_v37, %v21200_v55  ;;  %v9403_v7 = vadd.f32 %v11894_v11, %v9142_v46  ;;  %v18324_v62 = vmax.f32 %v9465_v17, 0.0  ;;  %v11897_v41 = vpop.f32.mrf.mxu1 }
 0x7d5   :  { %v11841_v20 = vpop.f32.mrf.mxu0  ;;  %v18366_v28 = vand.u32 4294901760, %v18354_v61  ;;  %11906 = vmatprep.subr.mxu0 %v18363_v57 }
 0x7d6   :  { %9656 = vrot.lane.b32.xlu1 %v18228_v24, %s12186_s11  ;;  %v9397_v16 = vadd.f32 %v9396_v10, %v9136_v15  ;;  %v18328_v8 = vmax.f32 %v9464_v27, 0.0  ;;  %v9154_v58 = vadd.f32 %v11841_v20, %v18122_v5  ;;  %v9467_v49 = vmul.f32 %v9403_v7, %v21201_v60  ;;  %v9408_v4 = vpop.f32.mrf.mxu1  ;;  %11907 = vmatpush3.msra.mxu0 %v18363_v57 }
 0x7d7   :  { %v9147_v1 = vpop.f32.mrf.mxu0  ;;  %21204 = vst [vmem:[#allocation321_spill] sm:$0xff] %v18366_v28  ;;  %v10126_v15 = vsub.f32 %v18354_v61, %v18366_v28  ;;  %v18395_v60 = vand.u32 4294901760, %v182_v6 }
 0x7d8   :  { %9654 = vrot.lane.b32.xlu0 %v18232_v45, %s12186_s11  ;;  %v9148_v2 = vadd.f32 %v9147_v1, %v18125_v53  ;;  %v9466_v30 = vmul.f32 %v9397_v16, %v21202_v29  ;;  %v9415_v5 = vadd.f32 %v11897_v41, %v9154_v58  ;;  %v18347_v31 = vmax.f32 %v9467_v49, 0.0  ;;  %v11900_v37 = vpop.f32.mrf.mxu1  ;;  %v181_v49 = vld [vmem:[%s18875_s3 + $0x90] sm:$0xff] }
 0x7d9   :  { %v11844_v35 = vpop.f32.mrf.mxu0  ;;  %v10127_v7 = vand.u32 4294901760, %v10126_v15  ;;  %11908 = vmatprep.subr.mxu0 %v18395_v60 }
 0x7da   :  { %9564 = vrot.lane.b32.xlu1 %v18244_v51, %s12185_s0  ;;  %v9409_v9 = vadd.f32 %v9408_v4, %v9148_v2  ;;  %v18351_v53 = vmax.f32 %v9466_v30, 0.0  ;;  %v9166_v36 = vadd.f32 %v11844_v35, %v18130_v13  ;;  %v9469_v14 = vmul.f32 %v9415_v5, %v21203_v59  ;;  %v9420_v20 = vpop.f32.mrf.mxu1  ;;  %v21208_v2 = vld [vmem:[#allocation323_spill] sm:$0xff]  ;;  %11909 = vmatpush3.msra.mxu0 %v18395_v60 }
 0x7db   :  { %v9159_v56 = vpop.f32.mrf.mxu0  ;;  %v18374_v13 = vsub.f32 %v183_v52, %v18363_v57  ;;  %11931 = vmatprep.subr.mxu1 %v10127_v7  ;;  %v18404_v35 = vand.u32 4294901760, %v181_v49  ;;  %v18408_v4 = vsub.f32 %v182_v6, %v18395_v60  ;;  %v180_v52 = vld [vmem:[%s18875_s3 + $0x88] sm:$0xff] }
 0x7dc   :  { %9562 = vrot.lane.b32.xlu0 %v18248_v33, %s12185_s0  ;;  %v9160_v46 = vadd.f32 %v9159_v56, %v18135_v3  ;;  %v9468_v17 = vmul.f32 %v9409_v9, %v21205_v48  ;;  %v9427_v55 = vadd.f32 %v11900_v37, %v9166_v36  ;;  %v18381_v3 = vmax.f32 %v9469_v14, 0.0  ;;  %11932 = vmatpush3.msra.mxu1 %v10127_v7  ;;  %v11903_v5 = vpop.f32.mrf.mxu1 }
 0x7dd   :  { %21206 = vst [vmem:[#allocation110_spill] sm:$0xff] %v18374_v13  ;;  %v11847_v11 = vpop.f32.mrf.mxu0  ;;  %v18384_v27 = vand.u32 4294901760, %v18374_v13  ;;  %21209 = vst [vmem:[#allocation117_spill] sm:$0xff] %v18408_v4  ;;  %v18419_v36 = vand.u32 4294901760, %v18408_v4  ;;  %v18422_v59 = vsub.f32 %v181_v49, %v18404_v35  ;;  %11910 = vmatprep.subr.mxu0 %v18404_v35 }
 0x7de   :  { %9660 = vrot.lane.b32.xlu1 %v18244_v51, %s12186_s11  ;;  %v9421_v10 = vadd.f32 %v9420_v20, %v9160_v46  ;;  %v18388_v16 = vmax.f32 %v9468_v17, 0.0  ;;  %v9178_v41 = vadd.f32 %v11847_v11, %v18139_v22  ;;  %v9471_v29 = vmul.f32 %v9427_v55, %v21208_v2  ;;  %v21210_v22 = vld [vmem:[#allocation331_spill] sm:$0xff]  ;;  %v179_v46 = vld [vmem:[%s18875_s3 + $0x80] sm:$0xff]  ;;  %v9432_v48 = vpop.f32.mrf.mxu1  ;;  %11911 = vmatpush3.msra.mxu0 %v18404_v35  ;;  %v21218_v2 = vld [vmem:[#allocation21_spill] sm:$0xff] }
 0x7df   :  { %21207 = vst [vmem:[#allocation113_spill] sm:$0xff] %v18384_v27  ;;  %v10133_v1 = vsub.f32 %v18374_v13, %v18384_v27  ;;  %v9171_v58 = vpop.f32.mrf.mxu0  ;;  %21211 = vst [vmem:[#allocation333_spill] sm:$0xff] %v18419_v36  ;;  %v10140_v17 = vsub.f32 %v18408_v4, %v18419_v36  ;;  %v18438_v11 = vand.u32 4294901760, %v18422_v59  ;;  %v18443_v55 = vand.u32 4294901760, %v179_v46 }
 0x7e0   :  { %9658 = vrot.lane.b32.xlu0 %v18248_v33, %s12186_s11  ;;  %v9172_v9 = vadd.f32 %v9171_v58, %v18142_v42  ;;  %v9470_v56 = vmul.f32 %v9421_v10, %v21210_v22  ;;  %21212 = vst [vmem:[#allocation121_spill] sm:$0xff] %v18422_v59  ;;  %v18424_v42 = vand.u32 4294901760, %v180_v52  ;;  %v9439_v14 = vadd.f32 %v11903_v5, %v9178_v41  ;;  %v178_v10 = vld [vmem:[%s18875_s3 + $0x78] sm:$0xff]  ;;  %v177_v5 = vld [vmem:[%s18875_s3 + $0x70] sm:$0xff] }
 0x7e1   :  { %v10134_v30 = vand.u32 4294901760, %v10133_v1  ;;  %v18428_v37 = vmax.f32 %v9471_v29, 0.0  ;;  %21213 = vst [vmem:[#allocation125_spill] sm:$0xff] %v18438_v11  ;;  %21215 = vst [vmem:[#allocation130_spill] sm:$0xff] %v18443_v55  ;;  %v10141_v1 = vand.u32 4294901760, %v10140_v17  ;;  %v10147_v6 = vsub.f32 %v18422_v59, %v18438_v11 }
 0x7e2   :  { %9568 = vrot.lane.b32.xlu1 %v18260_v43, %s12185_s0  ;;  %v18441_v15 = vsub.f32 %v180_v52, %v18424_v42  ;;  %v9433_v20 = vadd.f32 %v9432_v48, %v9172_v9  ;;  %v18447_v7 = vmax.f32 %v9470_v56, 0.0  ;;  %11912 = vmatprep.subr.mxu0 %v18424_v42  ;;  %v18460_v49 = vsub.f32 %v179_v46, %v18443_v55 }
 0x7e3   :  { %11933 = vmatprep.subr.mxu1 %v10134_v30  ;;  %11913 = vmatpush3.msra.mxu0 %v18424_v42  ;;  %v9473_v29 = vmul.f32 %v9439_v14, %v21218_v2  ;;  %v10148_v9 = vand.u32 4294901760, %v10147_v6  ;;  %v21221_v14 = vld [vmem:[#allocation314_spill] sm:$0xff]  ;;  %v18487_v17 = vand.u32 4294901760, %v177_v5  ;;  %v176_v6 = vld [vmem:[%s18875_s3 + $0x68] sm:$0xff] }
 0x7e4   :  { %9566 = vrot.lane.b32.xlu0 %v18264_v40, %s12185_s0  ;;  %11934 = vmatpush3.msra.mxu1 %v10134_v30  ;;  %21214 = vst [vmem:[#allocation27_spill] sm:$0xff] %v18441_v15  ;;  %v18457_v58 = vand.u32 4294901760, %v18441_v15  ;;  %21217 = vst [vmem:[#allocation138_spill] sm:$0xff] %v18460_v49  ;;  %v18468_v30 = vand.u32 4294901760, %v178_v10  ;;  %v18477_v56 = vand.u32 4294901760, %v18460_v49  ;;  %v9472_v46 = vmul.f32 %v9433_v20, %v21221_v14  ;;  %v175_v14 = vld [vmem:[%s18875_s3 + $0x60] sm:$0xff] }
 0x7e5   :  { %11914 = vmatprep.subr.mxu0 %v18443_v55  ;;  %11935 = vmatprep.subr.mxu1 %v10141_v1  ;;  %21223 = vst [vmem:[#allocation153_spill] sm:$0xff] %v18487_v17  ;;  %v18495_v11 = vand.u32 4294901760, %v176_v6 }
 0x7e6   :  { %9664 = vrot.lane.b32.xlu1 %v18260_v43, %s12186_s11  ;;  %21216 = vst [vmem:[#allocation134_spill] sm:$0xff] %v18457_v58  ;;  %21219 = vst [vmem:[#allocation142_spill] sm:$0xff] %v18468_v30  ;;  %v10154_v22 = vsub.f32 %v18441_v15, %v18457_v58  ;;  %11915 = vmatpush3.msra.mxu0 %v18443_v55  ;;  %v18485_v48 = vsub.f32 %v178_v10, %v18468_v30  ;;  %v18501_v10 = vmax.f32 %v9473_v29, 0.0  ;;  %v173_v15 = vld [vmem:[%s18875_s3 + $0x50] sm:$0xff] }
 0x7e7   :  { %21220 = vst [vmem:[#allocation146_spill] sm:$0xff] %v18477_v56  ;;  %11936 = vmatpush3.msra.mxu1 %v10141_v1  ;;  %v10161_v58 = vsub.f32 %v18460_v49, %v18477_v56  ;;  %11916 = vmatprep.subr.mxu0 %v18468_v30  ;;  %21224 = vst [vmem:[#allocation157_spill] sm:$0xff] %v18495_v11  ;;  %v18514_v36 = vsub.f32 %v176_v6, %v18495_v11  ;;  %v18516_v29 = vand.u32 4294901760, %v175_v14  ;;  %v174_v6 = vld [vmem:[%s18875_s3 + $0x58] sm:$0xff] }
 0x7e8   :  { %9662 = vrot.lane.b32.xlu0 %v18264_v40, %s12186_s11  ;;  %21222 = vst [vmem:[#allocation150_spill] sm:$0xff] %v18485_v48  ;;  %11937 = vmatprep.subr.mxu1 %v10148_v9  ;;  %v10155_v2 = vand.u32 4294901760, %v10154_v22  ;;  %v18504_v1 = vand.u32 4294901760, %v18485_v48  ;;  %v18507_v22 = vsub.f32 %v177_v5, %v18487_v17  ;;  %v18522_v5 = vmax.f32 %v9472_v46, 0.0 }
 0x7e9   :  { %11938 = vmatpush3.msra.mxu1 %v10148_v9  ;;  %v10162_v56 = vand.u32 4294901760, %v10161_v58  ;;  %11917 = vmatpush3.msra.mxu0 %v18468_v30  ;;  %21227 = vst [vmem:[#allocation170_spill] sm:$0xff] %v18514_v36  ;;  %21228 = vst [vmem:[#allocation174_spill] sm:$0xff] %v18516_v29  ;;  %v18534_v28 = vand.u32 4294901760, %v18514_v36  ;;  %v18537_v46 = vsub.f32 %v175_v14, %v18516_v29 }
 0x7ea   :  { %9572 = vrot.lane.b32.xlu1 %v18276_v0, %s12185_s0  ;;  %21225 = vst [vmem:[#allocation161_spill] sm:$0xff] %v18504_v1  ;;  %21226 = vst [vmem:[#allocation165_spill] sm:$0xff] %v18507_v22  ;;  %11939 = vmatprep.subr.mxu1 %v10155_v2  ;;  %v10168_v27 = vsub.f32 %v18485_v48, %v18504_v1  ;;  %v18527_v58 = vand.u32 4294901760, %v18507_v22 }
 0x7eb   :  { %11940 = vmatpush3.msra.mxu1 %v10155_v2  ;;  %11918 = vmatprep.subr.mxu0 %v18487_v17  ;;  %21230 = vst [vmem:[#allocation182_spill] sm:$0xff] %v18534_v28  ;;  %21231 = vst [vmem:[#allocation186_spill] sm:$0xff] %v18537_v46  ;;  %v18539_v2 = vand.u32 4294901760, %v174_v6  ;;  %v10182_v14 = vsub.f32 %v18514_v36, %v18534_v28  ;;  %v18554_v59 = vand.u32 4294901760, %v18537_v46 }
 0x7ec   :  { %9570 = vrot.lane.b32.xlu0 %v18280_v63, %s12185_s0  ;;  %21229 = vst [vmem:[#allocation178_spill] sm:$0xff] %v18527_v58  ;;  %11941 = vmatprep.subr.mxu1 %v10162_v56  ;;  %v10169_v1 = vand.u32 4294901760, %v10168_v27  ;;  %v10175_v48 = vsub.f32 %v18507_v22, %v18527_v58  ;;  %v18561_v58 = vand.u32 4294901760, %v173_v15 }
 0x7ed   :  { %21232 = vst [vmem:[#allocation190_spill] sm:$0xff] %v18539_v2  ;;  %11942 = vmatpush3.msra.mxu1 %v10162_v56  ;;  %11919 = vmatpush3.msra.mxu0 %v18487_v17  ;;  %21233 = vst [vmem:[#allocation193_spill] sm:$0xff] %v18554_v59  ;;  %v18557_v30 = vsub.f32 %v174_v6, %v18539_v2  ;;  %v10183_v22 = vand.u32 4294901760, %v10182_v14  ;;  %v10189_v28 = vsub.f32 %v18537_v46, %v18554_v59 }
 0x7ee   :  { %9668 = vrot.lane.b32.xlu1 %v18276_v0, %s12186_s11  ;;  %11943 = vmatprep.subr.mxu1 %v10169_v1  ;;  %v10176_v56 = vand.u32 4294901760, %v10175_v48  ;;  %21235 = vst [vmem:[#allocation201_spill] sm:$0xff] %v18561_v58  ;;  %v18572_v17 = vsub.f32 %v173_v15, %v18561_v58 }
 0x7ef   :  { %21234 = vst [vmem:[#allocation197_spill] sm:$0xff] %v18557_v30  ;;  %11944 = vmatpush3.msra.mxu1 %v10169_v1  ;;  %11920 = vmatprep.subr.mxu0 %v18495_v11  ;;  %v18569_v6 = vand.u32 4294901760, %v18557_v30  ;;  %v10190_v48 = vand.u32 4294901760, %v10189_v28 }
 0x7f0   :  { %9666 = vrot.lane.b32.xlu0 %v18280_v63, %s12186_s11  ;;  %11945 = vmatprep.subr.mxu1 %v10176_v56  ;;  %21237 = vst [vmem:[#allocation210_spill] sm:$0xff] %v18572_v17  ;;  %v18579_v59 = vand.u32 4294901760, %v18572_v17 }
 0x7f1   :  { %21236 = vst [vmem:[#allocation205_spill] sm:$0xff] %v18569_v6  ;;  %11946 = vmatpush3.msra.mxu1 %v10176_v56  ;;  %11921 = vmatpush3.msra.mxu0 %v18495_v11  ;;  %v10196_v14 = vsub.f32 %v18557_v30, %v18569_v6 }
 0x7f2   :  { %9576 = vrot.lane.b32.xlu1 %v18292_v25, %s12185_s0  ;;  %11947 = vmatprep.subr.mxu1 %v10183_v22  ;;  %21238 = vst [vmem:[#allocation214_spill] sm:$0xff] %v18579_v59  ;;  %v10203_v56 = vsub.f32 %v18572_v17, %v18579_v59 }
 0x7f3   :  { %11922 = vmatprep.subr.mxu0 %v18516_v29  ;;  %11948 = vmatpush3.msra.mxu1 %v10183_v22  ;;  %v10197_v15 = vand.u32 4294901760, %v10196_v14 }
 0x7f4   :  { %9574 = vrot.lane.b32.xlu0 %v18296_v54, %s12185_s0  ;;  %11923 = vmatpush3.msra.mxu0 %v18516_v29  ;;  %v10204_v6 = vand.u32 4294901760, %v10203_v56 }
 0x7f5   :  { %11949 = vmatprep.subr.mxu1 %v10190_v48  ;;  %11924 = vmatprep.subr.mxu0 %v18539_v2 }
 0x7f6   :  { %9672 = vrot.lane.b32.xlu1 %v18292_v25, %s12186_s11  ;;  %11950 = vmatpush3.msra.mxu1 %v10190_v48 }
 0x7f7   :  { %11925 = vmatpush3.msra.mxu0 %v18539_v2  ;;  %11951 = vmatprep.subr.mxu1 %v10197_v15 }
 0x7f8   :  { %9670 = vrot.lane.b32.xlu0 %v18296_v54, %s12186_s11  ;;  %11926 = vmatprep.subr.mxu0 %v18561_v58 }
 0x7f9   :  { %11952 = vmatpush3.msra.mxu1 %v10197_v15  ;;  %11927 = vmatpush3.msra.mxu0 %v18561_v58 }
 0x7fa   :  { %9580 = vrot.lane.b32.xlu1 %v18308_v32, %s12185_s0  ;;  %11953 = vmatprep.subr.mxu1 %v10204_v6 }
 0x7fb   :  { %11958 = vmatprep.subr.mxu0 %v18354_v61  ;;  %11954 = vmatpush3.msra.mxu1 %v10204_v6 }
 0x7fc   :  { %9578 = vrot.lane.b32.xlu0 %v18312_v38, %s12185_s0  ;;  %11985 = vmatprep.subr.mxu1 %v18337_v50 }
 0x7fe   :  { %9676 = vrot.lane.b32.xlu1 %v18308_v32, %s12186_s11 }
 0x800   :  { %9674 = vrot.lane.b32.xlu0 %v18312_v38, %s12186_s11 }
 0x802   :  { %9584 = vrot.lane.b32.xlu1 %v18324_v62, %s12185_s0 }
 0x804   :  { %9582 = vrot.lane.b32.xlu0 %v18328_v8, %s12185_s0 }
 0x806   :  { %9680 = vrot.lane.b32.xlu1 %v18324_v62, %s12186_s11 }
 0x808   :  { %9678 = vrot.lane.b32.xlu0 %v18328_v8, %s12186_s11 }
 0x80a   :  { %9588 = vrot.lane.b32.xlu1 %v18347_v31, %s12185_s0 }
 0x80c   :  { %9586 = vrot.lane.b32.xlu0 %v18351_v53, %s12185_s0 }
 0x80e   :  { %9684 = vrot.lane.b32.xlu1 %v18347_v31, %s12186_s11 }
 0x810   :  { %9682 = vrot.lane.b32.xlu0 %v18351_v53, %s12186_s11 }
 0x812   :  { %9592 = vrot.lane.b32.xlu1 %v18381_v3, %s12185_s0 }
 0x814   :  { %9590 = vrot.lane.b32.xlu0 %v18388_v16, %s12185_s0 }
 0x816   :  { %9688 = vrot.lane.b32.xlu1 %v18381_v3, %s12186_s11 }
 0x818   :  { %9686 = vrot.lane.b32.xlu0 %v18388_v16, %s12186_s11 }
 0x81a   :  { %9596 = vrot.lane.b32.xlu1 %v18428_v37, %s12185_s0 }
 0x81c   :  { %v18462_v41 = vpop.permute.xlu1 %9540  ;;  %9594 = vrot.lane.b32.xlu0 %v18447_v7, %s12185_s0 }
 0x81d   :  { %v9731_v15 = vsel %vm7527_vm1, %v18147_v18, %v18462_v41 }
 0x81e   :  { %9692 = vrot.lane.b32.xlu1 %v18428_v37, %s12186_s11  ;;  %v18481_v52 = vpop.permute.xlu0 %9538 }
 0x81f   :  { %v9730_v6 = vsel %vm7527_vm1, %v18152_v21, %v18481_v52 }
 0x820   :  { %v18497_v20 = vpop.permute.xlu1 %9636  ;;  %9690 = vrot.lane.b32.xlu0 %v18447_v7, %s12186_s11 }
 0x821   :  { %v9764_v11 = vsel %vm9762_vm2, %v9731_v15, %v18497_v20  ;;  %v12111_v15 = vld [vmem:[#allocation2 + $0x40] sm:$0xff] }
 0x822   :  { %9600 = vrot.lane.b32.xlu1 %v18501_v10, %s12185_s0  ;;  %v18520_v9 = vpop.permute.xlu0 %9634 }
 0x823   :  { %v9763_v13 = vsel %vm9762_vm2, %v9730_v6, %v18520_v9 }
 0x824   :  { %v18541_v49 = vpop.permute.xlu1 %9544  ;;  %9598 = vrot.lane.b32.xlu0 %v18522_v5, %s12185_s0 }
 0x825   :  { %v9733_v18 = vsel %vm7527_vm1, %v18164_v19, %v18541_v49 }
 0x826   :  { %9696 = vrot.lane.b32.xlu1 %v18501_v10, %s12186_s11  ;;  %v9543_v27 = vpop.permute.xlu0 %9542 }
 0x827   :  { %v9732_v58 = vsel %vm7527_vm1, %v18168_v12, %v9543_v27 }
 0x828   :  { %v9641_v36 = vpop.permute.xlu1 %9640  ;;  %9694 = vrot.lane.b32.xlu0 %v18522_v5, %s12186_s11 }
 0x829   :  { %v9766_v52 = vsel %vm9762_vm2, %v9733_v18, %v9641_v36 }
 0x82a   :  { %v9639_v1 = vpop.permute.xlu0 %9638 }
 0x82b   :  { %v9765_v4 = vsel %vm9762_vm2, %v9732_v58, %v9639_v1  ;;  %v12105_v58 = vld [vmem:[#allocation2 + $0x10] sm:$0xff]  ;;  %v12106_v1 = vld [vmem:[#allocation2] sm:$0xff] }
 0x82c   :  { %v9549_v46 = vpop.permute.xlu1 %9548  ;;  %v9797_v27 = vadd.f32 %v12105_v58, %v9765_v4  ;;  %v9795_v36 = vadd.f32 %v12106_v1, %v9763_v13  ;;  %v12109_v4 = vld [vmem:[#allocation2 + $0x30] sm:$0xff]  ;;  %v12112_v13 = vld [vmem:[#allocation2 + $0x8] sm:$0xff] }
 0x82d   :  { %v9735_v20 = vsel %vm7527_vm1, %v18180_v39, %v9549_v46  ;;  %v9796_v18 = vadd.f32 %v12112_v13, %v9764_v11 }
 0x82e   :  { %v9547_v28 = vpop.permute.xlu0 %9546 }
 0x82f   :  { %v9734_v55 = vsel %vm7527_vm1, %v18184_v34, %v9547_v28  ;;  %v12107_v28 = vld [vmem:[#allocation2 + $0x20] sm:$0xff] }
 0x830   :  { %v9645_v22 = vpop.permute.xlu1 %9644 }
 0x831   :  { %v9768_v19 = vsel %vm9762_vm2, %v9735_v20, %v9645_v22 }
 0x832   :  { %v9643_v14 = vpop.permute.xlu0 %9642 }
 0x833   :  { %v9767_v12 = vsel %vm9762_vm2, %v9734_v55, %v9643_v14 }
 0x834   :  { %v9553_v59 = vpop.permute.xlu1 %9552  ;;  %v9799_v14 = vadd.f32 %v12107_v28, %v9767_v12  ;;  %v9837_v12 = vsel %vm9827_vm3, %v9797_v27, -inf  ;;  %v12115_v27 = vld [vmem:[#allocation2 + $0x58] sm:$0xff] }
 0x835   :  { %v9737_v55 = vsel %vm7527_vm1, %v18196_v23, %v9553_v59  ;;  %v12110_v23 = vld [vmem:[#allocation2 + $0x28] sm:$0xff] }
 0x836   :  { %v9551_v48 = vpop.permute.xlu0 %9550  ;;  %v9800_v59 = vadd.f32 %v12110_v23, %v9768_v19 }
 0x837   :  { %v9736_v21 = vsel %vm7527_vm1, %v18200_v47, %v9551_v48 }
 0x838   :  { %v9649_v17 = vpop.permute.xlu1 %9648 }
 0x839   :  { %v9770_v39 = vsel %vm9762_vm2, %v9737_v55, %v9649_v17  ;;  %v12113_v17 = vld [vmem:[#allocation2 + $0x38] sm:$0xff] }
 0x83a   :  { %v9647_v30 = vpop.permute.xlu0 %9646 }
 0x83b   :  { %v9769_v34 = vsel %vm9762_vm2, %v9736_v21, %v9647_v30  ;;  %v9802_v21 = vadd.f32 %v12113_v17, %v9770_v39  ;;  %v12116_v39 = vld [vmem:[#allocation2 + $0x50] sm:$0xff] }
 0x83c   :  { %v9557_v2 = vpop.permute.xlu1 %9556  ;;  %v9801_v48 = vadd.f32 %v12109_v4, %v9769_v34 }
 0x83d   :  { %v9739_v30 = vsel %vm7527_vm1, %v18212_v44, %v9557_v2 }
 0x83e   :  { %v9555_v56 = vpop.permute.xlu0 %9554  ;;  %v9855_v11 = vsel %vm9827_vm3, %v9801_v48, -inf }
 0x83f   :  { %v9738_v9 = vsel %vm7527_vm1, %v18216_v26, %v9555_v56  ;;  %v12108_v26 = vld [vmem:[#allocation2 + $0x18] sm:$0xff] }
 0x840   :  { %v9653_v29 = vpop.permute.xlu1 %9652  ;;  %v9798_v46 = vadd.f32 %v12108_v26, %v9766_v52  ;;  %v12114_v52 = vld [vmem:[#allocation2 + $0x48] sm:$0xff] }
 0x841   :  { %v9772_v22 = vsel %vm9762_vm2, %v9739_v30, %v9653_v29  ;;  %v9846_v29 = vsel %vm9827_vm3, %v9799_v14, -inf  ;;  %v9856_v14 = vsel %vm9827_vm3, %v9802_v21, -inf }
 0x842   :  { %v9651_v41 = vpop.permute.xlu0 %9650  ;;  %v9804_v20 = vadd.f32 %v12114_v52, %v9772_v22 }
 0x843   :  { %v9771_v47 = vsel %vm9762_vm2, %v9738_v9, %v9651_v41  ;;  %v9828_v41 = vsel %vm9827_vm3, %v9795_v36, -inf  ;;  %v9838_v9 = vsel %vm9827_vm3, %v9798_v46, -inf  ;;  %v9829_v36 = vsel %vm9827_vm3, %v9796_v18, -inf }
 0x844   :  { %v9561_v49 = vpop.permute.xlu1 %9560  ;;  %v9803_v6 = vadd.f32 %v12111_v15, %v9771_v47  ;;  %v9847_v47 = vsel %vm9827_vm3, %v9800_v59, -inf  ;;  %v9830_v46 = vmax.f32 %v9828_v41, %v9829_v36  ;;  %v9865_v4 = vsel %vm9827_vm3, %v9804_v20, -inf  ;;  %v12117_v41 = vld [vmem:[#allocation2 + $0x68] sm:$0xff] }
 0x845   :  { %v9741_v44 = vsel %vm7527_vm1, %v18228_v24, %v9561_v49  ;;  %v9839_v24 = vmax.f32 %v9837_v12, %v9838_v9  ;;  %v9848_v28 = vmax.f32 %v9846_v29, %v9847_v47 }
 0x846   :  { %v9559_v56 = vpop.permute.xlu0 %9558  ;;  %v9864_v49 = vsel %vm9827_vm3, %v9803_v6, -inf  ;;  %v9831_v12 = vrot.slane %v9830_v46, 4 }
 0x847   :  { %v9740_v58 = vsel %vm7527_vm1, %v18232_v45, %v9559_v56  ;;  %v9857_v45 = vmax.f32 %v9855_v11, %v9856_v14  ;;  %v9866_v48 = vmax.f32 %v9864_v49, %v9865_v4  ;;  %v9840_v59 = vrot.slane %v9839_v24, 4 }
 0x848   :  { %v9657_v2 = vpop.permute.xlu1 %9656  ;;  %v9849_v6 = vrot.slane %v9848_v28, 4 }
 0x849   :  { %v9774_v34 = vsel %vm9762_vm2, %v9741_v44, %v9657_v2  ;;  %v9858_v17 = vrot.slane %v9857_v45, 4  ;;  %v9867_v44 = vrot.slane %v9866_v48, 4  ;;  %v9841_v20 = vmax.f32 %v9839_v24, %v9840_v59 }
 0x84a   :  { %v9806_v19 = vadd.f32 %v12115_v27, %v9774_v34  ;;  %v9655_v55 = vpop.permute.xlu0 %9654  ;;  %v9850_v11 = vmax.f32 %v9848_v28, %v9849_v6 }
 0x84b   :  { %v9773_v1 = vsel %vm9762_vm2, %v9740_v58, %v9655_v55  ;;  %v12118_v58 = vld [vmem:[#allocation2 + $0x60] sm:$0xff]  ;;  %v9859_v55 = vmax.f32 %v9857_v45, %v9858_v17  ;;  %v9868_v47 = vmax.f32 %v9866_v48, %v9867_v44 }
 0x84c   :  { %v9805_v30 = vadd.f32 %v12116_v39, %v9773_v1  ;;  %v9565_v26 = vpop.permute.xlu1 %9564  ;;  %v9874_v22 = vsel %vm9827_vm3, %v9806_v19, -inf  ;;  %v9832_v19 = vmax.f32 %v9830_v46, %v9831_v12 }
 0x84d   :  { %v9743_v13 = vsel %vm7527_vm1, %v18244_v51, %v9565_v26  ;;  %v9860_v4 = vrot.slane %v9859_v55, 2  ;;  %v9869_v45 = vrot.slane %v9868_v47, 2 }
 0x84e   :  { %v9873_v56 = vsel %vm9827_vm3, %v9805_v30, -inf  ;;  %v9563_v23 = vpop.permute.xlu0 %9562  ;;  %v9851_v30 = vrot.slane %v9850_v11, 2  ;;  %v9833_v28 = vrot.slane %v9832_v19, 2 }
 0x84f   :  { %v9875_v15 = vmax.f32 %v9873_v56, %v9874_v22  ;;  %v9742_v2 = vsel %vm7527_vm1, %v18248_v33, %v9563_v23  ;;  %v9842_v33 = vrot.slane %v9841_v20, 2  ;;  %v12119_v56 = vld [vmem:[#allocation2 + $0x78] sm:$0xff] }
 0x850   :  { %v9661_v18 = vpop.permute.xlu1 %9660  ;;  %v9852_v12 = vmax.f32 %v9850_v11, %v9851_v30  ;;  %v9834_v44 = vmax.f32 %v9832_v19, %v9833_v28 }
 0x851   :  { %v9776_v21 = vsel %vm9762_vm2, %v9743_v13, %v9661_v18  ;;  %v9876_v34 = vrot.slane %v9875_v15, 4  ;;  %v9843_v6 = vmax.f32 %v9841_v20, %v9842_v33 }
 0x852   :  { %v9808_v29 = vadd.f32 %v12117_v41, %v9776_v21  ;;  %v9659_v52 = vpop.permute.xlu0 %9658  ;;  %v9835_v11 = vrot.slane %v9834_v44, 1 }
 0x853   :  { %v9775_v9 = vsel %vm9762_vm2, %v9742_v2, %v9659_v52  ;;  %v9877_v14 = vmax.f32 %v9875_v15, %v9876_v34  ;;  %v9861_v2 = vmax.f32 %v9859_v55, %v9860_v4  ;;  %v12121_v4 = vld [vmem:[#allocation2 + $0x80] sm:$0xff] }
 0x854   :  { %v9807_v27 = vadd.f32 %v12118_v58, %v9775_v9  ;;  %v9569_v51 = vpop.permute.xlu1 %9568  ;;  %v9883_v49 = vsel %vm9827_vm3, %v9808_v29, -inf  ;;  %v9870_v29 = vmax.f32 %v9868_v47, %v9869_v45  ;;  %v9844_v9 = vrot.slane %v9843_v6, 1 }
 0x855   :  { %v9745_v24 = vsel %vm7527_vm1, %v18260_v43, %v9569_v51  ;;  %v9878_v15 = vrot.slane %v9877_v14, 2  ;;  %v12120_v43 = vld [vmem:[#allocation2 + $0x70] sm:$0xff] }
 0x856   :  { %v9882_v1 = vsel %vm9827_vm3, %v9807_v27, -inf  ;;  %v9567_v36 = vpop.permute.xlu0 %9566  ;;  %v9853_v27 = vrot.slane %v9852_v12, 1  ;;  %v9871_v55 = vrot.slane %v9870_v29, 1 }
 0x857   :  { %v9884_v39 = vmax.f32 %v9882_v1, %v9883_v49  ;;  %v9744_v48 = vsel %vm7527_vm1, %v18264_v40, %v9567_v36  ;;  %v9879_v58 = vmax.f32 %v9877_v14, %v9878_v15  ;;  %v9862_v1 = vrot.slane %v9861_v2, 1 }
 0x858   :  { %v9665_v26 = vpop.permute.xlu1 %9664  ;;  %v9845_v14 = vmax.f32 %v9843_v6, %v9844_v9  ;;  %v9854_v28 = vmax.f32 %v9852_v12, %v9853_v27  ;;  %v12123_v9 = vld [vmem:[#allocation2 + $0x98] sm:$0xff] }
 0x859   :  { %v9885_v22 = vrot.slane %v9884_v39, 4  ;;  %v9778_v46 = vsel %vm9762_vm2, %v9745_v24, %v9665_v26  ;;  %v9880_v30 = vrot.slane %v9879_v58, 1 }
 0x85a   :  { %v9810_v23 = vadd.f32 %v12119_v56, %v9778_v46  ;;  %v9663_v59 = vpop.permute.xlu0 %9662 }
 0x85b   :  { %v9886_v13 = vmax.f32 %v9884_v39, %v9885_v22  ;;  %v9777_v18 = vsel %vm9762_vm2, %v9744_v48, %v9663_v59  ;;  %v9863_v48 = vmax.f32 %v9861_v2, %v9862_v1  ;;  %v9872_v59 = vmax.f32 %v9870_v29, %v9871_v55 }
 0x85c   :  { %v9809_v17 = vadd.f32 %v12120_v43, %v9777_v18  ;;  %v9573_v21 = vpop.permute.xlu1 %9572  ;;  %v9892_v52 = vsel %vm9827_vm3, %v9810_v23, -inf  ;;  %v12122_v23 = vld [vmem:[#allocation2 + $0x88] sm:$0xff] }
 0x85d   :  { %v9887_v41 = vrot.slane %v9886_v13, 2  ;;  %v9747_v19 = vsel %vm7527_vm1, %v18276_v0, %v9573_v21  ;;  %v9836_v0 = vmax.f32 %v9834_v44, %v9835_v11  ;;  %v12124_v11 = vld [vmem:[#allocation2 + $0x90] sm:$0xff] }
 0x85e   :  { %v9891_v40 = vsel %vm9827_vm3, %v9809_v17, -inf  ;;  %v9571_v34 = vpop.permute.xlu0 %9570 }
 0x85f   :  { %v9893_v20 = vmax.f32 %v9891_v40, %v9892_v52  ;;  %v9888_v51 = vmax.f32 %v9886_v13, %v9887_v41  ;;  %v9746_v47 = vsel %vm7527_vm1, %v18280_v63, %v9571_v34  ;;  %v9881_v13 = vmax.f32 %v9879_v58, %v9880_v30 }
 0x860   :  { %v9669_v49 = vpop.permute.xlu1 %9668  ;;  %v9993_v12 = vsel %vm9992_vm4, %v9845_v14, %v9836_v0 }
 0x861   :  { %v9894_v36 = vrot.slane %v9893_v20, 4  ;;  %v9780_v33 = vsel %vm9762_vm2, %v9747_v19, %v9669_v49  ;;  %v9889_v45 = vrot.slane %v9888_v51, 1  ;;  %v9995_v44 = vsel %vm9994_vm5, %v9854_v28, %v9993_v12 }
 0x862   :  { %v9667_v39 = vpop.permute.xlu0 %9666  ;;  %v9812_v63 = vadd.f32 %v12122_v23, %v9780_v33  ;;  %v9997_v52 = vsel %vm9996_vm6, %v9863_v48, %v9995_v44  ;;  %v12125_v48 = vld [vmem:[#allocation2 + $0xa8] sm:$0xff] }
 0x863   :  { %v9895_v24 = vmax.f32 %v9893_v20, %v9894_v36  ;;  %v9779_v26 = vsel %vm9762_vm2, %v9746_v47, %v9667_v39  ;;  %v9890_v21 = vmax.f32 %v9888_v51, %v9889_v45 }
 0x864   :  { %v9811_v22 = vadd.f32 %v12121_v4, %v9779_v26  ;;  %v9577_v46 = vpop.permute.xlu1 %9576  ;;  %v9901_v2 = vsel %vm9827_vm3, %v9812_v63, -inf }
 0x865   :  { %v9896_v56 = vrot.slane %v9895_v24, 2  ;;  %v9749_v43 = vsel %vm7527_vm1, %v18292_v25, %v9577_v46  ;;  %v9999_v25 = vsel %vm9998_vm7, %v9872_v59, %v9997_v52 }
 0x866   :  { %v9575_v15 = vpop.permute.xlu0 %9574  ;;  %v9900_v6 = vsel %vm9827_vm3, %v9811_v22, -inf  ;;  %v10001_v49 = vsel %vm10000_vm8, %v9881_v13, %v9999_v25 }
 0x867   :  { %v9897_v18 = vmax.f32 %v9895_v24, %v9896_v56  ;;  %v9902_v40 = vmax.f32 %v9900_v6, %v9901_v2  ;;  %v9748_v34 = vsel %vm7527_vm1, %v18296_v54, %v9575_v15  ;;  %v10003_v19 = vsel %vm10002_vm9, %v9890_v21, %v10001_v49  ;;  %v12126_v15 = vld [vmem:[#allocation2 + $0xa0] sm:$0xff] }
 0x868   :  { %v9673_v17 = vpop.permute.xlu1 %9672 }
 0x869   :  { %v9782_v41 = vsel %vm9762_vm2, %v9749_v43, %v9673_v17  ;;  %v9898_v29 = vrot.slane %v9897_v18, 1  ;;  %v9903_v47 = vrot.slane %v9902_v40, 4 }
 0x86a   :  { %v9814_v58 = vadd.f32 %v12123_v9, %v9782_v41  ;;  %v9671_v20 = vpop.permute.xlu0 %9670 }
 0x86b   :  { %v9781_v27 = vsel %vm9762_vm2, %v9748_v34, %v9671_v20  ;;  %v9899_v51 = vmax.f32 %v9897_v18, %v9898_v29  ;;  %v9904_v45 = vmax.f32 %v9902_v40, %v9903_v47  ;;  %v12127_v20 = vld [vmem:[#allocation2 + $0xb8] sm:$0xff] }
 0x86c   :  { %v9813_v1 = vadd.f32 %v12124_v11, %v9781_v27  ;;  %v9581_v36 = vpop.permute.xlu1 %9580  ;;  %v9910_v54 = vsel %vm9827_vm3, %v9814_v58, -inf }
 0x86d   :  { %v10005_v55 = vsel %vm10004_vm10, %v9899_v51, %v10003_v19  ;;  %v9751_v26 = vsel %vm7527_vm1, %v18308_v32, %v9581_v36  ;;  %v9905_v43 = vrot.slane %v9904_v45, 2 }
 0x86e   :  { %v9909_v33 = vsel %vm9827_vm3, %v9813_v1, -inf  ;;  %10653 = vrot.lane.b32.xlu0 %v10005_v55, %s12185_s0  ;;  %v10013_v39 = vsel %vm9827_vm3, %v10005_v55, 0  ;;  %v9579_v14 = vpop.permute.xlu0 %9578  ;;  %v12128_v1 = vld [vmem:[#allocation2 + $0xb0] sm:$0xff] }
 0x86f   :  { %v9911_v30 = vmax.f32 %v9909_v33, %v9910_v54  ;;  %v18684_v24 = vand.u32 4294901760, %v10013_v39  ;;  %v9750_v0 = vsel %vm7527_vm1, %v18312_v38, %v9579_v14  ;;  %v9906_v9 = vmax.f32 %v9904_v45, %v9905_v43 }
 0x870   :  { %v9677_v28 = vpop.permute.xlu1 %9676 }
 0x871   :  { %v9912_v4 = vrot.slane %v9911_v30, 4  ;;  %v18689_v22 = vsub.f32 %v10013_v39, %v18684_v24  ;;  %v9784_v46 = vsel %vm9762_vm2, %v9751_v26, %v9677_v28  ;;  %11955 = vmatprep.mubr.f32.mxu1 %v18684_v24  ;;  %v9907_v55 = vrot.slane %v9906_v9, 1 }
 0x872   :  { %v9816_v56 = vadd.f32 %v12125_v48, %v9784_v46  ;;  %v9675_v23 = vpop.permute.xlu0 %9674  ;;  %v12129_v48 = vld [vmem:[#allocation2 + $0xc8] sm:$0xff] }
 0x873   :  { %v9913_v63 = vmax.f32 %v9911_v30, %v9912_v4  ;;  %v9783_v59 = vsel %vm9762_vm2, %v9750_v0, %v9675_v23  ;;  %v10096_v32 = vand.u32 4294901760, %v18689_v22  ;;  %v9908_v45 = vmax.f32 %v9906_v9, %v9907_v55  ;;  %v12131_v9 = vld [vmem:[#allocation2 + $0xd8] sm:$0xff] }
 0x874   :  { %v9815_v6 = vadd.f32 %v12126_v15, %v9783_v59  ;;  %v9585_v13 = vpop.permute.xlu1 %9584  ;;  %v9919_v17 = vsel %vm9827_vm3, %v9816_v56, -inf }
 0x875   :  { %v9914_v18 = vrot.slane %v9913_v63, 2  ;;  %v10097_v12 = vsub.f32 %v18689_v22, %v10096_v32  ;;  %v9753_v29 = vsel %vm7527_vm1, %v18324_v62, %v9585_v13 }
 0x876   :  { %v9918_v38 = vsel %vm9827_vm3, %v9815_v6, -inf  ;;  %v9583_v21 = vpop.permute.xlu0 %9582  ;;  %v12130_v6 = vld [vmem:[#allocation2 + $0xc0] sm:$0xff] }
 0x877   :  { %v9920_v44 = vmax.f32 %v9918_v38, %v9919_v17  ;;  %v10098_v2 = vand.u32 4294901760, %v10097_v12  ;;  %v9915_v41 = vmax.f32 %v9913_v63, %v9914_v18  ;;  %v9752_v58 = vsel %vm7527_vm1, %v18328_v8, %v9583_v21 }
 0x878   :  { %v9681_v52 = vpop.permute.xlu1 %9680 }
 0x879   :  { %v9921_v40 = vrot.slane %v9920_v44, 4  ;;  %v9786_v34 = vsel %vm9762_vm2, %v9753_v29, %v9681_v52  ;;  %11928 = vmatprep.mubr.f32.mxu0 %v10098_v2  ;;  %v9916_v11 = vrot.slane %v9915_v41, 1 }
 0x87a   :  { %v9818_v25 = vadd.f32 %v12127_v20, %v9786_v34  ;;  %v9679_v27 = vpop.permute.xlu0 %9678 }
 0x87b   :  { %v9922_v51 = vmax.f32 %v9920_v44, %v9921_v40  ;;  %v9785_v49 = vsel %vm9762_vm2, %v9752_v58, %v9679_v27  ;;  %v9917_v8 = vmax.f32 %v9915_v41, %v9916_v11 }
 0x87c   :  { %v9817_v36 = vadd.f32 %v12128_v1, %v9785_v49  ;;  %v9589_v19 = vpop.permute.xlu1 %9588  ;;  %v9928_v47 = vsel %vm9827_vm3, %v9818_v25, -inf  ;;  %v12132_v49 = vld [vmem:[#allocation2 + $0xd0] sm:$0xff] }
 0x87d   :  { %v9923_v62 = vrot.slane %v9922_v51, 2  ;;  %v9755_v30 = vsel %vm7527_vm1, %v18347_v31, %v9589_v19  ;;  %v10006_v31 = vsel %vm9992_vm4, %v9917_v8, %v9908_v45 }
 0x87e   :  { %v9927_v54 = vsel %vm9827_vm3, %v9817_v36, -inf  ;;  %v9587_v33 = vpop.permute.xlu0 %9586 }
 0x87f   :  { %v9924_v39 = vmax.f32 %v9922_v51, %v9923_v62  ;;  %v9929_v14 = vmax.f32 %v9927_v54, %v9928_v47  ;;  %v9754_v0 = vsel %vm7527_vm1, %v18351_v53, %v9587_v33 }
 0x880   :  { %v9685_v26 = vpop.permute.xlu1 %9684 }
 0x881   :  { %v9925_v28 = vrot.slane %v9924_v39, 1  ;;  %v9930_v4 = vrot.slane %v9929_v14, 4  ;;  %v9788_v46 = vsel %vm9762_vm2, %v9755_v30, %v9685_v26  ;;  %v12133_v26 = vld [vmem:[#allocation2 + $0xe8] sm:$0xff] }
 0x882   :  { %v9820_v56 = vadd.f32 %v12129_v48, %v9788_v46  ;;  %v9683_v23 = vpop.permute.xlu0 %9682  ;;  %v12134_v48 = vld [vmem:[#allocation2 + $0xe0] sm:$0xff] }
 0x883   :  { %v9926_v63 = vmax.f32 %v9924_v39, %v9925_v28  ;;  %v9931_v59 = vmax.f32 %v9929_v14, %v9930_v4  ;;  %v9787_v15 = vsel %vm9762_vm2, %v9754_v0, %v9683_v23 }
 0x884   :  { %v9819_v13 = vadd.f32 %v12130_v6, %v9787_v15  ;;  %v9593_v18 = vpop.permute.xlu1 %9592  ;;  %v9937_v17 = vsel %vm9827_vm3, %v9820_v56, -inf }
 0x885   :  { %v9932_v12 = vrot.slane %v9931_v59, 2  ;;  %v10007_v43 = vsel %vm9994_vm5, %v9926_v63, %v10006_v31  ;;  %v9757_v2 = vsel %vm7527_vm1, %v18381_v3, %v9593_v18 }
 0x886   :  { %v9936_v38 = vsel %vm9827_vm3, %v9819_v13, -inf  ;;  %v9591_v53 = vpop.permute.xlu0 %9590 }
 0x887   :  { %v9933_v21 = vmax.f32 %v9931_v59, %v9932_v12  ;;  %v9938_v44 = vmax.f32 %v9936_v38, %v9937_v17  ;;  %v9756_v34 = vsel %vm7527_vm1, %v18388_v16, %v9591_v53  ;;  %v12135_v53 = vld [vmem:[#allocation2 + $0xf8] sm:$0xff] }
 0x888   :  { %v9689_v41 = vpop.permute.xlu1 %9688 }
 0x889   :  { %v9934_v29 = vrot.slane %v9933_v21, 1  ;;  %v9939_v52 = vrot.slane %v9938_v44, 4  ;;  %v9790_v40 = vsel %vm9762_vm2, %v9757_v2, %v9689_v41 }
 0x88a   :  { %v9822_v58 = vadd.f32 %v12131_v9, %v9790_v40  ;;  %v9687_v20 = vpop.permute.xlu0 %9686 }
 0x88b   :  { %v9935_v25 = vmax.f32 %v9933_v21, %v9934_v29  ;;  %v9940_v27 = vmax.f32 %v9938_v44, %v9939_v52  ;;  %v9789_v51 = vsel %vm9762_vm2, %v9756_v34, %v9687_v20  ;;  %v12136_v52 = vld [vmem:[#allocation2 + $0xf0] sm:$0xff] }
 0x88c   :  { %v9821_v11 = vadd.f32 %v12132_v49, %v9789_v51  ;;  %v9597_v1 = vpop.permute.xlu1 %9596  ;;  %v9946_v19 = vsel %vm9827_vm3, %v9822_v58, -inf }
 0x88d   :  { %v9941_v36 = vrot.slane %v9940_v27, 2  ;;  %v10008_v3 = vsel %vm9996_vm6, %v9935_v25, %v10007_v43  ;;  %v9759_v54 = vsel %vm7527_vm1, %v18428_v37, %v9597_v1 }
 0x88e   :  { %v9945_v62 = vsel %vm9827_vm3, %v9821_v11, -inf  ;;  %v9595_v55 = vpop.permute.xlu0 %9594 }
 0x88f   :  { %v9942_v47 = vmax.f32 %v9940_v27, %v9941_v36  ;;  %v9947_v16 = vmax.f32 %v9945_v62, %v9946_v19  ;;  %v9758_v30 = vsel %vm7527_vm1, %v18447_v7, %v9595_v55 }
 0x890   :  { %v9693_v33 = vpop.permute.xlu1 %9692 }
 0x891   :  { %v9943_v39 = vrot.slane %v9942_v47, 1  ;;  %v9948_v14 = vrot.slane %v9947_v16, 4  ;;  %v9792_v8 = vsel %vm9762_vm2, %v9759_v54, %v9693_v33 }
 0x892   :  { %v9824_v28 = vadd.f32 %v12133_v26, %v9792_v8  ;;  %v9691_v4 = vpop.permute.xlu0 %9690  ;;  %v21241_v8 = vld [vmem:[#allocation117_spill] sm:$0xff] }
 0x893   :  { %v9944_v46 = vmax.f32 %v9942_v47, %v9943_v39  ;;  %v9949_v45 = vmax.f32 %v9947_v16, %v9948_v14  ;;  %v9791_v0 = vsel %vm9762_vm2, %v9758_v30, %v9691_v4  ;;  %v21240_v14 = vld [vmem:[#allocation130_spill] sm:$0xff]  ;;  %v21244_v26 = vld [vmem:[#allocation153_spill] sm:$0xff] }
 0x894   :  { %v9823_v56 = vadd.f32 %v12134_v48, %v9791_v0  ;;  %v9601_v23 = vpop.permute.xlu1 %9600  ;;  %v9955_v59 = vsel %vm9827_vm3, %v9824_v28, -inf  ;;  %v21242_v30 = vld [vmem:[#allocation142_spill] sm:$0xff]  ;;  %v21246_v28 = vld [vmem:[#allocation157_spill] sm:$0xff] }
 0x895   :  { %v9950_v63 = vrot.slane %v9949_v45, 2  ;;  %v10009_v37 = vsel %vm9998_vm7, %v9944_v46, %v10008_v3  ;;  %v9761_v18 = vsel %vm7527_vm1, %v18501_v10, %v9601_v23  ;;  %v21247_v4 = vld [vmem:[#allocation138_spill] sm:$0xff]  ;;  %v21251_v48 = vld [vmem:[#allocation165_spill] sm:$0xff] }
 0x896   :  { %v9954_v15 = vsel %vm9827_vm3, %v9823_v56, -inf  ;;  %v9599_v6 = vpop.permute.xlu0 %9598  ;;  %v21248_v46 = vld [vmem:[#allocation174_spill] sm:$0xff]  ;;  %v21252_v56 = vld [vmem:[#allocation201_spill] sm:$0xff] }
 0x897   :  { %v9951_v13 = vmax.f32 %v9949_v45, %v9950_v63  ;;  %v9956_v7 = vmax.f32 %v9954_v15, %v9955_v59  ;;  %v9760_v38 = vsel %vm7527_vm1, %v18522_v5, %v9599_v6  ;;  %v21249_v45 = vld [vmem:[#allocation150_spill] sm:$0xff]  ;;  %v21263_v15 = vld [vmem:[#allocation161_spill] sm:$0xff] }
 0x898   :  { %v9697_v31 = vpop.permute.xlu1 %9696  ;;  %v21250_v0 = vld [vmem:[#allocation190_spill] sm:$0xff] }
 0x899   :  { %v9952_v12 = vrot.slane %v9951_v13, 1  ;;  %v9957_v43 = vrot.slane %v9956_v7, 4  ;;  %v9794_v17 = vsel %vm9762_vm2, %v9761_v18, %v9697_v31  ;;  %v21253_v23 = vld [vmem:[#allocation170_spill] sm:$0xff]  ;;  %v21267_v18 = vld [vmem:[#allocation205_spill] sm:$0xff] }
 0x89a   :  { %v9826_v21 = vadd.f32 %v12135_v53, %v9794_v17  ;;  %v9695_v44 = vpop.permute.xlu0 %9694  ;;  %v21254_v63 = vld [vmem:[#allocation186_spill] sm:$0xff] }
 0x89b   :  { %v9958_v2 = vmax.f32 %v9956_v7, %v9957_v43  ;;  %v9793_v41 = vsel %vm9762_vm2, %v9760_v38, %v9695_v44  ;;  %v9953_v29 = vmax.f32 %v9951_v13, %v9952_v12  ;;  %v21256_v59 = vld [vmem:[#allocation210_spill] sm:$0xff]  ;;  %v21266_v7 = vld [vmem:[#allocation193_spill] sm:$0xff] }
 0x89c   :  { %v9825_v40 = vadd.f32 %v12136_v52, %v9793_v41  ;;  %v9964_v9 = vsel %vm9827_vm3, %v9826_v21, -inf  ;;  %v21264_v6 = vld [vmem:[#allocation178_spill] sm:$0xff] }
 0x89d   :  { %v9959_v34 = vrot.slane %v9958_v2, 2  ;;  %v10010_v10 = vsel %vm10000_vm8, %v9953_v29, %v10009_v37  ;;  %v21255_v37 = vld [vmem:[#allocation197_spill] sm:$0xff]  ;;  %v21265_v13 = vld [vmem:[#allocation182_spill] sm:$0xff] }
 0x89e   :  { %v9963_v58 = vsel %vm9827_vm3, %v9825_v40, -inf  ;;  %v21268_v31 = vld [vmem:[#allocation214_spill] sm:$0xff] }
 0x89f   :  { %v9960_v20 = vmax.f32 %v9958_v2, %v9959_v34  ;;  %v9965_v25 = vmax.f32 %v9963_v58, %v9964_v9  ;;  %v10679_v43 = vld [vmem:[%s18876_s4 + $0x2] ss:$0 sm:$0xff]  ;;  %s12187_s4 = smov [#allocation5]  }
 0x8a0   :  { %s10667_s11 = sshll.u32 %s12187_s4, 4  ;;  %s10668_s11 = int_to_ptr.vmem [resolvable:$true] %s10667_s11 }
 0x8a1   :  { %v9966_v27 = vrot.slane %v9965_v25, 4  ;;  %v9961_v5 = vrot.slane %v9960_v20, 1  ;;  %s12157_s12 = scalar_lea.vmem %s10668_s11, 256  ;;  %p12162_p6 = scmp.lt.s32.totalorder %s10668_s11, %s10668_s11 }
 0x8a2   :  { %p12158_p5 = scmp.ne.s32.totalorder %s10668_s11, %s12157_s12  ;;  %p12163_p7 = scmp.lt.s32.totalorder %s12157_s12, %s12157_s12 }
 0x8a3   :  { %v9967_v51 = vmax.f32 %v9965_v25, %v9966_v27  ;;  %v9962_v49 = vmax.f32 %v9960_v20, %v9961_v5 }
 0x8a4   :  { %p12164_p8 = por %p12163_p7, %p12162_p6 }
 0x8a5   :  { %v9968_v11 = vrot.slane %v9967_v51, 2  ;;  %v10011_v1 = vsel %vm10002_vm9, %v9962_v49, %v10010_v10 }
 0x8a6   :  { %p12165_p9 = pnand %p12164_p8, %p12158_p5 }
 0x8a7   :  { %v9969_v36 = vmax.f32 %v9967_v51, %v9968_v11 }
 0x8a9   :  { %v9970_v3 = vrot.slane %v9969_v36, 1 }
 0x8ab   :  { %v9971_v19 = vmax.f32 %v9969_v36, %v9970_v3 }
 0x8ad   :  { %v10012_v62 = vsel %vm10004_vm10, %v9971_v19, %v10011_v1 }
 0x8ae   :  { %10655 = vrot.lane.b32.xlu1 %v10012_v62, %s12185_s0  ;;  %v10015_v55 = vsel %vm9827_vm3, %v10012_v62, 0 }
 0x8af   :  { %v18751_v47 = vand.u32 4294901760, %v10015_v55 }
 0x8b1   :  { %v18754_v16 = vsub.f32 %v10015_v55, %v18751_v47  ;;  %11956 = vmatmul.mubr.f32.vlgmr.msra.gmra.mxu1 %v18751_v47 }
 0x8b2   :  { %11986 = vmatpush3.msra.mxu1 %v18337_v50  ;;  %12009 = vmatprep.mubr.f32.mxu1 %v10096_v32  ;;  %v21239_v32 = vld [vmem:[#allocation110_spill] sm:$0xff] }
 0x8b3   :  { %v10106_v54 = vand.u32 4294901760, %v18754_v16  ;;  %11987 = vmatprep.subr.mxu1 %v18363_v57 }
 0x8b4   :  { %11988 = vmatpush3.msra.mxu1 %v18363_v57 }
 0x8b5   :  { %v10107_v33 = vsub.f32 %v18754_v16, %v10106_v54  ;;  %11989 = vmatprep.subr.mxu1 %v18395_v60 }
 0x8b6   :  { %11990 = vmatpush3.msra.mxu1 %v18395_v60 }
 0x8b7   :  { %v10108_v39 = vand.u32 4294901760, %v10107_v33  ;;  %11991 = vmatprep.subr.mxu1 %v18404_v35 }
 0x8b8   :  { %11992 = vmatpush3.msra.mxu1 %v18404_v35 }
 0x8b9   :  { %11993 = vmatprep.subr.mxu1 %v18424_v42  ;;  %11929 = vmatmul.mubr.f32.vlgmr.msra.gmra.mxu0 %v10108_v39 }
 0x8ba   :  { %11959 = vmatpush3.msra.mxu0 %v18354_v61  ;;  %11994 = vmatpush3.msra.mxu1 %v18424_v42  ;;  %v21243_v61 = vld [vmem:[#allocation121_spill] sm:$0xff] }
 0x8bb   :  { %11960 = vmatprep.subr.mxu0 %v21239_v32  ;;  %11982 = vmatprep.mubr.f32.mxu0 %v18689_v22  ;;  %v21245_v22 = vld [vmem:[#allocation27_spill] sm:$0xff] }
 0x8bc   :  { %11995 = vmatprep.subr.mxu1 %v21240_v14  ;;  %11961 = vmatpush3.msra.mxu0 %v21239_v32 }
 0x8bd   :  { %11996 = vmatpush3.msra.mxu1 %v21240_v14  ;;  %11962 = vmatprep.subr.mxu0 %v21241_v8 }
 0x8be   :  { %11997 = vmatprep.subr.mxu1 %v21242_v30  ;;  %11963 = vmatpush3.msra.mxu0 %v21241_v8 }
 0x8bf   :  { %11998 = vmatpush3.msra.mxu1 %v21242_v30  ;;  %11964 = vmatprep.subr.mxu0 %v21243_v61 }
 0x8c0   :  { %11999 = vmatprep.subr.mxu1 %v21244_v26  ;;  %11965 = vmatpush3.msra.mxu0 %v21243_v61 }
 0x8c1   :  { %12000 = vmatpush3.msra.mxu1 %v21244_v26  ;;  %11966 = vmatprep.subr.mxu0 %v21245_v22 }
 0x8c2   :  { %12001 = vmatprep.subr.mxu1 %v21246_v28  ;;  %11967 = vmatpush3.msra.mxu0 %v21245_v22 }
 0x8c3   :  { %12002 = vmatpush3.msra.mxu1 %v21246_v28  ;;  %11968 = vmatprep.subr.mxu0 %v21247_v4 }
 0x8c4   :  { %12003 = vmatprep.subr.mxu1 %v21248_v46  ;;  %11969 = vmatpush3.msra.mxu0 %v21247_v4 }
 0x8c5   :  { %12004 = vmatpush3.msra.mxu1 %v21248_v46  ;;  %11970 = vmatprep.subr.mxu0 %v21249_v45 }
 0x8c6   :  { %12005 = vmatprep.subr.mxu1 %v21250_v0  ;;  %11971 = vmatpush3.msra.mxu0 %v21249_v45 }
 0x8c7   :  { %12006 = vmatpush3.msra.mxu1 %v21250_v0  ;;  %11972 = vmatprep.subr.mxu0 %v21251_v48 }
 0x8c8   :  { %12007 = vmatprep.subr.mxu1 %v21252_v56  ;;  %11973 = vmatpush3.msra.mxu0 %v21251_v48 }
 0x8c9   :  { %12008 = vmatpush3.msra.mxu1 %v21252_v56  ;;  %11974 = vmatprep.subr.mxu0 %v21253_v23 }
 0x8ca   :  { %12010 = vmatmul.mubr.f32.vlgmr.msra.gmra.mxu1 %v10106_v54  ;;  %12039 = vmatprep.subr.mxu1 %v18337_v50 }
 0x8cb   :  { %11975 = vmatpush3.msra.mxu0 %v21253_v23  ;;  %12040 = vmatpush3.msra.mxu1 %v18337_v50  ;;  %v21257_v50 = vld [vmem:[#allocation321_spill] sm:$0xff] }
 0x8cc   :  { %12063 = vmatprep.mubr.f32.mxu1 %v18684_v24  ;;  %11976 = vmatprep.subr.mxu0 %v21254_v63 }
 0x8cd   :  { %12041 = vmatprep.subr.mxu1 %v18363_v57  ;;  %11977 = vmatpush3.msra.mxu0 %v21254_v63 }
 0x8ce   :  { %12042 = vmatpush3.msra.mxu1 %v18363_v57  ;;  %11978 = vmatprep.subr.mxu0 %v21255_v37  ;;  %v21258_v57 = vld [vmem:[#allocation113_spill] sm:$0xff] }
 0x8cf   :  { %12043 = vmatprep.subr.mxu1 %v18395_v60  ;;  %11979 = vmatpush3.msra.mxu0 %v21255_v37 }
 0x8d0   :  { %12044 = vmatpush3.msra.mxu1 %v18395_v60  ;;  %11980 = vmatprep.subr.mxu0 %v21256_v59  ;;  %v21259_v60 = vld [vmem:[#allocation333_spill] sm:$0xff] }
 0x8d1   :  { %12045 = vmatprep.subr.mxu1 %v18404_v35  ;;  %11981 = vmatpush3.msra.mxu0 %v21256_v59 }
 0x8d2   :  { %12046 = vmatpush3.msra.mxu1 %v18404_v35  ;;  %11983 = vmatmul.mubr.f32.vlgmr.msra.gmra.mxu0 %v18754_v16  ;;  %v21260_v35 = vld [vmem:[#allocation125_spill] sm:$0xff] }
 0x8d3   :  { %12012 = vmatprep.subr.mxu0 %v21257_v50  ;;  %12047 = vmatprep.subr.mxu1 %v18424_v42 }
 0x8d4   :  { %12013 = vmatpush3.msra.mxu0 %v21257_v50  ;;  %12036 = vmatprep.mubr.f32.mxu0 %v18684_v24  ;;  %v21262_v24 = vld [vmem:[#allocation146_spill] sm:$0xff] }
 0x8d5   :  { %12048 = vmatpush3.msra.mxu1 %v18424_v42  ;;  %12014 = vmatprep.subr.mxu0 %v21258_v57  ;;  %v21261_v42 = vld [vmem:[#allocation134_spill] sm:$0xff] }
 0x8d6   :  { %12049 = vmatprep.subr.mxu1 %v21240_v14  ;;  %12015 = vmatpush3.msra.mxu0 %v21258_v57 }
 0x8d7   :  { %12050 = vmatpush3.msra.mxu1 %v21240_v14  ;;  %12016 = vmatprep.subr.mxu0 %v21259_v60 }
 0x8d8   :  { %12051 = vmatprep.subr.mxu1 %v21242_v30  ;;  %12017 = vmatpush3.msra.mxu0 %v21259_v60 }
 0x8d9   :  { %12052 = vmatpush3.msra.mxu1 %v21242_v30  ;;  %12018 = vmatprep.subr.mxu0 %v21260_v35 }
 0x8da   :  { %12053 = vmatprep.subr.mxu1 %v21244_v26  ;;  %12019 = vmatpush3.msra.mxu0 %v21260_v35 }
 0x8db   :  { %12054 = vmatpush3.msra.mxu1 %v21244_v26  ;;  %12020 = vmatprep.subr.mxu0 %v21261_v42 }
 0x8dc   :  { %12055 = vmatprep.subr.mxu1 %v21246_v28  ;;  %12021 = vmatpush3.msra.mxu0 %v21261_v42 }
 0x8dd   :  { %12056 = vmatpush3.msra.mxu1 %v21246_v28  ;;  %12022 = vmatprep.subr.mxu0 %v21262_v24 }
 0x8de   :  { %12057 = vmatprep.subr.mxu1 %v21248_v46  ;;  %12023 = vmatpush3.msra.mxu0 %v21262_v24 }
 0x8df   :  { %12058 = vmatpush3.msra.mxu1 %v21248_v46  ;;  %12024 = vmatprep.subr.mxu0 %v21263_v15 }
 0x8e0   :  { %12059 = vmatprep.subr.mxu1 %v21250_v0  ;;  %12025 = vmatpush3.msra.mxu0 %v21263_v15  ;;  %v10654_v55 = vpop.permute.xlu0 %10653 }
 0x8e1   :  { %12060 = vmatpush3.msra.mxu1 %v21250_v0  ;;  %12026 = vmatprep.subr.mxu0 %v21264_v6 }
 0x8e2   :  { %12061 = vmatprep.subr.mxu1 %v21252_v56  ;;  %12027 = vmatpush3.msra.mxu0 %v21264_v6 }
 0x8e3   :  { %12062 = vmatpush3.msra.mxu1 %v21252_v56  ;;  %12028 = vmatprep.subr.mxu0 %v21265_v13 }
 0x8e4   :  { %12064 = vmatmul.mubr.f32.vlgmr.msra.gmra.mxu1 %v18751_v47  ;;  %12029 = vmatpush3.msra.mxu0 %v21265_v13 }
 0x8e5   :  { %12030 = vmatprep.subr.mxu0 %v21266_v7 }
 0x8e6   :  { %12031 = vmatpush3.msra.mxu0 %v21266_v7 }
 0x8e7   :  { %12032 = vmatprep.subr.mxu0 %v21267_v18 }
 0x8e8   :  { %12033 = vmatpush3.msra.mxu0 %v21267_v18 }
 0x8e9   :  { %12034 = vmatprep.subr.mxu0 %v21268_v31 }
 0x8ea   :  { %12035 = vmatpush3.msra.mxu0 %v21268_v31 }
 0x8eb   :  { %12037 = vmatmul.mubr.f32.vlgmr.msra.gmra.mxu0 %v18751_v47 }
 0x920   :  { %v10656_v19 = vpop.permute.xlu1 %10655 }
 0x971   :  { %v11957_v17 = vpop.f32.mrf.mxu1 }
 0x973   :  { %v10241_v2 = vpop.f32.mrf.mxu1 }
 0x979   :  { %v11930_v12 = vpop.f32.mrf.mxu0 }
 0x97a   :  { %v10111_v53 = vadd.f32 %v11930_v12, %v10679_v43 }
 0x97b   :  { %v10100_v38 = vpop.f32.mrf.mxu0 }
 0x97c   :  { %v10101_v44 = vadd.f32 %v10679_v43, %v10100_v38  ;;  %v10248_v41 = vadd.f32 %v11957_v17, %v10111_v53 }
 0x97e   :  { %v10242_v34 = vadd.f32 %v10241_v2, %v10101_v44 }
 0x98a   :  { %v12011_v29 = vpop.f32.mrf.mxu1 }
 0x98c   :  { %v10435_v9 = vpop.f32.mrf.mxu1 }
 0x992   :  { %v11984_v21 = vpop.f32.mrf.mxu0 }
 0x993   :  { %v10351_v40 = vadd.f32 %v11984_v21, %v10248_v41 }
 0x994   :  { %v10343_v52 = vpop.f32.mrf.mxu0 }
 0x995   :  { %v10344_v10 = vadd.f32 %v10343_v52, %v10242_v34  ;;  %v10444_v58 = vadd.f32 %v12011_v29, %v10351_v40 }
 0x997   :  { %v10436_v5 = vadd.f32 %v10435_v9, %v10344_v10 }
 0x9a4   :  { %v12065_v20 = vpop.f32.mrf.mxu1 }
 0x9a6   :  { %v10639_v1 = vpop.f32.mrf.mxu1 }
 0x9ab   :  { %v12038_v25 = vpop.f32.mrf.mxu0 }
 0x9ac   :  { %v10557_v27 = vadd.f32 %v12038_v25, %v10444_v58 }
 0x9ad   :  { %v10550_v51 = vpop.f32.mrf.mxu0 }
 0x9ae   :  { %v10646_v49 = vadd.f32 %v12065_v20, %v10557_v27  ;;  %v10551_v11 = vadd.f32 %v10550_v51, %v10436_v5 }
 0x9b0   :  { %v10650_v36 = vmax.f32 %v10646_v49, 0.0  ;;  %v10640_v3 = vadd.f32 %v10639_v1, %v10551_v11 }
 0x9b2   :  { %10652 = vst.msk [vmem:[#allocation5 + $0x8] sm:$0xff] %vm7527_vm1, %v10650_v36  ;;  %v10649_v62 = vmax.f32 %v10640_v3, 0.0 }
 0x9b3   :  { %10661 = vst.msk [vmem:[#allocation5 + $0x8] sm:$0xff] %vm10659_vm11, %v10656_v19 }
 0x9b4   :  { %10651 = vst.msk [vmem:[#allocation5] sm:$0xff] %vm7527_vm1, %v10649_v62 }
 0x9b5   :  { %10660 = vst.msk [vmem:[#allocation5] sm:$0xff] %vm10659_vm11, %v10654_v55 }
 0x9b6   :  { %12168 = shalt.err (!%p12165_p9)
}
 0x9b7   :  { %10673 = dma.vmem_to_hbm [thread:$0]  %s10668_s11, 256, %s18877_s5, [#allocation4], %s12182_s21, %s12182_s21, %s12183_s22  }
 0x9b8   :  { %12179 = dma.done.wait [#allocation4], 256  }
 0x9b9   :  { %12180 = vsyncadd [#allocation4], 4294967040 }
 0x9ba   :  { %10677 = vsyncpa [#allocation3], 1 }
 0x9bb   :  { %10678 = vsyncpa [#allocation4], 1 }

</bundles_post_ra>
